<compile_context>
chip_gen: v7x
topology: tpu7x:2x2x1
jax: 0.10.0
libtpu: 0.0.40
codegen_flags: <defaults>
</compile_context>

<pallas_src>
import functools

import jax
import jax.numpy as jnp
from jax.experimental import pallas as pl
from jax.experimental.pallas import tpu as pltpu


# ----------------------------------------------------------------------------
# Fused Pallas kernel: 3 ST blocks + head, one batch element per grid step
# ----------------------------------------------------------------------------

def _gated_stgcn_kernel(
    x_ref, cheb_ref,
    wt1a_ref, bt1a_ref, wga_ref, bga_ref, wt2a_ref, bt2a_ref,
    wt1b_ref, bt1b_ref, wgb_ref, bgb_ref, wt2b_ref, bt2b_ref,
    wt1c_ref, bt1c_ref, wgc_ref, bgc_ref, wt2c_ref, bt2c_ref,
    wh_ref, bh_ref,
    o_ref,
    *, T, N, c_in, c_out, K, Kt):
    """Whole Gated_STGCN forward for one batch element.

    Activation layout: 3-D (T, N, c) for temporal shifts, 2-D (T*N, c)
    (t-major rows) for all channel matmuls.  All reshapes touch leading dims
    only; relayouts between them are done via static slices + concatenates.
    """
    f32 = jnp.float32
    bf16 = jnp.bfloat16
    pad = (Kt - 1) // 2                      # 'same' padding (exact for odd Kt)

    # Stacked Chebyshev basis (K*N, N), broadcast ONCE to (T, K*N, N) and
    # reused by all three blocks (broadcast_in_dim is not CSE'd -> hoist).
    cheb_b = jnp.broadcast_to(cheb_ref[...][None], (T, K * N, N))

    def temporal_glu(h3d, cin, w_ref, b_ref):
        # Gated temporal conv as ONE im2col matmul: concat the Kt time-shifted
        # slices along channels -> (T*N, Kt*cin) @ fused [Wf|Wg] (Kt*cin, 2co).
        def shifted(k):                       # out[t] = h[t + k - pad], 0 if OOB
            off = k - pad
            if off == 0:
                return h3d
            if off > 0:
                z = jnp.zeros((off, N, cin), bf16)
                return jnp.concatenate([h3d[off:], z], axis=0)
            z = jnp.zeros((-off, N, cin), bf16)
            return jnp.concatenate([z, h3d[:T + off]], axis=0)

        xcat = jnp.concatenate([shifted(k) for k in range(Kt)], axis=-1)
        z = jnp.dot(xcat.reshape(T * N, Kt * cin), w_ref[...],
                    preferred_element_type=f32)
        z = z + b_ref[...]                                    # (T*N, 2co) f32
        # gating stays f32 (v5e VPU/EUP have no bf16 path)
        return z[:, :c_out] * jax.nn.sigmoid(z[:, c_out:])    # (T*N, co) f32

    def graph_conv(h2d, wg_ref, bg_ref):
        # K-order Chebyshev graph conv + ReLU: one T-batched matmul against the
        # stacked basis, then a single contraction over all K orders at once.
        h3d = h2d.astype(bf16).reshape(T, N, c_out)
        z = jnp.einsum("tpm,tmc->tpc", cheb_b, h3d,
                       preferred_element_type=f32)            # (T, K*N, co)
        zcat = jnp.concatenate(
            [z[:, k * N:(k + 1) * N, :] for k in range(K)], axis=-1)
        g = jnp.dot(zcat.reshape(T * N, K * c_out).astype(bf16), wg_ref[...],
                    preferred_element_type=f32)               # (T*N, co)
        return jnp.maximum(g + bg_ref[...], 0.0)              # f32

    def st_block(h3d, cin, wt1, bt1, wg, bg, wt2, bt2):
        h1 = temporal_glu(h3d, cin, wt1, bt1)                 # (T*N, co) f32
        h2 = graph_conv(h1, wg, bg)                           # (T*N, co) f32
        h3 = temporal_glu(h2.astype(bf16).reshape(T, N, c_out), c_out, wt2, bt2)
        return h3                                             # (T*N, co) f32

    x = x_ref[0]                                              # (T, N, c_in) bf16
    h = st_block(x, c_in, wt1a_ref, bt1a_ref, wga_ref, bga_ref,
                 wt2a_ref, bt2a_ref)
    h = st_block(h.astype(bf16).reshape(T, N, c_out), c_out,
                 wt1b_ref, bt1b_ref, wgb_ref, bgb_ref, wt2b_ref, bt2b_ref)
    h = st_block(h.astype(bf16).reshape(T, N, c_out), c_out,
                 wt1c_ref, bt1c_ref, wgc_ref, bgc_ref, wt2c_ref, bt2c_ref)

    # Head: Conv2d(c_out, horizon, (1, T)) == (N, T*c_out) @ (T*c_out, horizon).
    # Build the (N, T*c_out) LHS by concatenating per-time slices (time-major
    # columns match the flattened head weight rows).
    h3d = h.astype(bf16).reshape(T, N, c_out)
    xhead = jnp.concatenate([h3d[t] for t in range(T)], axis=-1)   # (N, T*co)
    out = jnp.dot(xhead, wh_ref[...], preferred_element_type=f32) + bh_ref[...]
    o_ref[0] = out                                                 # (N, horizon)


# ----------------------------------------------------------------------------
# pallas_call wrapper
# ----------------------------------------------------------------------------

def _const_spec(a):
    nd = a.ndim
    return pl.BlockSpec(a.shape, lambda b, _nd=nd: (0,) * _nd)


def gated_stgcn_pallas(x, cheb_stack, flat_weights, w_head, b_head,
                       *, K, Kt, c_out):
    B, T, N, c_in = x.shape
    horizon = w_head.shape[1]
    operands = [x, cheb_stack] + list(flat_weights) + [w_head, b_head]

    in_specs = [pl.BlockSpec((1, T, N, c_in), lambda b: (b, 0, 0, 0))]
    in_specs += [_const_spec(a) for a in operands[1:]]

    kernel = functools.partial(_gated_stgcn_kernel, T=T, N=N, c_in=c_in,
                               c_out=c_out, K=K, Kt=Kt)
    return pl.pallas_call(
        kernel,
        out_shape=jax.ShapeDtypeStruct((B, N, horizon), jnp.float32),
        grid=(B,),
        in_specs=in_specs,
        out_specs=pl.BlockSpec((1, N, horizon), lambda b: (b, 0, 0)),
        compiler_params=pltpu.CompilerParams(
            dimension_semantics=("parallel",),        # megacore on v7x
            vmem_limit_bytes=32 * 1024 * 1024),       # tiny footprint, explicit
    )(*operands)


# ----------------------------------------------------------------------------
# Model glue (BN stats, Chebyshev basis, weight packing) + parameters
# ----------------------------------------------------------------------------

def chebyshev_basis(adj, K):
    # T_0 = I, T_1 = A, T_k = 2 A T_{k-1} - T_{k-2}  (tiny NxN trace-time setup)
    n = adj.shape[0]
    t0 = jnp.eye(n, dtype=adj.dtype)
    if K == 1:
        return t0[None]
    mats = [t0, adj]
    for _ in range(2, K):
        mats.append(2.0 * adj @ mats[-1] - mats[-2])
    return jnp.stack(mats[:K], axis=0)


@functools.partial(jax.jit, static_argnames=("K", "Kt"))
def gated_stgcn_forward(x_w, x_d, x_r, supports, params, *, K, Kt):
    # The reference forward only uses x_r; x_w / x_d are accepted and ignored.
    del x_w, x_d
    B, c_in, N, T = x_r.shape
    x = jnp.transpose(x_r, (0, 3, 2, 1)).astype(jnp.float32)   # (B, T, N, c_in)

    # BatchNorm2d(c_in, affine=False): training-mode batch statistics over
    # (B, N, T), biased variance, eps=1e-5.  Plain jnp (XLA fuses with the
    # transpose); two-pass variance avoids E[x^2]-E[x]^2 cancellation.
    mean = jnp.mean(x, axis=(0, 1, 2), keepdims=True)
    var = jnp.mean(jnp.square(x - mean), axis=(0, 1, 2), keepdims=True)
    xn = ((x - mean) * jax.lax.rsqrt(var + 1e-5)).astype(jnp.bfloat16)

    blocks = params["blocks"]
    c_out = blocks[0]["wg"].shape[-1]
    cheb_stack = chebyshev_basis(supports, K).reshape(K * N, N).astype(jnp.bfloat16)

    # Pre-cast matmul weights to bf16 once, outside the kernel (v5e-friendly;
    # also halves DMA / resident VMEM).  Biases stay f32.
    flat = []
    for blk in blocks:
        flat += [blk["wt1"].astype(jnp.bfloat16),
                 blk["bt1"].astype(jnp.float32),
                 blk["wg"].reshape(K * c_out, c_out).astype(jnp.bfloat16),
                 blk["bg"].astype(jnp.float32),
                 blk["wt2"].astype(jnp.bfloat16),
                 blk["bt2"].astype(jnp.float32)]
    w_head = params["w_final"].astype(jnp.bfloat16)
    b_head = params["b_final"].astype(jnp.float32)

    out = gated_stgcn_pallas(xn, cheb_stack, flat, w_head, b_head,
                             K=K, Kt=Kt, c_out=c_out)
    # Conv2d(c_out, 12, (1, recent)) -> (B,12,N,1) -> squeeze -> permute(0,2,1)
    return out, supports, supports


def _uniform(key, shape, fan_in):
    bound = 1.0 / jnp.sqrt(jnp.float32(fan_in))
    return jax.random.uniform(key, shape, jnp.float32, -bound, bound)


def _init_block(key, c_in, c_out, K, Kt):
    ks = jax.random.split(key, 6)
    return dict(
        # fused temporal weights: rows k-major (k, c), columns [filter | gate]
        wt1=_uniform(ks[0], (Kt * c_in, 2 * c_out), Kt * c_in),
        bt1=_uniform(ks[1], (1, 2 * c_out), Kt * c_in),
        wg=_uniform(ks[2], (K, c_out, c_out), K * c_out),
        bg=_uniform(ks[3], (1, c_out), K * c_out),
        wt2=_uniform(ks[4], (Kt * c_out, 2 * c_out), Kt * c_out),
        bt2=_uniform(ks[5], (1, 2 * c_out), Kt * c_out),
    )


def init_params(key, c_in, c_out, K, Kt, recent, horizon=12):
    k1, k2, k3, k4 = jax.random.split(key, 4)
    blocks = [
        _init_block(k1, c_in, c_out, K, Kt),
        _init_block(k2, c_out, c_out, K, Kt),
        _init_block(k3, c_out, c_out, K, Kt),
    ]
    kf1, kf2 = jax.random.split(k4)
    # final conv weight flattened time-major: rows ordered (t, c_out)
    w_final = _uniform(kf1, (recent * c_out, horizon), c_out * recent)
    b_final = _uniform(kf2, (1, horizon), c_out * recent)
    return dict(blocks=blocks, w_final=w_final, b_final=b_final)


# ----------------------------------------------------------------------------
# Example
# ----------------------------------------------------------------------------

if __name__ == "__main__":
    key = jax.random.PRNGKey(0)
    B, c_in, c_out, N = 2, 4, 32, 16
    week, day, recent = 4, 4, 12
    K, Kt = 3, 3

    k1, k2, k3, k4, k5 = jax.random.split(key, 5)
    x_w = jax.random.normal(k1, (B, c_in, N, week), jnp.float32)
    x_d = jax.random.normal(k2, (B, c_in, N, day), jnp.float32)
    x_r = jax.random.normal(k3, (B, c_in, N, recent), jnp.float32)

    A = jax.random.uniform(k4, (N, N), jnp.float32)
    A = 0.5 * (A + A.T)
    supports = A / jnp.sum(A, axis=1, keepdims=True)     # synthetic graph support

    params = init_params(k5, c_in, c_out, K, Kt, recent, horizon=12)

    out, s1, s2 = gated_stgcn_forward(x_w, x_d, x_r, supports, params, K=K, Kt=Kt)
    jax.block_until_ready(out)
    assert out.shape == (B, N, 12), out.shape
    assert s1.shape == (N, N) and s2.shape == (N, N)
    assert bool(jnp.all(jnp.isfinite(out)))
    print("KERNEL_OK")
</pallas_src>

<mosaic_0001>
module attributes {stable_mosaic.version = 11 : i64} {
  func.func @_gated_stgcn_kernel(%arg0: i32, %arg1: memref<1x12x16x4xbf16, #tpu.memory_space<vmem>>, %arg2: memref<48x16xbf16, #tpu.memory_space<vmem>>, %arg3: memref<12x64xbf16, #tpu.memory_space<vmem>>, %arg4: memref<1x64xf32, #tpu.memory_space<vmem>>, %arg5: memref<96x32xbf16, #tpu.memory_space<vmem>>, %arg6: memref<1x32xf32, #tpu.memory_space<vmem>>, %arg7: memref<96x64xbf16, #tpu.memory_space<vmem>>, %arg8: memref<1x64xf32, #tpu.memory_space<vmem>>, %arg9: memref<96x64xbf16, #tpu.memory_space<vmem>>, %arg10: memref<1x64xf32, #tpu.memory_space<vmem>>, %arg11: memref<96x32xbf16, #tpu.memory_space<vmem>>, %arg12: memref<1x32xf32, #tpu.memory_space<vmem>>, %arg13: memref<96x64xbf16, #tpu.memory_space<vmem>>, %arg14: memref<1x64xf32, #tpu.memory_space<vmem>>, %arg15: memref<96x64xbf16, #tpu.memory_space<vmem>>, %arg16: memref<1x64xf32, #tpu.memory_space<vmem>>, %arg17: memref<96x32xbf16, #tpu.memory_space<vmem>>, %arg18: memref<1x32xf32, #tpu.memory_space<vmem>>, %arg19: memref<96x64xbf16, #tpu.memory_space<vmem>>, %arg20: memref<1x64xf32, #tpu.memory_space<vmem>>, %arg21: memref<384x12xbf16, #tpu.memory_space<vmem>>, %arg22: memref<1x12xf32, #tpu.memory_space<vmem>>, %arg23: memref<1x16x12xf32, #tpu.memory_space<vmem>>) attributes {dimension_semantics = [#tpu.dimension_semantics<parallel>], iteration_bounds = array<i64: 2>, scalar_prefetch = 0 : i64, scratch_operands = 0 : i64, tpu.core_type = #tpu.core_type<tc>, window_params = [{transform_indices = @transform_0, window_bounds = array<i64: 1, 12, 16, 4>}, {pipeline_mode = #tpu.pipeline_mode<synchronous>, transform_indices = @transform_1, window_bounds = array<i64: 48, 16>}, {pipeline_mode = #tpu.pipeline_mode<synchronous>, transform_indices = @transform_2, window_bounds = array<i64: 12, 64>}, {pipeline_mode = #tpu.pipeline_mode<synchronous>, transform_indices = @transform_3, window_bounds = array<i64: 1, 64>}, {pipeline_mode = #tpu.pipeline_mode<synchronous>, transform_indices = @transform_4, window_bounds = array<i64: 96, 32>}, {pipeline_mode = #tpu.pipeline_mode<synchronous>, transform_indices = @transform_5, window_bounds = array<i64: 1, 32>}, {pipeline_mode = #tpu.pipeline_mode<synchronous>, transform_indices = @transform_6, window_bounds = array<i64: 96, 64>}, {pipeline_mode = #tpu.pipeline_mode<synchronous>, transform_indices = @transform_7, window_bounds = array<i64: 1, 64>}, {pipeline_mode = #tpu.pipeline_mode<synchronous>, transform_indices = @transform_8, window_bounds = array<i64: 96, 64>}, {pipeline_mode = #tpu.pipeline_mode<synchronous>, transform_indices = @transform_9, window_bounds = array<i64: 1, 64>}, {pipeline_mode = #tpu.pipeline_mode<synchronous>, transform_indices = @transform_10, window_bounds = array<i64: 96, 32>}, {pipeline_mode = #tpu.pipeline_mode<synchronous>, transform_indices = @transform_11, window_bounds = array<i64: 1, 32>}, {pipeline_mode = #tpu.pipeline_mode<synchronous>, transform_indices = @transform_12, window_bounds = array<i64: 96, 64>}, {pipeline_mode = #tpu.pipeline_mode<synchronous>, transform_indices = @transform_13, window_bounds = array<i64: 1, 64>}, {pipeline_mode = #tpu.pipeline_mode<synchronous>, transform_indices = @transform_14, window_bounds = array<i64: 96, 64>}, {pipeline_mode = #tpu.pipeline_mode<synchronous>, transform_indices = @transform_15, window_bounds = array<i64: 1, 64>}, {pipeline_mode = #tpu.pipeline_mode<synchronous>, transform_indices = @transform_16, window_bounds = array<i64: 96, 32>}, {pipeline_mode = #tpu.pipeline_mode<synchronous>, transform_indices = @transform_17, window_bounds = array<i64: 1, 32>}, {pipeline_mode = #tpu.pipeline_mode<synchronous>, transform_indices = @transform_18, window_bounds = array<i64: 96, 64>}, {pipeline_mode = #tpu.pipeline_mode<synchronous>, transform_indices = @transform_19, window_bounds = array<i64: 1, 64>}, {pipeline_mode = #tpu.pipeline_mode<synchronous>, transform_indices = @transform_20, window_bounds = array<i64: 384, 12>}, {pipeline_mode = #tpu.pipeline_mode<synchronous>, transform_indices = @transform_21, window_bounds = array<i64: 1, 12>}, {transform_indices = @transform_22, window_bounds = array<i64: 1, 16, 12>}]} {
    %c0 = arith.constant 0 : index
    %c0_0 = arith.constant 0 : index
    %0 = vector.load %arg2[%c0, %c0_0] : memref<48x16xbf16, #tpu.memory_space<vmem>>, vector<48x16xbf16>
    %1 = vector.shape_cast %0 : vector<48x16xbf16> to vector<1x48x16xbf16>
    %2 = vector.shape_cast %1 : vector<1x48x16xbf16> to vector<1x48x16xbf16>
    %3 = vector.broadcast %2 : vector<1x48x16xbf16> to vector<12x48x16xbf16>
    %c0_1 = arith.constant 0 : index
    %c0_2 = arith.constant 0 : index
    %c0_3 = arith.constant 0 : index
    %c0_4 = arith.constant 0 : index
    %4 = vector.load %arg1[%c0_1, %c0_2, %c0_3, %c0_4] : memref<1x12x16x4xbf16, #tpu.memory_space<vmem>>, vector<1x12x16x4xbf16>
    %5 = vector.shape_cast %4 : vector<1x12x16x4xbf16> to vector<12x16x4xbf16>
    %cst = arith.constant 0.000000e+00 : bf16
    %6 = vector.broadcast %cst : bf16 to vector<1x16x4xbf16>
    %7 = vector.extract_strided_slice %5 {offsets = [0, 0, 0], sizes = [11, 16, 4], strides = [1, 1, 1]} : vector<12x16x4xbf16> to vector<11x16x4xbf16>
    %8 = tpu.concatenate %6, %7 in 0 : vector<1x16x4xbf16>, vector<11x16x4xbf16> -> vector<12x16x4xbf16>
    %cst_5 = arith.constant 0.000000e+00 : bf16
    %9 = vector.broadcast %cst_5 : bf16 to vector<1x16x4xbf16>
    %10 = vector.extract_strided_slice %5 {offsets = [1, 0, 0], sizes = [11, 16, 4], strides = [1, 1, 1]} : vector<12x16x4xbf16> to vector<11x16x4xbf16>
    %11 = tpu.concatenate %10, %9 in 0 : vector<11x16x4xbf16>, vector<1x16x4xbf16> -> vector<12x16x4xbf16>
    %12 = tpu.concatenate %8, %5, %11 in 2 : vector<12x16x4xbf16>, vector<12x16x4xbf16>, vector<12x16x4xbf16> -> vector<12x16x12xbf16>
    %13 = vector.shape_cast %12 : vector<12x16x12xbf16> to vector<192x12xbf16>
    %c0_6 = arith.constant 0 : index
    %c0_7 = arith.constant 0 : index
    %14 = vector.load %arg3[%c0_6, %c0_7] : memref<12x64xbf16, #tpu.memory_space<vmem>>, vector<12x64xbf16>
    %cst_8 = arith.constant dense<0.000000e+00> : vector<192x64xf32>
    %15 = tpu.matmul %13, %14, %cst_8 {dimension_numbers = #tpu.dot_dimension_numbers<[1], [0], [0], [1], [0, 0, 1, 1], [], []>} : vector<192x12xbf16>, vector<12x64xbf16>, vector<192x64xf32> -> vector<192x64xf32>
    %c0_9 = arith.constant 0 : index
    %c0_10 = arith.constant 0 : index
    %16 = vector.load %arg4[%c0_9, %c0_10] : memref<1x64xf32, #tpu.memory_space<vmem>>, vector<1x64xf32>
    %17 = vector.broadcast %16 : vector<1x64xf32> to vector<192x64xf32>
    %18 = arith.addf %15, %17 : vector<192x64xf32>
    %19 = vector.extract_strided_slice %18 {offsets = [0, 0], sizes = [192, 32], strides = [1, 1]} : vector<192x64xf32> to vector<192x32xf32>
    %20 = vector.extract_strided_slice %18 {offsets = [0, 32], sizes = [192, 32], strides = [1, 1]} : vector<192x64xf32> to vector<192x32xf32>
    %21 = arith.negf %20 : vector<192x32xf32>
    %22 = math.exp %21 : vector<192x32xf32>
    %cst_11 = arith.constant 1.000000e+00 : f32
    %23 = vector.broadcast %cst_11 : f32 to vector<192x32xf32>
    %24 = arith.addf %23, %22 : vector<192x32xf32>
    %25 = arith.divf %23, %24 : vector<192x32xf32>
    %26 = arith.mulf %19, %25 : vector<192x32xf32>
    %27 = arith.truncf %26 : vector<192x32xf32> to vector<192x32xbf16>
    %28 = vector.shape_cast %27 : vector<192x32xbf16> to vector<12x16x32xbf16>
    "tpu.trace_start"() <{level = 10 : i32, message = "tpm,tmc->tpc"}> : () -> ()
    %cst_12 = arith.constant dense<0.000000e+00> : vector<12x48x32xf32>
    %29 = tpu.matmul %3, %28, %cst_12 {dimension_numbers = #tpu.dot_dimension_numbers<[2], [1], [1], [2], [0, 0, 0, 1, 1, 2], [0], [0]>} : vector<12x48x16xbf16>, vector<12x16x32xbf16>, vector<12x48x32xf32> -> vector<12x48x32xf32>
    "tpu.trace_stop"() : () -> ()
    %30 = vector.extract_strided_slice %29 {offsets = [0, 0, 0], sizes = [12, 16, 32], strides = [1, 1, 1]} : vector<12x48x32xf32> to vector<12x16x32xf32>
    %31 = vector.extract_strided_slice %29 {offsets = [0, 16, 0], sizes = [12, 16, 32], strides = [1, 1, 1]} : vector<12x48x32xf32> to vector<12x16x32xf32>
    %32 = vector.extract_strided_slice %29 {offsets = [0, 32, 0], sizes = [12, 16, 32], strides = [1, 1, 1]} : vector<12x48x32xf32> to vector<12x16x32xf32>
    %33 = tpu.concatenate %30, %31, %32 in 2 : vector<12x16x32xf32>, vector<12x16x32xf32>, vector<12x16x32xf32> -> vector<12x16x96xf32>
    %34 = vector.shape_cast %33 : vector<12x16x96xf32> to vector<192x96xf32>
    %35 = arith.truncf %34 : vector<192x96xf32> to vector<192x96xbf16>
    %c0_13 = arith.constant 0 : index
    %c0_14 = arith.constant 0 : index
    %36 = vector.load %arg5[%c0_13, %c0_14] : memref<96x32xbf16, #tpu.memory_space<vmem>>, vector<96x32xbf16>
    %cst_15 = arith.constant dense<0.000000e+00> : vector<192x32xf32>
    %37 = tpu.matmul %35, %36, %cst_15 {dimension_numbers = #tpu.dot_dimension_numbers<[1], [0], [0], [1], [0, 0, 1, 1], [], []>} : vector<192x96xbf16>, vector<96x32xbf16>, vector<192x32xf32> -> vector<192x32xf32>
    %c0_16 = arith.constant 0 : index
    %c0_17 = arith.constant 0 : index
    %38 = vector.load %arg6[%c0_16, %c0_17] : memref<1x32xf32, #tpu.memory_space<vmem>>, vector<1x32xf32>
    %39 = vector.broadcast %38 : vector<1x32xf32> to vector<192x32xf32>
    %40 = arith.addf %37, %39 : vector<192x32xf32>
    %cst_18 = arith.constant 0.000000e+00 : f32
    %41 = vector.broadcast %cst_18 : f32 to vector<192x32xf32>
    %42 = arith.maximumf %40, %41 : vector<192x32xf32>
    %43 = arith.truncf %42 : vector<192x32xf32> to vector<192x32xbf16>
    %44 = vector.shape_cast %43 : vector<192x32xbf16> to vector<12x16x32xbf16>
    %cst_19 = arith.constant 0.000000e+00 : bf16
    %45 = vector.broadcast %cst_19 : bf16 to vector<1x16x32xbf16>
    %46 = vector.extract_strided_slice %44 {offsets = [0, 0, 0], sizes = [11, 16, 32], strides = [1, 1, 1]} : vector<12x16x32xbf16> to vector<11x16x32xbf16>
    %47 = tpu.concatenate %45, %46 in 0 : vector<1x16x32xbf16>, vector<11x16x32xbf16> -> vector<12x16x32xbf16>
    %cst_20 = arith.constant 0.000000e+00 : bf16
    %48 = vector.broadcast %cst_20 : bf16 to vector<1x16x32xbf16>
    %49 = vector.extract_strided_slice %44 {offsets = [1, 0, 0], sizes = [11, 16, 32], strides = [1, 1, 1]} : vector<12x16x32xbf16> to vector<11x16x32xbf16>
    %50 = tpu.concatenate %49, %48 in 0 : vector<11x16x32xbf16>, vector<1x16x32xbf16> -> vector<12x16x32xbf16>
    %51 = tpu.concatenate %47, %44, %50 in 2 : vector<12x16x32xbf16>, vector<12x16x32xbf16>, vector<12x16x32xbf16> -> vector<12x16x96xbf16>
    %52 = vector.shape_cast %51 : vector<12x16x96xbf16> to vector<192x96xbf16>
    %c0_21 = arith.constant 0 : index
    %c0_22 = arith.constant 0 : index
    %53 = vector.load %arg7[%c0_21, %c0_22] : memref<96x64xbf16, #tpu.memory_space<vmem>>, vector<96x64xbf16>
    %cst_23 = arith.constant dense<0.000000e+00> : vector<192x64xf32>
    %54 = tpu.matmul %52, %53, %cst_23 {dimension_numbers = #tpu.dot_dimension_numbers<[1], [0], [0], [1], [0, 0, 1, 1], [], []>} : vector<192x96xbf16>, vector<96x64xbf16>, vector<192x64xf32> -> vector<192x64xf32>
    %c0_24 = arith.constant 0 : index
    %c0_25 = arith.constant 0 : index
    %55 = vector.load %arg8[%c0_24, %c0_25] : memref<1x64xf32, #tpu.memory_space<vmem>>, vector<1x64xf32>
    %56 = vector.broadcast %55 : vector<1x64xf32> to vector<192x64xf32>
    %57 = arith.addf %54, %56 : vector<192x64xf32>
    %58 = vector.extract_strided_slice %57 {offsets = [0, 0], sizes = [192, 32], strides = [1, 1]} : vector<192x64xf32> to vector<192x32xf32>
    %59 = vector.extract_strided_slice %57 {offsets = [0, 32], sizes = [192, 32], strides = [1, 1]} : vector<192x64xf32> to vector<192x32xf32>
    %60 = arith.negf %59 : vector<192x32xf32>
    %61 = math.exp %60 : vector<192x32xf32>
    %cst_26 = arith.constant 1.000000e+00 : f32
    %62 = vector.broadcast %cst_26 : f32 to vector<192x32xf32>
    %63 = arith.addf %62, %61 : vector<192x32xf32>
    %64 = arith.divf %62, %63 : vector<192x32xf32>
    %65 = arith.mulf %58, %64 : vector<192x32xf32>
    %66 = arith.truncf %65 : vector<192x32xf32> to vector<192x32xbf16>
    %67 = vector.shape_cast %66 : vector<192x32xbf16> to vector<12x16x32xbf16>
    %cst_27 = arith.constant 0.000000e+00 : bf16
    %68 = vector.broadcast %cst_27 : bf16 to vector<1x16x32xbf16>
    %69 = vector.extract_strided_slice %67 {offsets = [0, 0, 0], sizes = [11, 16, 32], strides = [1, 1, 1]} : vector<12x16x32xbf16> to vector<11x16x32xbf16>
    %70 = tpu.concatenate %68, %69 in 0 : vector<1x16x32xbf16>, vector<11x16x32xbf16> -> vector<12x16x32xbf16>
    %cst_28 = arith.constant 0.000000e+00 : bf16
    %71 = vector.broadcast %cst_28 : bf16 to vector<1x16x32xbf16>
    %72 = vector.extract_strided_slice %67 {offsets = [1, 0, 0], sizes = [11, 16, 32], strides = [1, 1, 1]} : vector<12x16x32xbf16> to vector<11x16x32xbf16>
    %73 = tpu.concatenate %72, %71 in 0 : vector<11x16x32xbf16>, vector<1x16x32xbf16> -> vector<12x16x32xbf16>
    %74 = tpu.concatenate %70, %67, %73 in 2 : vector<12x16x32xbf16>, vector<12x16x32xbf16>, vector<12x16x32xbf16> -> vector<12x16x96xbf16>
    %75 = vector.shape_cast %74 : vector<12x16x96xbf16> to vector<192x96xbf16>
    %c0_29 = arith.constant 0 : index
    %c0_30 = arith.constant 0 : index
    %76 = vector.load %arg9[%c0_29, %c0_30] : memref<96x64xbf16, #tpu.memory_space<vmem>>, vector<96x64xbf16>
    %cst_31 = arith.constant dense<0.000000e+00> : vector<192x64xf32>
    %77 = tpu.matmul %75, %76, %cst_31 {dimension_numbers = #tpu.dot_dimension_numbers<[1], [0], [0], [1], [0, 0, 1, 1], [], []>} : vector<192x96xbf16>, vector<96x64xbf16>, vector<192x64xf32> -> vector<192x64xf32>
    %c0_32 = arith.constant 0 : index
    %c0_33 = arith.constant 0 : index
    %78 = vector.load %arg10[%c0_32, %c0_33] : memref<1x64xf32, #tpu.memory_space<vmem>>, vector<1x64xf32>
    %79 = vector.broadcast %78 : vector<1x64xf32> to vector<192x64xf32>
    %80 = arith.addf %77, %79 : vector<192x64xf32>
    %81 = vector.extract_strided_slice %80 {offsets = [0, 0], sizes = [192, 32], strides = [1, 1]} : vector<192x64xf32> to vector<192x32xf32>
    %82 = vector.extract_strided_slice %80 {offsets = [0, 32], sizes = [192, 32], strides = [1, 1]} : vector<192x64xf32> to vector<192x32xf32>
    %83 = arith.negf %82 : vector<192x32xf32>
    %84 = math.exp %83 : vector<192x32xf32>
    %cst_34 = arith.constant 1.000000e+00 : f32
    %85 = vector.broadcast %cst_34 : f32 to vector<192x32xf32>
    %86 = arith.addf %85, %84 : vector<192x32xf32>
    %87 = arith.divf %85, %86 : vector<192x32xf32>
    %88 = arith.mulf %81, %87 : vector<192x32xf32>
    %89 = arith.truncf %88 : vector<192x32xf32> to vector<192x32xbf16>
    %90 = vector.shape_cast %89 : vector<192x32xbf16> to vector<12x16x32xbf16>
    "tpu.trace_start"() <{level = 10 : i32, message = "tpm,tmc->tpc"}> : () -> ()
    %cst_35 = arith.constant dense<0.000000e+00> : vector<12x48x32xf32>
    %91 = tpu.matmul %3, %90, %cst_35 {dimension_numbers = #tpu.dot_dimension_numbers<[2], [1], [1], [2], [0, 0, 0, 1, 1, 2], [0], [0]>} : vector<12x48x16xbf16>, vector<12x16x32xbf16>, vector<12x48x32xf32> -> vector<12x48x32xf32>
    "tpu.trace_stop"() : () -> ()
    %92 = vector.extract_strided_slice %91 {offsets = [0, 0, 0], sizes = [12, 16, 32], strides = [1, 1, 1]} : vector<12x48x32xf32> to vector<12x16x32xf32>
    %93 = vector.extract_strided_slice %91 {offsets = [0, 16, 0], sizes = [12, 16, 32], strides = [1, 1, 1]} : vector<12x48x32xf32> to vector<12x16x32xf32>
    %94 = vector.extract_strided_slice %91 {offsets = [0, 32, 0], sizes = [12, 16, 32], strides = [1, 1, 1]} : vector<12x48x32xf32> to vector<12x16x32xf32>
    %95 = tpu.concatenate %92, %93, %94 in 2 : vector<12x16x32xf32>, vector<12x16x32xf32>, vector<12x16x32xf32> -> vector<12x16x96xf32>
    %96 = vector.shape_cast %95 : vector<12x16x96xf32> to vector<192x96xf32>
    %97 = arith.truncf %96 : vector<192x96xf32> to vector<192x96xbf16>
    %c0_36 = arith.constant 0 : index
    %c0_37 = arith.constant 0 : index
    %98 = vector.load %arg11[%c0_36, %c0_37] : memref<96x32xbf16, #tpu.memory_space<vmem>>, vector<96x32xbf16>
    %cst_38 = arith.constant dense<0.000000e+00> : vector<192x32xf32>
    %99 = tpu.matmul %97, %98, %cst_38 {dimension_numbers = #tpu.dot_dimension_numbers<[1], [0], [0], [1], [0, 0, 1, 1], [], []>} : vector<192x96xbf16>, vector<96x32xbf16>, vector<192x32xf32> -> vector<192x32xf32>
    %c0_39 = arith.constant 0 : index
    %c0_40 = arith.constant 0 : index
    %100 = vector.load %arg12[%c0_39, %c0_40] : memref<1x32xf32, #tpu.memory_space<vmem>>, vector<1x32xf32>
    %101 = vector.broadcast %100 : vector<1x32xf32> to vector<192x32xf32>
    %102 = arith.addf %99, %101 : vector<192x32xf32>
    %cst_41 = arith.constant 0.000000e+00 : f32
    %103 = vector.broadcast %cst_41 : f32 to vector<192x32xf32>
    %104 = arith.maximumf %102, %103 : vector<192x32xf32>
    %105 = arith.truncf %104 : vector<192x32xf32> to vector<192x32xbf16>
    %106 = vector.shape_cast %105 : vector<192x32xbf16> to vector<12x16x32xbf16>
    %cst_42 = arith.constant 0.000000e+00 : bf16
    %107 = vector.broadcast %cst_42 : bf16 to vector<1x16x32xbf16>
    %108 = vector.extract_strided_slice %106 {offsets = [0, 0, 0], sizes = [11, 16, 32], strides = [1, 1, 1]} : vector<12x16x32xbf16> to vector<11x16x32xbf16>
    %109 = tpu.concatenate %107, %108 in 0 : vector<1x16x32xbf16>, vector<11x16x32xbf16> -> vector<12x16x32xbf16>
    %cst_43 = arith.constant 0.000000e+00 : bf16
    %110 = vector.broadcast %cst_43 : bf16 to vector<1x16x32xbf16>
    %111 = vector.extract_strided_slice %106 {offsets = [1, 0, 0], sizes = [11, 16, 32], strides = [1, 1, 1]} : vector<12x16x32xbf16> to vector<11x16x32xbf16>
    %112 = tpu.concatenate %111, %110 in 0 : vector<11x16x32xbf16>, vector<1x16x32xbf16> -> vector<12x16x32xbf16>
    %113 = tpu.concatenate %109, %106, %112 in 2 : vector<12x16x32xbf16>, vector<12x16x32xbf16>, vector<12x16x32xbf16> -> vector<12x16x96xbf16>
    %114 = vector.shape_cast %113 : vector<12x16x96xbf16> to vector<192x96xbf16>
    %c0_44 = arith.constant 0 : index
    %c0_45 = arith.constant 0 : index
    %115 = vector.load %arg13[%c0_44, %c0_45] : memref<96x64xbf16, #tpu.memory_space<vmem>>, vector<96x64xbf16>
    %cst_46 = arith.constant dense<0.000000e+00> : vector<192x64xf32>
    %116 = tpu.matmul %114, %115, %cst_46 {dimension_numbers = #tpu.dot_dimension_numbers<[1], [0], [0], [1], [0, 0, 1, 1], [], []>} : vector<192x96xbf16>, vector<96x64xbf16>, vector<192x64xf32> -> vector<192x64xf32>
    %c0_47 = arith.constant 0 : index
    %c0_48 = arith.constant 0 : index
    %117 = vector.load %arg14[%c0_47, %c0_48] : memref<1x64xf32, #tpu.memory_space<vmem>>, vector<1x64xf32>
    %118 = vector.broadcast %117 : vector<1x64xf32> to vector<192x64xf32>
    %119 = arith.addf %116, %118 : vector<192x64xf32>
    %120 = vector.extract_strided_slice %119 {offsets = [0, 0], sizes = [192, 32], strides = [1, 1]} : vector<192x64xf32> to vector<192x32xf32>
    %121 = vector.extract_strided_slice %119 {offsets = [0, 32], sizes = [192, 32], strides = [1, 1]} : vector<192x64xf32> to vector<192x32xf32>
    %122 = arith.negf %121 : vector<192x32xf32>
    %123 = math.exp %122 : vector<192x32xf32>
    %cst_49 = arith.constant 1.000000e+00 : f32
    %124 = vector.broadcast %cst_49 : f32 to vector<192x32xf32>
    %125 = arith.addf %124, %123 : vector<192x32xf32>
    %126 = arith.divf %124, %125 : vector<192x32xf32>
    %127 = arith.mulf %120, %126 : vector<192x32xf32>
    %128 = arith.truncf %127 : vector<192x32xf32> to vector<192x32xbf16>
    %129 = vector.shape_cast %128 : vector<192x32xbf16> to vector<12x16x32xbf16>
    %cst_50 = arith.constant 0.000000e+00 : bf16
    %130 = vector.broadcast %cst_50 : bf16 to vector<1x16x32xbf16>
    %131 = vector.extract_strided_slice %129 {offsets = [0, 0, 0], sizes = [11, 16, 32], strides = [1, 1, 1]} : vector<12x16x32xbf16> to vector<11x16x32xbf16>
    %132 = tpu.concatenate %130, %131 in 0 : vector<1x16x32xbf16>, vector<11x16x32xbf16> -> vector<12x16x32xbf16>
    %cst_51 = arith.constant 0.000000e+00 : bf16
    %133 = vector.broadcast %cst_51 : bf16 to vector<1x16x32xbf16>
    %134 = vector.extract_strided_slice %129 {offsets = [1, 0, 0], sizes = [11, 16, 32], strides = [1, 1, 1]} : vector<12x16x32xbf16> to vector<11x16x32xbf16>
    %135 = tpu.concatenate %134, %133 in 0 : vector<11x16x32xbf16>, vector<1x16x32xbf16> -> vector<12x16x32xbf16>
    %136 = tpu.concatenate %132, %129, %135 in 2 : vector<12x16x32xbf16>, vector<12x16x32xbf16>, vector<12x16x32xbf16> -> vector<12x16x96xbf16>
    %137 = vector.shape_cast %136 : vector<12x16x96xbf16> to vector<192x96xbf16>
    %c0_52 = arith.constant 0 : index
    %c0_53 = arith.constant 0 : index
    %138 = vector.load %arg15[%c0_52, %c0_53] : memref<96x64xbf16, #tpu.memory_space<vmem>>, vector<96x64xbf16>
    %cst_54 = arith.constant dense<0.000000e+00> : vector<192x64xf32>
    %139 = tpu.matmul %137, %138, %cst_54 {dimension_numbers = #tpu.dot_dimension_numbers<[1], [0], [0], [1], [0, 0, 1, 1], [], []>} : vector<192x96xbf16>, vector<96x64xbf16>, vector<192x64xf32> -> vector<192x64xf32>
    %c0_55 = arith.constant 0 : index
    %c0_56 = arith.constant 0 : index
    %140 = vector.load %arg16[%c0_55, %c0_56] : memref<1x64xf32, #tpu.memory_space<vmem>>, vector<1x64xf32>
    %141 = vector.broadcast %140 : vector<1x64xf32> to vector<192x64xf32>
    %142 = arith.addf %139, %141 : vector<192x64xf32>
    %143 = vector.extract_strided_slice %142 {offsets = [0, 0], sizes = [192, 32], strides = [1, 1]} : vector<192x64xf32> to vector<192x32xf32>
    %144 = vector.extract_strided_slice %142 {offsets = [0, 32], sizes = [192, 32], strides = [1, 1]} : vector<192x64xf32> to vector<192x32xf32>
    %145 = arith.negf %144 : vector<192x32xf32>
    %146 = math.exp %145 : vector<192x32xf32>
    %cst_57 = arith.constant 1.000000e+00 : f32
    %147 = vector.broadcast %cst_57 : f32 to vector<192x32xf32>
    %148 = arith.addf %147, %146 : vector<192x32xf32>
    %149 = arith.divf %147, %148 : vector<192x32xf32>
    %150 = arith.mulf %143, %149 : vector<192x32xf32>
    %151 = arith.truncf %150 : vector<192x32xf32> to vector<192x32xbf16>
    %152 = vector.shape_cast %151 : vector<192x32xbf16> to vector<12x16x32xbf16>
    "tpu.trace_start"() <{level = 10 : i32, message = "tpm,tmc->tpc"}> : () -> ()
    %cst_58 = arith.constant dense<0.000000e+00> : vector<12x48x32xf32>
    %153 = tpu.matmul %3, %152, %cst_58 {dimension_numbers = #tpu.dot_dimension_numbers<[2], [1], [1], [2], [0, 0, 0, 1, 1, 2], [0], [0]>} : vector<12x48x16xbf16>, vector<12x16x32xbf16>, vector<12x48x32xf32> -> vector<12x48x32xf32>
    "tpu.trace_stop"() : () -> ()
    %154 = vector.extract_strided_slice %153 {offsets = [0, 0, 0], sizes = [12, 16, 32], strides = [1, 1, 1]} : vector<12x48x32xf32> to vector<12x16x32xf32>
    %155 = vector.extract_strided_slice %153 {offsets = [0, 16, 0], sizes = [12, 16, 32], strides = [1, 1, 1]} : vector<12x48x32xf32> to vector<12x16x32xf32>
    %156 = vector.extract_strided_slice %153 {offsets = [0, 32, 0], sizes = [12, 16, 32], strides = [1, 1, 1]} : vector<12x48x32xf32> to vector<12x16x32xf32>
    %157 = tpu.concatenate %154, %155, %156 in 2 : vector<12x16x32xf32>, vector<12x16x32xf32>, vector<12x16x32xf32> -> vector<12x16x96xf32>
    %158 = vector.shape_cast %157 : vector<12x16x96xf32> to vector<192x96xf32>
    %159 = arith.truncf %158 : vector<192x96xf32> to vector<192x96xbf16>
    %c0_59 = arith.constant 0 : index
    %c0_60 = arith.constant 0 : index
    %160 = vector.load %arg17[%c0_59, %c0_60] : memref<96x32xbf16, #tpu.memory_space<vmem>>, vector<96x32xbf16>
    %cst_61 = arith.constant dense<0.000000e+00> : vector<192x32xf32>
    %161 = tpu.matmul %159, %160, %cst_61 {dimension_numbers = #tpu.dot_dimension_numbers<[1], [0], [0], [1], [0, 0, 1, 1], [], []>} : vector<192x96xbf16>, vector<96x32xbf16>, vector<192x32xf32> -> vector<192x32xf32>
    %c0_62 = arith.constant 0 : index
    %c0_63 = arith.constant 0 : index
    %162 = vector.load %arg18[%c0_62, %c0_63] : memref<1x32xf32, #tpu.memory_space<vmem>>, vector<1x32xf32>
    %163 = vector.broadcast %162 : vector<1x32xf32> to vector<192x32xf32>
    %164 = arith.addf %161, %163 : vector<192x32xf32>
    %cst_64 = arith.constant 0.000000e+00 : f32
    %165 = vector.broadcast %cst_64 : f32 to vector<192x32xf32>
    %166 = arith.maximumf %164, %165 : vector<192x32xf32>
    %167 = arith.truncf %166 : vector<192x32xf32> to vector<192x32xbf16>
    %168 = vector.shape_cast %167 : vector<192x32xbf16> to vector<12x16x32xbf16>
    %cst_65 = arith.constant 0.000000e+00 : bf16
    %169 = vector.broadcast %cst_65 : bf16 to vector<1x16x32xbf16>
    %170 = vector.extract_strided_slice %168 {offsets = [0, 0, 0], sizes = [11, 16, 32], strides = [1, 1, 1]} : vector<12x16x32xbf16> to vector<11x16x32xbf16>
    %171 = tpu.concatenate %169, %170 in 0 : vector<1x16x32xbf16>, vector<11x16x32xbf16> -> vector<12x16x32xbf16>
    %cst_66 = arith.constant 0.000000e+00 : bf16
    %172 = vector.broadcast %cst_66 : bf16 to vector<1x16x32xbf16>
    %173 = vector.extract_strided_slice %168 {offsets = [1, 0, 0], sizes = [11, 16, 32], strides = [1, 1, 1]} : vector<12x16x32xbf16> to vector<11x16x32xbf16>
    %174 = tpu.concatenate %173, %172 in 0 : vector<11x16x32xbf16>, vector<1x16x32xbf16> -> vector<12x16x32xbf16>
    %175 = tpu.concatenate %171, %168, %174 in 2 : vector<12x16x32xbf16>, vector<12x16x32xbf16>, vector<12x16x32xbf16> -> vector<12x16x96xbf16>
    %176 = vector.shape_cast %175 : vector<12x16x96xbf16> to vector<192x96xbf16>
    %c0_67 = arith.constant 0 : index
    %c0_68 = arith.constant 0 : index
    %177 = vector.load %arg19[%c0_67, %c0_68] : memref<96x64xbf16, #tpu.memory_space<vmem>>, vector<96x64xbf16>
    %cst_69 = arith.constant dense<0.000000e+00> : vector<192x64xf32>
    %178 = tpu.matmul %176, %177, %cst_69 {dimension_numbers = #tpu.dot_dimension_numbers<[1], [0], [0], [1], [0, 0, 1, 1], [], []>} : vector<192x96xbf16>, vector<96x64xbf16>, vector<192x64xf32> -> vector<192x64xf32>
    %c0_70 = arith.constant 0 : index
    %c0_71 = arith.constant 0 : index
    %179 = vector.load %arg20[%c0_70, %c0_71] : memref<1x64xf32, #tpu.memory_space<vmem>>, vector<1x64xf32>
    %180 = vector.broadcast %179 : vector<1x64xf32> to vector<192x64xf32>
    %181 = arith.addf %178, %180 : vector<192x64xf32>
    %182 = vector.extract_strided_slice %181 {offsets = [0, 0], sizes = [192, 32], strides = [1, 1]} : vector<192x64xf32> to vector<192x32xf32>
    %183 = vector.extract_strided_slice %181 {offsets = [0, 32], sizes = [192, 32], strides = [1, 1]} : vector<192x64xf32> to vector<192x32xf32>
    %184 = arith.negf %183 : vector<192x32xf32>
    %185 = math.exp %184 : vector<192x32xf32>
    %cst_72 = arith.constant 1.000000e+00 : f32
    %186 = vector.broadcast %cst_72 : f32 to vector<192x32xf32>
    %187 = arith.addf %186, %185 : vector<192x32xf32>
    %188 = arith.divf %186, %187 : vector<192x32xf32>
    %189 = arith.mulf %182, %188 : vector<192x32xf32>
    %190 = arith.truncf %189 : vector<192x32xf32> to vector<192x32xbf16>
    %191 = vector.shape_cast %190 : vector<192x32xbf16> to vector<12x16x32xbf16>
    %192 = vector.extract_strided_slice %191 {offsets = [0, 0, 0], sizes = [1, 16, 32], strides = [1, 1, 1]} : vector<12x16x32xbf16> to vector<1x16x32xbf16>
    %193 = vector.shape_cast %192 : vector<1x16x32xbf16> to vector<16x32xbf16>
    %194 = vector.extract_strided_slice %191 {offsets = [1, 0, 0], sizes = [1, 16, 32], strides = [1, 1, 1]} : vector<12x16x32xbf16> to vector<1x16x32xbf16>
    %195 = vector.shape_cast %194 : vector<1x16x32xbf16> to vector<16x32xbf16>
    %196 = vector.extract_strided_slice %191 {offsets = [2, 0, 0], sizes = [1, 16, 32], strides = [1, 1, 1]} : vector<12x16x32xbf16> to vector<1x16x32xbf16>
    %197 = vector.shape_cast %196 : vector<1x16x32xbf16> to vector<16x32xbf16>
    %198 = vector.extract_strided_slice %191 {offsets = [3, 0, 0], sizes = [1, 16, 32], strides = [1, 1, 1]} : vector<12x16x32xbf16> to vector<1x16x32xbf16>
    %199 = vector.shape_cast %198 : vector<1x16x32xbf16> to vector<16x32xbf16>
    %200 = vector.extract_strided_slice %191 {offsets = [4, 0, 0], sizes = [1, 16, 32], strides = [1, 1, 1]} : vector<12x16x32xbf16> to vector<1x16x32xbf16>
    %201 = vector.shape_cast %200 : vector<1x16x32xbf16> to vector<16x32xbf16>
    %202 = vector.extract_strided_slice %191 {offsets = [5, 0, 0], sizes = [1, 16, 32], strides = [1, 1, 1]} : vector<12x16x32xbf16> to vector<1x16x32xbf16>
    %203 = vector.shape_cast %202 : vector<1x16x32xbf16> to vector<16x32xbf16>
    %204 = vector.extract_strided_slice %191 {offsets = [6, 0, 0], sizes = [1, 16, 32], strides = [1, 1, 1]} : vector<12x16x32xbf16> to vector<1x16x32xbf16>
    %205 = vector.shape_cast %204 : vector<1x16x32xbf16> to vector<16x32xbf16>
    %206 = vector.extract_strided_slice %191 {offsets = [7, 0, 0], sizes = [1, 16, 32], strides = [1, 1, 1]} : vector<12x16x32xbf16> to vector<1x16x32xbf16>
    %207 = vector.shape_cast %206 : vector<1x16x32xbf16> to vector<16x32xbf16>
    %208 = vector.extract_strided_slice %191 {offsets = [8, 0, 0], sizes = [1, 16, 32], strides = [1, 1, 1]} : vector<12x16x32xbf16> to vector<1x16x32xbf16>
    %209 = vector.shape_cast %208 : vector<1x16x32xbf16> to vector<16x32xbf16>
    %210 = vector.extract_strided_slice %191 {offsets = [9, 0, 0], sizes = [1, 16, 32], strides = [1, 1, 1]} : vector<12x16x32xbf16> to vector<1x16x32xbf16>
    %211 = vector.shape_cast %210 : vector<1x16x32xbf16> to vector<16x32xbf16>
    %212 = vector.extract_strided_slice %191 {offsets = [10, 0, 0], sizes = [1, 16, 32], strides = [1, 1, 1]} : vector<12x16x32xbf16> to vector<1x16x32xbf16>
    %213 = vector.shape_cast %212 : vector<1x16x32xbf16> to vector<16x32xbf16>
    %214 = vector.extract_strided_slice %191 {offsets = [11, 0, 0], sizes = [1, 16, 32], strides = [1, 1, 1]} : vector<12x16x32xbf16> to vector<1x16x32xbf16>
    %215 = vector.shape_cast %214 : vector<1x16x32xbf16> to vector<16x32xbf16>
    %216 = tpu.concatenate %193, %195, %197, %199, %201, %203, %205, %207, %209, %211, %213, %215 in 1 : vector<16x32xbf16>, vector<16x32xbf16>, vector<16x32xbf16>, vector<16x32xbf16>, vector<16x32xbf16>, vector<16x32xbf16>, vector<16x32xbf16>, vector<16x32xbf16>, vector<16x32xbf16>, vector<16x32xbf16>, vector<16x32xbf16>, vector<16x32xbf16> -> vector<16x384xbf16>
    %c0_73 = arith.constant 0 : index
    %c0_74 = arith.constant 0 : index
    %217 = vector.load %arg21[%c0_73, %c0_74] : memref<384x12xbf16, #tpu.memory_space<vmem>>, vector<384x12xbf16>
    %cst_75 = arith.constant dense<0.000000e+00> : vector<16x12xf32>
    %218 = tpu.matmul %216, %217, %cst_75 {dimension_numbers = #tpu.dot_dimension_numbers<[1], [0], [0], [1], [0, 0, 1, 1], [], []>} : vector<16x384xbf16>, vector<384x12xbf16>, vector<16x12xf32> -> vector<16x12xf32>
    %c0_76 = arith.constant 0 : index
    %c0_77 = arith.constant 0 : index
    %219 = vector.load %arg22[%c0_76, %c0_77] : memref<1x12xf32, #tpu.memory_space<vmem>>, vector<1x12xf32>
    %220 = vector.broadcast %219 : vector<1x12xf32> to vector<16x12xf32>
    %221 = arith.addf %218, %220 : vector<16x12xf32>
    %c0_78 = arith.constant 0 : index
    %c0_79 = arith.constant 0 : index
    %c0_80 = arith.constant 0 : index
    %222 = vector.load %arg23[%c0_78, %c0_79, %c0_80] : memref<1x16x12xf32, #tpu.memory_space<vmem>>, vector<1x16x12xf32>
    %223 = vector.shape_cast %222 : vector<1x16x12xf32> to vector<16x12xf32>
    %224 = vector.shape_cast %221 : vector<16x12xf32> to vector<1x16x12xf32>
    tpu.vector_store %arg23[%c0_78, %c0_79, %c0_80], %224 {strides = array<i32>} : memref<1x16x12xf32, #tpu.memory_space<vmem>>, vector<1x16x12xf32>,
    return
  }
  func.func @transform_0(%arg0: i32) -> (i32, i32, i32, i32) {
    %c0_i32 = arith.constant 0 : i32
    %c0_i32_0 = arith.constant 0 : i32
    %c0_i32_1 = arith.constant 0 : i32
    %c0_i32_2 = arith.constant 0 : i32
    return %arg0, %c0_i32, %c0_i32_0, %c0_i32_1 : i32, i32, i32, i32
  }
  func.func @transform_1(%arg0: i32) -> (i32, i32) {
    %c0_i32 = arith.constant 0 : i32
    %c0_i32_0 = arith.constant 0 : i32
    %c0_i32_1 = arith.constant 0 : i32
    return %c0_i32, %c0_i32_0 : i32, i32
  }
  func.func @transform_2(%arg0: i32) -> (i32, i32) {
    %c0_i32 = arith.constant 0 : i32
    %c0_i32_0 = arith.constant 0 : i32
    %c0_i32_1 = arith.constant 0 : i32
    return %c0_i32, %c0_i32_0 : i32, i32
  }
  func.func @transform_3(%arg0: i32) -> (i32, i32) {
    %c0_i32 = arith.constant 0 : i32
    %c0_i32_0 = arith.constant 0 : i32
    %c0_i32_1 = arith.constant 0 : i32
    return %c0_i32, %c0_i32_0 : i32, i32
  }
  func.func @transform_4(%arg0: i32) -> (i32, i32) {
    %c0_i32 = arith.constant 0 : i32
    %c0_i32_0 = arith.constant 0 : i32
    %c0_i32_1 = arith.constant 0 : i32
    return %c0_i32, %c0_i32_0 : i32, i32
  }
  func.func @transform_5(%arg0: i32) -> (i32, i32) {
    %c0_i32 = arith.constant 0 : i32
    %c0_i32_0 = arith.constant 0 : i32
    %c0_i32_1 = arith.constant 0 : i32
    return %c0_i32, %c0_i32_0 : i32, i32
  }
  func.func @transform_6(%arg0: i32) -> (i32, i32) {
    %c0_i32 = arith.constant 0 : i32
    %c0_i32_0 = arith.constant 0 : i32
    %c0_i32_1 = arith.constant 0 : i32
    return %c0_i32, %c0_i32_0 : i32, i32
  }
  func.func @transform_7(%arg0: i32) -> (i32, i32) {
    %c0_i32 = arith.constant 0 : i32
    %c0_i32_0 = arith.constant 0 : i32
    %c0_i32_1 = arith.constant 0 : i32
    return %c0_i32, %c0_i32_0 : i32, i32
  }
  func.func @transform_8(%arg0: i32) -> (i32, i32) {
    %c0_i32 = arith.constant 0 : i32
    %c0_i32_0 = arith.constant 0 : i32
    %c0_i32_1 = arith.constant 0 : i32
    return %c0_i32, %c0_i32_0 : i32, i32
  }
  func.func @transform_9(%arg0: i32) -> (i32, i32) {
    %c0_i32 = arith.constant 0 : i32
    %c0_i32_0 = arith.constant 0 : i32
    %c0_i32_1 = arith.constant 0 : i32
    return %c0_i32, %c0_i32_0 : i32, i32
  }
  func.func @transform_10(%arg0: i32) -> (i32, i32) {
    %c0_i32 = arith.constant 0 : i32
    %c0_i32_0 = arith.constant 0 : i32
    %c0_i32_1 = arith.constant 0 : i32
    return %c0_i32, %c0_i32_0 : i32, i32
  }
  func.func @transform_11(%arg0: i32) -> (i32, i32) {
    %c0_i32 = arith.constant 0 : i32
    %c0_i32_0 = arith.constant 0 : i32
    %c0_i32_1 = arith.constant 0 : i32
    return %c0_i32, %c0_i32_0 : i32, i32
  }
  func.func @transform_12(%arg0: i32) -> (i32, i32) {
    %c0_i32 = arith.constant 0 : i32
    %c0_i32_0 = arith.constant 0 : i32
    %c0_i32_1 = arith.constant 0 : i32
    return %c0_i32, %c0_i32_0 : i32, i32
  }
  func.func @transform_13(%arg0: i32) -> (i32, i32) {
    %c0_i32 = arith.constant 0 : i32
    %c0_i32_0 = arith.constant 0 : i32
    %c0_i32_1 = arith.constant 0 : i32
    return %c0_i32, %c0_i32_0 : i32, i32
  }
  func.func @transform_14(%arg0: i32) -> (i32, i32) {
    %c0_i32 = arith.constant 0 : i32
    %c0_i32_0 = arith.constant 0 : i32
    %c0_i32_1 = arith.constant 0 : i32
    return %c0_i32, %c0_i32_0 : i32, i32
  }
  func.func @transform_15(%arg0: i32) -> (i32, i32) {
    %c0_i32 = arith.constant 0 : i32
    %c0_i32_0 = arith.constant 0 : i32
    %c0_i32_1 = arith.constant 0 : i32
    return %c0_i32, %c0_i32_0 : i32, i32
  }
  func.func @transform_16(%arg0: i32) -> (i32, i32) {
    %c0_i32 = arith.constant 0 : i32
    %c0_i32_0 = arith.constant 0 : i32
    %c0_i32_1 = arith.constant 0 : i32
    return %c0_i32, %c0_i32_0 : i32, i32
  }
  func.func @transform_17(%arg0: i32) -> (i32, i32) {
    %c0_i32 = arith.constant 0 : i32
    %c0_i32_0 = arith.constant 0 : i32
    %c0_i32_1 = arith.constant 0 : i32
    return %c0_i32, %c0_i32_0 : i32, i32
  }
  func.func @transform_18(%arg0: i32) -> (i32, i32) {
    %c0_i32 = arith.constant 0 : i32
    %c0_i32_0 = arith.constant 0 : i32
    %c0_i32_1 = arith.constant 0 : i32
    return %c0_i32, %c0_i32_0 : i32, i32
  }
  func.func @transform_19(%arg0: i32) -> (i32, i32) {
    %c0_i32 = arith.constant 0 : i32
    %c0_i32_0 = arith.constant 0 : i32
    %c0_i32_1 = arith.constant 0 : i32
    return %c0_i32, %c0_i32_0 : i32, i32
  }
  func.func @transform_20(%arg0: i32) -> (i32, i32) {
    %c0_i32 = arith.constant 0 : i32
    %c0_i32_0 = arith.constant 0 : i32
    %c0_i32_1 = arith.constant 0 : i32
    return %c0_i32, %c0_i32_0 : i32, i32
  }
  func.func @transform_21(%arg0: i32) -> (i32, i32) {
    %c0_i32 = arith.constant 0 : i32
    %c0_i32_0 = arith.constant 0 : i32
    %c0_i32_1 = arith.constant 0 : i32
    return %c0_i32, %c0_i32_0 : i32, i32
  }
  func.func @transform_22(%arg0: i32) -> (i32, i32, i32) {
    %c0_i32 = arith.constant 0 : i32
    %c0_i32_0 = arith.constant 0 : i32
    %c0_i32_1 = arith.constant 0 : i32
    return %arg0, %c0_i32, %c0_i32_0 : i32, i32, i32
  }
}

</mosaic_0001>

<bundles_post_ra>
// kernel: gated_stgcn_forward.1
= control target key start
LH: loop header
LB: loop body
LE: loop exit
PB: predicated region body
PF: predicated region fallthrough
CT: control target
= control target key end

     0   :  { %s14076_s0 = inlined_call_operand.vmem [shape: bf16[2,12,16,4], index: 0, kind: input, shape index: {}]   ;;  %s14077_s1 = inlined_call_operand.vmem [shape: bf16[48,16], index: 1, kind: input, shape index: {}]   ;;  %s14078_s2 = inlined_call_operand.vmem [shape: bf16[12,64], index: 2, kind: input, shape index: {}]   ;;  %s14079_s3 = inlined_call_operand.vmem [shape: f32[1,64], index: 3, kind: input, shape index: {}]   ;;  %s14080_s4 = inlined_call_operand.vmem [shape: bf16[96,32], index: 4, kind: input, shape index: {}]   ;;  %s14081_s5 = inlined_call_operand.vmem [shape: f32[1,32], index: 5, kind: input, shape index: {}]   ;;  %s14082_s6 = inlined_call_operand.vmem [shape: bf16[96,64], index: 6, kind: input, shape index: {}]   ;;  %s14083_s7 = inlined_call_operand.vmem [shape: f32[1,64], index: 7, kind: input, shape index: {}]   ;;  %s14084_s8 = inlined_call_operand.vmem [shape: bf16[96,64], index: 8, kind: input, shape index: {}]   ;;  %s14085_s9 = inlined_call_operand.vmem [shape: f32[1,64], index: 9, kind: input, shape index: {}]   ;;  %s14086_s10 = inlined_call_operand.vmem [shape: bf16[96,32], index: 10, kind: input, shape index: {}]   ;;  %s14087_s11 = inlined_call_operand.vmem [shape: f32[1,32], index: 11, kind: input, shape index: {}]   ;;  %s14088_s12 = inlined_call_operand.vmem [shape: bf16[96,64], index: 12, kind: input, shape index: {}]   ;;  %s14089_s13 = inlined_call_operand.vmem [shape: f32[1,64], index: 13, kind: input, shape index: {}]   ;;  %s14090_s14 = inlined_call_operand.vmem [shape: bf16[96,64], index: 14, kind: input, shape index: {}]   ;;  %s14091_s15 = inlined_call_operand.vmem [shape: f32[1,64], index: 15, kind: input, shape index: {}]   ;;  %s14092_s16 = inlined_call_operand.vmem [shape: bf16[96,32], index: 16, kind: input, shape index: {}]   ;;  %s14093_s17 = inlined_call_operand.vmem [shape: f32[1,32], index: 17, kind: input, shape index: {}]   ;;  %s14094_s18 = inlined_call_operand.vmem [shape: bf16[96,64], index: 18, kind: input, shape index: {}]   ;;  %s14095_s19 = inlined_call_operand.vmem [shape: f32[1,64], index: 19, kind: input, shape index: {}]   ;;  %s14096_s20 = inlined_call_operand.vmem [shape: bf16[384,12], index: 20, kind: input, shape index: {}]   ;;  %s14097_s21 = inlined_call_operand.vmem [shape: f32[1,12], index: 21, kind: input, shape index: {}]   ;;  %s14098_s22 = inlined_call_operand.vmem [shape: f32[2,16,12], index: 22, kind: output, shape index: {}]  }
   0x1   :  { %14102 = sst [smem:[#allocation2_spill]] %s14076_s0 }
   0x2   :  { %14103 = sst [smem:[#allocation3_spill]] %s14077_s1 }
   0x3   :  { %14104 = sst [smem:[#allocation4_spill]] %s14078_s2 }
   0x4   :  { %14105 = sst [smem:[#allocation5_spill]] %s14079_s3  ;;  %s11151_s3 = smov 0  }
   0x5   :  { %14106 = sst [smem:[#allocation6_spill]] %s14080_s4 }
   0x6   :  { %14107 = sst [smem:[#allocation7_spill]] %s14081_s5 }
   0x7   :  { %14108 = sst [smem:[#allocation8_spill]] %s14082_s6 }
   0x8 LB: > { %s8332_s28 = sadd.s32 4294967295, %s11026_s3   ;;  %p8336_p0 = scmp.ge.s32.totalorder %s11026_s3, 1  ;;  %s11026_s3 = sphi %s11151_s3, %s32_s3  }
   0x9   : > { %p612_p1 = scmp.lt.s32.totalorder %s11026_s3, 3 }
   0xb   : > { %p613_p2 = pnand %p8336_p0, %p612_p1 }
   0xc   : > { %p674_p3 = scmp.lt.s32.totalorder (!%p613_p2), %s8332_s28, 1  ;;  %vm927_vm0 = vcmask (!%p613_p2), 1045504   ;;  %s14109_s4 = sld [smem:[#allocation4_spill]] (!%p613_p2)  ;;  %v11030_v14 = vmov (!%p613_p2), 0   ;;  %vm826_vm1 = vcmask (!%p613_p2), 31744   ;;  %vm863_vm2 = vcmask (!%p613_p2), 64512  }
   0xd   : > { %616 = sbr.rel (%p613_p2) target bundleno = 5429 (0x1535), region = 108  ;;  %s14110_s5 = sld [smem:[#allocation2_spill]] (!%p613_p2)  ;;  %v8352_v15 = vcombine.low (!%p613_p2), %v11030_v14, %v11030_v14  ;;  %vm902_vm3 = vcmask (!%p613_p2), 97280   ;;  %vm11032_vm4 = vmmov (!%p613_p2), 0   ;;  %vm1351_vm5 = vcmask (!%p613_p2), 130048  }
   0xe   : > { %s11028_s6 = smov (!%p613_p2), 4   ;;  %s11029_s25 = smov (!%p613_p2), 8   ;;  %vm2237_vm6 = vcmask (!%p613_p2), 261120   ;;  %vm2262_vm7 = vcmask (!%p613_p2), 523264   ;;  %vm2354_vm8 = vcmask (!%p613_p2), 785408  }
   0xf   : > { %s14111_s27 = sld [smem:[#allocation5_spill]] (!%p613_p2)  ;;  %s11033_s29 = smov (!%p613_p2), 96  }
  0x10   : > { %s14113_s26 = sld [smem:[#allocation6_spill]] (!%p613_p2)  ;;  %s11034_s2 = smov (!%p613_p2), 32  }
  0x11   : > { %s11035_s1 = smov (!%p613_p2), 64  }
  0x12   : > { %v10361_v0 = vld [vmem:[%s14109_s4] sm:$0x3f] (!%p613_p2)  }
  0x13   : > { %9972 = vmatprep.subr.msk.bf16.mxu0 (!%p613_p2), %vm927_vm0, %v10361_v0  ;;  %v929_v1 = vsel (!%p613_p2), %vm927_vm0, %v10361_v0, 0 }
  0x14   : > { %s14117_s28 = smov (!%p674_p3, %s8332_s28), 1  ;;  %9135 = vmatpush3.bf16.msra.mxu0 %v929_v1 }
  0x15   : > { %s9973_s0 = smul.u32 96, %s14117_s28  ;;  %v11272_v0 = vld [vmem:[%s14111_s27] ss:$0 sm:$0xff] }
  0x17   : > { %s11168_s24 = scalar_lea.vmem %s14110_s5, %s9973_s0  ;;  %s14112_s0 = sld [smem:[#allocation3_spill]] }
  0x18   : > { %v10350_v2 = vld [vmem:[%s11168_s24] sm:$0xff]   ;;  %v10351_v3 = vld [vmem:[%s11168_s24 + $0x8] sm:$0xff]   ;;  %v10352_v4 = vld [vmem:[%s11168_s24 + $0x10] sm:$0xff]   ;;  %s14114_s5 = sld [smem:[#allocation8_spill]] }
  0x19   : > { %775 = vrot.lane.b32.xlu0 %v10350_v2, %s11028_s6  ;;  %802 = vrot.lane.b32.xlu1 %v10351_v3, %s11029_s25  ;;  %v10353_v5 = vld [vmem:[%s11168_s24 + $0x18] sm:$0xff]   ;;  %v10354_v6 = vld [vmem:[%s11168_s24 + $0x20] sm:$0xff]  }
  0x1a   : > { %v11182_v7 = vld [vmem:[%s11168_s24 + $0x28] sm:$0xff]   ;;  %v10356_v8 = vld [vmem:[%s11168_s24 + $0x30] sm:$0xff]   ;;  %v11191_v9 = vld [vmem:[%s11168_s24 + $0x38] sm:$0xff]  }
  0x1b   : > { %v11197_v10 = vld [vmem:[%s11168_s24 + $0x40] sm:$0xff]   ;;  %v11203_v11 = vld [vmem:[%s11168_s24 + $0x48] sm:$0xff]   ;;  %v11210_v12 = vld [vmem:[%s11168_s24 + $0x50] sm:$0xff]  }
  0x1c   : > { %v10362_v13 = vld [vmem:[%s11168_s24 + $0x58] sm:$0xff]  }
  0x1d   : > { %777 = vrot.lane.b32.xlu0 %v10351_v3, %s11028_s6  ;;  %804 = vrot.lane.b32.xlu1 %v10352_v4, %s11029_s25 }
  0x21   : > { %779 = vrot.lane.b32.xlu0 %v10352_v4, %s11028_s6  ;;  %781 = vrot.lane.b32.xlu1 %v10353_v5, %s11028_s6 }
  0x25   : > { %806 = vrot.lane.b32.xlu0 %v10353_v5, %s11029_s25  ;;  %808 = vrot.lane.b32.xlu1 %v10354_v6, %s11029_s25 }
  0x29   : > { %783 = vrot.lane.b32.xlu0 %v10354_v6, %s11028_s6  ;;  %785 = vrot.lane.b32.xlu1 %v11182_v7, %s11028_s6 }
  0x2d   : > { %810 = vrot.lane.b32.xlu0 %v11182_v7, %s11029_s25  ;;  %812 = vrot.lane.b32.xlu1 %v10356_v8, %s11029_s25 }
  0x31   : > { %787 = vrot.lane.b32.xlu0 %v10356_v8, %s11028_s6  ;;  %789 = vrot.lane.b32.xlu1 %v11191_v9, %s11028_s6 }
  0x35   : > { %814 = vrot.lane.b32.xlu0 %v11191_v9, %s11029_s25  ;;  %816 = vrot.lane.b32.xlu1 %v11197_v10, %s11029_s25 }
  0x39   : > { %791 = vrot.lane.b32.xlu0 %v11197_v10, %s11028_s6  ;;  %793 = vrot.lane.b32.xlu1 %v11203_v11, %s11028_s6 }
  0x3d   : > { %818 = vrot.lane.b32.xlu0 %v11203_v11, %s11029_s25  ;;  %820 = vrot.lane.b32.xlu1 %v11210_v12, %s11029_s25 }
  0x41   : > { %795 = vrot.lane.b32.xlu0 %v11210_v12, %s11028_s6  ;;  %797 = vrot.lane.b32.xlu1 %v10362_v13, %s11028_s6 }
  0x45   : > { %822 = vrot.lane.b32.xlu0 %v10362_v13, %s11029_s25  ;;  %824 = vrot.lane.b32.xlu1 %v8352_v15, %s11029_s25  ;;  %s14115_s25 = sld [smem:[#allocation7_spill]] }
  0x8b   : > { %v776_v16 = vpop.permute.xlu0 %775  ;;  %v803_v18 = vpop.permute.xlu1 %802 }
  0x8c   : > { %v829_v17 = vsel %vm826_vm1, 0, %v776_v16 }
  0x8d   : > { %v865_v19 = vsel %vm863_vm2, %v829_v17, %v803_v18 }
  0x8e   : > { %9136 = vmatprep.mubr.msk.bf16.mxu0 %vm902_vm3, %v865_v19 }
  0x8f   : > { %v778_v20 = vpop.permute.xlu0 %777  ;;  %v805_v22 = vpop.permute.xlu1 %804 }
  0x90   : > { %v832_v21 = vsel %vm826_vm1, %v10350_v2, %v778_v20 }
  0x91   : > { %v867_v23 = vsel %vm863_vm2, %v832_v21, %v805_v22 }
  0x92   : > { %9137 = vmatmul.mubr.msk.bf16.vlgmr.msra.gmra.mrb[0].mxu0 %vm902_vm3, %v867_v23 }
  0x93   : > { %v780_v24 = vpop.permute.xlu0 %779  ;;  %v782_v25 = vpop.permute.xlu1 %781 }
  0x94   : > { %v835_v26 = vsel %vm826_vm1, %v10351_v3, %v780_v24  ;;  %v838_v27 = vsel %vm826_vm1, %v10352_v4, %v782_v25 }
  0x97   : > { %v807_v28 = vpop.permute.xlu0 %806  ;;  %v809_v30 = vpop.permute.xlu1 %808 }
  0x98   : > { %v869_v29 = vsel %vm863_vm2, %v835_v26, %v807_v28  ;;  %v871_v31 = vsel %vm863_vm2, %v838_v27, %v809_v30 }
  0x99   : > { %9140 = vmatprep.mubr.msk.bf16.mxu0 %vm902_vm3, %v869_v29 }
  0x9a   : > { %9141 = vmatmul.mubr.msk.bf16.gmra.mrb[4].mxu0 %vm902_vm3, %v871_v31 }
  0x9b   : > { %v784_v32 = vpop.permute.xlu0 %783  ;;  %v786_v33 = vpop.permute.xlu1 %785 }
  0x9c   : > { %v841_v34 = vsel %vm826_vm1, %v10353_v5, %v784_v32  ;;  %v844_v35 = vsel %vm826_vm1, %v10354_v6, %v786_v33 }
  0x9f   : > { %v811_v36 = vpop.permute.xlu0 %810  ;;  %v813_v38 = vpop.permute.xlu1 %812 }
  0xa0   : > { %v873_v37 = vsel %vm863_vm2, %v841_v34, %v811_v36  ;;  %v875_v39 = vsel %vm863_vm2, %v844_v35, %v813_v38 }
  0xa1   : > { %9144 = vmatprep.mubr.msk.bf16.mxu0 %vm902_vm3, %v873_v37 }
  0xa2   : > { %9145 = vmatmul.mubr.msk.bf16.gmra.mrb[8].mxu0 %vm902_vm3, %v875_v39 }
  0xa3   : > { %v788_v40 = vpop.permute.xlu0 %787  ;;  %v790_v41 = vpop.permute.xlu1 %789 }
  0xa4   : > { %v847_v42 = vsel %vm826_vm1, %v11182_v7, %v788_v40  ;;  %v850_v43 = vsel %vm826_vm1, %v10356_v8, %v790_v41 }
  0xa7   : > { %v815_v44 = vpop.permute.xlu0 %814  ;;  %v817_v46 = vpop.permute.xlu1 %816 }
  0xa8   : > { %v877_v45 = vsel %vm863_vm2, %v847_v42, %v815_v44  ;;  %v879_v47 = vsel %vm863_vm2, %v850_v43, %v817_v46  ;;  %v11031_v46 = vmov 0.0  }
  0xa9   : > { %9148 = vmatprep.mubr.msk.bf16.mxu0 %vm902_vm3, %v877_v45  ;;  %9160 = vmatprep.subr.bf16.mxu1 %v11031_v46 }
  0xaa   : > { %9149 = vmatmul.mubr.msk.bf16.gmra.mrb[12].mxu0 %vm902_vm3, %v879_v47  ;;  %9188 = vmatprep.subr.bf16.mxu0 %v11031_v46 }
  0xab   : > { %v792_v48 = vpop.permute.xlu0 %791  ;;  %v794_v49 = vpop.permute.xlu1 %793  ;;  %9162 = vmatprep.mubr.msk.bf16.mxu1 %vm11032_vm4, %v11031_v46 }
  0xac   : > { %v853_v50 = vsel %vm826_vm1, %v11191_v9, %v792_v48  ;;  %v856_v51 = vsel %vm826_vm1, %v11197_v10, %v794_v49 }
  0xaf   : > { %v819_v52 = vpop.permute.xlu0 %818  ;;  %v821_v54 = vpop.permute.xlu1 %820 }
  0xb0   : > { %v881_v53 = vsel %vm863_vm2, %v853_v50, %v819_v52  ;;  %v883_v55 = vsel %vm863_vm2, %v856_v51, %v821_v54 }
  0xb1   : > { %9152 = vmatprep.mubr.msk.bf16.mxu0 %vm902_vm3, %v881_v53 }
  0xb2   : > { %9153 = vmatmul.mubr.msk.bf16.gmra.mrb[16].mxu0 %vm902_vm3, %v883_v55 }
  0xb3   : > { %v796_v56 = vpop.permute.xlu0 %795  ;;  %v798_v57 = vpop.permute.xlu1 %797 }
  0xb4   : > { %v859_v58 = vsel %vm826_vm1, %v11203_v11, %v796_v56  ;;  %v862_v59 = vsel %vm826_vm1, %v11210_v12, %v798_v57 }
  0xb7   : > { %v823_v60 = vpop.permute.xlu0 %822  ;;  %v825_v62 = vpop.permute.xlu1 %824 }
  0xb8   : > { %v885_v61 = vsel %vm863_vm2, %v859_v58, %v823_v60  ;;  %v887_v63 = vsel %vm863_vm2, %v862_v59, %v825_v62 }
  0xb9   : > { %9156 = vmatprep.mubr.msk.bf16.mxu0 %vm902_vm3, %v885_v61 }
  0xba   : > { %9157 = vmatmul.mubr.msk.bf16.gmra.mrb[20].mxu0 %vm902_vm3, %v887_v63 }
  0xbb   : > { %9190 = vmatprep.mubr.msk.bf16.mxu0 %vm11032_vm4, %v11031_v46 }
 0x165   : > { %v9138_v1 = vpop.f32.mrb[0].mxu0 }
 0x166   : > { %v11275_v2 = vadd.f32 %v9138_v1, %v11272_v0  ;;  %v965_v3 = vpop.f32.mrb[1].mxu0 }
 0x167   : > { %v11278_v4 = vadd.f32 %v11272_v0, %v965_v3  ;;  %v9139_v5 = vpop.f32.mrb[2].mxu0 }
 0x168   : > { %v8369_v6 = vmul.f32 -1.442695, %v11275_v2  ;;  %v11282_v7 = vadd.f32 %v9139_v5, %v11272_v0  ;;  %v968_v8 = vpop.f32.mrb[3].mxu0 }
 0x169   : > { %v8367_v9 = vmul.f32 -1.442695, %v11278_v4  ;;  %v11286_v10 = vadd.f32 %v11272_v0, %v968_v8 }
 0x16a   : > { %10438 = vpow2.f32 %v8369_v6  ;;  %v8370_v11 = vmul.f32 -1.442695, %v11282_v7 }
 0x16b   : > { %10440 = vpow2.f32 %v8367_v9  ;;  %v8368_v12 = vmul.f32 -1.442695, %v11286_v10 }
 0x16c   : > { %10442 = vpow2.f32 %v8370_v11 }
 0x16d   : > { %10444 = vpow2.f32 %v8368_v12  ;;  %v9142_v13 = vpop.f32.mrb[4].mxu0 }
 0x16e   : > { %v11291_v15 = vadd.f32 %v9142_v13, %v11272_v0  ;;  %v981_v16 = vpop.f32.mrb[5].mxu0 }
 0x16f   : > { %v11294_v17 = vadd.f32 %v11272_v0, %v981_v16  ;;  %v9143_v18 = vpop.f32.mrb[6].mxu0 }
 0x170   : > { %v8373_v19 = vmul.f32 -1.442695, %v11291_v15  ;;  %v11298_v20 = vadd.f32 %v9143_v18, %v11272_v0  ;;  %v984_v21 = vpop.f32.mrb[7].mxu0 }
 0x171   : > { %v8371_v22 = vmul.f32 -1.442695, %v11294_v17  ;;  %v11302_v23 = vadd.f32 %v11272_v0, %v984_v21 }
 0x172   : > { %10446 = vpow2.f32 %v8373_v19  ;;  %v8374_v24 = vmul.f32 -1.442695, %v11298_v20 }
 0x173   : > { %10448 = vpow2.f32 %v8371_v22  ;;  %v8372_v25 = vmul.f32 -1.442695, %v11302_v23 }
 0x174   : > { %v10439_v26 = vpop.eup %10438  ;;  %10450 = vpow2.f32 %v8374_v24 }
 0x175   : > { %v10441_v27 = vpop.eup %10440  ;;  %v1134_v28 = vadd.f32 1.0, %v10439_v26  ;;  %10452 = vpow2.f32 %v8372_v25  ;;  %v9146_v29 = vpop.f32.mrb[8].mxu0 }
 0x176   : > { %v10443_v30 = vpop.eup %10442  ;;  %v1132_v31 = vadd.f32 1.0, %v10441_v27  ;;  %v11307_v32 = vadd.f32 %v9146_v29, %v11272_v0  ;;  %v997_v33 = vpop.f32.mrb[9].mxu0 }
 0x177   : > { %v10445_v34 = vpop.eup %10444  ;;  %10454 = vrcp.f32 %v1134_v28  ;;  %v1135_v35 = vadd.f32 1.0, %v10443_v30  ;;  %v11310_v36 = vadd.f32 %v11272_v0, %v997_v33  ;;  %v9147_v37 = vpop.f32.mrb[10].mxu0 }
 0x178   : > { %10456 = vrcp.f32 %v1132_v31  ;;  %v1133_v38 = vadd.f32 1.0, %v10445_v34  ;;  %v8377_v39 = vmul.f32 -1.442695, %v11307_v32  ;;  %v11314_v40 = vadd.f32 %v9147_v37, %v11272_v0  ;;  %v1000_v41 = vpop.f32.mrb[11].mxu0 }
 0x179   : > { %10458 = vrcp.f32 %v1135_v35  ;;  %v8375_v42 = vmul.f32 -1.442695, %v11310_v36  ;;  %v11318_v43 = vadd.f32 %v11272_v0, %v1000_v41 }
 0x17a   : > { %10460 = vrcp.f32 %v1133_v38  ;;  %v8378_v44 = vmul.f32 -1.442695, %v11314_v40 }
 0x17b   : > { %10462 = vpow2.f32 %v8377_v39  ;;  %v8376_v45 = vmul.f32 -1.442695, %v11318_v43 }
 0x17c   : > { %v10447_v47 = vpop.eup %10446  ;;  %10464 = vpow2.f32 %v8375_v42 }
 0x17d   : > { %v10449_v48 = vpop.eup %10448  ;;  %v1138_v49 = vadd.f32 1.0, %v10447_v47  ;;  %10466 = vpow2.f32 %v8378_v44  ;;  %v9150_v50 = vpop.f32.mrb[12].mxu0 }
 0x17e   : > { %v10451_v51 = vpop.eup %10450  ;;  %v1136_v52 = vadd.f32 1.0, %v10449_v48  ;;  %10468 = vpow2.f32 %v8376_v45  ;;  %v11325_v53 = vadd.f32 %v9150_v50, %v11272_v0  ;;  %v1013_v54 = vpop.f32.mrb[13].mxu0 }
 0x17f   : > { %v10453_v55 = vpop.eup %10452  ;;  %10470 = vrcp.f32 %v1138_v49  ;;  %v1139_v56 = vadd.f32 1.0, %v10451_v51  ;;  %v11328_v57 = vadd.f32 %v11272_v0, %v1013_v54  ;;  %v9151_v58 = vpop.f32.mrb[14].mxu0 }
 0x180   : > { %10472 = vrcp.f32 %v1136_v52  ;;  %v1137_v59 = vadd.f32 1.0, %v10453_v55  ;;  %v8381_v60 = vmul.f32 -1.442695, %v11325_v53  ;;  %v11336_v61 = vadd.f32 %v9151_v58, %v11272_v0  ;;  %v1016_v62 = vpop.f32.mrb[15].mxu0 }
 0x181   : > { %v10455_v63 = vpop.eup %10454  ;;  %10474 = vrcp.f32 %v1139_v56  ;;  %v8379_v1 = vmul.f32 -1.442695, %v11328_v57  ;;  %v11340_v3 = vadd.f32 %v11272_v0, %v1016_v62 }
 0x182   : > { %v10457_v5 = vpop.eup %10456  ;;  %10476 = vrcp.f32 %v1137_v59  ;;  %v8382_v6 = vmul.f32 -1.442695, %v11336_v61 }
 0x183   : > { %v10459_v8 = vpop.eup %10458  ;;  %10478 = vpow2.f32 %v8381_v60  ;;  %v8380_v9 = vmul.f32 -1.442695, %v11340_v3  ;;  %1228 = vrot.lane.b32.xlu0 %v10457_v5, %s11033_s29 }
 0x184   : > { %v10461_v11 = vpop.eup %10460  ;;  %10480 = vpow2.f32 %v8379_v1 }
 0x185   : > { %v10463_v12 = vpop.eup %10462  ;;  %10482 = vpow2.f32 %v8382_v6  ;;  %1230 = vrot.lane.b32.xlu1 %v10461_v11, %s11033_s29  ;;  %v9154_v13 = vpop.f32.mrb[16].mxu0 }
 0x186   : > { %v10465_v16 = vpop.eup %10464  ;;  %v1142_v18 = vadd.f32 1.0, %v10463_v12  ;;  %10484 = vpow2.f32 %v8380_v9  ;;  %v11347_v19 = vadd.f32 %v9154_v13, %v11272_v0  ;;  %v1029_v21 = vpop.f32.mrb[17].mxu0 }
 0x187   : > { %v10467_v22 = vpop.eup %10466  ;;  %v1140_v24 = vadd.f32 1.0, %v10465_v16  ;;  %1232 = vrot.lane.b32.xlu0 %v10455_v63, %s11033_s29  ;;  %v11351_v25 = vadd.f32 %v11272_v0, %v1029_v21  ;;  %v9155_v26 = vpop.f32.mrb[18].mxu0 }
 0x188   : > { %v10469_v27 = vpop.eup %10468  ;;  %10486 = vrcp.f32 %v1142_v18  ;;  %v1143_v28 = vadd.f32 1.0, %v10467_v22  ;;  %v8385_v29 = vmul.f32 -1.442695, %v11347_v19  ;;  %v11355_v30 = vadd.f32 %v9155_v26, %v11272_v0  ;;  %v1032_v31 = vpop.f32.mrb[19].mxu0 }
 0x189   : > { %v10471_v33 = vpop.eup %10470  ;;  %10488 = vrcp.f32 %v1140_v24  ;;  %v1141_v34 = vadd.f32 1.0, %v10469_v27  ;;  %1234 = vrot.lane.b32.xlu1 %v10459_v8, %s11033_s29  ;;  %v8383_v35 = vmul.f32 -1.442695, %v11351_v25  ;;  %v11360_v37 = vadd.f32 %v11272_v0, %v1032_v31 }
 0x18a   : > { %v10473_v38 = vpop.eup %10472  ;;  %10490 = vrcp.f32 %v1143_v28  ;;  %v8386_v39 = vmul.f32 -1.442695, %v11355_v30 }
 0x18b   : > { %v10475_v41 = vpop.eup %10474  ;;  %10492 = vrcp.f32 %v1141_v34  ;;  %1236 = vrot.lane.b32.xlu0 %v10473_v38, %s11033_s29  ;;  %v8384_v42 = vmul.f32 -1.442695, %v11360_v37 }
 0x18c   : > { %v10477_v44 = vpop.eup %10476  ;;  %10494 = vpow2.f32 %v8385_v29 }
 0x18d   : > { %v10479_v45 = vpop.eup %10478  ;;  %1238 = vrot.lane.b32.xlu1 %v10477_v44, %s11033_s29  ;;  %10496 = vpow2.f32 %v8383_v35  ;;  %v9158_v47 = vpop.f32.mrb[20].mxu0 }
 0x18e   : > { %v10481_v48 = vpop.eup %10480  ;;  %v1146_v49 = vadd.f32 1.0, %v10479_v45  ;;  %10498 = vpow2.f32 %v8386_v39  ;;  %v11367_v50 = vadd.f32 %v9158_v47, %v11272_v0  ;;  %v1045_v51 = vpop.f32.mrb[21].mxu0 }
 0x18f   : > { %v10483_v52 = vpop.eup %10482  ;;  %v1144_v54 = vadd.f32 1.0, %v10481_v48  ;;  %1240 = vrot.lane.b32.xlu0 %v10471_v33, %s11033_s29  ;;  %10500 = vpow2.f32 %v8384_v42  ;;  %v11371_v55 = vadd.f32 %v11272_v0, %v1045_v51  ;;  %v9159_v56 = vpop.f32.mrb[22].mxu0 }
 0x190   : > { %v10485_v58 = vpop.eup %10484  ;;  %10502 = vrcp.f32 %v1146_v49  ;;  %v1147_v59 = vadd.f32 1.0, %v10483_v52  ;;  %v8389_v60 = vmul.f32 -1.442695, %v11367_v50  ;;  %v11375_v62 = vadd.f32 %v9159_v56, %v11272_v0  ;;  %v1048_v63 = vpop.f32.mrb[23].mxu0 }
 0x191   : > { %10504 = vrcp.f32 %v1144_v54  ;;  %v1145_v1 = vadd.f32 1.0, %v10485_v58  ;;  %1242 = vrot.lane.b32.xlu1 %v10475_v41, %s11033_s29  ;;  %v8387_v5 = vmul.f32 -1.442695, %v11371_v55  ;;  %v11380_v6 = vadd.f32 %v11272_v0, %v1048_v63 }
 0x192   : > { %v10487_v8 = vpop.eup %10486  ;;  %10506 = vrcp.f32 %v1147_v59  ;;  %v8390_v9 = vmul.f32 -1.442695, %v11375_v62 }
 0x193   : > { %v10489_v11 = vpop.eup %10488  ;;  %10508 = vrcp.f32 %v1145_v1  ;;  %v8388_v12 = vmul.f32 -1.442695, %v11380_v6 }
 0x194   : > { %v10491_v13 = vpop.eup %10490  ;;  %1244 = vrot.lane.b32.xlu0 %v10489_v11, %s11033_s29  ;;  %10510 = vpow2.f32 %v8389_v60 }
 0x195   : > { %v10493_v16 = vpop.eup %10492  ;;  %10512 = vpow2.f32 %v8387_v5 }
 0x196   : > { %v10495_v18 = vpop.eup %10494  ;;  %1246 = vrot.lane.b32.xlu1 %v10493_v16, %s11033_s29  ;;  %10514 = vpow2.f32 %v8390_v9 }
 0x197   : > { %v10497_v0 = vpop.eup %10496  ;;  %v1150_v21 = vadd.f32 1.0, %v10495_v18  ;;  %10516 = vpow2.f32 %v8388_v12  ;;  %v11405_v12 = vld [vmem:[%s14112_s0] sm:$0xff]  }
 0x198   : > { %v10499_v22 = vpop.eup %10498  ;;  %v1148_v24 = vadd.f32 1.0, %v10497_v0  ;;  %1248 = vrot.lane.b32.xlu0 %v10487_v8, %s11033_s29 }
 0x199   : > { %v10501_v26 = vpop.eup %10500  ;;  %v1151_v28 = vadd.f32 1.0, %v10499_v22 }
 0x19a   : > { %v10503_v27 = vpop.eup %10502  ;;  %10518 = vrcp.f32 %v1148_v24  ;;  %v1149_v29 = vadd.f32 1.0, %v10501_v26  ;;  %1250 = vrot.lane.b32.xlu1 %v10491_v13, %s11033_s29  ;;  %v11420_v24 = vld [vmem:[%s14112_s0 + $0x8] sm:$0xff]  }
 0x19b   : > { %v10505_v31 = vpop.eup %10504  ;;  %10520 = vrcp.f32 %v1150_v21 }
 0x19c   : > { %v10507_v33 = vpop.eup %10506  ;;  %10522 = vrcp.f32 %v1149_v29  ;;  %1252 = vrot.lane.b32.xlu0 %v10505_v31, %s11033_s29  ;;  %v11436_v29 = vld [vmem:[%s14112_s0 + $0x10] sm:$0xff]  }
 0x19d   : > { %v10509_v34 = vpop.eup %10508  ;;  %10524 = vrcp.f32 %v1151_v28 }
 0x19e   : > { %v10511_v35 = vpop.eup %10510  ;;  %1254 = vrot.lane.b32.xlu1 %v10509_v34, %s11033_s29 }
 0x19f   : > { %v10513_v38 = vpop.eup %10512  ;;  %v1154_v39 = vadd.f32 1.0, %v10511_v35 }
 0x1a0   : > { %v10515_v41 = vpop.eup %10514  ;;  %1256 = vrot.lane.b32.xlu0 %v10503_v27, %s11033_s29  ;;  %v1152_v42 = vadd.f32 1.0, %v10513_v38 }
 0x1a1   : > { %v10517_v44 = vpop.eup %10516  ;;  %v1155_v45 = vadd.f32 1.0, %v10515_v41 }
 0x1a2   : > { %1258 = vrot.lane.b32.xlu1 %v10507_v33, %s11033_s29  ;;  %10526 = vrcp.f32 %v1152_v42  ;;  %v1153_v47 = vadd.f32 1.0, %v10517_v44 }
 0x1a3   : > { %10528 = vrcp.f32 %v1154_v39 }
 0x1a4   : > { %v10519_v48 = vpop.eup %10518  ;;  %10530 = vrcp.f32 %v1153_v47 }
 0x1a5   : > { %v10521_v49 = vpop.eup %10520  ;;  %1260 = vrot.lane.b32.xlu0 %v10519_v48, %s11033_s29  ;;  %10532 = vrcp.f32 %v1155_v45 }
 0x1a6   : > { %v10523_v51 = vpop.eup %10522 }
 0x1a7   : > { %1262 = vrot.lane.b32.xlu1 %v10523_v51, %s11033_s29  ;;  %v10525_v52 = vpop.eup %10524 }
 0x1a9   : > { %1264 = vrot.lane.b32.xlu0 %v10521_v49, %s11033_s29 }
 0x1ab   : > { %1266 = vrot.lane.b32.xlu1 %v10525_v52, %s11033_s29 }
 0x1ac   : > { %v10527_v54 = vpop.eup %10526 }
 0x1ad   : > { %v10529_v56 = vpop.eup %10528  ;;  %1268 = vrot.lane.b32.xlu0 %v10527_v54, %s11033_s29 }
 0x1ae   : > { %v10531_v58 = vpop.eup %10530 }
 0x1af   : > { %1270 = vrot.lane.b32.xlu1 %v10531_v58, %s11033_s29  ;;  %v10533_v59 = vpop.eup %10532 }
 0x1b1   : > { %1272 = vrot.lane.b32.xlu0 %v10529_v56, %s11033_s29 }
 0x1b3   : > { %1274 = vrot.lane.b32.xlu1 %v10533_v59, %s11033_s29 }
 0x1f5   : > { %v1229_v60 = vpop.permute.xlu0 %1228 }
 0x1f6   : > { %v1300_v1 = vmul.f32 %v1229_v60, %v11278_v4 }
 0x1f7   : > { %v1231_v63 = vpop.permute.xlu1 %1230 }
 0x1f8   : > { %v1301_v5 = vmul.f32 %v1231_v63, %v11286_v10 }
 0x1f9   : > { %v1233_v8 = vpop.permute.xlu0 %1232 }
 0x1fa   : > { %v1324_v9 = vpack.c.bf16 %v1301_v5, %v1300_v1  ;;  %v1302_v13 = vmul.f32 %v1233_v8, %v11275_v2 }
 0x1fb   : > { %v1235_v11 = vpop.permute.xlu1 %1234 }
 0x1fc   : > { %v1303_v16 = vmul.f32 %v1235_v11, %v11282_v7  ;;  %9161 = vmatpush3.bf16.msra.mxu1 %v1324_v9 }
 0x1fd   : > { %v1237_v18 = vpop.permute.xlu0 %1236  ;;  %9174 = vmatprep.subr.bf16.mxu1 %v11031_v46 }
 0x1fe   : > { %v1325_v4 = vpack.c.bf16 %v1303_v16, %v1302_v13  ;;  %v1304_v10 = vmul.f32 %v1237_v18, %v11294_v17 }
 0x1ff   : > { %v1239_v0 = vpop.permute.xlu1 %1238  ;;  %9163 = vmatmul.mubr.msk.bf16.vlgmr.msra.gmra.mrb[0].mxu1 %vm1351_vm5, %v11405_v12 }
 0x200   : > { %v1305_v21 = vmul.f32 %v1239_v0, %v11302_v23  ;;  %9175 = vmatpush3.bf16.msra.mxu1 %v1325_v4  ;;  %9166 = vmatprep.mubr.msk.bf16.mxu1 %vm11032_vm4, %v11031_v46 }
 0x201   : > { %v1241_v2 = vpop.permute.xlu0 %1240  ;;  %9202 = vmatprep.subr.bf16.mxu1 %v11031_v46 }
 0x202   : > { %v1326_v7 = vpack.c.bf16 %v1305_v21, %v1304_v10  ;;  %v1306_v33 = vmul.f32 %v1241_v2, %v11291_v15  ;;  %v10366_v21 = vld [vmem:[%s14113_s26] sm:$0xff]  }
 0x203   : > { %v1243_v22 = vpop.permute.xlu1 %1242 }
 0x204   : > { %9189 = vmatpush3.bf16.msra.mxu0 %v1326_v7 }
 0x205   : > { %9216 = vmatprep.subr.bf16.mxu0 %v11031_v46 }
 0x206   : > { %v1245_v17 = vpop.permute.xlu0 %1244 }
 0x207   : > { %9167 = vmatmul.mubr.msk.bf16.gmra.mrb[4].mxu1 %vm1351_vm5, %v11420_v24  ;;  %9191 = vmatmul.mubr.msk.bf16.vlgmr.msra.gmra.mrb[24].mxu0 %vm1351_vm5, %v11405_v12  ;;  %v1308_v26 = vmul.f32 %v1245_v17, %v11310_v36 }
 0x208   : > { %v1247_v23 = vpop.permute.xlu1 %1246  ;;  %9170 = vmatprep.mubr.msk.bf16.mxu1 %vm11032_vm4, %v11031_v46  ;;  %9194 = vmatprep.mubr.msk.bf16.mxu0 %vm11032_vm4, %v11031_v46 }
 0x209   : > { %v1309_v27 = vmul.f32 %v1247_v23, %v11318_v43  ;;  %v1307_v43 = vmul.f32 %v1243_v22, %v11298_v20  ;;  %v10367_v22 = vld [vmem:[%s14113_s26 + $0x8] sm:$0xff]  }
 0x20a   : > { %v1249_v31 = vpop.permute.xlu0 %1248 }
 0x20b   : > { %v1328_v28 = vpack.c.bf16 %v1309_v27, %v1308_v26  ;;  %v1327_v34 = vpack.c.bf16 %v1307_v43, %v1306_v33  ;;  %v10368_v27 = vld [vmem:[%s14113_s26 + $0x10] sm:$0xff]  }
 0x20c   : > { %v1251_v36 = vpop.permute.xlu1 %1250 }
 0x20d   : > { %9217 = vmatpush3.bf16.msra.mxu0 %v1328_v28 }
 0x20e   : > { %9244 = vmatprep.subr.bf16.mxu0 %v11031_v46  ;;  %v1253_v38 = vpop.permute.xlu0 %1252 }
 0x20f   : > { %9171 = vmatmul.mubr.msk.bf16.gmra.mrb[8].mxu1 %vm1351_vm5, %v11436_v29  ;;  %9195 = vmatmul.mubr.msk.bf16.gmra.mrb[28].mxu0 %vm1351_vm5, %v11420_v24  ;;  %v1312_v20 = vmul.f32 %v1253_v38, %v11328_v57  ;;  %v1311_v57 = vmul.f32 %v1251_v36, %v11314_v40 }
 0x210   : > { %9176 = vmatprep.mubr.msk.bf16.mxu1 %vm11032_vm4, %v11031_v46  ;;  %9198 = vmatprep.mubr.msk.bf16.mxu0 %vm11032_vm4, %v11031_v46  ;;  %v1255_v35 = vpop.permute.xlu1 %1254 }
 0x211   : > { %v1313_v15 = vmul.f32 %v1255_v35, %v11340_v3  ;;  %v1310_v3 = vmul.f32 %v1249_v31, %v11307_v32 }
 0x212   : > { %v1257_v41 = vpop.permute.xlu0 %1256 }
 0x213   : > { %v1330_v39 = vpack.c.bf16 %v1313_v15, %v1312_v20  ;;  %v1329_v44 = vpack.c.bf16 %v1311_v57, %v1310_v3 }
 0x214   : > { %v1259_v42 = vpop.permute.xlu1 %1258 }
 0x217   : > { %9177 = vmatmul.mubr.msk.bf16.vlgmr.msra.gmra.mrb[12].mxu1 %vm1351_vm5, %v11405_v12  ;;  %9199 = vmatmul.mubr.msk.bf16.gmra.mrb[32].mxu0 %vm1351_vm5, %v11436_v29  ;;  %v1261_v47 = vpop.permute.xlu0 %1260 }
 0x218   : > { %9203 = vmatpush3.bf16.msra.mxu1 %v1327_v34  ;;  %9180 = vmatprep.mubr.msk.bf16.mxu1 %vm11032_vm4, %v11031_v46  ;;  %v1316_v40 = vmul.f32 %v1261_v47, %v11351_v25  ;;  %v1315_v25 = vmul.f32 %v1259_v42, %v11336_v61  ;;  %v10369_v34 = vld [vmem:[%s14113_s26 + $0x18] sm:$0xff]  }
 0x219   : > { %9218 = vmatprep.mubr.msk.bf16.mxu0 %vm11032_vm4, %v11031_v46  ;;  %9230 = vmatprep.subr.bf16.mxu1 %v11031_v46  ;;  %v1263_v45 = vpop.permute.xlu1 %1262 }
 0x21a   : > { %v1317_v32 = vmul.f32 %v1263_v45, %v11360_v37  ;;  %v1314_v37 = vmul.f32 %v1257_v41, %v11325_v53  ;;  %v10371_v45 = vld [vmem:[%s14113_s26 + $0x28] sm:$0xff]  }
 0x21b   : > { %v1265_v51 = vpop.permute.xlu0 %1264 }
 0x21c   : > { %v1332_v48 = vpack.c.bf16 %v1317_v32, %v1316_v40  ;;  %v1331_v52 = vpack.c.bf16 %v1315_v25, %v1314_v37 }
 0x21d   : > { %v1267_v49 = vpop.permute.xlu1 %1266 }
 0x21f   : > { %9181 = vmatmul.mubr.msk.bf16.gmra.mrb[16].mxu1 %vm1351_vm5, %v11420_v24  ;;  %9219 = vmatmul.mubr.msk.bf16.vlgmr.msra.gmra.mrb[36].mxu0 %vm1351_vm5, %v11405_v12  ;;  %v1269_v56 = vpop.permute.xlu0 %1268 }
 0x220   : > { %9245 = vmatpush3.bf16.msra.mxu0 %v1330_v39  ;;  %9184 = vmatprep.mubr.msk.bf16.mxu1 %vm11032_vm4, %v11031_v46  ;;  %v1320_v61 = vmul.f32 %v1269_v56, %v11371_v55  ;;  %v1319_v55 = vmul.f32 %v1267_v49, %v11355_v30  ;;  %v10370_v39 = vld [vmem:[%s14113_s26 + $0x20] sm:$0xff]  }
 0x221   : > { %9222 = vmatprep.mubr.msk.bf16.mxu0 %vm11032_vm4, %v11031_v46  ;;  %9272 = vmatprep.subr.bf16.mxu0 %v11031_v46  ;;  %v1271_v54 = vpop.permute.xlu1 %1270 }
 0x222   : > { %v1321_v53 = vmul.f32 %v1271_v54, %v11380_v6  ;;  %v1318_v6 = vmul.f32 %v1265_v51, %v11347_v19 }
 0x223   : > { %v1273_v30 = vpop.permute.xlu0 %1272 }
 0x224   : > { %v1334_v58 = vpack.c.bf16 %v1321_v53, %v1320_v61  ;;  %v1333_v59 = vpack.c.bf16 %v1319_v55, %v1318_v6  ;;  %v1322_v63 = vmul.f32 %v1273_v30, %v11367_v50 }
 0x225   : > { %v1275_v19 = vpop.permute.xlu1 %1274 }
 0x226   : > { %v1323_v60 = vmul.f32 %v1275_v19, %v11375_v62 }
 0x227   : > { %9185 = vmatmul.mubr.msk.bf16.gmra.mrb[20].mxu1 %vm1351_vm5, %v11436_v29  ;;  %9223 = vmatmul.mubr.msk.bf16.gmra.mrb[40].mxu0 %vm1351_vm5, %v11420_v24 }
 0x228   : > { %9204 = vmatprep.mubr.msk.bf16.mxu1 %vm11032_vm4, %v11031_v46  ;;  %9226 = vmatprep.mubr.msk.bf16.mxu0 %vm11032_vm4, %v11031_v46  ;;  %v1335_v1 = vpack.c.bf16 %v1323_v60, %v1322_v63 }
 0x22f   : > { %9205 = vmatmul.mubr.msk.bf16.vlgmr.msra.gmra.mrb[24].mxu1 %vm1351_vm5, %v11405_v12  ;;  %9227 = vmatmul.mubr.msk.bf16.gmra.mrb[44].mxu0 %vm1351_vm5, %v11436_v29 }
 0x230   : > { %9231 = vmatpush3.bf16.msra.mxu1 %v1329_v44  ;;  %9208 = vmatprep.mubr.msk.bf16.mxu1 %vm11032_vm4, %v11031_v46 }
 0x231   : > { %9246 = vmatprep.mubr.msk.bf16.mxu0 %vm11032_vm4, %v11031_v46  ;;  %9258 = vmatprep.subr.bf16.mxu1 %v11031_v46 }
 0x237   : > { %9209 = vmatmul.mubr.msk.bf16.gmra.mrb[28].mxu1 %vm1351_vm5, %v11420_v24  ;;  %9247 = vmatmul.mubr.msk.bf16.vlgmr.msra.gmra.mrb[48].mxu0 %vm1351_vm5, %v11405_v12 }
 0x238   : > { %9273 = vmatpush3.bf16.msra.mxu0 %v1332_v48  ;;  %9212 = vmatprep.mubr.msk.bf16.mxu1 %vm11032_vm4, %v11031_v46 }
 0x239   : > { %9250 = vmatprep.mubr.msk.bf16.mxu0 %vm11032_vm4, %v11031_v46  ;;  %9300 = vmatprep.subr.bf16.mxu0 %v11031_v46 }
 0x23f   : > { %9213 = vmatmul.mubr.msk.bf16.gmra.mrb[32].mxu1 %vm1351_vm5, %v11436_v29  ;;  %9251 = vmatmul.mubr.msk.bf16.gmra.mrb[52].mxu0 %vm1351_vm5, %v11420_v24 }
 0x240   : > { %9232 = vmatprep.mubr.msk.bf16.mxu1 %vm11032_vm4, %v11031_v46  ;;  %9254 = vmatprep.mubr.msk.bf16.mxu0 %vm11032_vm4, %v11031_v46 }
 0x247   : > { %9233 = vmatmul.mubr.msk.bf16.vlgmr.msra.gmra.mrb[36].mxu1 %vm1351_vm5, %v11405_v12  ;;  %9255 = vmatmul.mubr.msk.bf16.gmra.mrb[56].mxu0 %vm1351_vm5, %v11436_v29 }
 0x248   : > { %9259 = vmatpush3.bf16.msra.mxu1 %v1331_v52  ;;  %9236 = vmatprep.mubr.msk.bf16.mxu1 %vm11032_vm4, %v11031_v46 }
 0x249   : > { %9274 = vmatprep.mubr.msk.bf16.mxu0 %vm11032_vm4, %v11031_v46  ;;  %9286 = vmatprep.subr.bf16.mxu1 %v11031_v46 }
 0x24f   : > { %9237 = vmatmul.mubr.msk.bf16.gmra.mrb[40].mxu1 %vm1351_vm5, %v11420_v24  ;;  %9275 = vmatmul.mubr.msk.bf16.vlgmr.msra.gmra.mrb[60].mxu0 %vm1351_vm5, %v11405_v12 }
 0x250   : > { %9240 = vmatprep.mubr.msk.bf16.mxu1 %vm11032_vm4, %v11031_v46  ;;  %9278 = vmatprep.mubr.msk.bf16.mxu0 %vm11032_vm4, %v11031_v46 }
 0x251   : > { %9301 = vmatpush3.bf16.msra.mxu0 %v1334_v58 }
 0x252   : > { %9328 = vmatprep.subr.bf16.mxu0 %v10366_v21 }
 0x257   : > { %9241 = vmatmul.mubr.msk.bf16.gmra.mrb[44].mxu1 %vm1351_vm5, %v11436_v29  ;;  %9279 = vmatmul.mubr.msk.bf16.gmra.mrb[64].mxu0 %vm1351_vm5, %v11420_v24 }
 0x258   : > { %9260 = vmatprep.mubr.msk.bf16.mxu1 %vm11032_vm4, %v11031_v46  ;;  %9282 = vmatprep.mubr.msk.bf16.mxu0 %vm11032_vm4, %v11031_v46 }
 0x25f   : > { %9261 = vmatmul.mubr.msk.bf16.vlgmr.msra.gmra.mrb[48].mxu1 %vm1351_vm5, %v11405_v12  ;;  %9283 = vmatmul.mubr.msk.bf16.gmra.mrb[68].mxu0 %vm1351_vm5, %v11436_v29 }
 0x260   : > { %9287 = vmatpush3.bf16.msra.mxu1 %v1333_v59  ;;  %9264 = vmatprep.mubr.msk.bf16.mxu1 %vm11032_vm4, %v11031_v46 }
 0x261   : > { %9314 = vmatprep.subr.bf16.mxu1 %v11031_v46  ;;  %9302 = vmatprep.mubr.msk.bf16.mxu0 %vm11032_vm4, %v11031_v46 }
 0x267   : > { %9265 = vmatmul.mubr.msk.bf16.gmra.mrb[52].mxu1 %vm1351_vm5, %v11420_v24  ;;  %9303 = vmatmul.mubr.msk.bf16.vlgmr.msra.gmra.mrb[72].mxu0 %vm1351_vm5, %v11405_v12 }
 0x268   : > { %9268 = vmatprep.mubr.msk.bf16.mxu1 %vm11032_vm4, %v11031_v46  ;;  %9306 = vmatprep.mubr.msk.bf16.mxu0 %vm11032_vm4, %v11031_v46 }
 0x269   : > { %9329 = vmatpush3.bf16.msra.mxu0 %v10366_v21 }
 0x26a   : > { %9330 = vmatprep.subr.bf16.mxu0 %v10367_v22 }
 0x26d   : > { %9331 = vmatpush3.bf16.msra.mxu0 %v10367_v22 }
 0x26e   : > { %9332 = vmatprep.subr.bf16.mxu0 %v10368_v27 }
 0x26f   : > { %9269 = vmatmul.mubr.msk.bf16.gmra.mrb[56].mxu1 %vm1351_vm5, %v11436_v29  ;;  %9307 = vmatmul.mubr.msk.bf16.gmra.mrb[76].mxu0 %vm1351_vm5, %v11420_v24 }
 0x270   : > { %9288 = vmatprep.mubr.msk.bf16.mxu1 %vm11032_vm4, %v11031_v46  ;;  %9310 = vmatprep.mubr.msk.bf16.mxu0 %vm11032_vm4, %v11031_v46 }
 0x271   : > { %9333 = vmatpush3.bf16.msra.mxu0 %v10368_v27 }
 0x272   : > { %9334 = vmatprep.subr.bf16.mxu0 %v10369_v34 }
 0x275   : > { %9335 = vmatpush3.bf16.msra.mxu0 %v10369_v34 }
 0x276   : > { %9336 = vmatprep.subr.bf16.mxu0 %v10370_v39 }
 0x277   : > { %9289 = vmatmul.mubr.msk.bf16.vlgmr.msra.gmra.mrb[60].mxu1 %vm1351_vm5, %v11405_v12  ;;  %9311 = vmatmul.mubr.msk.bf16.gmra.mrb[80].mxu0 %vm1351_vm5, %v11436_v29 }
 0x278   : > { %9292 = vmatprep.mubr.msk.bf16.mxu1 %vm11032_vm4, %v11031_v46  ;;  %9315 = vmatpush3.bf16.msra.mxu1 %v1335_v1 }
 0x279   : > { %9337 = vmatpush3.bf16.msra.mxu0 %v10370_v39 }
 0x27a   : > { %9338 = vmatprep.subr.bf16.mxu0 %v10371_v45 }
 0x27d   : > { %9339 = vmatpush3.bf16.msra.mxu0 %v10371_v45 }
 0x27f   : > { %9293 = vmatmul.mubr.msk.bf16.gmra.mrb[64].mxu1 %vm1351_vm5, %v11420_v24 }
 0x280   : > { %9296 = vmatprep.mubr.msk.bf16.mxu1 %vm11032_vm4, %v11031_v46 }
 0x287   : > { %9297 = vmatmul.mubr.msk.bf16.gmra.mrb[68].mxu1 %vm1351_vm5, %v11436_v29 }
 0x288   : > { %9316 = vmatprep.mubr.msk.bf16.mxu1 %vm11032_vm4, %v11031_v46 }
 0x28f   : > { %9317 = vmatmul.mubr.msk.bf16.vlgmr.msra.gmra.mrb[72].mxu1 %vm1351_vm5, %v11405_v12 }
 0x290   : > { %9320 = vmatprep.mubr.msk.bf16.mxu1 %vm11032_vm4, %v11031_v46 }
 0x297   : > { %9321 = vmatmul.mubr.msk.bf16.gmra.mrb[76].mxu1 %vm1351_vm5, %v11420_v24 }
 0x298   : > { %9324 = vmatprep.mubr.msk.bf16.mxu1 %vm11032_vm4, %v11031_v46 }
 0x29f   : > { %9325 = vmatmul.mubr.msk.bf16.gmra.mrb[80].mxu1 %vm1351_vm5, %v11436_v29 }
 0x2d2   : > { %v11589_v50 = vpop.f32.mrb[0].mxu1 }
 0x2d3   : > { %v9164_v62 = vpop.f32.mrb[1].mxu1 }
 0x2d4   : > { %v11591_v5 = vpop.f32.mrb[2].mxu1 }
 0x2d5   : > { %v9165_v8 = vpop.f32.mrb[3].mxu1 }
 0x2da   : > { %v1403_v9 = vpop.f32.mrb[4].mxu1  ;;  %v11593_v11 = vpop.f32.mrb[24].mxu0 }
 0x2db   : > { %v9168_v12 = vpop.f32.mrb[5].mxu1  ;;  %v9192_v13 = vpop.f32.mrb[25].mxu0 }
 0x2dc   : > { %v1406_v16 = vpop.f32.mrb[6].mxu1  ;;  %v11595_v18 = vpop.f32.mrb[26].mxu0 }
 0x2dd   : > { %v9990_v4 = vpack.i.bf16 %v1406_v16, %v1403_v9  ;;  %v9169_v0 = vpop.f32.mrb[7].mxu1  ;;  %v9193_v10 = vpop.f32.mrb[27].mxu0 }
 0x2df   : > { %9991 = vrot.lane.b32.xlu0 %v9990_v4, %s11034_s2 }
 0x2e2   : > { %v1411_v2 = vpop.f32.mrb[8].mxu1  ;;  %v1517_v7 = vpop.f32.mrb[28].mxu0 }
 0x2e3   : > { %v9172_v24 = vpop.f32.mrb[9].mxu1  ;;  %v9196_v17 = vpop.f32.mrb[29].mxu0 }
 0x2e4   : > { %v1414_v23 = vpop.f32.mrb[10].mxu1  ;;  %v1520_v26 = vpop.f32.mrb[30].mxu0 }
 0x2e5   : > { %v9995_v28 = vpack.i.bf16 %v1414_v23, %v1411_v2  ;;  %v9173_v29 = vpop.f32.mrb[11].mxu1  ;;  %v10000_v36 = vpack.i.bf16 %v1520_v26, %v1517_v7  ;;  %v9197_v43 = vpop.f32.mrb[31].mxu0 }
 0x2e7   : > { %9996 = vrot.lane.b32.xlu0 %v9995_v28, %s11035_s1 }
 0x2ea   : > { %v11608_v31 = vpop.f32.mrb[12].mxu1  ;;  %v1525_v33 = vpop.f32.mrb[32].mxu0 }
 0x2eb   : > { %v9178_v35 = vpop.f32.mrb[13].mxu1  ;;  %10001 = vrot.lane.b32.xlu0 %v10000_v36, %s11034_s2  ;;  %v9200_v38 = vpop.f32.mrb[33].mxu0 }
 0x2ec   : > { %v11614_v15 = vpop.f32.mrb[14].mxu1  ;;  %v1528_v20 = vpop.f32.mrb[34].mxu0 }
 0x2ed   : > { %v10005_v57 = vpack.i.bf16 %v1528_v20, %v1525_v33  ;;  %v9179_v3 = vpop.f32.mrb[15].mxu1  ;;  %v9201_v41 = vpop.f32.mrb[35].mxu0 }
 0x2ef   : > { %10006 = vrot.lane.b32.xlu0 %v10005_v57, %s11035_s1 }
 0x2f2   : > { %v1460_v42 = vpop.f32.mrb[16].mxu1  ;;  %v11620_v44 = vpop.f32.mrb[36].mxu0 }
 0x2f3   : > { %v9182_v47 = vpop.f32.mrb[17].mxu1  ;;  %v9220_v32 = vpop.f32.mrb[37].mxu0 }
 0x2f4   : > { %v1463_v40 = vpop.f32.mrb[18].mxu1  ;;  %v11625_v48 = vpop.f32.mrb[38].mxu0 }
 0x2f5   : > { %v10010_v25 = vpack.i.bf16 %v1463_v40, %v1460_v42  ;;  %v9183_v37 = vpop.f32.mrb[19].mxu1  ;;  %v9221_v49 = vpop.f32.mrb[39].mxu0 }
 0x2f7   : > { %10011 = vrot.lane.b32.xlu1 %v10010_v25, %s11034_s2 }
 0x2fa   : > { %v1468_v51 = vpop.f32.mrb[20].mxu1  ;;  %v1631_v52 = vpop.f32.mrb[40].mxu0 }
 0x2fb   : > { %v9186_v54 = vpop.f32.mrb[21].mxu1  ;;  %v9224_v56 = vpop.f32.mrb[41].mxu0 }
 0x2fc   : > { %v1471_v53 = vpop.f32.mrb[22].mxu1  ;;  %v1634_v61 = vpop.f32.mrb[42].mxu0 }
 0x2fd   : > { %v10015_v58 = vpack.i.bf16 %v1471_v53, %v1468_v51  ;;  %v10020_v55 = vpack.i.bf16 %v1634_v61, %v1631_v52  ;;  %v9187_v6 = vpop.f32.mrb[23].mxu1  ;;  %v9225_v59 = vpop.f32.mrb[43].mxu0 }
 0x2ff   : > { %10016 = vrot.lane.b32.xlu1 %v10015_v58, %s11035_s1  ;;  %10021 = vrot.lane.b32.xlu0 %v10020_v55, %s11034_s2 }
 0x302   : > { %v11630_v19 = vpop.f32.mrb[24].mxu1  ;;  %v1639_v30 = vpop.f32.mrb[44].mxu0 }
 0x303   : > { %v9206_v60 = vpop.f32.mrb[25].mxu1  ;;  %v9228_v63 = vpop.f32.mrb[45].mxu0 }
 0x304   : > { %v11632_v1 = vpop.f32.mrb[26].mxu1  ;;  %v1642_v62 = vpop.f32.mrb[46].mxu0 }
 0x305   : > { %v10025_v8 = vpack.i.bf16 %v1642_v62, %v1639_v30  ;;  %v9207_v9 = vpop.f32.mrb[27].mxu1  ;;  %v9229_v12 = vpop.f32.mrb[47].mxu0 }
 0x307   : > { %10026 = vrot.lane.b32.xlu0 %v10025_v8, %s11035_s1 }
 0x30a   : > { %v1574_v13 = vpop.f32.mrb[28].mxu1  ;;  %v11635_v16 = vpop.f32.mrb[48].mxu0 }
 0x30b   : > { %v9210_v4 = vpop.f32.mrb[29].mxu1  ;;  %v9248_v0 = vpop.f32.mrb[49].mxu0 }
 0x30c   : > { %v1577_v10 = vpop.f32.mrb[30].mxu1  ;;  %v11637_v21 = vpop.f32.mrb[50].mxu0 }
 0x30d   : > { %v10030_v2 = vpack.i.bf16 %v1577_v10, %v1574_v13  ;;  %v9211_v7 = vpop.f32.mrb[31].mxu1  ;;  %v9249_v22 = vpop.f32.mrb[51].mxu0 }
 0x30f   : > { %10031 = vrot.lane.b32.xlu1 %v10030_v2, %s11034_s2 }
 0x312   : > { %v1582_v24 = vpop.f32.mrb[32].mxu1  ;;  %v1745_v17 = vpop.f32.mrb[52].mxu0 }
 0x313   : > { %v9214_v23 = vpop.f32.mrb[33].mxu1  ;;  %v9252_v26 = vpop.f32.mrb[53].mxu0 }
 0x314   : > { %v1585_v27 = vpop.f32.mrb[34].mxu1  ;;  %v1748_v28 = vpop.f32.mrb[54].mxu0 }
 0x315   : > { %v10035_v29 = vpack.i.bf16 %v1585_v27, %v1582_v24  ;;  %v10050_v36 = vpack.i.bf16 %v1748_v28, %v1745_v17  ;;  %v9215_v43 = vpop.f32.mrb[35].mxu1  ;;  %v9253_v33 = vpop.f32.mrb[55].mxu0 }
 0x317   : > { %10036 = vrot.lane.b32.xlu1 %v10035_v29, %s11035_s1  ;;  %10051 = vrot.lane.b32.xlu0 %v10050_v36, %s11034_s2 }
 0x31a   : > { %v11642_v34 = vpop.f32.mrb[36].mxu1  ;;  %v1753_v35 = vpop.f32.mrb[56].mxu0 }
 0x31b   : > { %v9234_v38 = vpop.f32.mrb[37].mxu1  ;;  %v9256_v20 = vpop.f32.mrb[57].mxu0 }
 0x31c   : > { %v11644_v39 = vpop.f32.mrb[38].mxu1  ;;  %v1756_v57 = vpop.f32.mrb[58].mxu0 }
 0x31d   : > { %v10055_v3 = vpack.i.bf16 %v1756_v57, %v1753_v35  ;;  %v9235_v41 = vpop.f32.mrb[39].mxu1  ;;  %v9257_v42 = vpop.f32.mrb[59].mxu0 }
 0x31f   : > { %10056 = vrot.lane.b32.xlu0 %v10055_v3, %s11035_s1 }
 0x322   : > { %v1688_v45 = vpop.f32.mrb[40].mxu1  ;;  %v11647_v47 = vpop.f32.mrb[60].mxu0 }
 0x323   : > { %v9238_v32 = vpop.f32.mrb[41].mxu1  ;;  %v9276_v40 = vpop.f32.mrb[61].mxu0 }
 0x324   : > { %v1691_v25 = vpop.f32.mrb[42].mxu1  ;;  %v11649_v37 = vpop.f32.mrb[62].mxu0 }
 0x325   : > { %v10040_v49 = vpack.i.bf16 %v1691_v25, %v1688_v45  ;;  %v9239_v51 = vpop.f32.mrb[43].mxu1  ;;  %v9277_v52 = vpop.f32.mrb[63].mxu0 }
 0x327   : > { %10041 = vrot.lane.b32.xlu1 %v10040_v49, %s11034_s2 }
 0x32a   : > { %v1696_v54 = vpop.f32.mrb[44].mxu1  ;;  %v1859_v56 = vpop.f32.mrb[64].mxu0 }
 0x32b   : > { %v9242_v53 = vpop.f32.mrb[45].mxu1  ;;  %v9280_v61 = vpop.f32.mrb[65].mxu0 }
 0x32c   : > { %v1699_v58 = vpop.f32.mrb[46].mxu1  ;;  %v1862_v55 = vpop.f32.mrb[66].mxu0 }
 0x32d   : > { %v10045_v6 = vpack.i.bf16 %v1699_v58, %v1696_v54  ;;  %v10070_v59 = vpack.i.bf16 %v1862_v55, %v1859_v56  ;;  %v9243_v30 = vpop.f32.mrb[47].mxu1  ;;  %v9281_v60 = vpop.f32.mrb[67].mxu0 }
 0x32f   : > { %10046 = vrot.lane.b32.xlu1 %v10045_v6, %s11035_s1  ;;  %10071 = vrot.lane.b32.xlu0 %v10070_v59, %s11034_s2 }
 0x332   : > { %v1867_v63 = vpop.f32.mrb[68].mxu0  ;;  %v11654_v62 = vpop.f32.mrb[48].mxu1 }
 0x333   : > { %v9284_v8 = vpop.f32.mrb[69].mxu0  ;;  %v9262_v9 = vpop.f32.mrb[49].mxu1 }
 0x334   : > { %v1870_v12 = vpop.f32.mrb[70].mxu0  ;;  %v11656_v13 = vpop.f32.mrb[50].mxu1 }
 0x335   : > { %v10075_v4 = vpack.i.bf16 %v1870_v12, %v1867_v63  ;;  %v9263_v0 = vpop.f32.mrb[51].mxu1  ;;  %v9285_v10 = vpop.f32.mrb[71].mxu0 }
 0x337   : > { %10076 = vrot.lane.b32.xlu0 %v10075_v4, %s11035_s1 }
 0x33a   : > { %v1802_v2 = vpop.f32.mrb[52].mxu1  ;;  %v11659_v7 = vpop.f32.mrb[72].mxu0 }
 0x33b   : > { %v9266_v22 = vpop.f32.mrb[53].mxu1  ;;  %v9304_v24 = vpop.f32.mrb[73].mxu0 }
 0x33c   : > { %v1805_v17 = vpop.f32.mrb[54].mxu1  ;;  %v11661_v23 = vpop.f32.mrb[74].mxu0 }
 0x33d   : > { %v10060_v26 = vpack.i.bf16 %v1805_v17, %v1802_v2  ;;  %v9267_v27 = vpop.f32.mrb[55].mxu1  ;;  %v9305_v28 = vpop.f32.mrb[75].mxu0 }
 0x33f   : > { %10061 = vrot.lane.b32.xlu1 %v10060_v26, %s11034_s2 }
 0x342   : > { %v1810_v29 = vpop.f32.mrb[56].mxu1  ;;  %v1973_v36 = vpop.f32.mrb[76].mxu0 }
 0x343   : > { %v9270_v43 = vpop.f32.mrb[57].mxu1  ;;  %v9308_v33 = vpop.f32.mrb[77].mxu0 }
 0x344   : > { %v1813_v35 = vpop.f32.mrb[58].mxu1  ;;  %v1976_v38 = vpop.f32.mrb[78].mxu0 }
 0x345   : > { %v10065_v20 = vpack.i.bf16 %v1813_v35, %v1810_v29  ;;  %v9271_v57 = vpop.f32.mrb[59].mxu1  ;;  %v10090_v3 = vpack.i.bf16 %v1976_v38, %v1973_v36  ;;  %v9309_v41 = vpop.f32.mrb[79].mxu0 }
 0x347   : > { %10066 = vrot.lane.b32.xlu1 %v10065_v20, %s11035_s1  ;;  %10091 = vrot.lane.b32.xlu0 %v10090_v3, %s11034_s2 }
 0x34a   : > { %v11666_v42 = vpop.f32.mrb[60].mxu1  ;;  %v1981_v45 = vpop.f32.mrb[80].mxu0 }
 0x34b   : > { %v9290_v32 = vpop.f32.mrb[61].mxu1  ;;  %v9312_v40 = vpop.f32.mrb[81].mxu0 }
 0x34c   : > { %v11668_v25 = vpop.f32.mrb[62].mxu1  ;;  %v1984_v49 = vpop.f32.mrb[82].mxu0 }
 0x34d   : > { %v9291_v51 = vpop.f32.mrb[63].mxu1  ;;  %v10095_v52 = vpack.i.bf16 %v1984_v49, %v1981_v45  ;;  %v9313_v54 = vpop.f32.mrb[83].mxu0 }
 0x34f   : > { %10096 = vrot.lane.b32.xlu0 %v10095_v52, %s11035_s1 }
 0x351   : > { %v9992_v61 = vpop.permute.xlu0 %9991 }
 0x352   : > { %v1916_v56 = vpop.f32.mrb[64].mxu1  ;;  %v9994_v59 = vunpack.i.h.bf16 %v9992_v61  ;;  %v9993_v30 = vunpack.i.l.bf16 %v9992_v61 }
 0x353   : > { %v9294_v53 = vpop.f32.mrb[65].mxu1 }
 0x354   : > { %v1919_v58 = vpop.f32.mrb[66].mxu1  ;;  %v2239_v12 = vsel %vm2237_vm6, %v11591_v5, %v9994_v59  ;;  %v2238_v4 = vsel %vm2237_vm6, %v11589_v50, %v9993_v30 }
 0x355   : > { %v10080_v55 = vpack.i.bf16 %v1919_v58, %v1916_v56  ;;  %v9295_v6 = vpop.f32.mrb[67].mxu1 }
 0x357   : > { %10081 = vrot.lane.b32.xlu1 %v10080_v55, %s11034_s2 }
 0x359   : > { %v9997_v60 = vpop.permute.xlu0 %9996 }
 0x35a   : > { %v9999_v63 = vunpack.i.h.bf16 %v9997_v60  ;;  %v9998_v8 = vunpack.i.l.bf16 %v9997_v60  ;;  %v1924_v9 = vpop.f32.mrb[68].mxu1 }
 0x35b   : > { %v9298_v0 = vpop.f32.mrb[69].mxu1 }
 0x35c   : > { %v2263_v10 = vsel %vm2262_vm7, %v2238_v4, %v9998_v8  ;;  %v2264_v2 = vsel %vm2262_vm7, %v2239_v12, %v9999_v63  ;;  %v1927_v22 = vpop.f32.mrb[70].mxu1 }
 0x35d   : > { %v10085_v24 = vpack.i.bf16 %v1927_v22, %v1924_v9  ;;  %v10002_v17 = vpop.permute.xlu0 %10001  ;;  %v2287_v26 = vpack.c.bf16 %v2264_v2, %v2263_v10  ;;  %v9299_v27 = vpop.f32.mrb[71].mxu1 }
 0x35e   : > { %v10004_v28 = vunpack.i.h.bf16 %v10002_v17  ;;  %v10003_v29 = vunpack.i.l.bf16 %v10002_v17 }
 0x35f   : > { %10086 = vrot.lane.b32.xlu1 %v10085_v24, %s11035_s1  ;;  %9340 = vmatprep.mubr.msk.bf16.mxu0 %vm2354_vm8, %v2287_v26 }
 0x360   : > { %v2243_v33 = vsel %vm2237_vm6, %v11595_v18, %v10004_v28  ;;  %v2242_v35 = vsel %vm2237_vm6, %v11593_v11, %v10003_v29 }
 0x361   : > { %v10007_v5 = vpop.permute.xlu0 %10006 }
 0x362   : > { %v10009_v36 = vunpack.i.h.bf16 %v10007_v5  ;;  %v10008_v50 = vunpack.i.l.bf16 %v10007_v5  ;;  %v11680_v43 = vpop.f32.mrb[72].mxu1 }
 0x363   : > { %v9318_v38 = vpop.f32.mrb[73].mxu1 }
 0x364   : > { %v2267_v20 = vsel %vm2262_vm7, %v2242_v35, %v10008_v50  ;;  %v2268_v57 = vsel %vm2262_vm7, %v2243_v33, %v10009_v36  ;;  %v11688_v3 = vpop.f32.mrb[74].mxu1 }
 0x365   : > { %v9319_v41 = vpop.f32.mrb[75].mxu1  ;;  %v2289_v45 = vpack.c.bf16 %v2268_v57, %v2267_v20 }
 0x369   : > { %v10012_v49 = vpop.permute.xlu1 %10011 }
 0x36a   : > { %v2030_v32 = vpop.f32.mrb[76].mxu1  ;;  %v10014_v56 = vunpack.i.h.bf16 %v10012_v49  ;;  %v10013_v18 = vunpack.i.l.bf16 %v10012_v49 }
 0x36b   : > { %v9322_v40 = vpop.f32.mrb[77].mxu1 }
 0x36c   : > { %v2033_v51 = vpop.f32.mrb[78].mxu1  ;;  %v2241_v55 = vsel %vm2237_vm6, %v11614_v15, %v10014_v56  ;;  %v2240_v6 = vsel %vm2237_vm6, %v11608_v31, %v10013_v18 }
 0x36d   : > { %v10100_v52 = vpack.i.bf16 %v2033_v51, %v2030_v32  ;;  %v9323_v54 = vpop.f32.mrb[79].mxu1 }
 0x36f   : > { %10101 = vrot.lane.b32.xlu1 %v10100_v52, %s11034_s2 }
 0x371   : > { %v10017_v11 = vpop.permute.xlu1 %10016  ;;  %v10022_v63 = vpop.permute.xlu0 %10021 }
 0x372   : > { %v10019_v53 = vunpack.i.h.bf16 %v10017_v11  ;;  %v10018_v61 = vunpack.i.l.bf16 %v10017_v11  ;;  %v2038_v58 = vpop.f32.mrb[80].mxu1  ;;  %v10024_v0 = vunpack.i.h.bf16 %v10022_v63  ;;  %v10023_v10 = vunpack.i.l.bf16 %v10022_v63 }
 0x373   : > { %v9326_v59 = vpop.f32.mrb[81].mxu1 }
 0x374   : > { %v2266_v30 = vsel %vm2262_vm7, %v2241_v55, %v10019_v53  ;;  %v2265_v60 = vsel %vm2262_vm7, %v2240_v6, %v10018_v61  ;;  %v2041_v8 = vpop.f32.mrb[82].mxu1  ;;  %v2247_v22 = vsel %vm2237_vm6, %v11625_v48, %v10024_v0  ;;  %v2246_v24 = vsel %vm2237_vm6, %v11620_v44, %v10023_v10 }
 0x375   : > { %v2288_v9 = vpack.c.bf16 %v2266_v30, %v2265_v60  ;;  %v10105_v12 = vpack.i.bf16 %v2041_v8, %v2038_v58  ;;  %v9327_v4 = vpop.f32.mrb[83].mxu1 }
 0x377   : > { %10106 = vrot.lane.b32.xlu1 %v10105_v12, %s11035_s1  ;;  %9341 = vmatmul.mubr.msk.bf16.vlgmr.msra.gmra.mrb[84].mxu0 %vm2354_vm8, %v2288_v9 }
 0x378   : > { %9344 = vmatprep.mubr.msk.bf16.mxu0 %vm2354_vm8, %v2289_v45 }
 0x379   : > { %v10027_v15 = vpop.permute.xlu0 %10026 }
 0x37a   : > { %v10029_v31 = vunpack.i.h.bf16 %v10027_v15  ;;  %v10028_v2 = vunpack.i.l.bf16 %v10027_v15 }
 0x37c   : > { %v2271_v17 = vsel %vm2262_vm7, %v2246_v24, %v10028_v2  ;;  %v2272_v26 = vsel %vm2262_vm7, %v2247_v22, %v10029_v31 }
 0x37d   : > { %v2291_v27 = vpack.c.bf16 %v2272_v26, %v2271_v17 }
 0x381   : > { %v10032_v28 = vpop.permute.xlu1 %10031 }
 0x382   : > { %v10034_v29 = vunpack.i.h.bf16 %v10032_v28  ;;  %v10033_v5 = vunpack.i.l.bf16 %v10032_v28 }
 0x384   : > { %v2245_v35 = vsel %vm2237_vm6, %v11632_v1, %v10034_v29  ;;  %v2244_v48 = vsel %vm2237_vm6, %v11630_v19, %v10033_v5 }
 0x389   : > { %v10037_v36 = vpop.permute.xlu1 %10036  ;;  %v10052_v20 = vpop.permute.xlu0 %10051 }
 0x38a   : > { %v10039_v50 = vunpack.i.h.bf16 %v10037_v36  ;;  %v10038_v33 = vunpack.i.l.bf16 %v10037_v36  ;;  %v10054_v41 = vunpack.i.h.bf16 %v10052_v20  ;;  %v10053_v45 = vunpack.i.l.bf16 %v10052_v20 }
 0x38c   : > { %v2270_v38 = vsel %vm2262_vm7, %v2245_v35, %v10039_v50  ;;  %v2269_v44 = vsel %vm2262_vm7, %v2244_v48, %v10038_v33  ;;  %v2251_v1 = vsel %vm2237_vm6, %v11637_v21, %v10054_v41  ;;  %v2250_v19 = vsel %vm2237_vm6, %v11635_v16, %v10053_v45 }
 0x38d   : > { %v2290_v57 = vpack.c.bf16 %v2270_v38, %v2269_v44 }
 0x38f   : > { %9345 = vmatmul.mubr.msk.bf16.gmra.mrb[88].mxu0 %vm2354_vm8, %v2290_v57 }
 0x390   : > { %9348 = vmatprep.mubr.msk.bf16.mxu0 %vm2354_vm8, %v2291_v27 }
 0x391   : > { %v10057_v32 = vpop.permute.xlu0 %10056 }
 0x392   : > { %v10059_v40 = vunpack.i.h.bf16 %v10057_v32  ;;  %v10058_v49 = vunpack.i.l.bf16 %v10057_v32 }
 0x394   : > { %v2275_v51 = vsel %vm2262_vm7, %v2250_v19, %v10058_v49  ;;  %v2276_v52 = vsel %vm2262_vm7, %v2251_v1, %v10059_v40 }
 0x395   : > { %v2293_v54 = vpack.c.bf16 %v2276_v52, %v2275_v51 }
 0x399   : > { %v10042_v56 = vpop.permute.xlu1 %10041 }
 0x39a   : > { %v10044_v18 = vunpack.i.h.bf16 %v10042_v56  ;;  %v10043_v11 = vunpack.i.l.bf16 %v10042_v56 }
 0x39c   : > { %v2249_v55 = vsel %vm2237_vm6, %v11644_v39, %v10044_v18  ;;  %v2248_v21 = vsel %vm2237_vm6, %v11642_v34, %v10043_v11 }
 0x3a1   : > { %v10047_v53 = vpop.permute.xlu1 %10046  ;;  %v10072_v59 = vpop.permute.xlu0 %10071 }
 0x3a2   : > { %v10049_v61 = vunpack.i.h.bf16 %v10047_v53  ;;  %v10048_v58 = vunpack.i.l.bf16 %v10047_v53  ;;  %v10074_v60 = vunpack.i.h.bf16 %v10072_v59  ;;  %v10073_v63 = vunpack.i.l.bf16 %v10072_v59 }
 0x3a4   : > { %v2274_v6 = vsel %vm2262_vm7, %v2249_v55, %v10049_v61  ;;  %v2273_v16 = vsel %vm2262_vm7, %v2248_v21, %v10048_v58  ;;  %v2255_v39 = vsel %vm2237_vm6, %v11649_v37, %v10074_v60  ;;  %v2254_v34 = vsel %vm2237_vm6, %v11647_v47, %v10073_v63  ;;  %v10372_v55 = vld [vmem:[%s14114_s5] sm:$0xff]  }
 0x3a5   : > { %v2292_v30 = vpack.c.bf16 %v2274_v6, %v2273_v16  ;;  %9364 = vmatprep.subr.bf16.mxu1 %v10372_v55  ;;  %v10373_v16 = vld [vmem:[%s14114_s5 + $0x8] sm:$0xff]  }
 0x3a6   : > { %9365 = vmatpush3.bf16.msra.mxu1 %v10372_v55 }
 0x3a7   : > { %9349 = vmatmul.mubr.msk.bf16.gmra.mrb[92].mxu0 %vm2354_vm8, %v2292_v30  ;;  %9366 = vmatprep.subr.bf16.mxu1 %v10373_v16 }
 0x3a8   : > { %9352 = vmatprep.mubr.msk.bf16.mxu0 %vm2354_vm8, %v2293_v54 }
 0x3a9   : > { %v10077_v8 = vpop.permute.xlu0 %10076 }
 0x3aa   : > { %v10079_v9 = vunpack.i.h.bf16 %v10077_v8  ;;  %v10078_v12 = vunpack.i.l.bf16 %v10077_v8  ;;  %v10374_v8 = vld [vmem:[%s14114_s5 + $0x10] sm:$0xff]   ;;  %9367 = vmatpush3.bf16.msra.mxu1 %v10373_v16 }
 0x3ab   : > { %9368 = vmatprep.subr.bf16.mxu1 %v10374_v8 }
 0x3ac   : > { %v2279_v4 = vsel %vm2262_vm7, %v2254_v34, %v10078_v12  ;;  %v2280_v0 = vsel %vm2262_vm7, %v2255_v39, %v10079_v9 }
 0x3ad   : > { %v2295_v10 = vpack.c.bf16 %v2280_v0, %v2279_v4  ;;  %v10375_v0 = vld [vmem:[%s14114_s5 + $0x18] sm:$0xff]  }
 0x3ae   : > { %9369 = vmatpush3.bf16.msra.mxu1 %v10374_v8 }
 0x3af   : > { %9370 = vmatprep.subr.bf16.mxu1 %v10375_v0 }
 0x3b1   : > { %v10062_v15 = vpop.permute.xlu1 %10061 }
 0x3b2   : > { %v10064_v31 = vunpack.i.h.bf16 %v10062_v15  ;;  %v10063_v2 = vunpack.i.l.bf16 %v10062_v15  ;;  %9371 = vmatpush3.bf16.msra.mxu1 %v10375_v0 }
 0x3b4   : > { %v2253_v26 = vsel %vm2237_vm6, %v11656_v13, %v10064_v31  ;;  %v2252_v37 = vsel %vm2237_vm6, %v11654_v62, %v10063_v2  ;;  %v10376_v31 = vld [vmem:[%s14114_s5 + $0x20] sm:$0xff]   ;;  %v10377_v2 = vld [vmem:[%s14114_s5 + $0x28] sm:$0xff]  }
 0x3b5   : > { %9372 = vmatprep.subr.bf16.mxu1 %v10376_v31 }
 0x3b6   : > { %9373 = vmatpush3.bf16.msra.mxu1 %v10376_v31 }
 0x3b7   : > { %9374 = vmatprep.subr.bf16.mxu1 %v10377_v2 }
 0x3b9   : > { %v10067_v22 = vpop.permute.xlu1 %10066  ;;  %v10092_v27 = vpop.permute.xlu0 %10091 }
 0x3ba   : > { %v10069_v24 = vunpack.i.h.bf16 %v10067_v22  ;;  %v10068_v17 = vunpack.i.l.bf16 %v10067_v22  ;;  %v10094_v5 = vunpack.i.h.bf16 %v10092_v27  ;;  %v10093_v36 = vunpack.i.l.bf16 %v10092_v27  ;;  %9375 = vmatpush3.bf16.msra.mxu1 %v10377_v2 }
 0x3bb   : > { %9436 = vmatprep.subr.bf16.mxu1 %v11031_v46 }
 0x3bc   : > { %v2278_v47 = vsel %vm2262_vm7, %v2253_v26, %v10069_v24  ;;  %v2277_v28 = vsel %vm2262_vm7, %v2252_v37, %v10068_v17  ;;  %v2259_v50 = vsel %vm2237_vm6, %v11661_v23, %v10094_v5  ;;  %v2258_v13 = vsel %vm2237_vm6, %v11659_v7, %v10093_v36 }
 0x3bd   : > { %v2294_v29 = vpack.c.bf16 %v2278_v47, %v2277_v28 }
 0x3bf   : > { %9353 = vmatmul.mubr.msk.bf16.gmra.mrb[96].mxu0 %vm2354_vm8, %v2294_v29 }
 0x3c0   : > { %9356 = vmatprep.mubr.msk.bf16.mxu0 %vm2354_vm8, %v2295_v10 }
 0x3c1   : > { %v10097_v33 = vpop.permute.xlu0 %10096 }
 0x3c2   : > { %v10099_v62 = vunpack.i.h.bf16 %v10097_v33  ;;  %v10098_v35 = vunpack.i.l.bf16 %v10097_v33 }
 0x3c4   : > { %v2283_v48 = vsel %vm2262_vm7, %v2258_v13, %v10098_v35  ;;  %v2284_v38 = vsel %vm2262_vm7, %v2259_v50, %v10099_v62 }
 0x3c5   : > { %v2297_v44 = vpack.c.bf16 %v2284_v38, %v2283_v48 }
 0x3c9   : > { %v10082_v20 = vpop.permute.xlu1 %10081 }
 0x3ca   : > { %v10084_v57 = vunpack.i.h.bf16 %v10082_v20  ;;  %v10083_v41 = vunpack.i.l.bf16 %v10082_v20 }
 0x3cc   : > { %v2257_v23 = vsel %vm2237_vm6, %v11668_v25, %v10084_v57  ;;  %v2256_v7 = vsel %vm2237_vm6, %v11666_v42, %v10083_v41 }
 0x3d1   : > { %v10087_v45 = vpop.permute.xlu1 %10086 }
 0x3d2   : > { %v10089_v32 = vunpack.i.h.bf16 %v10087_v45  ;;  %v10088_v40 = vunpack.i.l.bf16 %v10087_v45 }
 0x3d4   : > { %v2282_v49 = vsel %vm2262_vm7, %v2257_v23, %v10089_v32  ;;  %v2281_v1 = vsel %vm2262_vm7, %v2256_v7, %v10088_v40 }
 0x3d5   : > { %v2296_v19 = vpack.c.bf16 %v2282_v49, %v2281_v1 }
 0x3d7   : > { %9357 = vmatmul.mubr.msk.bf16.gmra.mrb[100].mxu0 %vm2354_vm8, %v2296_v19 }
 0x3d8   : > { %9360 = vmatprep.mubr.msk.bf16.mxu0 %vm2354_vm8, %v2297_v44 }
 0x3e1   : > { %v10102_v51 = vpop.permute.xlu1 %10101 }
 0x3e2   : > { %v10104_v52 = vunpack.i.h.bf16 %v10102_v51  ;;  %v10103_v54 = vunpack.i.l.bf16 %v10102_v51 }
 0x3e4   : > { %v2261_v56 = vsel %vm2237_vm6, %v11688_v3, %v10104_v52  ;;  %v2260_v25 = vsel %vm2237_vm6, %v11680_v43, %v10103_v54  ;;  %v11769_v3 = vld [vmem:[%s14115_s25] ss:$0 sm:$0xff] }
 0x3e9   : > { %v10107_v18 = vpop.permute.xlu1 %10106 }
 0x3ea   : > { %v10109_v42 = vunpack.i.h.bf16 %v10107_v18  ;;  %v10108_v11 = vunpack.i.l.bf16 %v10107_v18 }
 0x3ec   : > { %v2286_v53 = vsel %vm2262_vm7, %v2261_v56, %v10109_v42  ;;  %v2285_v61 = vsel %vm2262_vm7, %v2260_v25, %v10108_v11 }
 0x3ed   : > { %v2298_v58 = vpack.c.bf16 %v2286_v53, %v2285_v61 }
 0x3ef   : > { %9361 = vmatmul.mubr.msk.bf16.gmra.mrb[104].mxu0 %vm2354_vm8, %v2298_v58 }
 0x44a   : > { %v9342_v43 = vpop.f32.mrb[84].mxu0 }
 0x44b   : > { %v2434_v21 = vadd.f32 %v9342_v43, %v11769_v3  ;;  %v2425_v6 = vpop.f32.mrb[85].mxu0 }
 0x44c   : > { %v2426_v59 = vadd.f32 %v11769_v3, %v2425_v6  ;;  %v9343_v30 = vpop.f32.mrb[86].mxu0 }
 0x44d   : > { %v2437_v60 = vadd.f32 %v9343_v30, %v11769_v3  ;;  %v2428_v63 = vpop.f32.mrb[87].mxu0  ;;  %v2522_v12 = vmax.f32 %v2434_v21, 0.0 }
 0x44e   : > { %v2429_v9 = vadd.f32 %v11769_v3, %v2428_v63  ;;  %v2520_v34 = vmax.f32 %v2426_v59, 0.0 }
 0x44f   : > { %v2523_v39 = vmax.f32 %v2437_v60, 0.0 }
 0x450   : > { %v2521_v4 = vmax.f32 %v2429_v9, 0.0 }
 0x451   : > { %v11784_v10 = vpack.c.bf16 %v2523_v39, %v2522_v12 }
 0x452   : > { %v11786_v15 = vpack.c.bf16 %v2521_v4, %v2520_v34 }
 0x453   : > { %2570 = vrot.lane.b32.xlu1 %v11784_v10, %s11034_s2 }
 0x454   : > { %2568 = vrot.lane.b32.xlu0 %v11786_v15, %s11034_s2 }
 0x458   : > { %2592 = vrot.lane.b32.xlu0 %v11784_v10, %s11035_s1 }
 0x462   : > { %v9346_v22 = vpop.f32.mrb[88].mxu0 }
 0x463   : > { %v2450_v24 = vadd.f32 %v9346_v22, %v11769_v3  ;;  %v2441_v17 = vpop.f32.mrb[89].mxu0 }
 0x464   : > { %v2442_v26 = vadd.f32 %v11769_v3, %v2441_v17  ;;  %v9347_v37 = vpop.f32.mrb[90].mxu0 }
 0x465   : > { %v2453_v27 = vadd.f32 %v9347_v37, %v11769_v3  ;;  %v2444_v47 = vpop.f32.mrb[91].mxu0  ;;  %v2526_v29 = vmax.f32 %v2450_v24, 0.0 }
 0x466   : > { %v2445_v28 = vadd.f32 %v11769_v3, %v2444_v47  ;;  %v2524_v36 = vmax.f32 %v2442_v26, 0.0 }
 0x467   : > { %v2527_v5 = vmax.f32 %v2453_v27, 0.0 }
 0x468   : > { %v2525_v50 = vmax.f32 %v2445_v28, 0.0 }
 0x469   : > { %v11805_v13 = vpack.c.bf16 %v2527_v5, %v2526_v29 }
 0x46a   : > { %v11807_v33 = vpack.c.bf16 %v2525_v50, %v2524_v36 }
 0x46c   : > { %2594 = vrot.lane.b32.xlu1 %v11807_v33, %s11035_s1  ;;  %2572 = vrot.lane.b32.xlu0 %v11807_v33, %s11034_s2 }
 0x470   : > { %2574 = vrot.lane.b32.xlu1 %v11805_v13, %s11034_s2  ;;  %2596 = vrot.lane.b32.xlu0 %v11805_v13, %s11035_s1 }
 0x47a   : > { %v9350_v62 = vpop.f32.mrb[92].mxu0 }
 0x47b   : > { %v2466_v35 = vadd.f32 %v9350_v62, %v11769_v3  ;;  %v2457_v48 = vpop.f32.mrb[93].mxu0 }
 0x47c   : > { %v2458_v38 = vadd.f32 %v11769_v3, %v2457_v48  ;;  %v9351_v44 = vpop.f32.mrb[94].mxu0 }
 0x47d   : > { %v2469_v20 = vadd.f32 %v9351_v44, %v11769_v3  ;;  %v2460_v57 = vpop.f32.mrb[95].mxu0  ;;  %v2530_v45 = vmax.f32 %v2466_v35, 0.0 }
 0x47e   : > { %v2461_v41 = vadd.f32 %v11769_v3, %v2460_v57  ;;  %v2528_v40 = vmax.f32 %v2458_v38, 0.0 }
 0x47f   : > { %v2531_v32 = vmax.f32 %v2469_v20, 0.0 }
 0x480   : > { %v2529_v23 = vmax.f32 %v2461_v41, 0.0 }
 0x481   : > { %v11821_v7 = vpack.c.bf16 %v2531_v32, %v2530_v45 }
 0x482   : > { %v11823_v49 = vpack.c.bf16 %v2529_v23, %v2528_v40 }
 0x484   : > { %2598 = vrot.lane.b32.xlu1 %v11823_v49, %s11035_s1  ;;  %2576 = vrot.lane.b32.xlu0 %v11823_v49, %s11034_s2 }
 0x488   : > { %2578 = vrot.lane.b32.xlu1 %v11821_v7, %s11034_s2  ;;  %2600 = vrot.lane.b32.xlu0 %v11821_v7, %s11035_s1 }
 0x492   : > { %v9354_v1 = vpop.f32.mrb[96].mxu0 }
 0x493   : > { %v2482_v19 = vadd.f32 %v9354_v1, %v11769_v3  ;;  %v2473_v51 = vpop.f32.mrb[97].mxu0 }
 0x494   : > { %v2474_v52 = vadd.f32 %v11769_v3, %v2473_v51  ;;  %v9355_v54 = vpop.f32.mrb[98].mxu0 }
 0x495   : > { %v2485_v56 = vadd.f32 %v9355_v54, %v11769_v3  ;;  %v2476_v25 = vpop.f32.mrb[99].mxu0  ;;  %v2534_v42 = vmax.f32 %v2482_v19, 0.0 }
 0x496   : > { %v2477_v18 = vadd.f32 %v11769_v3, %v2476_v25  ;;  %v2532_v53 = vmax.f32 %v2474_v52, 0.0 }
 0x497   : > { %v2535_v11 = vmax.f32 %v2485_v56, 0.0 }
 0x498   : > { %v2533_v61 = vmax.f32 %v2477_v18, 0.0 }
 0x499   : > { %v11837_v58 = vpack.c.bf16 %v2535_v11, %v2534_v42 }
 0x49a   : > { %v11839_v55 = vpack.c.bf16 %v2533_v61, %v2532_v53 }
 0x49c   : > { %2602 = vrot.lane.b32.xlu1 %v11839_v55, %s11035_s1  ;;  %2580 = vrot.lane.b32.xlu0 %v11839_v55, %s11034_s2 }
 0x4a0   : > { %2582 = vrot.lane.b32.xlu1 %v11837_v58, %s11034_s2  ;;  %2604 = vrot.lane.b32.xlu0 %v11837_v58, %s11035_s1 }
 0x4aa   : > { %v9358_v43 = vpop.f32.mrb[100].mxu0 }
 0x4ab   : > { %v2498_v21 = vadd.f32 %v9358_v43, %v11769_v3  ;;  %v2489_v6 = vpop.f32.mrb[101].mxu0 }
 0x4ac   : > { %v2490_v16 = vadd.f32 %v11769_v3, %v2489_v6  ;;  %v9359_v59 = vpop.f32.mrb[102].mxu0 }
 0x4ad   : > { %v2501_v30 = vadd.f32 %v9359_v59, %v11769_v3  ;;  %v2492_v60 = vpop.f32.mrb[103].mxu0  ;;  %v2538_v8 = vmax.f32 %v2498_v21, 0.0 }
 0x4ae   : > { %v2493_v63 = vadd.f32 %v11769_v3, %v2492_v60  ;;  %v2536_v12 = vmax.f32 %v2490_v16, 0.0 }
 0x4af   : > { %v2539_v9 = vmax.f32 %v2501_v30, 0.0 }
 0x4b0   : > { %v2537_v39 = vmax.f32 %v2493_v63, 0.0 }
 0x4b1   : > { %v11853_v34 = vpack.c.bf16 %v2539_v9, %v2538_v8 }
 0x4b2   : > { %v11855_v4 = vpack.c.bf16 %v2537_v39, %v2536_v12 }
 0x4b4   : > { %2606 = vrot.lane.b32.xlu1 %v11855_v4, %s11035_s1  ;;  %2584 = vrot.lane.b32.xlu0 %v11855_v4, %s11034_s2 }
 0x4b8   : > { %2586 = vrot.lane.b32.xlu1 %v11853_v34, %s11034_s2  ;;  %2608 = vrot.lane.b32.xlu0 %v11853_v34, %s11035_s1 }
 0x4c2   : > { %v9362_v0 = vpop.f32.mrb[104].mxu0 }
 0x4c3   : > { %v2514_v31 = vadd.f32 %v9362_v0, %v11769_v3  ;;  %v2505_v2 = vpop.f32.mrb[105].mxu0 }
 0x4c4   : > { %v2506_v22 = vadd.f32 %v11769_v3, %v2505_v2  ;;  %v9363_v24 = vpop.f32.mrb[106].mxu0 }
 0x4c5   : > { %v2542_v17 = vmax.f32 %v2514_v31, 0.0  ;;  %v2517_v26 = vadd.f32 %v9363_v24, %v11769_v3  ;;  %v2508_v37 = vpop.f32.mrb[107].mxu0 }
 0x4c6   : > { %v2540_v27 = vmax.f32 %v2506_v22, 0.0  ;;  %v2509_v47 = vadd.f32 %v11769_v3, %v2508_v37  ;;  %v2569_v28 = vpop.permute.xlu0 %2568  ;;  %v2571_v3 = vpop.permute.xlu1 %2570 }
 0x4c7   : > { %v2543_v29 = vmax.f32 %v2517_v26, 0.0  ;;  %v2617_v62 = vsel %vm2237_vm6, 0, %v2569_v28  ;;  %v2620_v38 = vsel %vm2237_vm6, %v11786_v15, %v2571_v3 }
 0x4c8   : > { %v2541_v5 = vmax.f32 %v2509_v47, 0.0 }
 0x4c9   : > { %v2555_v36 = vpack.c.bf16 %v2543_v29, %v2542_v17 }
 0x4ca   : > { %v2554_v50 = vpack.c.bf16 %v2541_v5, %v2540_v27  ;;  %v2593_v35 = vpop.permute.xlu0 %2592 }
 0x4cb   : > { %v2652_v48 = vsel %vm2262_vm7, %v2617_v62, %v2593_v35 }
 0x4cc   : > { %2610 = vrot.lane.b32.xlu1 %v2554_v50, %s11035_s1  ;;  %2588 = vrot.lane.b32.xlu0 %v2554_v50, %s11034_s2 }
 0x4cd   : > { %9376 = vmatprep.mubr.msk.bf16.mxu1 %vm2354_vm8, %v2652_v48 }
 0x4d0   : > { %2590 = vrot.lane.b32.xlu1 %v2555_v36, %s11034_s2  ;;  %2612 = vrot.lane.b32.xlu0 %v2555_v36, %s11035_s1 }
 0x4d4   : > { %2614 = vrot.lane.b32.xlu1 %v11030_v14, %s11035_s1 }
 0x4de   : > { %v2595_v44 = vpop.permute.xlu1 %2594  ;;  %v2573_v20 = vpop.permute.xlu0 %2572 }
 0x4df   : > { %v2654_v57 = vsel %vm2262_vm7, %v2620_v38, %v2595_v44  ;;  %v2623_v41 = vsel %vm2237_vm6, %v11784_v10, %v2573_v20 }
 0x4e0   : > { %9377 = vmatmul.mubr.msk.bf16.vlgmr.msra.gmra.mrb[84].mxu1 %vm2354_vm8, %v2654_v57 }
 0x4e2   : > { %v2597_v45 = vpop.permute.xlu0 %2596  ;;  %v2575_v40 = vpop.permute.xlu1 %2574 }
 0x4e3   : > { %v2656_v32 = vsel %vm2262_vm7, %v2623_v41, %v2597_v45  ;;  %v2626_v14 = vsel %vm2237_vm6, %v11807_v33, %v2575_v40 }
 0x4e4   : > { %9380 = vmatprep.mubr.msk.bf16.mxu1 %vm2354_vm8, %v2656_v32 }
 0x4f6   : > { %v2599_v23 = vpop.permute.xlu1 %2598  ;;  %v2577_v15 = vpop.permute.xlu0 %2576 }
 0x4f7   : > { %v2658_v1 = vsel %vm2262_vm7, %v2626_v14, %v2599_v23  ;;  %v2629_v19 = vsel %vm2237_vm6, %v11805_v13, %v2577_v15 }
 0x4f8   : > { %9381 = vmatmul.mubr.msk.bf16.gmra.mrb[88].mxu1 %vm2354_vm8, %v2658_v1 }
 0x4fa   : > { %v2601_v51 = vpop.permute.xlu0 %2600  ;;  %v2579_v52 = vpop.permute.xlu1 %2578 }
 0x4fb   : > { %v2660_v10 = vsel %vm2262_vm7, %v2629_v19, %v2601_v51  ;;  %v2632_v54 = vsel %vm2237_vm6, %v11823_v49, %v2579_v52 }
 0x4fc   : > { %9384 = vmatprep.mubr.msk.bf16.mxu1 %vm2354_vm8, %v2660_v10 }
 0x50e   : > { %v2603_v56 = vpop.permute.xlu1 %2602  ;;  %v2581_v33 = vpop.permute.xlu0 %2580 }
 0x50f   : > { %v2662_v25 = vsel %vm2262_vm7, %v2632_v54, %v2603_v56  ;;  %v2635_v18 = vsel %vm2237_vm6, %v11821_v7, %v2581_v33 }
 0x510   : > { %9385 = vmatmul.mubr.msk.bf16.gmra.mrb[92].mxu1 %vm2354_vm8, %v2662_v25 }
 0x512   : > { %v2605_v42 = vpop.permute.xlu0 %2604  ;;  %v2583_v11 = vpop.permute.xlu1 %2582 }
 0x513   : > { %v2664_v13 = vsel %vm2262_vm7, %v2635_v18, %v2605_v42  ;;  %v2638_v53 = vsel %vm2237_vm6, %v11839_v55, %v2583_v11 }
 0x514   : > { %9388 = vmatprep.mubr.msk.bf16.mxu1 %vm2354_vm8, %v2664_v13 }
 0x526   : > { %v2607_v61 = vpop.permute.xlu1 %2606  ;;  %v2585_v49 = vpop.permute.xlu0 %2584 }
 0x527   : > { %v2666_v43 = vsel %vm2262_vm7, %v2638_v53, %v2607_v61  ;;  %v2641_v21 = vsel %vm2237_vm6, %v11837_v58, %v2585_v49 }
 0x528   : > { %9389 = vmatmul.mubr.msk.bf16.gmra.mrb[96].mxu1 %vm2354_vm8, %v2666_v43 }
 0x52a   : > { %v2609_v6 = vpop.permute.xlu0 %2608  ;;  %v2587_v16 = vpop.permute.xlu1 %2586 }
 0x52b   : > { %v2668_v7 = vsel %vm2262_vm7, %v2641_v21, %v2609_v6  ;;  %v2644_v59 = vsel %vm2237_vm6, %v11855_v4, %v2587_v16 }
 0x52c   : > { %9392 = vmatprep.mubr.msk.bf16.mxu1 %vm2354_vm8, %v2668_v7 }
 0x53e   : > { %v2611_v30 = vpop.permute.xlu1 %2610  ;;  %v2589_v55 = vpop.permute.xlu0 %2588 }
 0x53f   : > { %v2670_v60 = vsel %vm2262_vm7, %v2644_v59, %v2611_v30  ;;  %v2647_v63 = vsel %vm2237_vm6, %v11853_v34, %v2589_v55  ;;  %v11929_v34 = vld [vmem:[%s14083_s7] ss:$0 sm:$0xff] }
 0x540   : > { %9393 = vmatmul.mubr.msk.bf16.gmra.mrb[100].mxu1 %vm2354_vm8, %v2670_v60 }
 0x542   : > { %v2591_v8 = vpop.permute.xlu1 %2590  ;;  %v2613_v58 = vpop.permute.xlu0 %2612 }
 0x543   : > { %v2672_v9 = vsel %vm2262_vm7, %v2647_v63, %v2613_v58  ;;  %v2650_v12 = vsel %vm2237_vm6, %v2554_v50, %v2591_v8 }
 0x544   : > { %9396 = vmatprep.mubr.msk.bf16.mxu1 %vm2354_vm8, %v2672_v9 }
 0x546   : > { %v11919_v39 = vpop.permute.xlu1 %2614 }
 0x547   : > { %v2674_v4 = vsel %vm2262_vm7, %v2650_v12, %v11919_v39 }
 0x548   : > { %9397 = vmatmul.mubr.msk.bf16.gmra.mrb[104].mxu1 %vm2354_vm8, %v2674_v4 }
 0x549   : > { %9438 = vmatprep.mubr.msk.bf16.mxu1 %vm11032_vm4, %v11031_v46 }
 0x5b3   : > { %v9378_v0 = vpop.f32.mrb[84].mxu1 }
 0x5b4   : > { %v11932_v31 = vadd.f32 %v9378_v0, %v11929_v34  ;;  %v2788_v2 = vpop.f32.mrb[85].mxu1 }
 0x5b5   : > { %v11935_v22 = vadd.f32 %v11929_v34, %v2788_v2  ;;  %v9379_v24 = vpop.f32.mrb[86].mxu1 }
 0x5b6   : > { %v8470_v17 = vmul.f32 -1.442695, %v11932_v31  ;;  %v11939_v26 = vadd.f32 %v9379_v24, %v11929_v34  ;;  %v2791_v37 = vpop.f32.mrb[87].mxu1 }
 0x5b7   : > { %v8468_v27 = vmul.f32 -1.442695, %v11935_v22  ;;  %v11943_v47 = vadd.f32 %v11929_v34, %v2791_v37 }
 0x5b8   : > { %10534 = vpow2.f32 %v8470_v17  ;;  %v8471_v28 = vmul.f32 -1.442695, %v11939_v26 }
 0x5b9   : > { %10536 = vpow2.f32 %v8468_v27  ;;  %v8469_v29 = vmul.f32 -1.442695, %v11943_v47 }
 0x5ba   : > { %10538 = vpow2.f32 %v8471_v28 }
 0x5bb   : > { %10540 = vpow2.f32 %v8469_v29 }
 0x5c2   : > { %v10535_v5 = vpop.eup %10534 }
 0x5c3   : > { %v10537_v36 = vpop.eup %10536  ;;  %v2957_v50 = vadd.f32 1.0, %v10535_v5 }
 0x5c4   : > { %v10539_v62 = vpop.eup %10538  ;;  %v2955_v48 = vadd.f32 1.0, %v10537_v36 }
 0x5c5   : > { %v10541_v35 = vpop.eup %10540  ;;  %10542 = vrcp.f32 %v2957_v50  ;;  %v2958_v3 = vadd.f32 1.0, %v10539_v62 }
 0x5c6   : > { %v2956_v38 = vadd.f32 1.0, %v10541_v35 }
 0x5c7   : > { %10544 = vrcp.f32 %v2958_v3 }
 0x5c8   : > { %10546 = vrcp.f32 %v2955_v48 }
 0x5c9   : > { %10548 = vrcp.f32 %v2956_v38 }
 0x5cb   : > { %v9382_v44 = vpop.f32.mrb[88].mxu1 }
 0x5cc   : > { %v11948_v20 = vadd.f32 %v9382_v44, %v11929_v34  ;;  %v2804_v57 = vpop.f32.mrb[89].mxu1 }
 0x5cd   : > { %v11951_v41 = vadd.f32 %v11929_v34, %v2804_v57  ;;  %v9383_v45 = vpop.f32.mrb[90].mxu1  ;;  %v10378_v57 = vld [vmem:[%s14084_s8] sm:$0xff]  }
 0x5ce   : > { %v8474_v32 = vmul.f32 -1.442695, %v11948_v20  ;;  %v11955_v40 = vadd.f32 %v9383_v45, %v11929_v34  ;;  %v2807_v14 = vpop.f32.mrb[91].mxu1  ;;  %9400 = vmatprep.subr.bf16.mxu0 %v10378_v57  ;;  %v10379_v45 = vld [vmem:[%s14084_s8 + $0x8] sm:$0xff]  }
 0x5cf   : > { %v10543_v23 = vpop.eup %10542  ;;  %v8472_v15 = vmul.f32 -1.442695, %v11951_v41  ;;  %v11959_v1 = vadd.f32 %v11929_v34, %v2807_v14  ;;  %9401 = vmatpush3.bf16.msra.mxu0 %v10378_v57 }
 0x5d0   : > { %10550 = vpow2.f32 %v8474_v32  ;;  %v8475_v19 = vmul.f32 -1.442695, %v11955_v40  ;;  %3055 = vrot.lane.b32.xlu0 %v10543_v23, %s11033_s29  ;;  %9402 = vmatprep.subr.bf16.mxu0 %v10379_v45 }
 0x5d1   : > { %v10545_v51 = vpop.eup %10544  ;;  %10552 = vpow2.f32 %v8472_v15  ;;  %v8473_v10 = vmul.f32 -1.442695, %v11959_v1 }
 0x5d2   : > { %10554 = vpow2.f32 %v8475_v19  ;;  %3057 = vrot.lane.b32.xlu1 %v10545_v51, %s11033_s29  ;;  %v10547_v52 = vpop.eup %10546 }
 0x5d3   : > { %10556 = vpow2.f32 %v8473_v10  ;;  %v10549_v54 = vpop.eup %10548  ;;  %9403 = vmatpush3.bf16.msra.mxu0 %v10379_v45 }
 0x5d4   : > { %3051 = vrot.lane.b32.xlu0 %v10547_v52, %s11033_s29 }
 0x5d6   : > { %3053 = vrot.lane.b32.xlu1 %v10549_v54, %s11033_s29 }
 0x5da   : > { %v10551_v56 = vpop.eup %10550 }
 0x5db   : > { %v10553_v33 = vpop.eup %10552  ;;  %v2961_v13 = vadd.f32 1.0, %v10551_v56  ;;  %v10380_v56 = vld [vmem:[%s14084_s8 + $0x10] sm:$0xff]  }
 0x5dc   : > { %v10555_v25 = vpop.eup %10554  ;;  %v2959_v18 = vadd.f32 1.0, %v10553_v33  ;;  %9404 = vmatprep.subr.bf16.mxu0 %v10380_v56 }
 0x5dd   : > { %v10557_v42 = vpop.eup %10556  ;;  %v2962_v53 = vadd.f32 1.0, %v10555_v25  ;;  %9405 = vmatpush3.bf16.msra.mxu0 %v10380_v56 }
 0x5de   : > { %10558 = vrcp.f32 %v2959_v18  ;;  %v2960_v11 = vadd.f32 1.0, %v10557_v42 }
 0x5e0   : > { %10560 = vrcp.f32 %v2960_v11 }
 0x5e1   : > { %10562 = vrcp.f32 %v2961_v13 }
 0x5e2   : > { %10564 = vrcp.f32 %v2962_v53 }
 0x5e3   : > { %v9386_v61 = vpop.f32.mrb[92].mxu1 }
 0x5e4   : > { %v2820_v49 = vpop.f32.mrb[93].mxu1  ;;  %v11998_v48 = vadd.f32 %v9386_v61, %v11929_v34 }
 0x5e5   : > { %v11968_v43 = vadd.f32 %v11929_v34, %v2820_v49  ;;  %v9387_v21 = vpop.f32.mrb[94].mxu1 }
 0x5e6   : > { %v2823_v6 = vpop.f32.mrb[95].mxu1  ;;  %v8478_v3 = vmul.f32 -1.442695, %v11998_v48  ;;  %v12012_v32 = vadd.f32 %v9387_v21, %v11929_v34 }
 0x5e7   : > { %v8476_v7 = vmul.f32 -1.442695, %v11968_v43  ;;  %v11972_v16 = vadd.f32 %v11929_v34, %v2823_v6 }
 0x5e8   : > { %v10559_v59 = vpop.eup %10558  ;;  %v8479_v51 = vmul.f32 -1.442695, %v12012_v32 }
 0x5e9   : > { %10566 = vpow2.f32 %v8476_v7  ;;  %v8477_v30 = vmul.f32 -1.442695, %v11972_v16  ;;  %3059 = vrot.lane.b32.xlu0 %v10559_v59, %s11033_s29  ;;  %v10382_v7 = vld [vmem:[%s14084_s8 + $0x20] sm:$0xff]  }
 0x5ea   : > { %v10561_v55 = vpop.eup %10560 }
 0x5eb   : > { %10568 = vpow2.f32 %v8477_v30  ;;  %3061 = vrot.lane.b32.xlu1 %v10561_v55, %s11033_s29  ;;  %v10563_v60 = vpop.eup %10562 }
 0x5ec   : > { %v10565_v63 = vpop.eup %10564 }
 0x5ed   : > { %3063 = vrot.lane.b32.xlu0 %v10563_v60, %s11033_s29 }
 0x5ef   : > { %3065 = vrot.lane.b32.xlu1 %v10565_v63, %s11033_s29 }
 0x5f3   : > { %v10567_v8 = vpop.eup %10566 }
 0x5f4   : > { %v2963_v58 = vadd.f32 1.0, %v10567_v8 }
 0x5f5   : > { %v10569_v9 = vpop.eup %10568 }
 0x5f6   : > { %10570 = vrcp.f32 %v2963_v58  ;;  %v2964_v12 = vadd.f32 1.0, %v10569_v9 }
 0x5f8   : > { %10572 = vrcp.f32 %v2964_v12 }
 0x5f9   : > { %10574 = vpow2.f32 %v8478_v3 }
 0x5fb   : > { %v9390_v4 = vpop.f32.mrb[96].mxu1 }
 0x5fc   : > { %v2836_v0 = vpop.f32.mrb[97].mxu1  ;;  %v12015_v15 = vadd.f32 %v9390_v4, %v11929_v34 }
 0x5fd   : > { %v11979_v2 = vpop.f32.mrb[98].mxu1  ;;  %v12002_v38 = vadd.f32 %v11929_v34, %v2836_v0 }
 0x5fe   : > { %v2839_v24 = vpop.f32.mrb[99].mxu1  ;;  %v8482_v13 = vmul.f32 -1.442695, %v12015_v15  ;;  %v12057_v58 = vadd.f32 %v11979_v2, %v11929_v34 }
 0x5ff   : > { %v8480_v44 = vmul.f32 -1.442695, %v12002_v38  ;;  %v12019_v10 = vadd.f32 %v11929_v34, %v2839_v24 }
 0x600   : > { %v10571_v17 = vpop.eup %10570  ;;  %v8483_v24 = vmul.f32 -1.442695, %v12057_v58 }
 0x601   : > { %3067 = vrot.lane.b32.xlu0 %v10571_v17, %s11033_s29  ;;  %10576 = vpow2.f32 %v8480_v44 }
 0x602   : > { %v10573_v37 = vpop.eup %10572  ;;  %10578 = vpow2.f32 %v8479_v51 }
 0x603   : > { %3069 = vrot.lane.b32.xlu1 %v10573_v37, %s11033_s29  ;;  %v10575_v23 = vpop.eup %10574 }
 0x604   : > { %v2965_v33 = vadd.f32 1.0, %v10575_v23 }
 0x606   : > { %10580 = vrcp.f32 %v2965_v33 }
 0x607   : > { %10582 = vpow2.f32 %v8482_v13 }
 0x60b   : > { %v10577_v18 = vpop.eup %10576 }
 0x60c   : > { %v2967_v49 = vadd.f32 1.0, %v10577_v18  ;;  %v10579_v59 = vpop.eup %10578 }
 0x60d   : > { %v2966_v63 = vadd.f32 1.0, %v10579_v59 }
 0x610   : > { %v10581_v30 = vpop.eup %10580 }
 0x611   : > { %v10583_v55 = vpop.eup %10582 }
 0x612   : > { %v2969_v9 = vadd.f32 1.0, %v10583_v55 }
 0x613   : > { %v11983_v27 = vpop.f32.mrb[100].mxu1 }
 0x614   : > { %v2852_v28 = vpop.f32.mrb[101].mxu1 }
 0x615   : > { %v11985_v29 = vpop.f32.mrb[102].mxu1  ;;  %v12038_v21 = vadd.f32 %v11929_v34, %v2852_v28 }
 0x616   : > { %v11987_v5 = vpop.f32.mrb[103].mxu1 }
 0x617   : > { %v12063_v37 = vadd.f32 %v11929_v34, %v11987_v5 }
 0x61b   : > { %v11989_v36 = vpop.f32.mrb[104].mxu1 }
 0x61c   : > { %v11991_v50 = vpop.f32.mrb[105].mxu1 }
 0x61d   : > { %v11993_v62 = vpop.f32.mrb[106].mxu1 }
 0x61e   : > { %v11995_v35 = vpop.f32.mrb[107].mxu1  ;;  %v12125_v55 = vadd.f32 %v11993_v62, %v11929_v34 }
 0x642   : > { %v3056_v14 = vpop.permute.xlu0 %3055 }
 0x643   : > { %v3125_v52 = vmul.f32 %v3056_v14, %v11932_v31  ;;  %v10381_v31 = vld [vmem:[%s14084_s8 + $0x18] sm:$0xff]   ;;  %v8485_v14 = vmul.f32 -1.442695, %v12063_v37 }
 0x644   : > { %v3058_v19 = vpop.permute.xlu1 %3057  ;;  %9406 = vmatprep.subr.bf16.mxu0 %v10381_v31 }
 0x645   : > { %v3126_v54 = vmul.f32 %v3058_v19, %v11939_v26  ;;  %v8481_v26 = vmul.f32 -1.442695, %v12019_v10  ;;  %9407 = vmatpush3.bf16.msra.mxu0 %v10381_v31 }
 0x646   : > { %v3052_v25 = vpop.permute.xlu0 %3051  ;;  %9408 = vmatprep.subr.bf16.mxu0 %v10382_v7 }
 0x647   : > { %v12026_v42 = vpack.c.bf16 %v3126_v54, %v3125_v52  ;;  %v3123_v53 = vmul.f32 %v3052_v25, %v11935_v22  ;;  %10584 = vpow2.f32 %v8481_v26  ;;  %v10383_v22 = vld [vmem:[%s14084_s8 + $0x28] sm:$0xff]  }
 0x648   : > { %v3054_v11 = vpop.permute.xlu1 %3053  ;;  %10586 = vrcp.f32 %v2967_v49  ;;  %v12107_v49 = vadd.f32 %v11929_v34, %v11991_v50 }
 0x649   : > { %v3124_v61 = vmul.f32 %v3054_v11, %v11943_v47  ;;  %3173 = vrot.lane.b32.xlu1 %v12026_v42, %s11034_s2  ;;  %v8484_v47 = vmul.f32 -1.442695, %v12038_v21  ;;  %9409 = vmatpush3.bf16.msra.mxu0 %v10382_v7 }
 0x64a   : > { %9410 = vmatprep.subr.bf16.mxu0 %v10383_v22 }
 0x64b   : > { %v12040_v6 = vpack.c.bf16 %v3124_v61, %v3123_v53  ;;  %10588 = vpow2.f32 %v8484_v47 }
 0x64c   : > { %10590 = vrcp.f32 %v2966_v63  ;;  %v8491_v63 = vmul.f32 -1.442695, %v12125_v55 }
 0x64d   : > { %3171 = vrot.lane.b32.xlu0 %v12040_v6, %s11034_s2  ;;  %9411 = vmatpush3.bf16.msra.mxu0 %v10383_v22  ;;  %10592 = vrcp.f32 %v2969_v9 }
 0x64e   : > { %9464 = vmatprep.subr.bf16.mxu0 %v11031_v46 }
 0x651   : > { %3195 = vrot.lane.b32.xlu0 %v12026_v42, %s11035_s1  ;;  %v10585_v60 = vpop.eup %10584 }
 0x652   : > { %v10587_v8 = vpop.eup %10586  ;;  %v2968_v12 = vadd.f32 1.0, %v10585_v60 }
 0x654   : > { %10594 = vrcp.f32 %v2968_v12 }
 0x655   : > { %3071 = vrot.lane.b32.xlu0 %v10581_v30, %s11033_s29  ;;  %v10589_v0 = vpop.eup %10588  ;;  %10596 = vpow2.f32 %v8483_v24  ;;  %v12119_v30 = vadd.f32 %v11929_v34, %v11995_v35 }
 0x656   : > { %v2971_v3 = vadd.f32 1.0, %v10589_v0 }
 0x658   : > { %10598 = vrcp.f32 %v2971_v3 }
 0x659   : > { %3075 = vrot.lane.b32.xlu0 %v10587_v8, %s11033_s29  ;;  %10600 = vpow2.f32 %v8485_v14 }
 0x65b   : > { %v3060_v4 = vpop.permute.xlu0 %3059 }
 0x65c   : > { %v3127_v28 = vmul.f32 %v3060_v4, %v11951_v41 }
 0x65d   : > { %v3062_v17 = vpop.permute.xlu1 %3061 }
 0x65e   : > { %v3128_v2 = vmul.f32 %v3062_v17, %v11959_v1  ;;  %v10591_v1 = vpop.eup %10590 }
 0x65f   : > { %v3064_v44 = vpop.permute.xlu0 %3063  ;;  %v10593_v5 = vpop.eup %10592 }
 0x660   : > { %v12067_v57 = vpack.c.bf16 %v3128_v2, %v3127_v28  ;;  %v3129_v23 = vmul.f32 %v3064_v44, %v11948_v20  ;;  %v10595_v20 = vpop.eup %10594 }
 0x661   : > { %v3066_v45 = vpop.permute.xlu1 %3065 }
 0x662   : > { %v3130_v19 = vmul.f32 %v3066_v45, %v11955_v40  ;;  %3175 = vrot.lane.b32.xlu0 %v12067_v57, %s11034_s2  ;;  %3197 = vrot.lane.b32.xlu1 %v12067_v57, %s11035_s1  ;;  %v10597_v40 = vpop.eup %10596 }
 0x663   : > { %v10599_v51 = vpop.eup %10598  ;;  %v2970_v52 = vadd.f32 1.0, %v10597_v40 }
 0x664   : > { %v12076_v41 = vpack.c.bf16 %v3130_v19, %v3129_v23  ;;  %v10601_v54 = vpop.eup %10600 }
 0x665   : > { %10602 = vrcp.f32 %v2970_v52  ;;  %v2972_v56 = vadd.f32 1.0, %v10601_v54 }
 0x666   : > { %3073 = vrot.lane.b32.xlu1 %v10591_v1, %s11033_s29  ;;  %3199 = vrot.lane.b32.xlu0 %v12076_v41, %s11035_s1 }
 0x667   : > { %10604 = vrcp.f32 %v2972_v56 }
 0x66a   : > { %3077 = vrot.lane.b32.xlu1 %v10595_v20, %s11033_s29  ;;  %3079 = vrot.lane.b32.xlu0 %v10593_v5, %s11033_s29 }
 0x66e   : > { %3083 = vrot.lane.b32.xlu0 %v10599_v51, %s11033_s29  ;;  %3177 = vrot.lane.b32.xlu1 %v12076_v41, %s11034_s2 }
 0x66f   : > { %v10603_v31 = vpop.eup %10602 }
 0x671   : > { %v10605_v26 = vpop.eup %10604 }
 0x673   : > { %v3068_v33 = vpop.permute.xlu0 %3067 }
 0x674   : > { %v3131_v18 = vmul.f32 %v3068_v33, %v11968_v43  ;;  %v12098_v43 = vadd.f32 %v11983_v27, %v11929_v34  ;;  %v12113_v27 = vadd.f32 %v11989_v36, %v11929_v34  ;;  %v8489_v36 = vmul.f32 -1.442695, %v12119_v30 }
 0x675   : > { %v3070_v25 = vpop.permute.xlu1 %3069 }
 0x676   : > { %v3132_v13 = vmul.f32 %v3070_v25, %v11972_v16  ;;  %v12102_v16 = vadd.f32 %v11985_v29, %v11929_v34  ;;  %v8486_v61 = vmul.f32 -1.442695, %v12098_v43  ;;  %v8488_v29 = vmul.f32 -1.442695, %v12107_v49 }
 0x677   : > { %v8490_v50 = vmul.f32 -1.442695, %v12113_v27 }
 0x678   : > { %v12088_v11 = vpack.c.bf16 %v3132_v13, %v3131_v18  ;;  %v8487_v7 = vmul.f32 -1.442695, %v12102_v16  ;;  %10606 = vpow2.f32 %v8486_v61 }
 0x67a   : > { %3179 = vrot.lane.b32.xlu0 %v12088_v11, %s11034_s2  ;;  %3201 = vrot.lane.b32.xlu1 %v12088_v11, %s11035_s1  ;;  %10608 = vpow2.f32 %v8487_v7 }
 0x67b   : > { %10610 = vpow2.f32 %v8488_v29 }
 0x67c   : > { %10612 = vpow2.f32 %v8490_v50 }
 0x67d   : > { %10614 = vpow2.f32 %v8489_v36 }
 0x67e   : > { %3081 = vrot.lane.b32.xlu1 %v10603_v31, %s11033_s29  ;;  %10616 = vpow2.f32 %v8491_v63 }
 0x682   : > { %3085 = vrot.lane.b32.xlu1 %v10605_v26, %s11033_s29  ;;  %v10607_v8 = vpop.eup %10606 }
 0x683   : > { %v2973_v4 = vadd.f32 1.0, %v10607_v8 }
 0x684   : > { %v10609_v12 = vpop.eup %10608 }
 0x685   : > { %v10611_v0 = vpop.eup %10610  ;;  %v2974_v24 = vadd.f32 1.0, %v10609_v12  ;;  %10618 = vrcp.f32 %v2973_v4 }
 0x686   : > { %v10613_v2 = vpop.eup %10612  ;;  %v2975_v3 = vadd.f32 1.0, %v10611_v0 }
 0x687   : > { %v10615_v44 = vpop.eup %10614  ;;  %10620 = vrcp.f32 %v2974_v24  ;;  %v2977_v19 = vadd.f32 1.0, %v10613_v2 }
 0x688   : > { %10622 = vrcp.f32 %v2975_v3  ;;  %v2976_v20 = vadd.f32 1.0, %v10615_v44  ;;  %v10617_v40 = vpop.eup %10616 }
 0x689   : > { %10624 = vrcp.f32 %v2977_v19 }
 0x68a   : > { %10626 = vrcp.f32 %v2976_v20 }
 0x68f   : > { %v10619_v56 = vpop.eup %10618 }
 0x691   : > { %v10621_v33 = vpop.eup %10620 }
 0x6bb   : > { %v3174_v35 = vpop.permute.xlu1 %3173 }
 0x6bc   : > { %v3221_v17 = vsel %vm2237_vm6, %v12040_v6, %v3174_v35 }
 0x6bf   : > { %v3172_v53 = vpop.permute.xlu0 %3171 }
 0x6c0   : > { %v3218_v22 = vsel %vm2237_vm6, 0, %v3172_v53 }
 0x6c3   : > { %v3196_v47 = vpop.permute.xlu0 %3195 }
 0x6c4   : > { %v3253_v59 = vsel %vm2262_vm7, %v3218_v22, %v3196_v47 }
 0x6c5   : > { %9412 = vmatprep.mubr.msk.bf16.mxu0 %vm2354_vm8, %v3253_v59 }
 0x6c7   : > { %v3072_v60 = vpop.permute.xlu0 %3071 }
 0x6c8   : > { %v3133_v1 = vmul.f32 %v3072_v60, %v11998_v48  ;;  %v2978_v48 = vadd.f32 1.0, %v10617_v40 }
 0x6ca   : > { %10628 = vrcp.f32 %v2978_v48 }
 0x6cb   : > { %v3076_v9 = vpop.permute.xlu0 %3075 }
 0x6d4   : > { %v3198_v34 = vpop.permute.xlu1 %3197  ;;  %v3176_v62 = vpop.permute.xlu0 %3175 }
 0x6d5   : > { %v3255_v28 = vsel %vm2262_vm7, %v3221_v17, %v3198_v34  ;;  %v3224_v45 = vsel %vm2237_vm6, %v12026_v42, %v3176_v62  ;;  %v3135_v42 = vmul.f32 %v3076_v9, %v12002_v38  ;;  %v10623_v38 = vpop.eup %10622 }
 0x6d6   : > { %9413 = vmatmul.mubr.msk.bf16.vlgmr.msra.gmra.mrb[108].mxu0 %vm2354_vm8, %v3255_v28 }
 0x6d8   : > { %v3074_v14 = vpop.permute.xlu1 %3073  ;;  %v3200_v23 = vpop.permute.xlu0 %3199 }
 0x6d9   : > { %v3134_v6 = vmul.f32 %v3074_v14, %v12012_v32  ;;  %v3257_v5 = vsel %vm2262_vm7, %v3224_v45, %v3200_v23 }
 0x6da   : > { %9416 = vmatprep.mubr.msk.bf16.mxu0 %vm2354_vm8, %v3257_v5 }
 0x6db   : > { %v12139_v51 = vpack.c.bf16 %v3134_v6, %v3133_v1  ;;  %v12218_v1 = vld [vmem:[%s14085_s9] ss:$0 sm:$0xff] }
 0x6dc   : > { %v3078_v52 = vpop.permute.xlu1 %3077  ;;  %v3080_v31 = vpop.permute.xlu0 %3079 }
 0x6dd   : > { %v3136_v54 = vmul.f32 %v3078_v52, %v12019_v10  ;;  %3203 = vrot.lane.b32.xlu0 %v12139_v51, %s11035_s1  ;;  %3181 = vrot.lane.b32.xlu1 %v12139_v51, %s11034_s2  ;;  %v10625_v10 = vpop.eup %10624  ;;  %v3137_v22 = vmul.f32 %v3080_v31, %v12015_v15 }
 0x6de   : > { %v10627_v25 = vpop.eup %10626 }
 0x6df   : > { %v12147_v32 = vpack.c.bf16 %v3136_v54, %v3135_v42  ;;  %v10629_v13 = vpop.eup %10628 }
 0x6e0   : > { %v3178_v18 = vpop.permute.xlu1 %3177  ;;  %v3084_v59 = vpop.permute.xlu0 %3083 }
 0x6e1   : > { %3087 = vrot.lane.b32.xlu0 %v10619_v56, %s11033_s29  ;;  %3205 = vrot.lane.b32.xlu1 %v12147_v32, %s11035_s1  ;;  %v3227_v26 = vsel %vm2237_vm6, %v12067_v57, %v3178_v18  ;;  %v3139_v57 = vmul.f32 %v3084_v59, %v12038_v21 }
 0x6e5   : > { %3091 = vrot.lane.b32.xlu0 %v10623_v38, %s11033_s29  ;;  %3089 = vrot.lane.b32.xlu1 %v10621_v33, %s11033_s29 }
 0x6e9   : > { %3095 = vrot.lane.b32.xlu0 %v10625_v10, %s11033_s29  ;;  %3093 = vrot.lane.b32.xlu1 %v10627_v25, %s11033_s29 }
 0x6ec   : > { %v3202_v53 = vpop.permute.xlu1 %3201  ;;  %v3180_v15 = vpop.permute.xlu0 %3179 }
 0x6ed   : > { %v3259_v61 = vsel %vm2262_vm7, %v3227_v26, %v3202_v53  ;;  %3183 = vrot.lane.b32.xlu0 %v12147_v32, %s11034_s2  ;;  %3097 = vrot.lane.b32.xlu1 %v10629_v13, %s11033_s29  ;;  %v3230_v21 = vsel %vm2237_vm6, %v12076_v41, %v3180_v15 }
 0x6ee   : > { %9417 = vmatmul.mubr.msk.bf16.gmra.mrb[112].mxu0 %vm2354_vm8, %v3259_v61 }
 0x6f0   : > { %v3082_v7 = vpop.permute.xlu1 %3081 }
 0x6f1   : > { %v3138_v47 = vmul.f32 %v3082_v7, %v12057_v58 }
 0x6f3   : > { %v12165_v29 = vpack.c.bf16 %v3138_v47, %v3137_v22 }
 0x6f4   : > { %v3086_v50 = vpop.permute.xlu1 %3085 }
 0x6f5   : > { %v3140_v36 = vmul.f32 %v3086_v50, %v12063_v37  ;;  %3207 = vrot.lane.b32.xlu0 %v12165_v29, %s11035_s1  ;;  %3185 = vrot.lane.b32.xlu1 %v12165_v29, %s11034_s2 }
 0x6f7   : > { %v12173_v60 = vpack.c.bf16 %v3140_v36, %v3139_v57 }
 0x6f9   : > { %3187 = vrot.lane.b32.xlu0 %v12173_v60, %s11034_s2  ;;  %3209 = vrot.lane.b32.xlu1 %v12173_v60, %s11035_s1 }
 0x74f   : > { %v3182_v58 = vpop.permute.xlu1 %3181  ;;  %v3204_v37 = vpop.permute.xlu0 %3203 }
 0x750   : > { %v3261_v63 = vsel %vm2262_vm7, %v3230_v21, %v3204_v37  ;;  %v3233_v8 = vsel %vm2237_vm6, %v12088_v11, %v3182_v58 }
 0x751   : > { %9420 = vmatprep.mubr.msk.bf16.mxu0 %vm2354_vm8, %v3261_v63 }
 0x753   : > { %v3206_v35 = vpop.permute.xlu1 %3205  ;;  %v3088_v9 = vpop.permute.xlu0 %3087 }
 0x754   : > { %v3263_v12 = vsel %vm2262_vm7, %v3233_v8, %v3206_v35  ;;  %v3141_v24 = vmul.f32 %v3088_v9, %v12098_v43 }
 0x755   : > { %9421 = vmatmul.mubr.msk.bf16.gmra.mrb[116].mxu0 %vm2354_vm8, %v3263_v12 }
 0x757   : > { %v3090_v4 = vpop.permute.xlu1 %3089  ;;  %v3092_v0 = vpop.permute.xlu0 %3091 }
 0x758   : > { %v3142_v41 = vmul.f32 %v3090_v4, %v12102_v16  ;;  %v3143_v62 = vmul.f32 %v3092_v0, %v12107_v49 }
 0x75a   : > { %v12189_v17 = vpack.c.bf16 %v3142_v41, %v3141_v24 }
 0x75b   : > { %v3094_v34 = vpop.permute.xlu1 %3093  ;;  %v3096_v11 = vpop.permute.xlu0 %3095 }
 0x75c   : > { %v3144_v28 = vmul.f32 %v3094_v34, %v12119_v30  ;;  %3211 = vrot.lane.b32.xlu0 %v12189_v17, %s11035_s1  ;;  %3189 = vrot.lane.b32.xlu1 %v12189_v17, %s11034_s2  ;;  %v3145_v43 = vmul.f32 %v3096_v11, %v12113_v27 }
 0x75e   : > { %v12197_v2 = vpack.c.bf16 %v3144_v28, %v3143_v62 }
 0x75f   : > { %v3098_v3 = vpop.permute.xlu1 %3097  ;;  %v3184_v30 = vpop.permute.xlu0 %3183 }
 0x760   : > { %v3146_v16 = vmul.f32 %v3098_v3, %v12125_v55  ;;  %3191 = vrot.lane.b32.xlu0 %v12197_v2, %s11034_s2  ;;  %3213 = vrot.lane.b32.xlu1 %v12197_v2, %s11035_s1  ;;  %v3236_v44 = vsel %vm2237_vm6, %v12139_v51, %v3184_v30 }
 0x762   : > { %v3158_v49 = vpack.c.bf16 %v3146_v16, %v3145_v43 }
 0x764   : > { %3215 = vrot.lane.b32.xlu0 %v3158_v49, %s11035_s1  ;;  %3193 = vrot.lane.b32.xlu1 %v3158_v49, %s11034_s2 }
 0x767   : > { %v3186_v45 = vpop.permute.xlu1 %3185  ;;  %v3208_v14 = vpop.permute.xlu0 %3207 }
 0x768   : > { %v3265_v27 = vsel %vm2262_vm7, %v3236_v44, %v3208_v14  ;;  %v3239_v55 = vsel %vm2237_vm6, %v12147_v32, %v3186_v45 }
 0x769   : > { %9424 = vmatprep.mubr.msk.bf16.mxu0 %vm2354_vm8, %v3265_v27 }
 0x76b   : > { %v3210_v23 = vpop.permute.xlu1 %3209  ;;  %v3188_v9 = vpop.permute.xlu0 %3187 }
 0x76c   : > { %v3267_v19 = vsel %vm2262_vm7, %v3239_v55, %v3210_v23  ;;  %v3242_v4 = vsel %vm2237_vm6, %v12165_v29, %v3188_v9 }
 0x76d   : > { %9425 = vmatmul.mubr.msk.bf16.gmra.mrb[120].mxu0 %vm2354_vm8, %v3267_v19 }
 0x7a9   : > { %v9414_v6 = vpop.f32.mrb[108].mxu0 }
 0x7aa   : > { %v12221_v5 = vadd.f32 %v9414_v6, %v12218_v1  ;;  %v3388_v20 = vpop.f32.mrb[109].mxu0 }
 0x7ab   : > { %v12224_v40 = vadd.f32 %v12218_v1, %v3388_v20  ;;  %v9415_v51 = vpop.f32.mrb[110].mxu0 }
 0x7ac   : > { %v8513_v52 = vmul.f32 -1.442695, %v12221_v5  ;;  %v12228_v42 = vadd.f32 %v9415_v51, %v12218_v1  ;;  %v3391_v54 = vpop.f32.mrb[111].mxu0 }
 0x7ad   : > { %v8511_v48 = vmul.f32 -1.442695, %v12224_v40  ;;  %v12232_v32 = vadd.f32 %v12218_v1, %v3391_v54 }
 0x7ae   : > { %10630 = vpow2.f32 %v8513_v52  ;;  %v8514_v56 = vmul.f32 -1.442695, %v12228_v42 }
 0x7af   : > { %10632 = vpow2.f32 %v8511_v48  ;;  %v8512_v33 = vmul.f32 -1.442695, %v12232_v32 }
 0x7b0   : > { %10634 = vpow2.f32 %v8514_v56 }
 0x7b1   : > { %10636 = vpow2.f32 %v8512_v33 }
 0x7b8   : > { %v10631_v38 = vpop.eup %10630 }
 0x7b9   : > { %v10633_v10 = vpop.eup %10632  ;;  %v3557_v31 = vadd.f32 1.0, %v10631_v38 }
 0x7ba   : > { %v10635_v25 = vpop.eup %10634  ;;  %v3555_v18 = vadd.f32 1.0, %v10633_v10 }
 0x7bb   : > { %v10637_v13 = vpop.eup %10636  ;;  %v3558_v53 = vadd.f32 1.0, %v10635_v25 }
 0x7bc   : > { %10638 = vrcp.f32 %v3555_v18  ;;  %v3556_v26 = vadd.f32 1.0, %v10637_v13 }
 0x7be   : > { %10640 = vrcp.f32 %v3556_v26 }
 0x7bf   : > { %10642 = vrcp.f32 %v3557_v31 }
 0x7c0   : > { %10644 = vrcp.f32 %v3558_v53 }
 0x7c1   : > { %v9418_v61 = vpop.f32.mrb[112].mxu0 }
 0x7c2   : > { %v12237_v7 = vadd.f32 %v9418_v61, %v12218_v1  ;;  %v3404_v22 = vpop.f32.mrb[113].mxu0 }
 0x7c3   : > { %v12240_v47 = vadd.f32 %v12218_v1, %v3404_v22  ;;  %v9419_v59 = vpop.f32.mrb[114].mxu0 }
 0x7c4   : > { %v8517_v50 = vmul.f32 -1.442695, %v12237_v7  ;;  %v12244_v57 = vadd.f32 %v9419_v59, %v12218_v1  ;;  %v3407_v36 = vpop.f32.mrb[115].mxu0 }
 0x7c5   : > { %v8515_v15 = vmul.f32 -1.442695, %v12240_v47  ;;  %v12248_v21 = vadd.f32 %v12218_v1, %v3407_v36 }
 0x7c6   : > { %v10639_v58 = vpop.eup %10638  ;;  %10646 = vpow2.f32 %v8517_v50  ;;  %v8518_v37 = vmul.f32 -1.442695, %v12244_v57 }
 0x7c7   : > { %10648 = vpow2.f32 %v8515_v15  ;;  %v8516_v63 = vmul.f32 -1.442695, %v12248_v21  ;;  %3651 = vrot.lane.b32.xlu1 %v10639_v58, %s11033_s29 }
 0x7c8   : > { %v10641_v8 = vpop.eup %10640  ;;  %10650 = vpow2.f32 %v8518_v37 }
 0x7c9   : > { %10652 = vpow2.f32 %v8516_v63  ;;  %3653 = vrot.lane.b32.xlu0 %v10641_v8, %s11033_s29  ;;  %v10643_v35 = vpop.eup %10642 }
 0x7ca   : > { %v10645_v12 = vpop.eup %10644 }
 0x7cb   : > { %3655 = vrot.lane.b32.xlu1 %v10643_v35, %s11033_s29 }
 0x7cd   : > { %3657 = vrot.lane.b32.xlu0 %v10645_v12, %s11033_s29 }
 0x7ce   : > { %v3190_v0 = vpop.permute.xlu1 %3189  ;;  %v3212_v24 = vpop.permute.xlu0 %3211 }
 0x7cf   : > { %v3269_v41 = vsel %vm2262_vm7, %v3242_v4, %v3212_v24  ;;  %v3245_v3 = vsel %vm2237_vm6, %v12173_v60, %v3190_v0 }
 0x7d0   : > { %v10647_v34 = vpop.eup %10646  ;;  %9428 = vmatprep.mubr.msk.bf16.mxu0 %vm2354_vm8, %v3269_v41 }
 0x7d1   : > { %v10649_v62 = vpop.eup %10648  ;;  %v3561_v44 = vadd.f32 1.0, %v10647_v34 }
 0x7d2   : > { %v10651_v28 = vpop.eup %10650  ;;  %v3559_v11 = vadd.f32 1.0, %v10649_v62  ;;  %v3214_v43 = vpop.permute.xlu1 %3213 }
 0x7d3   : > { %v3192_v16 = vpop.permute.xlu0 %3191  ;;  %v10653_v49 = vpop.eup %10652  ;;  %v3271_v30 = vsel %vm2262_vm7, %v3245_v3, %v3214_v43  ;;  %v3562_v45 = vadd.f32 1.0, %v10651_v28 }
 0x7d4   : > { %10654 = vrcp.f32 %v3559_v11  ;;  %v3560_v29 = vadd.f32 1.0, %v10653_v49  ;;  %9429 = vmatmul.mubr.msk.bf16.gmra.mrb[124].mxu0 %vm2354_vm8, %v3271_v30  ;;  %v3248_v14 = vsel %vm2237_vm6, %v12189_v17, %v3192_v16  ;;  %v12313_v11 = vld [vmem:[%s14112_s0] sm:$0xff]  }
 0x7d6   : > { %10656 = vrcp.f32 %v3560_v29  ;;  %v3194_v27 = vpop.permute.xlu1 %3193 }
 0x7d7   : > { %v3216_v55 = vpop.permute.xlu0 %3215  ;;  %10658 = vrcp.f32 %v3561_v44  ;;  %v3251_v60 = vsel %vm2237_vm6, %v12197_v2, %v3194_v27 }
 0x7d8   : > { %v3273_v23 = vsel %vm2262_vm7, %v3248_v14, %v3216_v55  ;;  %10660 = vrcp.f32 %v3562_v45  ;;  %v3274_v19 = vsel %vm2262_vm7, %v3251_v60, %v11919_v39  ;;  %v12332_v14 = vld [vmem:[%s14112_s0 + $0x8] sm:$0xff]  }
 0x7d9   : > { %9432 = vmatprep.mubr.msk.bf16.mxu0 %vm2354_vm8, %v3273_v23 }
 0x7dc   : > { %9433 = vmatmul.mubr.msk.bf16.gmra.mrb[128].mxu0 %vm2354_vm8, %v3274_v19 }
 0x7dd   : > { %9466 = vmatprep.mubr.msk.bf16.mxu0 %vm11032_vm4, %v11031_v46 }
 0x7de   : > { %v10655_v17 = vpop.eup %10654 }
 0x7df   : > { %3659 = vrot.lane.b32.xlu1 %v10655_v17, %s11033_s29 }
 0x7e0   : > { %v10657_v6 = vpop.eup %10656 }
 0x7e1   : > { %3661 = vrot.lane.b32.xlu0 %v10657_v6, %s11033_s29  ;;  %v10659_v20 = vpop.eup %10658 }
 0x7e2   : > { %v10661_v2 = vpop.eup %10660 }
 0x7e3   : > { %3663 = vrot.lane.b32.xlu1 %v10659_v20, %s11033_s29 }
 0x7e5   : > { %3665 = vrot.lane.b32.xlu0 %v10661_v2, %s11033_s29  ;;  %v12342_v2 = vld [vmem:[%s14112_s0 + $0x10] sm:$0xff]  }
 0x828   : > { %v9422_v51 = vpop.f32.mrb[116].mxu0 }
 0x829   : > { %v12280_v52 = vadd.f32 %v9422_v51, %v12218_v1  ;;  %v3420_v54 = vpop.f32.mrb[117].mxu0 }
 0x82a   : > { %v12283_v48 = vadd.f32 %v12218_v1, %v3420_v54  ;;  %v9423_v56 = vpop.f32.mrb[118].mxu0 }
 0x82b   : > { %v8521_v33 = vmul.f32 -1.442695, %v12280_v52  ;;  %v12287_v38 = vadd.f32 %v9423_v56, %v12218_v1  ;;  %v3423_v10 = vpop.f32.mrb[119].mxu0 }
 0x82c   : > { %v8519_v25 = vmul.f32 -1.442695, %v12283_v48  ;;  %v12291_v18 = vadd.f32 %v12218_v1, %v3423_v10 }
 0x82d   : > { %10662 = vpow2.f32 %v8521_v33  ;;  %v8522_v13 = vmul.f32 -1.442695, %v12287_v38 }
 0x82e   : > { %10664 = vpow2.f32 %v8519_v25  ;;  %v8520_v31 = vmul.f32 -1.442695, %v12291_v18 }
 0x82f   : > { %10666 = vpow2.f32 %v8522_v13 }
 0x830   : > { %10668 = vpow2.f32 %v8520_v31 }
 0x837   : > { %v10663_v26 = vpop.eup %10662 }
 0x838   : > { %v10665_v53 = vpop.eup %10664  ;;  %v3565_v36 = vadd.f32 1.0, %v10663_v26 }
 0x839   : > { %v10667_v61 = vpop.eup %10666  ;;  %v3563_v22 = vadd.f32 1.0, %v10665_v53  ;;  %v3652_v59 = vpop.permute.xlu1 %3651 }
 0x83a   : > { %v10669_v50 = vpop.eup %10668  ;;  %v3723_v37 = vmul.f32 %v3652_v59, %v12224_v40  ;;  %v3566_v8 = vadd.f32 1.0, %v10667_v61 }
 0x83b   : > { %10670 = vrcp.f32 %v3563_v22  ;;  %v3564_v15 = vadd.f32 1.0, %v10669_v50  ;;  %v3654_v58 = vpop.permute.xlu0 %3653 }
 0x83c   : > { %v3724_v63 = vmul.f32 %v3654_v58, %v12232_v32 }
 0x83d   : > { %10672 = vrcp.f32 %v3564_v15  ;;  %v3656_v35 = vpop.permute.xlu1 %3655 }
 0x83e   : > { %v3747_v9 = vpack.c.bf16 %v3724_v63, %v3723_v37  ;;  %10674 = vrcp.f32 %v3565_v36  ;;  %v3725_v4 = vmul.f32 %v3656_v35, %v12221_v5 }
 0x83f   : > { %v3658_v12 = vpop.permute.xlu0 %3657  ;;  %10676 = vrcp.f32 %v3566_v8 }
 0x840   : > { %v3726_v0 = vmul.f32 %v3658_v12, %v12228_v42  ;;  %v9426_v24 = vpop.f32.mrb[120].mxu0  ;;  %9437 = vmatpush3.bf16.msra.mxu1 %v3747_v9 }
 0x841   : > { %v12300_v41 = vadd.f32 %v9426_v24, %v12218_v1  ;;  %v3436_v34 = vpop.f32.mrb[121].mxu0  ;;  %9450 = vmatprep.subr.bf16.mxu1 %v11031_v46 }
 0x842   : > { %v3748_v40 = vpack.c.bf16 %v3726_v0, %v3725_v4  ;;  %v12304_v32 = vadd.f32 %v12218_v1, %v3436_v34  ;;  %v9427_v62 = vpop.f32.mrb[122].mxu0 }
 0x843   : > { %v8525_v28 = vmul.f32 -1.442695, %v12300_v41  ;;  %v12308_v5 = vadd.f32 %v9427_v62, %v12218_v1  ;;  %v3439_v42 = vpop.f32.mrb[123].mxu0  ;;  %9439 = vmatmul.mubr.msk.bf16.vlgmr.msra.gmra.mrb[108].mxu1 %vm1351_vm5, %v12313_v11 }
 0x844   : > { %v8523_v3 = vmul.f32 -1.442695, %v12304_v32  ;;  %v12319_v43 = vadd.f32 %v12218_v1, %v3439_v42  ;;  %9451 = vmatpush3.bf16.msra.mxu1 %v3748_v40  ;;  %9442 = vmatprep.mubr.msk.bf16.mxu1 %vm11032_vm4, %v11031_v46 }
 0x845   : > { %v10671_v16 = vpop.eup %10670  ;;  %10678 = vpow2.f32 %v8525_v28  ;;  %v8526_v49 = vmul.f32 -1.442695, %v12308_v5  ;;  %9478 = vmatprep.subr.bf16.mxu1 %v11031_v46 }
 0x846   : > { %10680 = vpow2.f32 %v8523_v3  ;;  %v8524_v30 = vmul.f32 -1.442695, %v12319_v43  ;;  %3667 = vrot.lane.b32.xlu1 %v10671_v16, %s11033_s29 }
 0x847   : > { %v10673_v44 = vpop.eup %10672  ;;  %10682 = vpow2.f32 %v8526_v49 }
 0x848   : > { %10684 = vpow2.f32 %v8524_v30  ;;  %3669 = vrot.lane.b32.xlu0 %v10673_v44, %s11033_s29  ;;  %v10675_v29 = vpop.eup %10674 }
 0x849   : > { %v10677_v45 = vpop.eup %10676 }
 0x84a   : > { %3671 = vrot.lane.b32.xlu1 %v10675_v29, %s11033_s29 }
 0x84b   : > { %9443 = vmatmul.mubr.msk.bf16.gmra.mrb[112].mxu1 %vm1351_vm5, %v12332_v14 }
 0x84c   : > { %3673 = vrot.lane.b32.xlu0 %v10677_v45, %s11033_s29  ;;  %9446 = vmatprep.mubr.msk.bf16.mxu1 %vm11032_vm4, %v11031_v46 }
 0x84f   : > { %v10679_v27 = vpop.eup %10678 }
 0x850   : > { %v10681_v55 = vpop.eup %10680  ;;  %v3569_v6 = vadd.f32 1.0, %v10679_v27 }
 0x851   : > { %v10683_v23 = vpop.eup %10682  ;;  %v3567_v60 = vadd.f32 1.0, %v10681_v55  ;;  %v3660_v19 = vpop.permute.xlu1 %3659 }
 0x852   : > { %v10685_v17 = vpop.eup %10684  ;;  %v3727_v54 = vmul.f32 %v3660_v19, %v12240_v47  ;;  %v3570_v33 = vadd.f32 1.0, %v10683_v23 }
 0x853   : > { %10686 = vrcp.f32 %v3567_v60  ;;  %v3568_v20 = vadd.f32 1.0, %v10685_v17  ;;  %9447 = vmatmul.mubr.msk.bf16.gmra.mrb[116].mxu1 %vm1351_vm5, %v12342_v2  ;;  %v3662_v51 = vpop.permute.xlu0 %3661 }
 0x854   : > { %v3728_v56 = vmul.f32 %v3662_v51, %v12248_v21  ;;  %9452 = vmatprep.mubr.msk.bf16.mxu1 %vm11032_vm4, %v11031_v46 }
 0x855   : > { %10688 = vrcp.f32 %v3568_v20  ;;  %v3664_v10 = vpop.permute.xlu1 %3663 }
 0x856   : > { %v3749_v25 = vpack.c.bf16 %v3728_v56, %v3727_v54  ;;  %10690 = vrcp.f32 %v3569_v6  ;;  %v3729_v31 = vmul.f32 %v3664_v10, %v12237_v7 }
 0x857   : > { %v3666_v13 = vpop.permute.xlu0 %3665  ;;  %10692 = vrcp.f32 %v3570_v33 }
 0x858   : > { %v3730_v26 = vmul.f32 %v3666_v13, %v12244_v57  ;;  %9465 = vmatpush3.bf16.msra.mxu0 %v3749_v25 }
 0x859   : > { %9492 = vmatprep.subr.bf16.mxu0 %v11031_v46 }
 0x85a   : > { %v3750_v47 = vpack.c.bf16 %v3730_v26, %v3729_v31 }
 0x85b   : > { %9453 = vmatmul.mubr.msk.bf16.vlgmr.msra.gmra.mrb[120].mxu1 %vm1351_vm5, %v12313_v11  ;;  %9467 = vmatmul.mubr.msk.bf16.vlgmr.msra.gmra.mrb[132].mxu0 %vm1351_vm5, %v12313_v11 }
 0x85c   : > { %9479 = vmatpush3.bf16.msra.mxu1 %v3750_v47  ;;  %9456 = vmatprep.mubr.msk.bf16.mxu1 %vm11032_vm4, %v11031_v46 }
 0x85d   : > { %v10687_v21 = vpop.eup %10686  ;;  %9470 = vmatprep.mubr.msk.bf16.mxu0 %vm11032_vm4, %v11031_v46  ;;  %9506 = vmatprep.subr.bf16.mxu1 %v11031_v46 }
 0x85e   : > { %3675 = vrot.lane.b32.xlu1 %v10687_v21, %s11033_s29 }
 0x85f   : > { %v10689_v7 = vpop.eup %10688 }
 0x860   : > { %3677 = vrot.lane.b32.xlu0 %v10689_v7, %s11033_s29  ;;  %v10691_v57 = vpop.eup %10690 }
 0x861   : > { %v10693_v53 = vpop.eup %10692 }
 0x862   : > { %3679 = vrot.lane.b32.xlu1 %v10691_v57, %s11033_s29 }
 0x863   : > { %9457 = vmatmul.mubr.msk.bf16.gmra.mrb[124].mxu1 %vm1351_vm5, %v12332_v14  ;;  %9471 = vmatmul.mubr.msk.bf16.gmra.mrb[136].mxu0 %vm1351_vm5, %v12332_v14 }
 0x864   : > { %3681 = vrot.lane.b32.xlu0 %v10693_v53, %s11033_s29  ;;  %9460 = vmatprep.mubr.msk.bf16.mxu1 %vm11032_vm4, %v11031_v46 }
 0x865   : > { %9474 = vmatprep.mubr.msk.bf16.mxu0 %vm11032_vm4, %v11031_v46 }
 0x86b   : > { %9461 = vmatmul.mubr.msk.bf16.gmra.mrb[128].mxu1 %vm1351_vm5, %v12342_v2  ;;  %9475 = vmatmul.mubr.msk.bf16.gmra.mrb[140].mxu0 %vm1351_vm5, %v12342_v2 }
 0x86c   : > { %9480 = vmatprep.mubr.msk.bf16.mxu1 %vm11032_vm4, %v11031_v46  ;;  %9494 = vmatprep.mubr.msk.bf16.mxu0 %vm11032_vm4, %v11031_v46 }
 0x873   : > { %9481 = vmatmul.mubr.msk.bf16.vlgmr.msra.gmra.mrb[132].mxu1 %vm1351_vm5, %v12313_v11 }
 0x874   : > { %9484 = vmatprep.mubr.msk.bf16.mxu1 %vm11032_vm4, %v11031_v46 }
 0x87b   : > { %9485 = vmatmul.mubr.msk.bf16.gmra.mrb[136].mxu1 %vm1351_vm5, %v12332_v14 }
 0x87c   : > { %9488 = vmatprep.mubr.msk.bf16.mxu1 %vm11032_vm4, %v11031_v46 }
 0x883   : > { %9489 = vmatmul.mubr.msk.bf16.gmra.mrb[140].mxu1 %vm1351_vm5, %v12342_v2 }
 0x884   : > { %9508 = vmatprep.mubr.msk.bf16.mxu1 %vm11032_vm4, %v11031_v46 }
 0x8a7   : > { %v9430_v61 = vpop.f32.mrb[124].mxu0 }
 0x8a8   : > { %v12395_v22 = vadd.f32 %v9430_v61, %v12218_v1  ;;  %v3452_v59 = vpop.f32.mrb[125].mxu0 }
 0x8a9   : > { %v12398_v50 = vadd.f32 %v12218_v1, %v3452_v59  ;;  %v9431_v36 = vpop.f32.mrb[126].mxu0 }
 0x8aa   : > { %v8529_v15 = vmul.f32 -1.442695, %v12395_v22  ;;  %v12402_v58 = vadd.f32 %v9431_v36, %v12218_v1  ;;  %v3455_v37 = vpop.f32.mrb[127].mxu0 }
 0x8ab   : > { %v8527_v63 = vmul.f32 -1.442695, %v12398_v50  ;;  %v12406_v8 = vadd.f32 %v12218_v1, %v3455_v37 }
 0x8ac   : > { %10694 = vpow2.f32 %v8529_v15  ;;  %v8530_v35 = vmul.f32 -1.442695, %v12402_v58 }
 0x8ad   : > { %10696 = vpow2.f32 %v8527_v63  ;;  %v8528_v9 = vmul.f32 -1.442695, %v12406_v8 }
 0x8ae   : > { %10698 = vpow2.f32 %v8530_v35 }
 0x8af   : > { %10700 = vpow2.f32 %v8528_v9  ;;  %v9434_v12 = vpop.f32.mrb[128].mxu0 }
 0x8b0   : > { %v12411_v4 = vadd.f32 %v9434_v12, %v12218_v1  ;;  %v3468_v0 = vpop.f32.mrb[129].mxu0 }
 0x8b1   : > { %v12414_v24 = vadd.f32 %v12218_v1, %v3468_v0  ;;  %v9435_v34 = vpop.f32.mrb[130].mxu0 }
 0x8b2   : > { %v8533_v40 = vmul.f32 -1.442695, %v12411_v4  ;;  %v12418_v62 = vadd.f32 %v9435_v34, %v12218_v1  ;;  %v3471_v28 = vpop.f32.mrb[131].mxu0 }
 0x8b3   : > { %v8531_v42 = vmul.f32 -1.442695, %v12414_v24  ;;  %v12422_v3 = vadd.f32 %v12218_v1, %v3471_v28 }
 0x8b4   : > { %10702 = vpow2.f32 %v8533_v40  ;;  %v8534_v16 = vmul.f32 -1.442695, %v12418_v62 }
 0x8b5   : > { %10704 = vpow2.f32 %v8531_v42  ;;  %v8532_v49 = vmul.f32 -1.442695, %v12422_v3 }
 0x8b6   : > { %v10695_v30 = vpop.eup %10694  ;;  %10706 = vpow2.f32 %v8534_v16 }
 0x8b7   : > { %v10697_v44 = vpop.eup %10696  ;;  %10708 = vpow2.f32 %v8532_v49  ;;  %v3573_v23 = vadd.f32 1.0, %v10695_v30 }
 0x8b8   : > { %v10699_v29 = vpop.eup %10698  ;;  %v3571_v45 = vadd.f32 1.0, %v10697_v44  ;;  %v3668_v27 = vpop.permute.xlu1 %3667 }
 0x8b9   : > { %v10701_v55 = vpop.eup %10700  ;;  %v3731_v1 = vmul.f32 %v3668_v27, %v12283_v48  ;;  %v3574_v6 = vadd.f32 1.0, %v10699_v29 }
 0x8ba   : > { %10710 = vrcp.f32 %v3571_v45  ;;  %v3572_v60 = vadd.f32 1.0, %v10701_v55  ;;  %v3670_v19 = vpop.permute.xlu0 %3669 }
 0x8bb   : > { %v3732_v17 = vmul.f32 %v3670_v19, %v12291_v18 }
 0x8bc   : > { %10712 = vrcp.f32 %v3572_v60  ;;  %v3672_v20 = vpop.permute.xlu1 %3671 }
 0x8bd   : > { %v3751_v51 = vpack.c.bf16 %v3732_v17, %v3731_v1  ;;  %10714 = vrcp.f32 %v3573_v23  ;;  %v3733_v10 = vmul.f32 %v3672_v20, %v12280_v52 }
 0x8be   : > { %v10703_v54 = vpop.eup %10702  ;;  %v3674_v56 = vpop.permute.xlu0 %3673  ;;  %10716 = vrcp.f32 %v3574_v6 }
 0x8bf   : > { %v10705_v33 = vpop.eup %10704  ;;  %v3734_v25 = vmul.f32 %v3674_v56, %v12287_v38  ;;  %9493 = vmatpush3.bf16.msra.mxu0 %v3751_v51  ;;  %v3577_v26 = vadd.f32 1.0, %v10703_v54 }
 0x8c0   : > { %v10707_v13 = vpop.eup %10706  ;;  %v3575_v31 = vadd.f32 1.0, %v10705_v33  ;;  %9520 = vmatprep.subr.bf16.mxu0 %v11031_v46 }
 0x8c1   : > { %v10709_v48 = vpop.eup %10708  ;;  %v3752_v18 = vpack.c.bf16 %v3734_v25, %v3733_v10  ;;  %v3578_v38 = vadd.f32 1.0, %v10707_v13 }
 0x8c2   : > { %10718 = vrcp.f32 %v3575_v31  ;;  %v3576_v47 = vadd.f32 1.0, %v10709_v48  ;;  %9495 = vmatmul.mubr.msk.bf16.vlgmr.msra.gmra.mrb[144].mxu0 %vm1351_vm5, %v12313_v11 }
 0x8c3   : > { %9507 = vmatpush3.bf16.msra.mxu1 %v3752_v18  ;;  %9498 = vmatprep.mubr.msk.bf16.mxu0 %vm11032_vm4, %v11031_v46 }
 0x8c4   : > { %v10711_v52 = vpop.eup %10710  ;;  %10720 = vrcp.f32 %v3576_v47  ;;  %9534 = vmatprep.subr.bf16.mxu1 %v11031_v46 }
 0x8c5   : > { %3683 = vrot.lane.b32.xlu1 %v10711_v52, %s11033_s29  ;;  %10722 = vrcp.f32 %v3577_v26 }
 0x8c6   : > { %v10713_v21 = vpop.eup %10712  ;;  %9509 = vmatmul.mubr.msk.bf16.vlgmr.msra.gmra.mrb[144].mxu1 %vm1351_vm5, %v12313_v11  ;;  %10724 = vrcp.f32 %v3578_v38 }
 0x8c7   : > { %3685 = vrot.lane.b32.xlu0 %v10713_v21, %s11033_s29  ;;  %9512 = vmatprep.mubr.msk.bf16.mxu1 %vm11032_vm4, %v11031_v46  ;;  %v10715_v7 = vpop.eup %10714 }
 0x8c8   : > { %v10717_v57 = vpop.eup %10716 }
 0x8c9   : > { %3687 = vrot.lane.b32.xlu1 %v10715_v7, %s11033_s29 }
 0x8ca   : > { %9499 = vmatmul.mubr.msk.bf16.gmra.mrb[148].mxu0 %vm1351_vm5, %v12332_v14 }
 0x8cb   : > { %3689 = vrot.lane.b32.xlu0 %v10717_v57, %s11033_s29  ;;  %9502 = vmatprep.mubr.msk.bf16.mxu0 %vm11032_vm4, %v11031_v46 }
 0x8cc   : > { %v10719_v53 = vpop.eup %10718 }
 0x8cd   : > { %3691 = vrot.lane.b32.xlu1 %v10719_v53, %s11033_s29 }
 0x8ce   : > { %v10721_v61 = vpop.eup %10720  ;;  %9513 = vmatmul.mubr.msk.bf16.gmra.mrb[148].mxu1 %vm1351_vm5, %v12332_v14 }
 0x8cf   : > { %3693 = vrot.lane.b32.xlu0 %v10721_v61, %s11033_s29  ;;  %9516 = vmatprep.mubr.msk.bf16.mxu1 %vm11032_vm4, %v11031_v46  ;;  %v10723_v59 = vpop.eup %10722 }
 0x8d0   : > { %v3676_v36 = vpop.permute.xlu1 %3675  ;;  %v10725_v15 = vpop.eup %10724 }
 0x8d1   : > { %3695 = vrot.lane.b32.xlu1 %v10723_v59, %s11033_s29  ;;  %v3735_v63 = vmul.f32 %v3676_v36, %v12304_v32 }
 0x8d2   : > { %9503 = vmatmul.mubr.msk.bf16.gmra.mrb[152].mxu0 %vm1351_vm5, %v12342_v2  ;;  %v3678_v37 = vpop.permute.xlu0 %3677 }
 0x8d3   : > { %v3736_v35 = vmul.f32 %v3678_v37, %v12319_v43  ;;  %3697 = vrot.lane.b32.xlu0 %v10725_v15, %s11033_s29  ;;  %9522 = vmatprep.mubr.msk.bf16.mxu0 %vm11032_vm4, %v11031_v46 }
 0x8d4   : > { %v3680_v9 = vpop.permute.xlu1 %3679 }
 0x8d5   : > { %v3753_v12 = vpack.c.bf16 %v3736_v35, %v3735_v63  ;;  %v3737_v34 = vmul.f32 %v3680_v9, %v12300_v41 }
 0x8d6   : > { %9517 = vmatmul.mubr.msk.bf16.gmra.mrb[152].mxu1 %vm1351_vm5, %v12342_v2  ;;  %v3682_v0 = vpop.permute.xlu0 %3681 }
 0x8d7   : > { %v3738_v40 = vmul.f32 %v3682_v0, %v12308_v5  ;;  %9521 = vmatpush3.bf16.msra.mxu0 %v3753_v12  ;;  %9536 = vmatprep.mubr.msk.bf16.mxu1 %vm11032_vm4, %v11031_v46 }
 0x8d8   : > { %9548 = vmatprep.subr.bf16.mxu0 %v11031_v46 }
 0x8d9   : > { %v3754_v32 = vpack.c.bf16 %v3738_v40, %v3737_v34 }
 0x8da   : > { %9523 = vmatmul.mubr.msk.bf16.vlgmr.msra.gmra.mrb[156].mxu0 %vm1351_vm5, %v12313_v11 }
 0x8db   : > { %9535 = vmatpush3.bf16.msra.mxu1 %v3754_v32  ;;  %9526 = vmatprep.mubr.msk.bf16.mxu0 %vm11032_vm4, %v11031_v46 }
 0x8dc   : > { %9562 = vmatprep.subr.bf16.mxu1 %v11031_v46 }
 0x8de   : > { %9537 = vmatmul.mubr.msk.bf16.vlgmr.msra.gmra.mrb[156].mxu1 %vm1351_vm5, %v12313_v11 }
 0x8df   : > { %9540 = vmatprep.mubr.msk.bf16.mxu1 %vm11032_vm4, %v11031_v46 }
 0x8e2   : > { %9527 = vmatmul.mubr.msk.bf16.gmra.mrb[160].mxu0 %vm1351_vm5, %v12332_v14 }
 0x8e3   : > { %9530 = vmatprep.mubr.msk.bf16.mxu0 %vm11032_vm4, %v11031_v46 }
 0x8e6   : > { %9541 = vmatmul.mubr.msk.bf16.gmra.mrb[160].mxu1 %vm1351_vm5, %v12332_v14 }
 0x8e7   : > { %9544 = vmatprep.mubr.msk.bf16.mxu1 %vm11032_vm4, %v11031_v46 }
 0x8ea   : > { %9531 = vmatmul.mubr.msk.bf16.gmra.mrb[164].mxu0 %vm1351_vm5, %v12342_v2 }
 0x8eb   : > { %9550 = vmatprep.mubr.msk.bf16.mxu0 %vm11032_vm4, %v11031_v46 }
 0x8ee   : > { %9545 = vmatmul.mubr.msk.bf16.gmra.mrb[164].mxu1 %vm1351_vm5, %v12342_v2 }
 0x8ef   : > { %9564 = vmatprep.mubr.msk.bf16.mxu1 %vm11032_vm4, %v11031_v46 }
 0x916   : > { %v12494_v41 = vpop.f32.mrb[108].mxu1 }
 0x917   : > { %v9440_v5 = vpop.f32.mrb[109].mxu1 }
 0x918   : > { %v12496_v43 = vpop.f32.mrb[110].mxu1 }
 0x919   : > { %v9441_v28 = vpop.f32.mrb[111].mxu1 }
 0x91e   : > { %v3801_v42 = vpop.f32.mrb[112].mxu1 }
 0x91f   : > { %v9444_v16 = vpop.f32.mrb[113].mxu1 }
 0x920   : > { %v3804_v49 = vpop.f32.mrb[114].mxu1 }
 0x921   : > { %v10110_v30 = vpack.i.bf16 %v3804_v49, %v3801_v42  ;;  %v9445_v44 = vpop.f32.mrb[115].mxu1  ;;  %v10384_v42 = vld [vmem:[%s14086_s10] sm:$0xff]  }
 0x923   : > { %10111 = vrot.lane.b32.xlu1 %v10110_v30, %s11034_s2 }
 0x926   : > { %v3809_v29 = vpop.f32.mrb[116].mxu1 }
 0x927   : > { %v9448_v45 = vpop.f32.mrb[117].mxu1 }
 0x928   : > { %v3812_v27 = vpop.f32.mrb[118].mxu1 }
 0x929   : > { %v10115_v55 = vpack.i.bf16 %v3812_v27, %v3809_v29  ;;  %v9449_v23 = vpop.f32.mrb[119].mxu1 }
 0x92b   : > { %10116 = vrot.lane.b32.xlu1 %v10115_v55, %s11035_s1 }
 0x92e   : > { %v12500_v60 = vpop.f32.mrb[120].mxu1  ;;  %v12502_v19 = vpop.f32.mrb[132].mxu0 }
 0x92f   : > { %v9454_v1 = vpop.f32.mrb[121].mxu1  ;;  %v9468_v17 = vpop.f32.mrb[133].mxu0 }
 0x930   : > { %v12504_v6 = vpop.f32.mrb[122].mxu1  ;;  %v12506_v20 = vpop.f32.mrb[134].mxu0 }
 0x931   : > { %v9455_v51 = vpop.f32.mrb[123].mxu1  ;;  %v9469_v54 = vpop.f32.mrb[135].mxu0 }
 0x932   : > { %v10385_v54 = vld [vmem:[%s14086_s10 + $0x8] sm:$0xff]  }
 0x936   : > { %v3858_v56 = vpop.f32.mrb[124].mxu1  ;;  %v3915_v33 = vpop.f32.mrb[136].mxu0 }
 0x937   : > { %v3684_v10 = vpop.permute.xlu1 %3683  ;;  %v9458_v25 = vpop.f32.mrb[125].mxu1 }
 0x938   : > { %v9472_v13 = vpop.f32.mrb[137].mxu0  ;;  %v3861_v31 = vpop.f32.mrb[126].mxu1  ;;  %v3739_v47 = vmul.f32 %v3684_v10, %v12398_v50  ;;  %v10386_v25 = vld [vmem:[%s14086_s10 + $0x10] sm:$0xff]  }
 0x939   : > { %v10120_v48 = vpack.i.bf16 %v3861_v31, %v3858_v56  ;;  %v3918_v18 = vpop.f32.mrb[138].mxu0  ;;  %v3686_v26 = vpop.permute.xlu0 %3685  ;;  %v10387_v13 = vld [vmem:[%s14086_s10 + $0x18] sm:$0xff]   ;;  %v10389_v31 = vld [vmem:[%s14086_s10 + $0x28] sm:$0xff]  }
 0x93a   : > { %v10125_v52 = vpack.i.bf16 %v3918_v18, %v3915_v33  ;;  %v3740_v38 = vmul.f32 %v3686_v26, %v12406_v8  ;;  %v9459_v21 = vpop.f32.mrb[127].mxu1  ;;  %v9473_v7 = vpop.f32.mrb[139].mxu0 }
 0x93b   : > { %v3688_v57 = vpop.permute.xlu1 %3687  ;;  %10121 = vrot.lane.b32.xlu0 %v10120_v48, %s11034_s2 }
 0x93c   : > { %v3755_v53 = vpack.c.bf16 %v3740_v38, %v3739_v47  ;;  %10126 = vrot.lane.b32.xlu1 %v10125_v52, %s11034_s2  ;;  %v3741_v59 = vmul.f32 %v3688_v57, %v12395_v22 }
 0x93d   : > { %v3690_v61 = vpop.permute.xlu0 %3689 }
 0x93e   : > { %v3742_v36 = vmul.f32 %v3690_v61, %v12402_v58  ;;  %v3866_v15 = vpop.f32.mrb[128].mxu1  ;;  %v3923_v37 = vpop.f32.mrb[140].mxu0  ;;  %9549 = vmatpush3.bf16.msra.mxu0 %v3755_v53 }
 0x93f   : > { %v3692_v50 = vpop.permute.xlu1 %3691  ;;  %v9462_v63 = vpop.f32.mrb[129].mxu1  ;;  %9576 = vmatprep.subr.bf16.mxu0 %v11031_v46 }
 0x940   : > { %v3756_v8 = vpack.c.bf16 %v3742_v36, %v3741_v59  ;;  %v9476_v35 = vpop.f32.mrb[141].mxu0  ;;  %v3869_v9 = vpop.f32.mrb[130].mxu1  ;;  %v3743_v22 = vmul.f32 %v3692_v50, %v12414_v24 }
 0x941   : > { %v10130_v12 = vpack.i.bf16 %v3869_v9, %v3866_v15  ;;  %v3926_v0 = vpop.f32.mrb[142].mxu0  ;;  %9551 = vmatmul.mubr.msk.bf16.vlgmr.msra.gmra.mrb[168].mxu0 %vm1351_vm5, %v12313_v11  ;;  %v3694_v34 = vpop.permute.xlu0 %3693 }
 0x942   : > { %v10135_v40 = vpack.i.bf16 %v3926_v0, %v3923_v37  ;;  %v3744_v58 = vmul.f32 %v3694_v34, %v12422_v3  ;;  %9563 = vmatpush3.bf16.msra.mxu1 %v3756_v8  ;;  %9554 = vmatprep.mubr.msk.bf16.mxu0 %vm11032_vm4, %v11031_v46  ;;  %v9463_v32 = vpop.f32.mrb[131].mxu1  ;;  %v9477_v5 = vpop.f32.mrb[143].mxu0 }
 0x943   : > { %v3696_v28 = vpop.permute.xlu1 %3695  ;;  %10131 = vrot.lane.b32.xlu0 %v10130_v12, %s11035_s1  ;;  %9590 = vmatprep.subr.bf16.mxu1 %v11031_v46 }
 0x944   : > { %v3757_v16 = vpack.c.bf16 %v3744_v58, %v3743_v22  ;;  %10136 = vrot.lane.b32.xlu1 %v10135_v40, %s11035_s1  ;;  %v3745_v3 = vmul.f32 %v3696_v28, %v12411_v4 }
 0x945   : > { %9565 = vmatmul.mubr.msk.bf16.vlgmr.msra.gmra.mrb[168].mxu1 %vm1351_vm5, %v12313_v11  ;;  %v3698_v24 = vpop.permute.xlu0 %3697 }
 0x946   : > { %v3746_v49 = vmul.f32 %v3698_v24, %v12418_v62  ;;  %9577 = vmatpush3.bf16.msra.mxu0 %v3757_v16  ;;  %v12531_v30 = vpop.f32.mrb[132].mxu1  ;;  %9568 = vmatprep.mubr.msk.bf16.mxu1 %vm11032_vm4, %v11031_v46 }
 0x947   : > { %v9482_v44 = vpop.f32.mrb[133].mxu1  ;;  %9604 = vmatprep.subr.bf16.mxu0 %v10384_v42 }
 0x948   : > { %v3758_v29 = vpack.c.bf16 %v3746_v49, %v3745_v3  ;;  %v12535_v45 = vpop.f32.mrb[134].mxu1 }
 0x949   : > { %9555 = vmatmul.mubr.msk.bf16.gmra.mrb[172].mxu0 %vm1351_vm5, %v12332_v14  ;;  %v9483_v27 = vpop.f32.mrb[135].mxu1 }
 0x94a   : > { %9591 = vmatpush3.bf16.msra.mxu1 %v3758_v29  ;;  %9558 = vmatprep.mubr.msk.bf16.mxu0 %vm11032_vm4, %v11031_v46 }
 0x94d   : > { %9569 = vmatmul.mubr.msk.bf16.gmra.mrb[172].mxu1 %vm1351_vm5, %v12332_v14 }
 0x94e   : > { %v3972_v4 = vpop.f32.mrb[136].mxu1  ;;  %9572 = vmatprep.mubr.msk.bf16.mxu1 %vm11032_vm4, %v11031_v46 }
 0x94f   : > { %v9486_v62 = vpop.f32.mrb[137].mxu1 }
 0x950   : > { %v3975_v55 = vpop.f32.mrb[138].mxu1 }
 0x951   : > { %v10140_v23 = vpack.i.bf16 %v3975_v55, %v3972_v4  ;;  %9559 = vmatmul.mubr.msk.bf16.gmra.mrb[176].mxu0 %vm1351_vm5, %v12342_v2  ;;  %v9487_v1 = vpop.f32.mrb[139].mxu1 }
 0x952   : > { %9578 = vmatprep.mubr.msk.bf16.mxu0 %vm11032_vm4, %v11031_v46 }
 0x953   : > { %10141 = vrot.lane.b32.xlu0 %v10140_v23, %s11034_s2 }
 0x955   : > { %9573 = vmatmul.mubr.msk.bf16.gmra.mrb[176].mxu1 %vm1351_vm5, %v12342_v2 }
 0x956   : > { %v3980_v17 = vpop.f32.mrb[140].mxu1  ;;  %9592 = vmatprep.mubr.msk.bf16.mxu1 %vm11032_vm4, %v11031_v46 }
 0x957   : > { %v9490_v51 = vpop.f32.mrb[141].mxu1 }
 0x958   : > { %v3983_v56 = vpop.f32.mrb[142].mxu1 }
 0x959   : > { %v10150_v33 = vpack.i.bf16 %v3983_v56, %v3980_v17  ;;  %9579 = vmatmul.mubr.msk.bf16.vlgmr.msra.gmra.mrb[180].mxu0 %vm1351_vm5, %v12313_v11  ;;  %v9491_v10 = vpop.f32.mrb[143].mxu1 }
 0x95a   : > { %9582 = vmatprep.mubr.msk.bf16.mxu0 %vm11032_vm4, %v11031_v46  ;;  %9605 = vmatpush3.bf16.msra.mxu0 %v10384_v42 }
 0x95b   : > { %10151 = vrot.lane.b32.xlu0 %v10150_v33, %s11035_s1  ;;  %9606 = vmatprep.subr.bf16.mxu0 %v10385_v54 }
 0x95d   : > { %9593 = vmatmul.mubr.msk.bf16.vlgmr.msra.gmra.mrb[180].mxu1 %vm1351_vm5, %v12313_v11  ;;  %v10388_v11 = vld [vmem:[%s14086_s10 + $0x20] sm:$0xff]  }
 0x95e   : > { %9596 = vmatprep.mubr.msk.bf16.mxu1 %vm11032_vm4, %v11031_v46  ;;  %9607 = vmatpush3.bf16.msra.mxu0 %v10385_v54 }
 0x95f   : > { %9608 = vmatprep.subr.bf16.mxu0 %v10386_v25 }
 0x961   : > { %9583 = vmatmul.mubr.msk.bf16.gmra.mrb[184].mxu0 %vm1351_vm5, %v12332_v14 }
 0x962   : > { %9586 = vmatprep.mubr.msk.bf16.mxu0 %vm11032_vm4, %v11031_v46  ;;  %9609 = vmatpush3.bf16.msra.mxu0 %v10386_v25 }
 0x963   : > { %9610 = vmatprep.subr.bf16.mxu0 %v10387_v13 }
 0x965   : > { %9597 = vmatmul.mubr.msk.bf16.gmra.mrb[184].mxu1 %vm1351_vm5, %v12332_v14 }
 0x966   : > { %9600 = vmatprep.mubr.msk.bf16.mxu1 %vm11032_vm4, %v11031_v46  ;;  %9611 = vmatpush3.bf16.msra.mxu0 %v10387_v13 }
 0x967   : > { %9612 = vmatprep.subr.bf16.mxu0 %v10388_v11 }
 0x969   : > { %9587 = vmatmul.mubr.msk.bf16.gmra.mrb[188].mxu0 %vm1351_vm5, %v12342_v2 }
 0x96a   : > { %9613 = vmatpush3.bf16.msra.mxu0 %v10388_v11 }
 0x96b   : > { %9614 = vmatprep.subr.bf16.mxu0 %v10389_v31 }
 0x96d   : > { %9601 = vmatmul.mubr.msk.bf16.gmra.mrb[188].mxu1 %vm1351_vm5, %v12342_v2 }
 0x96e   : > { %9615 = vmatpush3.bf16.msra.mxu0 %v10389_v31 }
 0x995   : > { %v12590_v48 = vpop.f32.mrb[144].mxu0  ;;  %v10112_v26 = vpop.permute.xlu1 %10111 }
 0x996   : > { %v9496_v14 = vpop.f32.mrb[145].mxu0  ;;  %v10114_v21 = vunpack.i.h.bf16 %v10112_v26  ;;  %v10113_v7 = vunpack.i.l.bf16 %v10112_v26 }
 0x997   : > { %v12592_v18 = vpop.f32.mrb[146].mxu0 }
 0x998   : > { %v9497_v47 = vpop.f32.mrb[147].mxu0  ;;  %v4636_v37 = vsel %vm2237_vm6, %v12496_v43, %v10114_v21  ;;  %v4635_v50 = vsel %vm2237_vm6, %v12494_v41, %v10113_v7 }
 0x999   : > { %v12594_v52 = vpop.f32.mrb[144].mxu1 }
 0x99a   : > { %v9510_v38 = vpop.f32.mrb[145].mxu1 }
 0x99b   : > { %v12596_v57 = vpop.f32.mrb[146].mxu1 }
 0x99c   : > { %v9511_v53 = vpop.f32.mrb[147].mxu1 }
 0x99d   : > { %v10117_v61 = vpop.permute.xlu1 %10116  ;;  %v4029_v59 = vpop.f32.mrb[148].mxu0 }
 0x99e   : > { %v10119_v36 = vunpack.i.h.bf16 %v10117_v61  ;;  %v10118_v2 = vunpack.i.l.bf16 %v10117_v61  ;;  %v9500_v15 = vpop.f32.mrb[149].mxu0 }
 0x99f   : > { %v4032_v63 = vpop.f32.mrb[150].mxu0 }
 0x9a0   : > { %v4660_v8 = vsel %vm2262_vm7, %v4636_v37, %v10119_v36  ;;  %v4659_v35 = vsel %vm2262_vm7, %v4635_v50, %v10118_v2  ;;  %v10145_v9 = vpack.i.bf16 %v4032_v63, %v4029_v59  ;;  %v9501_v12 = vpop.f32.mrb[151].mxu0 }
 0x9a1   : > { %v4086_v0 = vpop.f32.mrb[148].mxu1  ;;  %v4683_v34 = vpack.c.bf16 %v4660_v8, %v4659_v35 }
 0x9a2   : > { %10146 = vrot.lane.b32.xlu1 %v10145_v9, %s11034_s2  ;;  %v9514_v22 = vpop.f32.mrb[149].mxu1 }
 0x9a3   : > { %v4089_v40 = vpop.f32.mrb[150].mxu1  ;;  %9616 = vmatprep.mubr.msk.bf16.mxu0 %vm2354_vm8, %v4683_v34 }
 0x9a4   : > { %v10160_v58 = vpack.i.bf16 %v4089_v40, %v4086_v0  ;;  %v9515_v43 = vpop.f32.mrb[151].mxu1 }
 0x9a5   : > { %v4037_v32 = vpop.f32.mrb[152].mxu0 }
 0x9a6   : > { %v9504_v5 = vpop.f32.mrb[153].mxu0  ;;  %10161 = vrot.lane.b32.xlu0 %v10160_v58, %s11034_s2 }
 0x9a7   : > { %v4040_v41 = vpop.f32.mrb[154].mxu0 }
 0x9a8   : > { %v10155_v28 = vpack.i.bf16 %v4040_v41, %v4037_v32  ;;  %v9505_v42 = vpop.f32.mrb[155].mxu0 }
 0x9a9   : > { %v4094_v16 = vpop.f32.mrb[152].mxu1 }
 0x9aa   : > { %10156 = vrot.lane.b32.xlu1 %v10155_v28, %s11035_s1  ;;  %v9518_v24 = vpop.f32.mrb[153].mxu1 }
 0x9ab   : > { %v4097_v3 = vpop.f32.mrb[154].mxu1 }
 0x9ac   : > { %v10165_v49 = vpack.i.bf16 %v4097_v3, %v4094_v16  ;;  %v9519_v44 = vpop.f32.mrb[155].mxu1 }
 0x9ad   : > { %v12608_v29 = vpop.f32.mrb[156].mxu0  ;;  %v10122_v4 = vpop.permute.xlu0 %10121 }
 0x9ae   : > { %10166 = vrot.lane.b32.xlu0 %v10165_v49, %s11035_s1  ;;  %v9524_v27 = vpop.f32.mrb[157].mxu0  ;;  %v10127_v55 = vpop.permute.xlu1 %10126  ;;  %v10124_v17 = vunpack.i.h.bf16 %v10122_v4  ;;  %v10123_v56 = vunpack.i.l.bf16 %v10122_v4 }
 0x9af   : > { %v12611_v62 = vpop.f32.mrb[158].mxu0  ;;  %v10129_v54 = vunpack.i.h.bf16 %v10127_v55  ;;  %v10128_v10 = vunpack.i.l.bf16 %v10127_v55 }
 0x9b0   : > { %v9525_v23 = vpop.f32.mrb[159].mxu0  ;;  %v4638_v31 = vsel %vm2237_vm6, %v12504_v6, %v10124_v17  ;;  %v4637_v7 = vsel %vm2237_vm6, %v12500_v60, %v10123_v56 }
 0x9b1   : > { %v12613_v1 = vpop.f32.mrb[156].mxu1  ;;  %v4640_v21 = vsel %vm2237_vm6, %v12506_v20, %v10129_v54  ;;  %v4639_v36 = vsel %vm2237_vm6, %v12502_v19, %v10128_v10 }
 0x9b2   : > { %v9538_v51 = vpop.f32.mrb[157].mxu1 }
 0x9b3   : > { %v12615_v33 = vpop.f32.mrb[158].mxu1 }
 0x9b4   : > { %v9539_v25 = vpop.f32.mrb[159].mxu1 }
 0x9b5   : > { %v4143_v13 = vpop.f32.mrb[160].mxu0  ;;  %v10132_v11 = vpop.permute.xlu0 %10131 }
 0x9b6   : > { %v10137_v14 = vpop.permute.xlu1 %10136  ;;  %v10134_v26 = vunpack.i.h.bf16 %v10132_v11  ;;  %v10133_v47 = vunpack.i.l.bf16 %v10132_v11  ;;  %v9528_v38 = vpop.f32.mrb[161].mxu0 }
 0x9b7   : > { %v10139_v53 = vunpack.i.h.bf16 %v10137_v14  ;;  %v10138_v61 = vunpack.i.l.bf16 %v10137_v14  ;;  %v4146_v59 = vpop.f32.mrb[162].mxu0 }
 0x9b8   : > { %v4661_v2 = vsel %vm2262_vm7, %v4637_v7, %v10133_v47  ;;  %v4662_v6 = vsel %vm2262_vm7, %v4638_v31, %v10134_v26  ;;  %v10170_v15 = vpack.i.bf16 %v4146_v59, %v4143_v13  ;;  %v9529_v37 = vpop.f32.mrb[163].mxu0 }
 0x9b9   : > { %v4664_v50 = vsel %vm2262_vm7, %v4640_v21, %v10139_v53  ;;  %v4663_v63 = vsel %vm2262_vm7, %v4639_v36, %v10138_v61  ;;  %v4684_v20 = vpack.c.bf16 %v4662_v6, %v4661_v2  ;;  %v4200_v8 = vpop.f32.mrb[160].mxu1 }
 0x9ba   : > { %10171 = vrot.lane.b32.xlu1 %v10170_v15, %s11034_s2  ;;  %v9542_v60 = vpop.f32.mrb[161].mxu1  ;;  %v4685_v35 = vpack.c.bf16 %v4664_v50, %v4663_v63 }
 0x9bb   : > { %v4203_v9 = vpop.f32.mrb[162].mxu1  ;;  %9617 = vmatmul.mubr.msk.bf16.vlgmr.msra.gmra.mrb[192].mxu0 %vm2354_vm8, %v4684_v20 }
 0x9bc   : > { %v10180_v19 = vpack.i.bf16 %v4203_v9, %v4200_v8  ;;  %9620 = vmatprep.mubr.msk.bf16.mxu0 %vm2354_vm8, %v4685_v35  ;;  %v9543_v12 = vpop.f32.mrb[163].mxu1 }
 0x9bd   : > { %v4151_v0 = vpop.f32.mrb[164].mxu0 }
 0x9be   : > { %v9532_v34 = vpop.f32.mrb[165].mxu0  ;;  %10181 = vrot.lane.b32.xlu0 %v10180_v19, %s11034_s2 }
 0x9bf   : > { %v4154_v22 = vpop.f32.mrb[166].mxu0 }
 0x9c0   : > { %v10175_v40 = vpack.i.bf16 %v4154_v22, %v4151_v0  ;;  %v9533_v58 = vpop.f32.mrb[167].mxu0 }
 0x9c1   : > { %v4208_v43 = vpop.f32.mrb[164].mxu1 }
 0x9c2   : > { %10176 = vrot.lane.b32.xlu1 %v10175_v40, %s11035_s1  ;;  %v9546_v32 = vpop.f32.mrb[165].mxu1 }
 0x9c3   : > { %v4211_v5 = vpop.f32.mrb[166].mxu1 }
 0x9c4   : > { %v10185_v41 = vpack.i.bf16 %v4211_v5, %v4208_v43  ;;  %v9547_v28 = vpop.f32.mrb[167].mxu1 }
 0x9c5   : > { %v10142_v42 = vpop.permute.xlu0 %10141 }
 0x9c6   : > { %10186 = vrot.lane.b32.xlu0 %v10185_v41, %s11035_s1  ;;  %v10144_v16 = vunpack.i.h.bf16 %v10142_v42  ;;  %v10143_v24 = vunpack.i.l.bf16 %v10142_v42 }
 0x9c8   : > { %v4642_v27 = vsel %vm2237_vm6, %v12535_v45, %v10144_v16  ;;  %v4641_v4 = vsel %vm2237_vm6, %v12531_v30, %v10143_v24 }
 0x9cd   : > { %v10152_v3 = vpop.permute.xlu0 %10151 }
 0x9ce   : > { %v10154_v49 = vunpack.i.h.bf16 %v10152_v3  ;;  %v10153_v44 = vunpack.i.l.bf16 %v10152_v3 }
 0x9d0   : > { %v4665_v55 = vsel %vm2262_vm7, %v4641_v4, %v10153_v44  ;;  %v4666_v23 = vsel %vm2262_vm7, %v4642_v27, %v10154_v49 }
 0x9d1   : > { %v4686_v17 = vpack.c.bf16 %v4666_v23, %v4665_v55 }
 0x9d3   : > { %9621 = vmatmul.mubr.msk.bf16.gmra.mrb[196].mxu0 %vm2354_vm8, %v4686_v17 }
 0xa14   : > { %v12642_v51 = vpop.f32.mrb[168].mxu0  ;;  %v10147_v10 = vpop.permute.xlu1 %10146 }
 0xa15   : > { %v9552_v54 = vpop.f32.mrb[169].mxu0  ;;  %v10149_v11 = vunpack.i.h.bf16 %v10147_v10  ;;  %v10148_v31 = vunpack.i.l.bf16 %v10147_v10 }
 0xa16   : > { %v12644_v56 = vpop.f32.mrb[170].mxu0 }
 0xa17   : > { %v9553_v25 = vpop.f32.mrb[171].mxu0  ;;  %v4644_v61 = vsel %vm2237_vm6, %v12592_v18, %v10149_v11  ;;  %v4643_v59 = vsel %vm2237_vm6, %v12590_v48, %v10148_v31 }
 0xa18   : > { %v12646_v13 = vpop.f32.mrb[168].mxu1  ;;  %v10162_v14 = vpop.permute.xlu0 %10161 }
 0xa19   : > { %v9566_v45 = vpop.f32.mrb[169].mxu1  ;;  %v10164_v36 = vunpack.i.h.bf16 %v10162_v14  ;;  %v10163_v2 = vunpack.i.l.bf16 %v10162_v14 }
 0xa1a   : > { %v12648_v30 = vpop.f32.mrb[170].mxu1 }
 0xa1b   : > { %v9567_v26 = vpop.f32.mrb[171].mxu1  ;;  %v4646_v48 = vsel %vm2237_vm6, %v12596_v57, %v10164_v36  ;;  %v4645_v19 = vsel %vm2237_vm6, %v12594_v52, %v10163_v2 }
 0xa1c   : > { %v10157_v47 = vpop.permute.xlu1 %10156  ;;  %v4257_v38 = vpop.f32.mrb[172].mxu0 }
 0xa1d   : > { %v10159_v21 = vunpack.i.h.bf16 %v10157_v47  ;;  %v10158_v7 = vunpack.i.l.bf16 %v10157_v47  ;;  %v9556_v53 = vpop.f32.mrb[173].mxu0 }
 0xa1e   : > { %v4260_v6 = vpop.f32.mrb[174].mxu0 }
 0xa1f   : > { %v4668_v15 = vsel %vm2262_vm7, %v4644_v61, %v10159_v21  ;;  %v4667_v37 = vsel %vm2262_vm7, %v4643_v59, %v10158_v7  ;;  %v10190_v50 = vpack.i.bf16 %v4260_v6, %v4257_v38  ;;  %v9557_v63 = vpop.f32.mrb[175].mxu0 }
 0xa20   : > { %v4314_v20 = vpop.f32.mrb[172].mxu1  ;;  %v10167_v8 = vpop.permute.xlu0 %10166  ;;  %v4687_v60 = vpack.c.bf16 %v4668_v15, %v4667_v37 }
 0xa21   : > { %v10169_v35 = vunpack.i.h.bf16 %v10167_v8  ;;  %v10168_v9 = vunpack.i.l.bf16 %v10167_v8  ;;  %10191 = vrot.lane.b32.xlu1 %v10190_v50, %s11034_s2  ;;  %v9570_v18 = vpop.f32.mrb[173].mxu1 }
 0xa22   : > { %v4317_v12 = vpop.f32.mrb[174].mxu1  ;;  %9624 = vmatprep.mubr.msk.bf16.mxu0 %vm2354_vm8, %v4687_v60 }
 0xa23   : > { %v4669_v0 = vsel %vm2262_vm7, %v4645_v19, %v10168_v9  ;;  %v4670_v34 = vsel %vm2262_vm7, %v4646_v48, %v10169_v35  ;;  %v10200_v22 = vpack.i.bf16 %v4317_v12, %v4314_v20  ;;  %v9571_v40 = vpop.f32.mrb[175].mxu1 }
 0xa24   : > { %v4265_v58 = vpop.f32.mrb[176].mxu0  ;;  %v4688_v43 = vpack.c.bf16 %v4670_v34, %v4669_v0 }
 0xa25   : > { %v9560_v32 = vpop.f32.mrb[177].mxu0  ;;  %10201 = vrot.lane.b32.xlu0 %v10200_v22, %s11034_s2 }
 0xa26   : > { %v4268_v5 = vpop.f32.mrb[178].mxu0  ;;  %9625 = vmatmul.mubr.msk.bf16.gmra.mrb[200].mxu0 %vm2354_vm8, %v4688_v43 }
 0xa27   : > { %v10195_v57 = vpack.i.bf16 %v4268_v5, %v4265_v58  ;;  %v9561_v41 = vpop.f32.mrb[179].mxu0  ;;  %v10390_v5 = vld [vmem:[%s14088_s12] sm:$0xff]  }
 0xa28   : > { %v4322_v52 = vpop.f32.mrb[176].mxu1  ;;  %9640 = vmatprep.subr.bf16.mxu1 %v10390_v5 }
 0xa29   : > { %10196 = vrot.lane.b32.xlu1 %v10195_v57, %s11035_s1  ;;  %v9574_v28 = vpop.f32.mrb[177].mxu1  ;;  %v12700_v57 = vld [vmem:[%s14087_s11] ss:$0 sm:$0xff]  ;;  %9641 = vmatpush3.bf16.msra.mxu1 %v10390_v5 }
 0xa2a   : > { %v4325_v42 = vpop.f32.mrb[178].mxu1 }
 0xa2b   : > { %v10205_v16 = vpack.i.bf16 %v4325_v42, %v4322_v52  ;;  %v9575_v24 = vpop.f32.mrb[179].mxu1  ;;  %v10391_v42 = vld [vmem:[%s14088_s12 + $0x8] sm:$0xff]  }
 0xa2c   : > { %v12667_v3 = vpop.f32.mrb[180].mxu0  ;;  %v10172_v27 = vpop.permute.xlu1 %10171  ;;  %9642 = vmatprep.subr.bf16.mxu1 %v10391_v42 }
 0xa2d   : > { %10206 = vrot.lane.b32.xlu0 %v10205_v16, %s11035_s1  ;;  %v9580_v49 = vpop.f32.mrb[181].mxu0  ;;  %v10174_v17 = vunpack.i.h.bf16 %v10172_v27  ;;  %v10173_v54 = vunpack.i.l.bf16 %v10172_v27  ;;  %9643 = vmatpush3.bf16.msra.mxu1 %v10391_v42 }
 0xa2e   : > { %v12670_v44 = vpop.f32.mrb[182].mxu0 }
 0xa2f   : > { %v9581_v4 = vpop.f32.mrb[183].mxu0  ;;  %v4648_v38 = vsel %vm2237_vm6, %v12611_v62, %v10174_v17  ;;  %v4647_v21 = vsel %vm2237_vm6, %v12608_v29, %v10173_v54  ;;  %v10392_v54 = vld [vmem:[%s14088_s12 + $0x10] sm:$0xff]  }
 0xa30   : > { %v12672_v55 = vpop.f32.mrb[180].mxu1  ;;  %v10182_v25 = vpop.permute.xlu0 %10181  ;;  %9644 = vmatprep.subr.bf16.mxu1 %v10392_v54 }
 0xa31   : > { %v9594_v23 = vpop.f32.mrb[181].mxu1  ;;  %v10184_v7 = vunpack.i.h.bf16 %v10182_v25  ;;  %v10183_v53 = vunpack.i.l.bf16 %v10182_v25  ;;  %9645 = vmatpush3.bf16.msra.mxu1 %v10392_v54 }
 0xa32   : > { %v12674_v10 = vpop.f32.mrb[182].mxu1 }
 0xa33   : > { %v9595_v45 = vpop.f32.mrb[183].mxu1  ;;  %v4650_v29 = vsel %vm2237_vm6, %v12615_v33, %v10184_v7  ;;  %v4649_v8 = vsel %vm2237_vm6, %v12613_v1, %v10183_v53  ;;  %v10394_v53 = vld [vmem:[%s14088_s12 + $0x20] sm:$0xff]  }
 0xa34   : > { %v10177_v11 = vpop.permute.xlu1 %10176  ;;  %v4371_v31 = vpop.f32.mrb[184].mxu0 }
 0xa35   : > { %v10179_v14 = vunpack.i.h.bf16 %v10177_v11  ;;  %v10178_v26 = vunpack.i.l.bf16 %v10177_v11  ;;  %v9584_v47 = vpop.f32.mrb[185].mxu0 }
 0xa36   : > { %v4374_v61 = vpop.f32.mrb[186].mxu0 }
 0xa37   : > { %v4672_v59 = vsel %vm2262_vm7, %v4648_v38, %v10179_v14  ;;  %v4671_v36 = vsel %vm2262_vm7, %v4647_v21, %v10178_v26  ;;  %v10210_v2 = vpack.i.bf16 %v4374_v61, %v4371_v31  ;;  %v9585_v6 = vpop.f32.mrb[187].mxu0  ;;  %v10393_v26 = vld [vmem:[%s14088_s12 + $0x18] sm:$0xff]  }
 0xa38   : > { %v4428_v15 = vpop.f32.mrb[184].mxu1  ;;  %v10187_v37 = vpop.permute.xlu0 %10186  ;;  %v4689_v50 = vpack.c.bf16 %v4672_v59, %v4671_v36  ;;  %9646 = vmatprep.subr.bf16.mxu1 %v10393_v26 }
 0xa39   : > { %v10189_v63 = vunpack.i.h.bf16 %v10187_v37  ;;  %v10188_v20 = vunpack.i.l.bf16 %v10187_v37  ;;  %10211 = vrot.lane.b32.xlu1 %v10210_v2, %s11034_s2  ;;  %v9598_v62 = vpop.f32.mrb[185].mxu1  ;;  %9647 = vmatpush3.bf16.msra.mxu1 %v10393_v26 }
 0xa3a   : > { %v4431_v60 = vpop.f32.mrb[186].mxu1  ;;  %9628 = vmatprep.mubr.msk.bf16.mxu0 %vm2354_vm8, %v4689_v50  ;;  %9648 = vmatprep.subr.bf16.mxu1 %v10394_v53  ;;  %v10395_v62 = vld [vmem:[%s14088_s12 + $0x28] sm:$0xff]  }
 0xa3b   : > { %v4673_v35 = vsel %vm2262_vm7, %v4649_v8, %v10188_v20  ;;  %v4674_v9 = vsel %vm2262_vm7, %v4650_v29, %v10189_v63  ;;  %v10220_v18 = vpack.i.bf16 %v4431_v60, %v4428_v15  ;;  %v9599_v48 = vpop.f32.mrb[187].mxu1 }
 0xa3c   : > { %v4379_v19 = vpop.f32.mrb[188].mxu0  ;;  %v4690_v12 = vpack.c.bf16 %v4674_v9, %v4673_v35 }
 0xa3d   : > { %v9588_v0 = vpop.f32.mrb[189].mxu0  ;;  %10221 = vrot.lane.b32.xlu0 %v10220_v18, %s11034_s2  ;;  %9649 = vmatpush3.bf16.msra.mxu1 %v10394_v53 }
 0xa3e   : > { %v4382_v34 = vpop.f32.mrb[190].mxu0  ;;  %9629 = vmatmul.mubr.msk.bf16.gmra.mrb[204].mxu0 %vm2354_vm8, %v4690_v12  ;;  %9650 = vmatprep.subr.bf16.mxu1 %v10395_v62 }
 0xa3f   : > { %v10215_v33 = vpack.i.bf16 %v4382_v34, %v4379_v19  ;;  %v9589_v22 = vpop.f32.mrb[191].mxu0 }
 0xa40   : > { %v4436_v1 = vpop.f32.mrb[188].mxu1 }
 0xa41   : > { %10216 = vrot.lane.b32.xlu1 %v10215_v33, %s11035_s1  ;;  %v9602_v40 = vpop.f32.mrb[189].mxu1  ;;  %9651 = vmatpush3.bf16.msra.mxu1 %v10395_v62 }
 0xa42   : > { %v4439_v58 = vpop.f32.mrb[190].mxu1  ;;  %9712 = vmatprep.subr.bf16.mxu1 %v11031_v46 }
 0xa43   : > { %v10225_v43 = vpack.i.bf16 %v4439_v58, %v4436_v1  ;;  %v9603_v32 = vpop.f32.mrb[191].mxu1 }
 0xa45   : > { %10226 = vrot.lane.b32.xlu0 %v10225_v43, %s11035_s1 }
 0xa8e   : > { %v9618_v41 = vpop.f32.mrb[192].mxu0 }
 0xa8f   : > { %v4829_v52 = vadd.f32 %v9618_v41, %v12700_v57  ;;  %v4820_v28 = vpop.f32.mrb[193].mxu0 }
 0xa90   : > { %v4821_v16 = vadd.f32 %v12700_v57, %v4820_v28  ;;  %v9619_v24 = vpop.f32.mrb[194].mxu0 }
 0xa91   : > { %v4832_v49 = vadd.f32 %v9619_v24, %v12700_v57  ;;  %v4823_v27 = vpop.f32.mrb[195].mxu0  ;;  %v4917_v23 = vmax.f32 %v4829_v52, 0.0 }
 0xa92   : > { %v4824_v4 = vadd.f32 %v12700_v57, %v4823_v27  ;;  %v4915_v25 = vmax.f32 %v4821_v16, 0.0 }
 0xa93   : > { %v4918_v17 = vmax.f32 %v4832_v49, 0.0  ;;  %v10192_v14 = vpop.permute.xlu1 %10191 }
 0xa94   : > { %v4916_v45 = vmax.f32 %v4824_v4, 0.0  ;;  %v10194_v47 = vunpack.i.h.bf16 %v10192_v14  ;;  %v10193_v38 = vunpack.i.l.bf16 %v10192_v14 }
 0xa95   : > { %v12712_v11 = vpack.c.bf16 %v4918_v17, %v4917_v23 }
 0xa96   : > { %v12714_v31 = vpack.c.bf16 %v4916_v45, %v4915_v25  ;;  %v4652_v36 = vsel %vm2237_vm6, %v12644_v56, %v10194_v47  ;;  %v4651_v2 = vsel %vm2237_vm6, %v12642_v51, %v10193_v38 }
 0xa97   : > { %4965 = vrot.lane.b32.xlu0 %v12712_v11, %s11034_s2  ;;  %v10202_v21 = vpop.permute.xlu0 %10201 }
 0xa98   : > { %4963 = vrot.lane.b32.xlu1 %v12714_v31, %s11034_s2  ;;  %v10204_v6 = vunpack.i.h.bf16 %v10202_v21  ;;  %v10203_v15 = vunpack.i.l.bf16 %v10202_v21 }
 0xa9a   : > { %v4654_v56 = vsel %vm2237_vm6, %v12648_v30, %v10204_v6  ;;  %v4653_v51 = vsel %vm2237_vm6, %v12646_v13, %v10203_v15 }
 0xa9b   : > { %v10197_v7 = vpop.permute.xlu1 %10196 }
 0xa9c   : > { %v10199_v61 = vunpack.i.h.bf16 %v10197_v7  ;;  %v10198_v59 = vunpack.i.l.bf16 %v10197_v7  ;;  %4987 = vrot.lane.b32.xlu1 %v12712_v11, %s11035_s1 }
 0xa9e   : > { %v4676_v37 = vsel %vm2262_vm7, %v4652_v36, %v10199_v61  ;;  %v4675_v50 = vsel %vm2262_vm7, %v4651_v2, %v10198_v59 }
 0xa9f   : > { %v10207_v63 = vpop.permute.xlu0 %10206  ;;  %v4691_v20 = vpack.c.bf16 %v4676_v37, %v4675_v50 }
 0xaa0   : > { %v10209_v29 = vunpack.i.h.bf16 %v10207_v63  ;;  %v10208_v8 = vunpack.i.l.bf16 %v10207_v63 }
 0xaa1   : > { %9632 = vmatprep.mubr.msk.bf16.mxu0 %vm2354_vm8, %v4691_v20 }
 0xaa2   : > { %v4677_v60 = vsel %vm2262_vm7, %v4653_v51, %v10208_v8  ;;  %v4678_v35 = vsel %vm2262_vm7, %v4654_v56, %v10209_v29 }
 0xaa3   : > { %v4692_v9 = vpack.c.bf16 %v4678_v35, %v4677_v60 }
 0xaa5   : > { %9633 = vmatmul.mubr.msk.bf16.gmra.mrb[208].mxu0 %vm2354_vm8, %v4692_v9 }
 0xaa6   : > { %v9622_v18 = vpop.f32.mrb[196].mxu0 }
 0xaa7   : > { %v4845_v48 = vadd.f32 %v9622_v18, %v12700_v57  ;;  %v4836_v30 = vpop.f32.mrb[197].mxu0 }
 0xaa8   : > { %v4837_v19 = vadd.f32 %v12700_v57, %v4836_v30  ;;  %v9623_v13 = vpop.f32.mrb[198].mxu0 }
 0xaa9   : > { %v4848_v12 = vadd.f32 %v9623_v13, %v12700_v57  ;;  %v4839_v0 = vpop.f32.mrb[199].mxu0  ;;  %v4921_v33 = vmax.f32 %v4845_v48, 0.0 }
 0xaaa   : > { %v4840_v34 = vadd.f32 %v12700_v57, %v4839_v0  ;;  %v4919_v1 = vmax.f32 %v4837_v19, 0.0 }
 0xaab   : > { %v4922_v22 = vmax.f32 %v4848_v12, 0.0  ;;  %v10212_v32 = vpop.permute.xlu1 %10211 }
 0xaac   : > { %v4920_v40 = vmax.f32 %v4840_v34, 0.0  ;;  %v10214_v5 = vunpack.i.h.bf16 %v10212_v32  ;;  %v10213_v41 = vunpack.i.l.bf16 %v10212_v32 }
 0xaad   : > { %v12750_v58 = vpack.c.bf16 %v4922_v22, %v4921_v33 }
 0xaae   : > { %v12752_v43 = vpack.c.bf16 %v4920_v40, %v4919_v1  ;;  %v4656_v24 = vsel %vm2237_vm6, %v12670_v44, %v10214_v5  ;;  %v4655_v49 = vsel %vm2237_vm6, %v12667_v3, %v10213_v41 }
 0xaaf   : > { %v10222_v52 = vpop.permute.xlu0 %10221 }
 0xab0   : > { %4989 = vrot.lane.b32.xlu0 %v12752_v43, %s11035_s1  ;;  %4967 = vrot.lane.b32.xlu1 %v12752_v43, %s11034_s2  ;;  %v10224_v27 = vunpack.i.h.bf16 %v10222_v52  ;;  %v10223_v4 = vunpack.i.l.bf16 %v10222_v52 }
 0xab2   : > { %v4658_v26 = vsel %vm2237_vm6, %v12674_v10, %v10224_v27  ;;  %v4657_v47 = vsel %vm2237_vm6, %v12672_v55, %v10223_v4 }
 0xab3   : > { %v10217_v28 = vpop.permute.xlu1 %10216 }
 0xab4   : > { %v10219_v42 = vunpack.i.h.bf16 %v10217_v28  ;;  %v10218_v16 = vunpack.i.l.bf16 %v10217_v28  ;;  %4969 = vrot.lane.b32.xlu0 %v12750_v58, %s11034_s2  ;;  %4991 = vrot.lane.b32.xlu1 %v12750_v58, %s11035_s1 }
 0xab6   : > { %v4680_v23 = vsel %vm2262_vm7, %v4656_v24, %v10219_v42  ;;  %v4679_v17 = vsel %vm2262_vm7, %v4655_v49, %v10218_v16 }
 0xab7   : > { %v10227_v54 = vpop.permute.xlu0 %10226  ;;  %v4693_v25 = vpack.c.bf16 %v4680_v23, %v4679_v17 }
 0xab8   : > { %v10229_v45 = vunpack.i.h.bf16 %v10227_v54  ;;  %v10228_v14 = vunpack.i.l.bf16 %v10227_v54 }
 0xab9   : > { %9636 = vmatprep.mubr.msk.bf16.mxu0 %vm2354_vm8, %v4693_v25 }
 0xaba   : > { %v4681_v3 = vsel %vm2262_vm7, %v4657_v47, %v10228_v14  ;;  %v4682_v44 = vsel %vm2262_vm7, %v4658_v26, %v10229_v45 }
 0xabb   : > { %v4694_v38 = vpack.c.bf16 %v4682_v44, %v4681_v3 }
 0xabd   : > { %9637 = vmatmul.mubr.msk.bf16.gmra.mrb[212].mxu0 %vm2354_vm8, %v4694_v38 }
 0xaf9   : > { %v9626_v21 = vpop.f32.mrb[200].mxu0 }
 0xafa   : > { %v4861_v7 = vadd.f32 %v9626_v21, %v12700_v57  ;;  %v4852_v53 = vpop.f32.mrb[201].mxu0 }
 0xafb   : > { %v4853_v61 = vadd.f32 %v12700_v57, %v4852_v53  ;;  %v9627_v59 = vpop.f32.mrb[202].mxu0 }
 0xafc   : > { %v4864_v10 = vadd.f32 %v9627_v59, %v12700_v57  ;;  %v4855_v36 = vpop.f32.mrb[203].mxu0  ;;  %v4925_v2 = vmax.f32 %v4861_v7, 0.0 }
 0xafd   : > { %v4856_v55 = vadd.f32 %v12700_v57, %v4855_v36  ;;  %v4923_v15 = vmax.f32 %v4853_v61, 0.0 }
 0xafe   : > { %v4926_v6 = vmax.f32 %v4864_v10, 0.0 }
 0xaff   : > { %v4924_v37 = vmax.f32 %v4856_v55, 0.0 }
 0xb00   : > { %v12780_v50 = vpack.c.bf16 %v4926_v6, %v4925_v2 }
 0xb01   : > { %v12782_v63 = vpack.c.bf16 %v4924_v37, %v4923_v15 }
 0xb03   : > { %4993 = vrot.lane.b32.xlu0 %v12782_v63, %s11035_s1  ;;  %4971 = vrot.lane.b32.xlu1 %v12782_v63, %s11034_s2 }
 0xb07   : > { %4973 = vrot.lane.b32.xlu0 %v12780_v50, %s11034_s2  ;;  %4995 = vrot.lane.b32.xlu1 %v12780_v50, %s11035_s1 }
 0xb09   : > { %v4966_v22 = vpop.permute.xlu0 %4965 }
 0xb0a   : > { %v4964_v20 = vpop.permute.xlu1 %4963  ;;  %v5013_v1 = vsel %vm2237_vm6, %v12714_v31, %v4966_v22 }
 0xb0b   : > { %v5010_v62 = vsel %vm2237_vm6, 0, %v4964_v20 }
 0xb0e   : > { %v4988_v29 = vpop.permute.xlu1 %4987 }
 0xb0f   : > { %v5045_v8 = vsel %vm2262_vm7, %v5010_v62, %v4988_v29 }
 0xb10   : > { %9652 = vmatprep.mubr.msk.bf16.mxu1 %vm2354_vm8, %v5045_v8 }
 0xb11   : > { %v9630_v56 = vpop.f32.mrb[204].mxu0 }
 0xb12   : > { %v4877_v51 = vadd.f32 %v9630_v56, %v12700_v57  ;;  %v4868_v60 = vpop.f32.mrb[205].mxu0 }
 0xb13   : > { %v4869_v35 = vadd.f32 %v12700_v57, %v4868_v60  ;;  %v9631_v9 = vpop.f32.mrb[206].mxu0 }
 0xb14   : > { %v4880_v18 = vadd.f32 %v9631_v9, %v12700_v57  ;;  %v4871_v48 = vpop.f32.mrb[207].mxu0  ;;  %v4929_v19 = vmax.f32 %v4877_v51, 0.0 }
 0xb15   : > { %v4872_v30 = vadd.f32 %v12700_v57, %v4871_v48  ;;  %v4927_v12 = vmax.f32 %v4869_v35, 0.0 }
 0xb16   : > { %v4930_v13 = vmax.f32 %v4880_v18, 0.0 }
 0xb17   : > { %v4928_v0 = vmax.f32 %v4872_v30, 0.0 }
 0xb18   : > { %v12799_v34 = vpack.c.bf16 %v4930_v13, %v4929_v19  ;;  %v12865_v13 = vld [vmem:[%s14089_s13] ss:$0 sm:$0xff] }
 0xb19   : > { %v12801_v33 = vpack.c.bf16 %v4928_v0, %v4927_v12 }
 0xb1b   : > { %4997 = vrot.lane.b32.xlu0 %v12801_v33, %s11035_s1  ;;  %4975 = vrot.lane.b32.xlu1 %v12801_v33, %s11034_s2 }
 0xb1f   : > { %4977 = vrot.lane.b32.xlu0 %v12799_v34, %s11034_s2  ;;  %4999 = vrot.lane.b32.xlu1 %v12799_v34, %s11035_s1 }
 0xb22   : > { %v4990_v40 = vpop.permute.xlu0 %4989  ;;  %v4968_v32 = vpop.permute.xlu1 %4967 }
 0xb23   : > { %v5047_v5 = vsel %vm2262_vm7, %v5013_v1, %v4990_v40  ;;  %v5016_v41 = vsel %vm2237_vm6, %v12712_v11, %v4968_v32 }
 0xb24   : > { %9653 = vmatmul.mubr.msk.bf16.vlgmr.msra.gmra.mrb[192].mxu1 %vm2354_vm8, %v5047_v5 }
 0xb26   : > { %v4992_v52 = vpop.permute.xlu1 %4991  ;;  %v4970_v42 = vpop.permute.xlu0 %4969 }
 0xb27   : > { %v5049_v28 = vsel %vm2262_vm7, %v5016_v41, %v4992_v52  ;;  %v5019_v16 = vsel %vm2237_vm6, %v12752_v43, %v4970_v42 }
 0xb28   : > { %9656 = vmatprep.mubr.msk.bf16.mxu1 %vm2354_vm8, %v5049_v28 }
 0xb75   : > { %v4994_v24 = vpop.permute.xlu0 %4993  ;;  %v4972_v31 = vpop.permute.xlu1 %4971 }
 0xb76   : > { %v5051_v49 = vsel %vm2262_vm7, %v5019_v16, %v4994_v24  ;;  %v5022_v11 = vsel %vm2237_vm6, %v12750_v58, %v4972_v31 }
 0xb77   : > { %9657 = vmatmul.mubr.msk.bf16.gmra.mrb[196].mxu1 %vm2354_vm8, %v5051_v49 }
 0xb78   : > { %v9634_v27 = vpop.f32.mrb[208].mxu0 }
 0xb79   : > { %v4893_v4 = vadd.f32 %v9634_v27, %v12700_v57  ;;  %v4884_v23 = vpop.f32.mrb[209].mxu0  ;;  %v4996_v54 = vpop.permute.xlu1 %4995 }
 0xb7a   : > { %v4885_v17 = vadd.f32 %v12700_v57, %v4884_v23  ;;  %v9635_v25 = vpop.f32.mrb[210].mxu0  ;;  %v5053_v45 = vsel %vm2262_vm7, %v5022_v11, %v4996_v54  ;;  %v4974_v7 = vpop.permute.xlu0 %4973 }
 0xb7b   : > { %v4896_v43 = vadd.f32 %v9635_v25, %v12700_v57  ;;  %v4887_v14 = vpop.f32.mrb[211].mxu0  ;;  %9660 = vmatprep.mubr.msk.bf16.mxu1 %vm2354_vm8, %v5053_v45  ;;  %v4933_v47 = vmax.f32 %v4893_v4, 0.0  ;;  %v5025_v53 = vsel %vm2237_vm6, %v12782_v63, %v4974_v7 }
 0xb7c   : > { %v4888_v26 = vadd.f32 %v12700_v57, %v4887_v14  ;;  %v4931_v44 = vmax.f32 %v4885_v17, 0.0 }
 0xb7d   : > { %v4934_v3 = vmax.f32 %v4896_v43, 0.0 }
 0xb7e   : > { %v4932_v38 = vmax.f32 %v4888_v26, 0.0 }
 0xb7f   : > { %v12831_v21 = vpack.c.bf16 %v4934_v3, %v4933_v47 }
 0xb80   : > { %v12833_v58 = vpack.c.bf16 %v4932_v38, %v4931_v44 }
 0xb82   : > { %5001 = vrot.lane.b32.xlu0 %v12833_v58, %s11035_s1  ;;  %4979 = vrot.lane.b32.xlu1 %v12833_v58, %s11034_s2 }
 0xb86   : > { %4981 = vrot.lane.b32.xlu0 %v12831_v21, %s11034_s2  ;;  %5003 = vrot.lane.b32.xlu1 %v12831_v21, %s11035_s1 }
 0xb8d   : > { %v4998_v61 = vpop.permute.xlu0 %4997  ;;  %v4976_v59 = vpop.permute.xlu1 %4975 }
 0xb8e   : > { %v5055_v10 = vsel %vm2262_vm7, %v5025_v53, %v4998_v61  ;;  %v5028_v6 = vsel %vm2237_vm6, %v12780_v50, %v4976_v59 }
 0xb8f   : > { %9661 = vmatmul.mubr.msk.bf16.gmra.mrb[200].mxu1 %vm2354_vm8, %v5055_v10 }
 0xb90   : > { %v9638_v36 = vpop.f32.mrb[212].mxu0 }
 0xb91   : > { %v4909_v55 = vadd.f32 %v9638_v36, %v12700_v57  ;;  %v4900_v2 = vpop.f32.mrb[213].mxu0  ;;  %v5000_v37 = vpop.permute.xlu1 %4999 }
 0xb92   : > { %v4901_v15 = vadd.f32 %v12700_v57, %v4900_v2  ;;  %v9639_v20 = vpop.f32.mrb[214].mxu0  ;;  %v5057_v62 = vsel %vm2262_vm7, %v5028_v6, %v5000_v37  ;;  %v4978_v50 = vpop.permute.xlu0 %4977 }
 0xb93   : > { %v4912_v63 = vadd.f32 %v9639_v20, %v12700_v57  ;;  %v4903_v29 = vpop.f32.mrb[215].mxu0  ;;  %9664 = vmatprep.mubr.msk.bf16.mxu1 %vm2354_vm8, %v5057_v62  ;;  %v4937_v56 = vmax.f32 %v4909_v55, 0.0 }
 0xb94   : > { %v4904_v8 = vadd.f32 %v12700_v57, %v4903_v29  ;;  %v4935_v60 = vmax.f32 %v4901_v15, 0.0  ;;  %v5031_v57 = vsel %vm2237_vm6, %v12801_v33, %v4978_v50 }
 0xb95   : > { %v4938_v51 = vmax.f32 %v4912_v63, 0.0 }
 0xb96   : > { %v4936_v35 = vmax.f32 %v4904_v8, 0.0 }
 0xb97   : > { %v4950_v9 = vpack.c.bf16 %v4938_v51, %v4937_v56 }
 0xb98   : > { %v4949_v18 = vpack.c.bf16 %v4936_v35, %v4935_v60 }
 0xb9a   : > { %5005 = vrot.lane.b32.xlu0 %v4949_v18, %s11035_s1  ;;  %4983 = vrot.lane.b32.xlu1 %v4949_v18, %s11034_s2 }
 0xb9e   : > { %4985 = vrot.lane.b32.xlu0 %v4950_v9, %s11034_s2  ;;  %5007 = vrot.lane.b32.xlu1 %v4950_v9, %s11035_s1 }
 0xbf4   : > { %v5002_v48 = vpop.permute.xlu0 %5001  ;;  %v4980_v30 = vpop.permute.xlu1 %4979 }
 0xbf5   : > { %v5059_v19 = vsel %vm2262_vm7, %v5031_v57, %v5002_v48  ;;  %v5034_v0 = vsel %vm2237_vm6, %v12799_v34, %v4980_v30 }
 0xbf6   : > { %9665 = vmatmul.mubr.msk.bf16.gmra.mrb[204].mxu1 %vm2354_vm8, %v5059_v19 }
 0xbf7   : > { %v9654_v12 = vpop.f32.mrb[192].mxu1 }
 0xbf8   : > { %v12871_v22 = vadd.f32 %v9654_v12, %v12865_v13  ;;  %v5004_v1 = vpop.permute.xlu1 %5003  ;;  %v5180_v40 = vpop.f32.mrb[193].mxu1 }
 0xbf9   : > { %v5061_v33 = vsel %vm2262_vm7, %v5034_v0, %v5004_v1  ;;  %v12876_v5 = vadd.f32 %v12865_v13, %v5180_v40  ;;  %v9655_v41 = vpop.f32.mrb[194].mxu1  ;;  %v4982_v4 = vpop.permute.xlu0 %4981 }
 0xbfa   : > { %v8611_v32 = vmul.f32 -1.442695, %v12871_v22  ;;  %9668 = vmatprep.mubr.msk.bf16.mxu1 %vm2354_vm8, %v5061_v33  ;;  %v12880_v52 = vadd.f32 %v9655_v41, %v12865_v13  ;;  %v5183_v28 = vpop.f32.mrb[195].mxu1  ;;  %v5037_v25 = vsel %vm2237_vm6, %v12833_v58, %v4982_v4 }
 0xbfb   : > { %v8609_v34 = vmul.f32 -1.442695, %v12876_v5  ;;  %v12884_v42 = vadd.f32 %v12865_v13, %v5183_v28 }
 0xbfc   : > { %10726 = vpow2.f32 %v8611_v32  ;;  %v8612_v16 = vmul.f32 -1.442695, %v12880_v52 }
 0xbfd   : > { %10728 = vpow2.f32 %v8609_v34  ;;  %v8610_v24 = vmul.f32 -1.442695, %v12884_v42 }
 0xbfe   : > { %10730 = vpow2.f32 %v8612_v16 }
 0xbff   : > { %10732 = vpow2.f32 %v8610_v24 }
 0xc06   : > { %v10727_v31 = vpop.eup %10726 }
 0xc07   : > { %v5349_v49 = vadd.f32 1.0, %v10727_v31  ;;  %v10729_v27 = vpop.eup %10728 }
 0xc08   : > { %v10731_v23 = vpop.eup %10730  ;;  %v5347_v11 = vadd.f32 1.0, %v10729_v27 }
 0xc09   : > { %10734 = vrcp.f32 %v5349_v49  ;;  %v10733_v17 = vpop.eup %10732  ;;  %v5350_v54 = vadd.f32 1.0, %v10731_v23 }
 0xc0a   : > { %v5348_v45 = vadd.f32 1.0, %v10733_v17 }
 0xc0b   : > { %10736 = vrcp.f32 %v5350_v54 }
 0xc0c   : > { %v5006_v43 = vpop.permute.xlu0 %5005  ;;  %v4984_v14 = vpop.permute.xlu1 %4983  ;;  %10738 = vrcp.f32 %v5347_v11 }
 0xc0d   : > { %v5063_v26 = vsel %vm2262_vm7, %v5037_v25, %v5006_v43  ;;  %10740 = vrcp.f32 %v5348_v45  ;;  %v5040_v47 = vsel %vm2237_vm6, %v12831_v21, %v4984_v14 }
 0xc0e   : > { %9669 = vmatmul.mubr.msk.bf16.gmra.mrb[208].mxu1 %vm2354_vm8, %v5063_v26 }
 0xc10   : > { %v4986_v3 = vpop.permute.xlu0 %4985  ;;  %v5008_v44 = vpop.permute.xlu1 %5007 }
 0xc11   : > { %v5065_v38 = vsel %vm2262_vm7, %v5040_v47, %v5008_v44  ;;  %v5043_v7 = vsel %vm2237_vm6, %v4949_v18, %v4986_v3 }
 0xc12   : > { %9672 = vmatprep.mubr.msk.bf16.mxu1 %vm2354_vm8, %v5065_v38  ;;  %v5066_v53 = vsel %vm2262_vm7, %v5043_v7, %v11919_v39 }
 0xc13   : > { %v10735_v58 = vpop.eup %10734 }
 0xc14   : > { %5447 = vrot.lane.b32.xlu0 %v10735_v58, %s11033_s29  ;;  %v10399_v58 = vld [vmem:[%s14090_s14 + $0x18] sm:$0xff]  }
 0xc15   : > { %v10737_v61 = vpop.eup %10736 }
 0xc16   : > { %9673 = vmatmul.mubr.msk.bf16.gmra.mrb[212].mxu1 %vm2354_vm8, %v5066_v53  ;;  %v10739_v59 = vpop.eup %10738  ;;  %5449 = vrot.lane.b32.xlu1 %v10737_v61, %s11033_s29  ;;  %v10400_v53 = vld [vmem:[%s14090_s14 + $0x20] sm:$0xff]   ;;  %v10401_v61 = vld [vmem:[%s14090_s14 + $0x28] sm:$0xff]  }
 0xc17   : > { %9714 = vmatprep.mubr.msk.bf16.mxu1 %vm11032_vm4, %v11031_v46  ;;  %v10741_v21 = vpop.eup %10740 }
 0xc18   : > { %5443 = vrot.lane.b32.xlu0 %v10739_v59, %s11033_s29 }
 0xc1a   : > { %5445 = vrot.lane.b32.xlu1 %v10741_v21, %s11033_s29 }
 0xc4a   : > { %v9658_v10 = vpop.f32.mrb[196].mxu1 }
 0xc4b   : > { %v12907_v36 = vadd.f32 %v9658_v10, %v12865_v13  ;;  %v5196_v55 = vpop.f32.mrb[197].mxu1 }
 0xc4c   : > { %v12910_v2 = vadd.f32 %v12865_v13, %v5196_v55  ;;  %v9659_v6 = vpop.f32.mrb[198].mxu1 }
 0xc4d   : > { %v8615_v15 = vmul.f32 -1.442695, %v12907_v36  ;;  %v12914_v37 = vadd.f32 %v9659_v6, %v12865_v13  ;;  %v5199_v20 = vpop.f32.mrb[199].mxu1 }
 0xc4e   : > { %v8613_v62 = vmul.f32 -1.442695, %v12910_v2  ;;  %v12918_v63 = vadd.f32 %v12865_v13, %v5199_v20 }
 0xc4f   : > { %10742 = vpow2.f32 %v8615_v15  ;;  %v8616_v29 = vmul.f32 -1.442695, %v12914_v37 }
 0xc50   : > { %10744 = vpow2.f32 %v8613_v62  ;;  %v8614_v8 = vmul.f32 -1.442695, %v12918_v63 }
 0xc51   : > { %10746 = vpow2.f32 %v8616_v29 }
 0xc52   : > { %10748 = vpow2.f32 %v8614_v8 }
 0xc59   : > { %v10743_v56 = vpop.eup %10742 }
 0xc5a   : > { %v10745_v51 = vpop.eup %10744  ;;  %v5353_v18 = vadd.f32 1.0, %v10743_v56 }
 0xc5b   : > { %v10747_v60 = vpop.eup %10746  ;;  %v5351_v35 = vadd.f32 1.0, %v10745_v51 }
 0xc5c   : > { %v10749_v9 = vpop.eup %10748  ;;  %v5354_v57 = vadd.f32 1.0, %v10747_v60 }
 0xc5d   : > { %10750 = vrcp.f32 %v5351_v35  ;;  %v5352_v50 = vadd.f32 1.0, %v10749_v9 }
 0xc5f   : > { %10752 = vrcp.f32 %v5352_v50 }
 0xc60   : > { %10754 = vrcp.f32 %v5353_v18 }
 0xc61   : > { %10756 = vrcp.f32 %v5354_v57 }
 0xc62   : > { %v9662_v48 = vpop.f32.mrb[200].mxu1 }
 0xc63   : > { %v5212_v30 = vpop.f32.mrb[201].mxu1  ;;  %v12937_v27 = vadd.f32 %v9662_v48, %v12865_v13 }
 0xc64   : > { %v12923_v19 = vadd.f32 %v12865_v13, %v5212_v30  ;;  %v12925_v12 = vpop.f32.mrb[202].mxu1 }
 0xc65   : > { %v5215_v0 = vpop.f32.mrb[203].mxu1  ;;  %v8619_v4 = vmul.f32 -1.442695, %v12937_v27  ;;  %v12978_v59 = vadd.f32 %v12925_v12, %v12865_v13 }
 0xc66   : > { %v8617_v1 = vmul.f32 -1.442695, %v12923_v19  ;;  %v12929_v33 = vadd.f32 %v12865_v13, %v5215_v0 }
 0xc67   : > { %v10751_v40 = vpop.eup %10750  ;;  %v8620_v21 = vmul.f32 -1.442695, %v12978_v59 }
 0xc68   : > { %10758 = vpow2.f32 %v8617_v1  ;;  %v8618_v32 = vmul.f32 -1.442695, %v12929_v33  ;;  %5451 = vrot.lane.b32.xlu0 %v10751_v40, %s11033_s29 }
 0xc69   : > { %v10753_v41 = vpop.eup %10752 }
 0xc6a   : > { %10760 = vpow2.f32 %v8618_v32  ;;  %5453 = vrot.lane.b32.xlu1 %v10753_v41, %s11033_s29  ;;  %v10755_v28 = vpop.eup %10754 }
 0xc6b   : > { %v10757_v34 = vpop.eup %10756 }
 0xc6c   : > { %5455 = vrot.lane.b32.xlu0 %v10755_v28, %s11033_s29 }
 0xc6e   : > { %5457 = vrot.lane.b32.xlu1 %v10757_v34, %s11033_s29 }
 0xc72   : > { %v10759_v16 = vpop.eup %10758 }
 0xc73   : > { %v5355_v24 = vadd.f32 1.0, %v10759_v16 }
 0xc74   : > { %v10761_v31 = vpop.eup %10760 }
 0xc75   : > { %10762 = vrcp.f32 %v5355_v24  ;;  %v5356_v49 = vadd.f32 1.0, %v10761_v31 }
 0xc77   : > { %10764 = vrcp.f32 %v5356_v49 }
 0xc78   : > { %10766 = vpow2.f32 %v8619_v4 }
 0xc7f   : > { %v10763_v23 = vpop.eup %10762 }
 0xc80   : > { %5459 = vrot.lane.b32.xlu0 %v10763_v23, %s11033_s29 }
 0xc81   : > { %v10765_v11 = vpop.eup %10764 }
 0xc82   : > { %5461 = vrot.lane.b32.xlu1 %v10765_v11, %s11033_s29  ;;  %v10767_v54 = vpop.eup %10766 }
 0xc83   : > { %v5357_v14 = vadd.f32 1.0, %v10767_v54 }
 0xc85   : > { %10768 = vrcp.f32 %v5357_v14 }
 0xc86   : > { %v5448_v17 = vpop.permute.xlu0 %5447  ;;  %10770 = vpow2.f32 %v8620_v21 }
 0xc87   : > { %v5517_v45 = vmul.f32 %v5448_v17, %v12871_v22  ;;  %v10396_v22 = vld [vmem:[%s14090_s14] sm:$0xff]  }
 0xc88   : > { %v5450_v25 = vpop.permute.xlu1 %5449  ;;  %9676 = vmatprep.subr.bf16.mxu0 %v10396_v22 }
 0xc89   : > { %v5518_v43 = vmul.f32 %v5450_v25, %v12880_v52  ;;  %v10397_v52 = vld [vmem:[%s14090_s14 + $0x8] sm:$0xff]   ;;  %9677 = vmatpush3.bf16.msra.mxu0 %v10396_v22 }
 0xc8a   : > { %v5444_v26 = vpop.permute.xlu0 %5443  ;;  %9678 = vmatprep.subr.bf16.mxu0 %v10397_v52 }
 0xc8b   : > { %v12944_v47 = vpack.c.bf16 %v5518_v43, %v5517_v45  ;;  %v5515_v44 = vmul.f32 %v5444_v26, %v12876_v5  ;;  %v10398_v5 = vld [vmem:[%s14090_s14 + $0x10] sm:$0xff]  }
 0xc8c   : > { %v5446_v3 = vpop.permute.xlu1 %5445 }
 0xc8d   : > { %v5516_v38 = vmul.f32 %v5446_v3, %v12884_v42  ;;  %5565 = vrot.lane.b32.xlu1 %v12944_v47, %s11034_s2  ;;  %9679 = vmatpush3.bf16.msra.mxu0 %v10397_v52 }
 0xc8e   : > { %9680 = vmatprep.subr.bf16.mxu0 %v10398_v5 }
 0xc8f   : > { %v12950_v7 = vpack.c.bf16 %v5516_v38, %v5515_v44  ;;  %v10769_v42 = vpop.eup %10768 }
 0xc90   : > { %v10771_v9 = vpop.eup %10770 }
 0xc91   : > { %5563 = vrot.lane.b32.xlu0 %v12950_v7, %s11034_s2  ;;  %9681 = vmatpush3.bf16.msra.mxu0 %v10398_v5  ;;  %v5358_v18 = vadd.f32 1.0, %v10771_v9 }
 0xc92   : > { %9682 = vmatprep.subr.bf16.mxu0 %v10399_v58 }
 0xc95   : > { %5587 = vrot.lane.b32.xlu0 %v12944_v47, %s11035_s1  ;;  %9683 = vmatpush3.bf16.msra.mxu0 %v10399_v58 }
 0xc96   : > { %9684 = vmatprep.subr.bf16.mxu0 %v10400_v53 }
 0xc99   : > { %5463 = vrot.lane.b32.xlu0 %v10769_v42, %s11033_s29  ;;  %9685 = vmatpush3.bf16.msra.mxu0 %v10400_v53 }
 0xc9a   : > { %9686 = vmatprep.subr.bf16.mxu0 %v10401_v61 }
 0xc9d   : > { %9687 = vmatpush3.bf16.msra.mxu0 %v10401_v61 }
 0xc9e   : > { %9740 = vmatprep.subr.bf16.mxu0 %v11031_v46 }
 0xcc9   : > { %v9666_v10 = vpop.f32.mrb[204].mxu1 }
 0xcca   : > { %v12982_v55 = vadd.f32 %v9666_v10, %v12865_v13  ;;  %v5228_v6 = vpop.f32.mrb[205].mxu1 }
 0xccb   : > { %v12985_v15 = vadd.f32 %v12865_v13, %v5228_v6  ;;  %v9667_v20 = vpop.f32.mrb[206].mxu1 }
 0xccc   : > { %v8623_v62 = vmul.f32 -1.442695, %v12982_v55  ;;  %v12989_v29 = vadd.f32 %v9667_v20, %v12865_v13  ;;  %v5231_v8 = vpop.f32.mrb[207].mxu1 }
 0xccd   : > { %v8621_v56 = vmul.f32 -1.442695, %v12985_v15  ;;  %v12993_v51 = vadd.f32 %v12865_v13, %v5231_v8 }
 0xcce   : > { %10772 = vpow2.f32 %v8623_v62  ;;  %v8624_v60 = vmul.f32 -1.442695, %v12989_v29 }
 0xccf   : > { %10774 = vpow2.f32 %v8621_v56  ;;  %v8622_v35 = vmul.f32 -1.442695, %v12993_v51 }
 0xcd0   : > { %10776 = vpow2.f32 %v8624_v60 }
 0xcd1   : > { %10778 = vpow2.f32 %v8622_v35 }
 0xcd2   : > { %10780 = vrcp.f32 %v5358_v18 }
 0xcd8   : > { %v10773_v50 = vpop.eup %10772 }
 0xcd9   : > { %v10775_v57 = vpop.eup %10774  ;;  %v5361_v1 = vadd.f32 1.0, %v10773_v50 }
 0xcda   : > { %v10777_v48 = vpop.eup %10776  ;;  %v5359_v30 = vadd.f32 1.0, %v10775_v57  ;;  %v5452_v12 = vpop.permute.xlu0 %5451 }
 0xcdb   : > { %v10779_v0 = vpop.eup %10778  ;;  %v5519_v41 = vmul.f32 %v5452_v12, %v12910_v2  ;;  %v5362_v34 = vadd.f32 1.0, %v10777_v48 }
 0xcdc   : > { %10782 = vrcp.f32 %v5359_v30  ;;  %v5360_v40 = vadd.f32 1.0, %v10779_v0  ;;  %v5454_v32 = vpop.permute.xlu1 %5453  ;;  %v10781_v23 = vpop.eup %10780 }
 0xcdd   : > { %v5520_v28 = vmul.f32 %v5454_v32, %v12918_v63 }
 0xcde   : > { %10784 = vrcp.f32 %v5360_v40  ;;  %v5456_v56 = vpop.permute.xlu0 %5455 }
 0xcdf   : > { %v12999_v16 = vpack.c.bf16 %v5520_v28, %v5519_v41  ;;  %10786 = vrcp.f32 %v5361_v1  ;;  %v5521_v40 = vmul.f32 %v5456_v56, %v12907_v36 }
 0xce0   : > { %10788 = vrcp.f32 %v5362_v34  ;;  %v5458_v60 = vpop.permute.xlu1 %5457 }
 0xce1   : > { %v9670_v24 = vpop.f32.mrb[208].mxu1  ;;  %5589 = vrot.lane.b32.xlu1 %v12999_v16, %s11035_s1  ;;  %v5522_v48 = vmul.f32 %v5458_v60, %v12914_v37 }
 0xce2   : > { %v5244_v31 = vpop.f32.mrb[209].mxu1  ;;  %v13012_v54 = vadd.f32 %v9670_v24, %v12865_v13 }
 0xce3   : > { %v13004_v49 = vadd.f32 %v12865_v13, %v5244_v31  ;;  %v9671_v4 = vpop.f32.mrb[210].mxu1  ;;  %v13040_v41 = vpack.c.bf16 %v5522_v48, %v5521_v40 }
 0xce4   : > { %v5247_v11 = vpop.f32.mrb[211].mxu1  ;;  %v13017_v43 = vadd.f32 %v9671_v4, %v12865_v13  ;;  %v8627_v44 = vmul.f32 -1.442695, %v13012_v54 }
 0xce5   : > { %v8625_v2 = vmul.f32 -1.442695, %v13004_v49  ;;  %v13008_v63 = vadd.f32 %v12865_v13, %v5247_v11  ;;  %5465 = vrot.lane.b32.xlu1 %v10781_v23, %s11033_s29 }
 0xce6   : > { %v10783_v17 = vpop.eup %10782  ;;  %v8628_v42 = vmul.f32 -1.442695, %v13017_v43 }
 0xce7   : > { %10790 = vpow2.f32 %v8625_v2  ;;  %v8626_v25 = vmul.f32 -1.442695, %v13008_v63  ;;  %5467 = vrot.lane.b32.xlu0 %v10783_v17, %s11033_s29 }
 0xce8   : > { %v10785_v45 = vpop.eup %10784 }
 0xce9   : > { %10792 = vpow2.f32 %v8626_v25  ;;  %v13019_v14 = vpop.f32.mrb[212].mxu1  ;;  %5469 = vrot.lane.b32.xlu1 %v10785_v45, %s11033_s29  ;;  %v10787_v26 = vpop.eup %10786 }
 0xcea   : > { %v5260_v3 = vpop.f32.mrb[213].mxu1  ;;  %v10789_v52 = vpop.eup %10788  ;;  %10794 = vpow2.f32 %v8627_v44  ;;  %v13065_v2 = vadd.f32 %v13019_v14, %v12865_v13 }
 0xceb   : > { %v13024_v38 = vadd.f32 %v12865_v13, %v5260_v3  ;;  %v13026_v22 = vpop.f32.mrb[214].mxu1  ;;  %5471 = vrot.lane.b32.xlu0 %v10787_v26, %s11033_s29  ;;  %10796 = vpow2.f32 %v8628_v42 }
 0xcec   : > { %v5263_v5 = vpop.f32.mrb[215].mxu1  ;;  %v8631_v17 = vmul.f32 -1.442695, %v13065_v2  ;;  %v13070_v25 = vadd.f32 %v13026_v22, %v12865_v13 }
 0xced   : > { %v13031_v58 = vadd.f32 %v12865_v13, %v5263_v5  ;;  %5473 = vrot.lane.b32.xlu1 %v10789_v52, %s11033_s29  ;;  %v8629_v53 = vmul.f32 -1.442695, %v13024_v38 }
 0xcee   : > { %v8632_v45 = vmul.f32 -1.442695, %v13070_v25 }
 0xcef   : > { %v8630_v21 = vmul.f32 -1.442695, %v13031_v58  ;;  %10798 = vpow2.f32 %v8629_v53 }
 0xcf1   : > { %v10791_v61 = vpop.eup %10790 }
 0xcf2   : > { %v5363_v10 = vadd.f32 1.0, %v10791_v61  ;;  %v5460_v0 = vpop.permute.xlu0 %5459 }
 0xcf3   : > { %v10793_v6 = vpop.eup %10792  ;;  %v5523_v34 = vmul.f32 %v5460_v0, %v12923_v19 }
 0xcf4   : > { %10800 = vrcp.f32 %v5363_v10  ;;  %v5364_v20 = vadd.f32 1.0, %v10793_v6  ;;  %v10795_v62 = vpop.eup %10794  ;;  %v5462_v1 = vpop.permute.xlu1 %5461 }
 0xcf5   : > { %10802 = vpow2.f32 %v8630_v21  ;;  %v10797_v8 = vpop.eup %10796  ;;  %v5365_v35 = vadd.f32 1.0, %v10795_v62  ;;  %v5524_v28 = vmul.f32 %v5462_v1, %v12929_v33 }
 0xcf6   : > { %10804 = vrcp.f32 %v5364_v20  ;;  %v5366_v50 = vadd.f32 1.0, %v10797_v8 }
 0xcf7   : > { %10806 = vrcp.f32 %v5365_v35  ;;  %v13048_v36 = vpack.c.bf16 %v5524_v28, %v5523_v34 }
 0xcf8   : > { %10808 = vrcp.f32 %v5366_v50 }
 0xcf9   : > { %v10799_v9 = vpop.eup %10798 }
 0xcfa   : > { %v5367_v12 = vadd.f32 1.0, %v10799_v9 }
 0xcfc   : > { %10810 = vrcp.f32 %v5367_v12 }
 0xcfe   : > { %v10801_v18 = vpop.eup %10800 }
 0xcff   : > { %v10803_v57 = vpop.eup %10802  ;;  %5475 = vrot.lane.b32.xlu0 %v10801_v18, %s11033_s29  ;;  %v5566_v3 = vpop.permute.xlu1 %5565 }
 0xd00   : > { %v10805_v30 = vpop.eup %10804  ;;  %v5368_v32 = vadd.f32 1.0, %v10803_v57  ;;  %v5613_v5 = vsel %vm2237_vm6, %v12950_v7, %v5566_v3 }
 0xd01   : > { %5477 = vrot.lane.b32.xlu1 %v10805_v30, %s11033_s29  ;;  %v10807_v4 = vpop.eup %10806 }
 0xd02   : > { %10812 = vrcp.f32 %v5368_v32  ;;  %v10809_v19 = vpop.eup %10808 }
 0xd03   : > { %5567 = vrot.lane.b32.xlu0 %v12999_v16, %s11034_s2  ;;  %v5564_v37 = vpop.permute.xlu0 %5563  ;;  %10814 = vpow2.f32 %v8631_v17 }
 0xd04   : > { %v5610_v24 = vsel %vm2237_vm6, 0, %v5564_v37  ;;  %10816 = vpow2.f32 %v8632_v45 }
 0xd05   : > { %5569 = vrot.lane.b32.xlu1 %v13040_v41, %s11034_s2 }
 0xd06   : > { %v10811_v23 = vpop.eup %10810 }
 0xd07   : > { %5591 = vrot.lane.b32.xlu0 %v13040_v41, %s11035_s1  ;;  %v5588_v31 = vpop.permute.xlu0 %5587 }
 0xd08   : > { %v5645_v33 = vsel %vm2262_vm7, %v5610_v24, %v5588_v31 }
 0xd09   : > { %5593 = vrot.lane.b32.xlu1 %v13048_v36, %s11035_s1  ;;  %9688 = vmatprep.mubr.msk.bf16.mxu0 %vm2354_vm8, %v5645_v33 }
 0xd0b   : > { %5479 = vrot.lane.b32.xlu0 %v10807_v4, %s11033_s29  ;;  %v5464_v61 = vpop.permute.xlu0 %5463 }
 0xd0c   : > { %v10813_v11 = vpop.eup %10812  ;;  %v5525_v22 = vmul.f32 %v5464_v61, %v12937_v27 }
 0xd0d   : > { %5481 = vrot.lane.b32.xlu1 %v10809_v19, %s11033_s29  ;;  %v10815_v26 = vpop.eup %10814 }
 0xd0e   : > { %v5369_v44 = vadd.f32 1.0, %v10815_v26  ;;  %v10817_v52 = vpop.eup %10816 }
 0xd0f   : > { %5483 = vrot.lane.b32.xlu0 %v10811_v23, %s11033_s29  ;;  %v5370_v53 = vadd.f32 1.0, %v10817_v52 }
 0xd10   : > { %10818 = vrcp.f32 %v5369_v44 }
 0xd11   : > { %5485 = vrot.lane.b32.xlu1 %v10813_v11, %s11033_s29  ;;  %10820 = vrcp.f32 %v5370_v53 }
 0xd13   : > { %5571 = vrot.lane.b32.xlu0 %v13048_v36, %s11034_s2 }
 0xd1a   : > { %v10819_v27 = vpop.eup %10818 }
 0xd1b   : > { %v10821_v60 = vpop.eup %10820 }
 0xd53   : > { %v5590_v42 = vpop.permute.xlu1 %5589 }
 0xd54   : > { %v5647_v14 = vsel %vm2262_vm7, %v5613_v5, %v5590_v42 }
 0xd55   : > { %9689 = vmatmul.mubr.msk.bf16.vlgmr.msra.gmra.mrb[216].mxu0 %vm2354_vm8, %v5647_v14 }
 0xd57   : > { %v5466_v13 = vpop.permute.xlu1 %5465 }
 0xd58   : > { %v5526_v21 = vmul.f32 %v5466_v13, %v12978_v59 }
 0xd59   : > { %v5468_v10 = vpop.permute.xlu0 %5467 }
 0xd5a   : > { %v13079_v6 = vpack.c.bf16 %v5526_v21, %v5525_v22  ;;  %v5527_v7 = vmul.f32 %v5468_v10, %v12985_v15 }
 0xd5b   : > { %v5470_v20 = vpop.permute.xlu1 %5469 }
 0xd5c   : > { %v5528_v62 = vmul.f32 %v5470_v20, %v12993_v51  ;;  %5595 = vrot.lane.b32.xlu0 %v13079_v6, %s11035_s1  ;;  %5573 = vrot.lane.b32.xlu1 %v13079_v6, %s11034_s2 }
 0xd5d   : > { %v5472_v59 = vpop.permute.xlu0 %5471 }
 0xd5e   : > { %v13087_v8 = vpack.c.bf16 %v5528_v62, %v5527_v7  ;;  %v5529_v51 = vmul.f32 %v5472_v59, %v12982_v55  ;;  %v13161_v7 = vld [vmem:[%s14091_s15] ss:$0 sm:$0xff] }
 0xd5f   : > { %v5474_v56 = vpop.permute.xlu1 %5473 }
 0xd60   : > { %5487 = vrot.lane.b32.xlu0 %v10819_v27, %s11033_s29  ;;  %5597 = vrot.lane.b32.xlu1 %v13087_v8, %s11035_s1  ;;  %v5530_v15 = vmul.f32 %v5474_v56, %v12989_v29 }
 0xd62   : > { %v13097_v35 = vpack.c.bf16 %v5530_v15, %v5529_v51 }
 0xd64   : > { %5575 = vrot.lane.b32.xlu0 %v13087_v8, %s11034_s2  ;;  %5489 = vrot.lane.b32.xlu1 %v10821_v60, %s11033_s29 }
 0xd68   : > { %5599 = vrot.lane.b32.xlu0 %v13097_v35, %s11035_s1  ;;  %5577 = vrot.lane.b32.xlu1 %v13097_v35, %s11034_s2 }
 0xd71   : > { %v5476_v9 = vpop.permute.xlu0 %5475 }
 0xd72   : > { %v5531_v29 = vmul.f32 %v5476_v9, %v13004_v49 }
 0xd73   : > { %v5478_v18 = vpop.permute.xlu1 %5477 }
 0xd74   : > { %v5532_v50 = vmul.f32 %v5478_v18, %v13008_v63 }
 0xd75   : > { %v5568_v55 = vpop.permute.xlu0 %5567 }
 0xd76   : > { %v5547_v57 = vpack.c.bf16 %v5532_v50, %v5531_v29  ;;  %v5616_v30 = vsel %vm2237_vm6, %v12944_v47, %v5568_v55 }
 0xd77   : > { %v5570_v48 = vpop.permute.xlu1 %5569 }
 0xd78   : > { %5579 = vrot.lane.b32.xlu0 %v5547_v57, %s11034_s2  ;;  %5601 = vrot.lane.b32.xlu1 %v5547_v57, %s11035_s1  ;;  %v5619_v1 = vsel %vm2237_vm6, %v12999_v16, %v5570_v48 }
 0xd79   : > { %v5592_v12 = vpop.permute.xlu0 %5591 }
 0xd7a   : > { %v5649_v0 = vsel %vm2262_vm7, %v5616_v30, %v5592_v12 }
 0xd7b   : > { %v5594_v40 = vpop.permute.xlu1 %5593  ;;  %9692 = vmatprep.mubr.msk.bf16.mxu0 %vm2354_vm8, %v5649_v0 }
 0xd7c   : > { %v5651_v49 = vsel %vm2262_vm7, %v5619_v1, %v5594_v40 }
 0xd7d   : > { %9693 = vmatmul.mubr.msk.bf16.gmra.mrb[220].mxu0 %vm2354_vm8, %v5651_v49  ;;  %v5480_v63 = vpop.permute.xlu0 %5479 }
 0xd7e   : > { %v5533_v28 = vmul.f32 %v5480_v63, %v13012_v54 }
 0xd7f   : > { %v5482_v32 = vpop.permute.xlu1 %5481 }
 0xd80   : > { %v5534_v37 = vmul.f32 %v5482_v32, %v13017_v43 }
 0xd81   : > { %v5484_v47 = vpop.permute.xlu0 %5483 }
 0xd82   : > { %v13117_v34 = vpack.c.bf16 %v5534_v37, %v5533_v28  ;;  %v5535_v31 = vmul.f32 %v5484_v47, %v13024_v38 }
 0xd83   : > { %v5486_v24 = vpop.permute.xlu1 %5485 }
 0xd84   : > { %v5536_v16 = vmul.f32 %v5486_v24, %v13031_v58  ;;  %5603 = vrot.lane.b32.xlu0 %v13117_v34, %s11035_s1  ;;  %5581 = vrot.lane.b32.xlu1 %v13117_v34, %s11034_s2 }
 0xd85   : > { %v5572_v54 = vpop.permute.xlu0 %5571 }
 0xd86   : > { %v13125_v33 = vpack.c.bf16 %v5536_v16, %v5535_v31  ;;  %v5622_v43 = vsel %vm2237_vm6, %v13040_v41, %v5572_v54 }
 0xd88   : > { %5583 = vrot.lane.b32.xlu0 %v13125_v33, %s11034_s2  ;;  %5605 = vrot.lane.b32.xlu1 %v13125_v33, %s11035_s1 }
 0xdce   : > { %v5574_v38 = vpop.permute.xlu1 %5573  ;;  %v5596_v58 = vpop.permute.xlu0 %5595 }
 0xdcf   : > { %v5653_v4 = vsel %vm2262_vm7, %v5622_v43, %v5596_v58  ;;  %v5625_v19 = vsel %vm2237_vm6, %v13048_v36, %v5574_v38 }
 0xdd0   : > { %9696 = vmatprep.mubr.msk.bf16.mxu0 %vm2354_vm8, %v5653_v4 }
 0xdd2   : > { %v5598_v23 = vpop.permute.xlu1 %5597  ;;  %v5488_v11 = vpop.permute.xlu0 %5487 }
 0xdd3   : > { %v5655_v17 = vsel %vm2262_vm7, %v5625_v19, %v5598_v23  ;;  %v5537_v3 = vmul.f32 %v5488_v11, %v13065_v2 }
 0xdd4   : > { %9697 = vmatmul.mubr.msk.bf16.gmra.mrb[224].mxu0 %vm2354_vm8, %v5655_v17 }
 0xdd6   : > { %v5490_v45 = vpop.permute.xlu1 %5489  ;;  %v5576_v26 = vpop.permute.xlu0 %5575 }
 0xdd7   : > { %v5538_v41 = vmul.f32 %v5490_v45, %v13070_v25  ;;  %v5628_v52 = vsel %vm2237_vm6, %v13079_v6, %v5576_v26 }
 0xdd9   : > { %v5550_v44 = vpack.c.bf16 %v5538_v41, %v5537_v3 }
 0xdda   : > { %v5600_v5 = vpop.permute.xlu0 %5599  ;;  %v5578_v36 = vpop.permute.xlu1 %5577 }
 0xddb   : > { %v5657_v42 = vsel %vm2262_vm7, %v5628_v52, %v5600_v5  ;;  %5607 = vrot.lane.b32.xlu0 %v5550_v44, %s11035_s1  ;;  %5585 = vrot.lane.b32.xlu1 %v5550_v44, %s11034_s2  ;;  %v5631_v14 = vsel %vm2237_vm6, %v13087_v8, %v5578_v36 }
 0xddc   : > { %9700 = vmatprep.mubr.msk.bf16.mxu0 %vm2354_vm8, %v5657_v42 }
 0xdea   : > { %v5602_v2 = vpop.permute.xlu1 %5601  ;;  %v5580_v53 = vpop.permute.xlu0 %5579 }
 0xdeb   : > { %v5659_v25 = vsel %vm2262_vm7, %v5631_v14, %v5602_v2  ;;  %v5634_v61 = vsel %vm2237_vm6, %v13097_v35, %v5580_v53 }
 0xdec   : > { %9701 = vmatmul.mubr.msk.bf16.gmra.mrb[228].mxu0 %vm2354_vm8, %v5659_v25 }
 0xdf6   : > { %v5582_v13 = vpop.permute.xlu1 %5581  ;;  %v5604_v22 = vpop.permute.xlu0 %5603 }
 0xdf7   : > { %v5661_v21 = vsel %vm2262_vm7, %v5634_v61, %v5604_v22  ;;  %v5637_v10 = vsel %vm2237_vm6, %v5547_v57, %v5582_v13 }
 0xdf8   : > { %9704 = vmatprep.mubr.msk.bf16.mxu0 %vm2354_vm8, %v5661_v21 }
 0xdfa   : > { %v5606_v6 = vpop.permute.xlu1 %5605  ;;  %v5584_v32 = vpop.permute.xlu0 %5583 }
 0xdfb   : > { %v5663_v20 = vsel %vm2262_vm7, %v5637_v10, %v5606_v6  ;;  %v5640_v37 = vsel %vm2237_vm6, %v13117_v34, %v5584_v32 }
 0xdfc   : > { %9705 = vmatmul.mubr.msk.bf16.gmra.mrb[232].mxu0 %vm2354_vm8, %v5663_v20 }
 0xe28   : > { %v9690_v62 = vpop.f32.mrb[216].mxu0 }
 0xe29   : > { %v13164_v8 = vadd.f32 %v9690_v62, %v13161_v7  ;;  %v5780_v27 = vpop.f32.mrb[217].mxu0 }
 0xe2a   : > { %v13167_v56 = vadd.f32 %v13161_v7, %v5780_v27  ;;  %v9691_v59 = vpop.f32.mrb[218].mxu0 }
 0xe2b   : > { %v8654_v15 = vmul.f32 -1.442695, %v13164_v8  ;;  %v13171_v60 = vadd.f32 %v9691_v59, %v13161_v7  ;;  %v5783_v51 = vpop.f32.mrb[219].mxu0 }
 0xe2c   : > { %v8652_v35 = vmul.f32 -1.442695, %v13167_v56  ;;  %v13175_v9 = vadd.f32 %v13161_v7, %v5783_v51 }
 0xe2d   : > { %10822 = vpow2.f32 %v8654_v15  ;;  %v8655_v18 = vmul.f32 -1.442695, %v13171_v60 }
 0xe2e   : > { %10824 = vpow2.f32 %v8652_v35  ;;  %v8653_v29 = vmul.f32 -1.442695, %v13175_v9 }
 0xe2f   : > { %10826 = vpow2.f32 %v8655_v18 }
 0xe30   : > { %10828 = vpow2.f32 %v8653_v29 }
 0xe37   : > { %v10823_v50 = vpop.eup %10822 }
 0xe38   : > { %v10825_v55 = vpop.eup %10824  ;;  %v5949_v12 = vadd.f32 1.0, %v10823_v50 }
 0xe39   : > { %v10827_v57 = vpop.eup %10826  ;;  %v5947_v48 = vadd.f32 1.0, %v10825_v55 }
 0xe3a   : > { %v10829_v30 = vpop.eup %10828  ;;  %v5950_v1 = vadd.f32 1.0, %v10827_v57 }
 0xe3b   : > { %10830 = vrcp.f32 %v5947_v48  ;;  %v5948_v0 = vadd.f32 1.0, %v10829_v30 }
 0xe3d   : > { %10832 = vrcp.f32 %v5948_v0 }
 0xe3e   : > { %10834 = vrcp.f32 %v5949_v12 }
 0xe3f   : > { %10836 = vrcp.f32 %v5950_v1 }
 0xe45   : > { %v10831_v40 = vpop.eup %10830 }
 0xe46   : > { %6043 = vrot.lane.b32.xlu1 %v10831_v40, %s11033_s29 }
 0xe47   : > { %v10833_v49 = vpop.eup %10832 }
 0xe48   : > { %6045 = vrot.lane.b32.xlu0 %v10833_v49, %s11033_s29  ;;  %v10835_v63 = vpop.eup %10834 }
 0xe49   : > { %v10837_v28 = vpop.eup %10836 }
 0xe4a   : > { %6047 = vrot.lane.b32.xlu1 %v10835_v63, %s11033_s29 }
 0xe4c   : > { %6049 = vrot.lane.b32.xlu0 %v10837_v28, %s11033_s29 }
 0xe4d   : > { %v5586_v47 = vpop.permute.xlu1 %5585  ;;  %v5608_v24 = vpop.permute.xlu0 %5607 }
 0xe4e   : > { %v5643_v31 = vsel %vm2237_vm6, %v13125_v33, %v5586_v47  ;;  %v5665_v16 = vsel %vm2262_vm7, %v5640_v37, %v5608_v24 }
 0xe4f   : > { %9708 = vmatprep.mubr.msk.bf16.mxu0 %vm2354_vm8, %v5665_v16  ;;  %v5666_v54 = vsel %vm2262_vm7, %v5643_v31, %v11919_v39 }
 0xe50   : > { %v9694_v43 = vpop.f32.mrb[220].mxu0  ;;  %9709 = vmatmul.mubr.msk.bf16.gmra.mrb[236].mxu0 %vm2354_vm8, %v5666_v54 }
 0xe51   : > { %v13193_v38 = vadd.f32 %v9694_v43, %v13161_v7  ;;  %v5796_v58 = vpop.f32.mrb[221].mxu0  ;;  %9742 = vmatprep.mubr.msk.bf16.mxu0 %vm11032_vm4, %v11031_v46 }
 0xe52   : > { %v13198_v34 = vadd.f32 %v13161_v7, %v5796_v58  ;;  %v9695_v33 = vpop.f32.mrb[222].mxu0  ;;  %v13248_v58 = vld [vmem:[%s14112_s0] sm:$0xff]  }
 0xe53   : > { %v8658_v4 = vmul.f32 -1.442695, %v13193_v38  ;;  %v13202_v19 = vadd.f32 %v9695_v33, %v13161_v7  ;;  %v5799_v23 = vpop.f32.mrb[223].mxu0 }
 0xe54   : > { %v8656_v11 = vmul.f32 -1.442695, %v13198_v34  ;;  %v13206_v17 = vadd.f32 %v13161_v7, %v5799_v23 }
 0xe55   : > { %10838 = vpow2.f32 %v8658_v4  ;;  %v8659_v45 = vmul.f32 -1.442695, %v13202_v19 }
 0xe56   : > { %10840 = vpow2.f32 %v8656_v11  ;;  %v8657_v26 = vmul.f32 -1.442695, %v13206_v17 }
 0xe57   : > { %10842 = vpow2.f32 %v8659_v45 }
 0xe58   : > { %10844 = vpow2.f32 %v8657_v26 }
 0xe5f   : > { %v10839_v3 = vpop.eup %10838 }
 0xe60   : > { %v10841_v41 = vpop.eup %10840  ;;  %v5953_v42 = vadd.f32 1.0, %v10839_v3 }
 0xe61   : > { %v10843_v44 = vpop.eup %10842  ;;  %v5951_v52 = vadd.f32 1.0, %v10841_v41 }
 0xe62   : > { %v10845_v5 = vpop.eup %10844  ;;  %v5954_v14 = vadd.f32 1.0, %v10843_v44  ;;  %v13267_v44 = vld [vmem:[%s14112_s0 + $0x8] sm:$0xff]  }
 0xe63   : > { %10846 = vrcp.f32 %v5951_v52  ;;  %v5952_v36 = vadd.f32 1.0, %v10845_v5 }
 0xe65   : > { %10848 = vrcp.f32 %v5952_v36 }
 0xe66   : > { %10850 = vrcp.f32 %v5953_v42 }
 0xe67   : > { %10852 = vrcp.f32 %v5954_v14 }
 0xe6d   : > { %v10847_v2 = vpop.eup %10846 }
 0xe6e   : > { %6051 = vrot.lane.b32.xlu1 %v10847_v2, %s11033_s29 }
 0xe6f   : > { %v10849_v25 = vpop.eup %10848 }
 0xe70   : > { %6053 = vrot.lane.b32.xlu0 %v10849_v25, %s11033_s29  ;;  %v10851_v53 = vpop.eup %10850 }
 0xe71   : > { %v10853_v61 = vpop.eup %10852 }
 0xe72   : > { %6055 = vrot.lane.b32.xlu1 %v10851_v53, %s11033_s29 }
 0xe74   : > { %6057 = vrot.lane.b32.xlu0 %v10853_v61, %s11033_s29 }
 0xea7   : > { %v9698_v13 = vpop.f32.mrb[224].mxu0 }
 0xea8   : > { %v13215_v22 = vadd.f32 %v9698_v13, %v13161_v7  ;;  %v5812_v21 = vpop.f32.mrb[225].mxu0 }
 0xea9   : > { %v13218_v10 = vadd.f32 %v13161_v7, %v5812_v21  ;;  %v9699_v6 = vpop.f32.mrb[226].mxu0 }
 0xeaa   : > { %v8662_v20 = vmul.f32 -1.442695, %v13215_v22  ;;  %v13222_v62 = vadd.f32 %v9699_v6, %v13161_v7  ;;  %v5815_v27 = vpop.f32.mrb[227].mxu0 }
 0xeab   : > { %v8660_v59 = vmul.f32 -1.442695, %v13218_v10  ;;  %v13226_v15 = vadd.f32 %v13161_v7, %v5815_v27 }
 0xeac   : > { %10854 = vpow2.f32 %v8662_v20  ;;  %v8663_v51 = vmul.f32 -1.442695, %v13222_v62 }
 0xead   : > { %10856 = vpow2.f32 %v8660_v59  ;;  %v8661_v35 = vmul.f32 -1.442695, %v13226_v15 }
 0xeae   : > { %10858 = vpow2.f32 %v8663_v51 }
 0xeaf   : > { %10860 = vpow2.f32 %v8661_v35  ;;  %v13287_v35 = vld [vmem:[%s14112_s0 + $0x10] sm:$0xff]  }
 0xeb6   : > { %v10855_v18 = vpop.eup %10854 }
 0xeb7   : > { %v10857_v29 = vpop.eup %10856  ;;  %v5957_v30 = vadd.f32 1.0, %v10855_v18 }
 0xeb8   : > { %v10859_v50 = vpop.eup %10858  ;;  %v5955_v55 = vadd.f32 1.0, %v10857_v29  ;;  %v6044_v57 = vpop.permute.xlu1 %6043 }
 0xeb9   : > { %v10861_v48 = vpop.eup %10860  ;;  %v6115_v1 = vmul.f32 %v6044_v57, %v13167_v56  ;;  %v5958_v49 = vadd.f32 1.0, %v10859_v50 }
 0xeba   : > { %10862 = vrcp.f32 %v5955_v55  ;;  %v5956_v12 = vadd.f32 1.0, %v10861_v48  ;;  %v6046_v0 = vpop.permute.xlu0 %6045 }
 0xebb   : > { %v6116_v40 = vmul.f32 %v6046_v0, %v13175_v9 }
 0xebc   : > { %10864 = vrcp.f32 %v5956_v12  ;;  %v6048_v63 = vpop.permute.xlu1 %6047 }
 0xebd   : > { %v6139_v32 = vpack.c.bf16 %v6116_v40, %v6115_v1  ;;  %10866 = vrcp.f32 %v5957_v30  ;;  %v6117_v37 = vmul.f32 %v6048_v63, %v13164_v8 }
 0xebe   : > { %v6050_v28 = vpop.permute.xlu0 %6049  ;;  %10868 = vrcp.f32 %v5958_v49 }
 0xebf   : > { %v6118_v47 = vmul.f32 %v6050_v28, %v13171_v60  ;;  %v9702_v24 = vpop.f32.mrb[228].mxu0  ;;  %9713 = vmatpush3.bf16.msra.mxu1 %v6139_v32 }
 0xec0   : > { %v13235_v31 = vadd.f32 %v9702_v24, %v13161_v7  ;;  %v5828_v16 = vpop.f32.mrb[229].mxu0  ;;  %9726 = vmatprep.subr.bf16.mxu1 %v11031_v46 }
 0xec1   : > { %v6140_v56 = vpack.c.bf16 %v6118_v47, %v6117_v37  ;;  %v13239_v9 = vadd.f32 %v13161_v7, %v5828_v16  ;;  %v9703_v54 = vpop.f32.mrb[230].mxu0 }
 0xec2   : > { %v8666_v43 = vmul.f32 -1.442695, %v13235_v31  ;;  %v13243_v8 = vadd.f32 %v9703_v54, %v13161_v7  ;;  %v5831_v60 = vpop.f32.mrb[231].mxu0  ;;  %9715 = vmatmul.mubr.msk.bf16.vlgmr.msra.gmra.mrb[216].mxu1 %vm1351_vm5, %v13248_v58 }
 0xec3   : > { %v8664_v33 = vmul.f32 -1.442695, %v13239_v9  ;;  %v13254_v4 = vadd.f32 %v13161_v7, %v5831_v60  ;;  %9727 = vmatpush3.bf16.msra.mxu1 %v6140_v56  ;;  %9718 = vmatprep.mubr.msk.bf16.mxu1 %vm11032_vm4, %v11031_v46 }
 0xec4   : > { %v10863_v23 = vpop.eup %10862  ;;  %10870 = vpow2.f32 %v8666_v43  ;;  %v8667_v11 = vmul.f32 -1.442695, %v13243_v8  ;;  %9754 = vmatprep.subr.bf16.mxu1 %v11031_v46 }
 0xec5   : > { %10872 = vpow2.f32 %v8664_v33  ;;  %v8665_v45 = vmul.f32 -1.442695, %v13254_v4  ;;  %6059 = vrot.lane.b32.xlu1 %v10863_v23, %s11033_s29 }
 0xec6   : > { %v10865_v26 = vpop.eup %10864  ;;  %10874 = vpow2.f32 %v8667_v11 }
 0xec7   : > { %10876 = vpow2.f32 %v8665_v45  ;;  %6061 = vrot.lane.b32.xlu0 %v10865_v26, %s11033_s29  ;;  %v10867_v3 = vpop.eup %10866 }
 0xec8   : > { %v10869_v41 = vpop.eup %10868 }
 0xec9   : > { %6063 = vrot.lane.b32.xlu1 %v10867_v3, %s11033_s29 }
 0xeca   : > { %9719 = vmatmul.mubr.msk.bf16.gmra.mrb[220].mxu1 %vm1351_vm5, %v13267_v44 }
 0xecb   : > { %6065 = vrot.lane.b32.xlu0 %v10869_v41, %s11033_s29  ;;  %9722 = vmatprep.mubr.msk.bf16.mxu1 %vm11032_vm4, %v11031_v46 }
 0xece   : > { %v10871_v52 = vpop.eup %10870 }
 0xecf   : > { %v10873_v5 = vpop.eup %10872  ;;  %v5961_v42 = vadd.f32 1.0, %v10871_v52  ;;  %v9706_v36 = vpop.f32.mrb[232].mxu0 }
 0xed0   : > { %v10875_v14 = vpop.eup %10874  ;;  %v5959_v2 = vadd.f32 1.0, %v10873_v5  ;;  %v13275_v25 = vadd.f32 %v9706_v36, %v13161_v7  ;;  %v5844_v53 = vpop.f32.mrb[233].mxu0 }
 0xed1   : > { %v10877_v61 = vpop.eup %10876  ;;  %10878 = vrcp.f32 %v5961_v42  ;;  %v5962_v13 = vadd.f32 1.0, %v10875_v14  ;;  %v13278_v21 = vadd.f32 %v13161_v7, %v5844_v53  ;;  %v9707_v6 = vpop.f32.mrb[234].mxu0 }
 0xed2   : > { %10880 = vrcp.f32 %v5959_v2  ;;  %v5960_v20 = vadd.f32 1.0, %v10877_v61  ;;  %v8670_v27 = vmul.f32 -1.442695, %v13275_v25  ;;  %v13282_v59 = vadd.f32 %v9707_v6, %v13161_v7  ;;  %v5847_v51 = vpop.f32.mrb[235].mxu0  ;;  %9723 = vmatmul.mubr.msk.bf16.gmra.mrb[224].mxu1 %vm1351_vm5, %v13287_v35 }
 0xed3   : > { %10882 = vrcp.f32 %v5962_v13  ;;  %v8668_v18 = vmul.f32 -1.442695, %v13278_v21  ;;  %v13293_v29 = vadd.f32 %v13161_v7, %v5847_v51  ;;  %9728 = vmatprep.mubr.msk.bf16.mxu1 %vm11032_vm4, %v11031_v46 }
 0xed4   : > { %10884 = vrcp.f32 %v5960_v20  ;;  %v8671_v50 = vmul.f32 -1.442695, %v13282_v59 }
 0xed5   : > { %10886 = vpow2.f32 %v8670_v27  ;;  %v8669_v55 = vmul.f32 -1.442695, %v13293_v29 }
 0xed6   : > { %10888 = vpow2.f32 %v8668_v18 }
 0xed7   : > { %10890 = vpow2.f32 %v8671_v50 }
 0xed8   : > { %10892 = vpow2.f32 %v8669_v55 }
 0xeda   : > { %9729 = vmatmul.mubr.msk.bf16.vlgmr.msra.gmra.mrb[228].mxu1 %vm1351_vm5, %v13248_v58 }
 0xedb   : > { %v10879_v57 = vpop.eup %10878  ;;  %9732 = vmatprep.mubr.msk.bf16.mxu1 %vm11032_vm4, %v11031_v46 }
 0xedc   : > { %v10881_v48 = vpop.eup %10880 }
 0xedd   : > { %v10883_v30 = vpop.eup %10882  ;;  %6067 = vrot.lane.b32.xlu1 %v10881_v48, %s11033_s29 }
 0xede   : > { %v10885_v12 = vpop.eup %10884 }
 0xedf   : > { %v10887_v0 = vpop.eup %10886  ;;  %6069 = vrot.lane.b32.xlu0 %v10885_v12, %s11033_s29 }
 0xee0   : > { %v10889_v1 = vpop.eup %10888  ;;  %v6052_v40 = vpop.permute.xlu1 %6051  ;;  %v5965_v28 = vadd.f32 1.0, %v10887_v0 }
 0xee1   : > { %v10891_v49 = vpop.eup %10890  ;;  %v5963_v63 = vadd.f32 1.0, %v10889_v1  ;;  %6071 = vrot.lane.b32.xlu1 %v10879_v57, %s11033_s29  ;;  %v6119_v24 = vmul.f32 %v6052_v40, %v13198_v34 }
 0xee2   : > { %v10893_v32 = vpop.eup %10892  ;;  %9733 = vmatmul.mubr.msk.bf16.gmra.mrb[232].mxu1 %vm1351_vm5, %v13267_v44  ;;  %v6054_v37 = vpop.permute.xlu0 %6053  ;;  %v5966_v54 = vadd.f32 1.0, %v10891_v49 }
 0xee3   : > { %10894 = vrcp.f32 %v5963_v63  ;;  %v5964_v47 = vadd.f32 1.0, %v10893_v32  ;;  %v6120_v16 = vmul.f32 %v6054_v37, %v13206_v17  ;;  %6073 = vrot.lane.b32.xlu0 %v10883_v30, %s11033_s29  ;;  %9736 = vmatprep.mubr.msk.bf16.mxu1 %vm11032_vm4, %v11031_v46 }
 0xee4   : > { %v6056_v56 = vpop.permute.xlu1 %6055 }
 0xee5   : > { %10896 = vrcp.f32 %v5964_v47  ;;  %v6141_v43 = vpack.c.bf16 %v6120_v16, %v6119_v24  ;;  %v6121_v33 = vmul.f32 %v6056_v56, %v13193_v38 }
 0xee6   : > { %v6058_v60 = vpop.permute.xlu0 %6057  ;;  %10898 = vrcp.f32 %v5965_v28 }
 0xee7   : > { %v6122_v23 = vmul.f32 %v6058_v60, %v13202_v19  ;;  %9741 = vmatpush3.bf16.msra.mxu0 %v6141_v43  ;;  %10900 = vrcp.f32 %v5966_v54 }
 0xee8   : > { %9768 = vmatprep.subr.bf16.mxu0 %v11031_v46 }
 0xee9   : > { %v6142_v34 = vpack.c.bf16 %v6122_v23, %v6121_v33 }
 0xeea   : > { %9737 = vmatmul.mubr.msk.bf16.gmra.mrb[236].mxu1 %vm1351_vm5, %v13287_v35  ;;  %9743 = vmatmul.mubr.msk.bf16.vlgmr.msra.gmra.mrb[240].mxu0 %vm1351_vm5, %v13248_v58 }
 0xeeb   : > { %9755 = vmatpush3.bf16.msra.mxu1 %v6142_v34  ;;  %9756 = vmatprep.mubr.msk.bf16.mxu1 %vm11032_vm4, %v11031_v46 }
 0xeec   : > { %9746 = vmatprep.mubr.msk.bf16.mxu0 %vm11032_vm4, %v11031_v46  ;;  %9782 = vmatprep.subr.bf16.mxu1 %v11031_v46 }
 0xeed   : > { %v10895_v38 = vpop.eup %10894 }
 0xeee   : > { %6075 = vrot.lane.b32.xlu1 %v10895_v38, %s11033_s29 }
 0xeef   : > { %v10897_v19 = vpop.eup %10896 }
 0xef0   : > { %6077 = vrot.lane.b32.xlu0 %v10897_v19, %s11033_s29  ;;  %v10899_v17 = vpop.eup %10898 }
 0xef1   : > { %v10901_v11 = vpop.eup %10900 }
 0xef2   : > { %6079 = vrot.lane.b32.xlu1 %v10899_v17, %s11033_s29  ;;  %9757 = vmatmul.mubr.msk.bf16.vlgmr.msra.gmra.mrb[240].mxu1 %vm1351_vm5, %v13248_v58 }
 0xef3   : > { %9747 = vmatmul.mubr.msk.bf16.gmra.mrb[244].mxu0 %vm1351_vm5, %v13267_v44  ;;  %9760 = vmatprep.mubr.msk.bf16.mxu1 %vm11032_vm4, %v11031_v46 }
 0xef4   : > { %6081 = vrot.lane.b32.xlu0 %v10901_v11, %s11033_s29  ;;  %9750 = vmatprep.mubr.msk.bf16.mxu0 %vm11032_vm4, %v11031_v46 }
 0xefa   : > { %9761 = vmatmul.mubr.msk.bf16.gmra.mrb[244].mxu1 %vm1351_vm5, %v13267_v44 }
 0xefb   : > { %9751 = vmatmul.mubr.msk.bf16.gmra.mrb[248].mxu0 %vm1351_vm5, %v13287_v35  ;;  %9764 = vmatprep.mubr.msk.bf16.mxu1 %vm11032_vm4, %v11031_v46 }
 0xefc   : > { %9770 = vmatprep.mubr.msk.bf16.mxu0 %vm11032_vm4, %v11031_v46 }
 0xf02   : > { %9765 = vmatmul.mubr.msk.bf16.gmra.mrb[248].mxu1 %vm1351_vm5, %v13287_v35 }
 0xf03   : > { %9784 = vmatprep.mubr.msk.bf16.mxu1 %vm11032_vm4, %v11031_v46 }
 0xf23   : > { %v9710_v45 = vpop.f32.mrb[236].mxu0 }
 0xf24   : > { %v13350_v26 = vadd.f32 %v9710_v45, %v13161_v7  ;;  %v5860_v3 = vpop.f32.mrb[237].mxu0 }
 0xf25   : > { %v13353_v41 = vadd.f32 %v13161_v7, %v5860_v3  ;;  %v9711_v52 = vpop.f32.mrb[238].mxu0 }
 0xf26   : > { %v8674_v5 = vmul.f32 -1.442695, %v13350_v26  ;;  %v13357_v42 = vadd.f32 %v9711_v52, %v13161_v7  ;;  %v5863_v36 = vpop.f32.mrb[239].mxu0 }
 0xf27   : > { %v8672_v14 = vmul.f32 -1.442695, %v13353_v41  ;;  %v13361_v2 = vadd.f32 %v13161_v7, %v5863_v36 }
 0xf28   : > { %10902 = vpow2.f32 %v8674_v5  ;;  %v8675_v53 = vmul.f32 -1.442695, %v13357_v42 }
 0xf29   : > { %10904 = vpow2.f32 %v8672_v14  ;;  %v8673_v61 = vmul.f32 -1.442695, %v13361_v2 }
 0xf2a   : > { %10906 = vpow2.f32 %v8675_v53 }
 0xf2b   : > { %10908 = vpow2.f32 %v8673_v61 }
 0xf32   : > { %v10903_v13 = vpop.eup %10902 }
 0xf33   : > { %v10905_v6 = vpop.eup %10904  ;;  %v5969_v18 = vadd.f32 1.0, %v10903_v13 }
 0xf34   : > { %v10907_v20 = vpop.eup %10906  ;;  %v5967_v27 = vadd.f32 1.0, %v10905_v6 }
 0xf35   : > { %v10909_v51 = vpop.eup %10908  ;;  %v5970_v57 = vadd.f32 1.0, %v10907_v20 }
 0xf36   : > { %10910 = vrcp.f32 %v5967_v27  ;;  %v5968_v50 = vadd.f32 1.0, %v10909_v51 }
 0xf37   : > { %v6060_v55 = vpop.permute.xlu1 %6059 }
 0xf38   : > { %10912 = vrcp.f32 %v5968_v50  ;;  %v6123_v48 = vmul.f32 %v6060_v55, %v13218_v10 }
 0xf39   : > { %v6062_v7 = vpop.permute.xlu0 %6061  ;;  %10914 = vrcp.f32 %v5969_v18 }
 0xf3a   : > { %v6124_v30 = vmul.f32 %v6062_v7, %v13226_v15  ;;  %10916 = vrcp.f32 %v5970_v57 }
 0xf3b   : > { %v6064_v12 = vpop.permute.xlu1 %6063 }
 0xf3c   : > { %v6143_v0 = vpack.c.bf16 %v6124_v30, %v6123_v48  ;;  %v6125_v40 = vmul.f32 %v6064_v12, %v13215_v22 }
 0xf3d   : > { %v6066_v1 = vpop.permute.xlu0 %6065 }
 0xf3e   : > { %v6126_v49 = vmul.f32 %v6066_v1, %v13222_v62  ;;  %9769 = vmatpush3.bf16.msra.mxu0 %v6143_v0  ;;  %v10402_v0 = vld [vmem:[%s14092_s16] sm:$0xff]  }
 0xf3f   : > { %9796 = vmatprep.subr.bf16.mxu0 %v11031_v46 }
 0xf40   : > { %v10911_v63 = vpop.eup %10910  ;;  %v6144_v32 = vpack.c.bf16 %v6126_v49, %v6125_v40 }
 0xf41   : > { %6083 = vrot.lane.b32.xlu1 %v10911_v63, %s11033_s29  ;;  %9771 = vmatmul.mubr.msk.bf16.vlgmr.msra.gmra.mrb[252].mxu0 %vm1351_vm5, %v13248_v58 }
 0xf42   : > { %v10913_v10 = vpop.eup %10912  ;;  %9783 = vmatpush3.bf16.msra.mxu1 %v6144_v32  ;;  %9774 = vmatprep.mubr.msk.bf16.mxu0 %vm11032_vm4, %v11031_v46 }
 0xf43   : > { %6085 = vrot.lane.b32.xlu0 %v10913_v10, %s11033_s29  ;;  %9810 = vmatprep.subr.bf16.mxu1 %v11031_v46  ;;  %v10915_v22 = vpop.eup %10914 }
 0xf44   : > { %v10917_v62 = vpop.eup %10916 }
 0xf45   : > { %6087 = vrot.lane.b32.xlu1 %v10915_v22, %s11033_s29  ;;  %9785 = vmatmul.mubr.msk.bf16.vlgmr.msra.gmra.mrb[252].mxu1 %vm1351_vm5, %v13248_v58 }
 0xf46   : > { %9788 = vmatprep.mubr.msk.bf16.mxu1 %vm11032_vm4, %v11031_v46 }
 0xf47   : > { %6089 = vrot.lane.b32.xlu0 %v10917_v62, %s11033_s29 }
 0xf49   : > { %9775 = vmatmul.mubr.msk.bf16.gmra.mrb[0].mxu0 %vm1351_vm5, %v13267_v44 }
 0xf4a   : > { %9778 = vmatprep.mubr.msk.bf16.mxu0 %vm11032_vm4, %v11031_v46 }
 0xf4d   : > { %9789 = vmatmul.mubr.msk.bf16.gmra.mrb[0].mxu1 %vm1351_vm5, %v13267_v44 }
 0xf4e   : > { %9792 = vmatprep.mubr.msk.bf16.mxu1 %vm11032_vm4, %v11031_v46 }
 0xf4f   : > { %v6068_v15 = vpop.permute.xlu1 %6067 }
 0xf50   : > { %v6127_v37 = vmul.f32 %v6068_v15, %v13239_v9 }
 0xf51   : > { %9779 = vmatmul.mubr.msk.bf16.gmra.mrb[4].mxu0 %vm1351_vm5, %v13287_v35  ;;  %v6070_v28 = vpop.permute.xlu0 %6069 }
 0xf52   : > { %v6128_v47 = vmul.f32 %v6070_v28, %v13254_v4  ;;  %9798 = vmatprep.mubr.msk.bf16.mxu0 %vm11032_vm4, %v11031_v46 }
 0xf53   : > { %v6072_v24 = vpop.permute.xlu1 %6071 }
 0xf54   : > { %v6145_v16 = vpack.c.bf16 %v6128_v47, %v6127_v37  ;;  %v6129_v54 = vmul.f32 %v6072_v24, %v13235_v31 }
 0xf55   : > { %9793 = vmatmul.mubr.msk.bf16.gmra.mrb[4].mxu1 %vm1351_vm5, %v13287_v35  ;;  %v6074_v56 = vpop.permute.xlu0 %6073 }
 0xf56   : > { %v6130_v43 = vmul.f32 %v6074_v56, %v13243_v8  ;;  %9797 = vmatpush3.bf16.msra.mxu0 %v6145_v16  ;;  %9812 = vmatprep.mubr.msk.bf16.mxu1 %vm11032_vm4, %v11031_v46  ;;  %v10404_v16 = vld [vmem:[%s14092_s16 + $0x10] sm:$0xff]   ;;  %v10405_v56 = vld [vmem:[%s14092_s16 + $0x18] sm:$0xff]  }
 0xf57   : > { %9824 = vmatprep.subr.bf16.mxu0 %v11031_v46 }
 0xf58   : > { %v6146_v9 = vpack.c.bf16 %v6130_v43, %v6129_v54 }
 0xf59   : > { %9799 = vmatmul.mubr.msk.bf16.vlgmr.msra.gmra.mrb[8].mxu0 %vm1351_vm5, %v13248_v58 }
 0xf5a   : > { %9811 = vmatpush3.bf16.msra.mxu1 %v6146_v9  ;;  %9802 = vmatprep.mubr.msk.bf16.mxu0 %vm11032_vm4, %v11031_v46 }
 0xf5b   : > { %9838 = vmatprep.subr.bf16.mxu1 %v11031_v46 }
 0xf5d   : > { %9813 = vmatmul.mubr.msk.bf16.vlgmr.msra.gmra.mrb[8].mxu1 %vm1351_vm5, %v13248_v58 }
 0xf5e   : > { %9816 = vmatprep.mubr.msk.bf16.mxu1 %vm11032_vm4, %v11031_v46 }
 0xf60   : > { %v6076_v31 = vpop.permute.xlu1 %6075 }
 0xf61   : > { %9803 = vmatmul.mubr.msk.bf16.gmra.mrb[12].mxu0 %vm1351_vm5, %v13267_v44  ;;  %v6131_v4 = vmul.f32 %v6076_v31, %v13278_v21 }
 0xf62   : > { %v6078_v8 = vpop.permute.xlu0 %6077  ;;  %9806 = vmatprep.mubr.msk.bf16.mxu0 %vm11032_vm4, %v11031_v46 }
 0xf63   : > { %v6132_v60 = vmul.f32 %v6078_v8, %v13293_v29 }
 0xf64   : > { %v6080_v33 = vpop.permute.xlu1 %6079 }
 0xf65   : > { %v6147_v23 = vpack.c.bf16 %v6132_v60, %v6131_v4  ;;  %9817 = vmatmul.mubr.msk.bf16.gmra.mrb[12].mxu1 %vm1351_vm5, %v13267_v44  ;;  %v6133_v38 = vmul.f32 %v6080_v33, %v13275_v25  ;;  %v10406_v60 = vld [vmem:[%s14092_s16 + $0x20] sm:$0xff]  }
 0xf66   : > { %v6082_v34 = vpop.permute.xlu0 %6081  ;;  %9820 = vmatprep.mubr.msk.bf16.mxu1 %vm11032_vm4, %v11031_v46 }
 0xf67   : > { %v6134_v19 = vmul.f32 %v6082_v34, %v13282_v59  ;;  %9825 = vmatpush3.bf16.msra.mxu0 %v6147_v23  ;;  %v10407_v34 = vld [vmem:[%s14092_s16 + $0x28] sm:$0xff]  }
 0xf68   : > { %9852 = vmatprep.subr.bf16.mxu0 %v11031_v46 }
 0xf69   : > { %v6148_v17 = vpack.c.bf16 %v6134_v19, %v6133_v38  ;;  %9807 = vmatmul.mubr.msk.bf16.gmra.mrb[16].mxu0 %vm1351_vm5, %v13287_v35 }
 0xf6a   : > { %9826 = vmatprep.mubr.msk.bf16.mxu0 %vm11032_vm4, %v11031_v46 }
 0xf6b   : > { %9839 = vmatpush3.bf16.msra.mxu1 %v6148_v17 }
 0xf6c   : > { %9866 = vmatprep.subr.bf16.mxu1 %v11031_v46 }
 0xf6d   : > { %9821 = vmatmul.mubr.msk.bf16.gmra.mrb[16].mxu1 %vm1351_vm5, %v13287_v35 }
 0xf6e   : > { %9840 = vmatprep.mubr.msk.bf16.mxu1 %vm11032_vm4, %v11031_v46 }
 0xf71   : > { %9827 = vmatmul.mubr.msk.bf16.vlgmr.msra.gmra.mrb[20].mxu0 %vm1351_vm5, %v13248_v58 }
 0xf72   : > { %9830 = vmatprep.mubr.msk.bf16.mxu0 %vm11032_vm4, %v11031_v46 }
 0xf75   : > { %9841 = vmatmul.mubr.msk.bf16.vlgmr.msra.gmra.mrb[20].mxu1 %vm1351_vm5, %v13248_v58 }
 0xf76   : > { %9844 = vmatprep.mubr.msk.bf16.mxu1 %vm11032_vm4, %v11031_v46 }
 0xf79   : > { %9831 = vmatmul.mubr.msk.bf16.gmra.mrb[24].mxu0 %vm1351_vm5, %v13267_v44 }
 0xf7a   : > { %9834 = vmatprep.mubr.msk.bf16.mxu0 %vm11032_vm4, %v11031_v46 }
 0xf7d   : > { %9845 = vmatmul.mubr.msk.bf16.gmra.mrb[24].mxu1 %vm1351_vm5, %v13267_v44 }
 0xf7e   : > { %9848 = vmatprep.mubr.msk.bf16.mxu1 %vm11032_vm4, %v11031_v46 }
 0xf81   : > { %9835 = vmatmul.mubr.msk.bf16.gmra.mrb[28].mxu0 %vm1351_vm5, %v13287_v35 }
 0xf82   : > { %9854 = vmatprep.mubr.msk.bf16.mxu0 %vm11032_vm4, %v11031_v46 }
 0xf85   : > { %9849 = vmatmul.mubr.msk.bf16.gmra.mrb[28].mxu1 %vm1351_vm5, %v13287_v35 }
 0xf86   : > { %9868 = vmatprep.mubr.msk.bf16.mxu1 %vm11032_vm4, %v11031_v46 }
 0xf95   : > { %v13459_v25 = vpop.f32.mrb[216].mxu1 }
 0xf96   : > { %v9716_v21 = vpop.f32.mrb[217].mxu1 }
 0xf97   : > { %v13461_v59 = vpop.f32.mrb[218].mxu1 }
 0xf98   : > { %v9717_v29 = vpop.f32.mrb[219].mxu1 }
 0xf9d   : > { %v6193_v11 = vpop.f32.mrb[220].mxu1 }
 0xf9e   : > { %v9720_v45 = vpop.f32.mrb[221].mxu1 }
 0xf9f   : > { %v6196_v3 = vpop.f32.mrb[222].mxu1 }
 0xfa0   : > { %v10230_v52 = vpack.i.bf16 %v6196_v3, %v6193_v11  ;;  %v9721_v5 = vpop.f32.mrb[223].mxu1 }
 0xfa2   : > { %10231 = vrot.lane.b32.xlu1 %v10230_v52, %s11034_s2 }
 0xfa5   : > { %v6201_v36 = vpop.f32.mrb[224].mxu1 }
 0xfa6   : > { %v9724_v14 = vpop.f32.mrb[225].mxu1 }
 0xfa7   : > { %v6204_v53 = vpop.f32.mrb[226].mxu1 }
 0xfa8   : > { %v10235_v61 = vpack.i.bf16 %v6204_v53, %v6201_v36  ;;  %v9725_v13 = vpop.f32.mrb[227].mxu1 }
 0xfaa   : > { %10236 = vrot.lane.b32.xlu1 %v10235_v61, %s11035_s1 }
 0xfad   : > { %v13465_v6 = vpop.f32.mrb[228].mxu1 }
 0xfae   : > { %v9730_v20 = vpop.f32.mrb[229].mxu1 }
 0xfaf   : > { %v13467_v27 = vpop.f32.mrb[230].mxu1 }
 0xfb0   : > { %v9731_v51 = vpop.f32.mrb[231].mxu1 }
 0xfb3   : > { %v6084_v18 = vpop.permute.xlu1 %6083 }
 0xfb4   : > { %v6135_v57 = vmul.f32 %v6084_v18, %v13353_v41 }
 0xfb5   : > { %v6086_v50 = vpop.permute.xlu0 %6085  ;;  %v6250_v55 = vpop.f32.mrb[232].mxu1 }
 0xfb6   : > { %v6136_v7 = vmul.f32 %v6086_v50, %v13361_v2  ;;  %v9734_v48 = vpop.f32.mrb[233].mxu1  ;;  %v10403_v2 = vld [vmem:[%s14092_s16 + $0x8] sm:$0xff]  }
 0xfb7   : > { %v6088_v30 = vpop.permute.xlu1 %6087  ;;  %v6253_v12 = vpop.f32.mrb[234].mxu1 }
 0xfb8   : > { %v6149_v1 = vpack.c.bf16 %v6136_v7, %v6135_v57  ;;  %v10240_v40 = vpack.i.bf16 %v6253_v12, %v6250_v55  ;;  %v9735_v49 = vpop.f32.mrb[235].mxu1  ;;  %v6137_v32 = vmul.f32 %v6088_v30, %v13350_v26 }
 0xfb9   : > { %v6090_v63 = vpop.permute.xlu0 %6089 }
 0xfba   : > { %v6138_v10 = vmul.f32 %v6090_v63, %v13357_v42  ;;  %9853 = vmatpush3.bf16.msra.mxu0 %v6149_v1  ;;  %10241 = vrot.lane.b32.xlu0 %v10240_v40, %s11034_s2 }
 0xfbb   : > { %9880 = vmatprep.subr.bf16.mxu0 %v10402_v0 }
 0xfbc   : > { %v6150_v41 = vpack.c.bf16 %v6138_v10, %v6137_v32 }
 0xfbd   : > { %v6258_v22 = vpop.f32.mrb[236].mxu1  ;;  %9855 = vmatmul.mubr.msk.bf16.vlgmr.msra.gmra.mrb[32].mxu0 %vm1351_vm5, %v13248_v58  ;;  %v13482_v62 = vpop.f32.mrb[240].mxu0 }
 0xfbe   : > { %v9738_v15 = vpop.f32.mrb[237].mxu1  ;;  %9867 = vmatpush3.bf16.msra.mxu1 %v6150_v41  ;;  %9858 = vmatprep.mubr.msk.bf16.mxu0 %vm11032_vm4, %v11031_v46  ;;  %v9744_v26 = vpop.f32.mrb[241].mxu0 }
 0xfbf   : > { %v6261_v42 = vpop.f32.mrb[238].mxu1  ;;  %v13486_v28 = vpop.f32.mrb[242].mxu0  ;;  %9881 = vmatpush3.bf16.msra.mxu0 %v10402_v0 }
 0xfc0   : > { %v10250_v37 = vpack.i.bf16 %v6261_v42, %v6258_v22  ;;  %v9739_v47 = vpop.f32.mrb[239].mxu1  ;;  %v9745_v24 = vpop.f32.mrb[243].mxu0  ;;  %9882 = vmatprep.subr.bf16.mxu0 %v10403_v2 }
 0xfc1   : > { %9869 = vmatmul.mubr.msk.bf16.vlgmr.msra.gmra.mrb[32].mxu1 %vm1351_vm5, %v13248_v58 }
 0xfc2   : > { %10251 = vrot.lane.b32.xlu0 %v10250_v37, %s11035_s1  ;;  %9872 = vmatprep.mubr.msk.bf16.mxu1 %vm11032_vm4, %v11031_v46 }
 0xfc3   : > { %9883 = vmatpush3.bf16.msra.mxu0 %v10403_v2 }
 0xfc4   : > { %9884 = vmatprep.subr.bf16.mxu0 %v10404_v16 }
 0xfc5   : > { %9859 = vmatmul.mubr.msk.bf16.gmra.mrb[36].mxu0 %vm1351_vm5, %v13267_v44  ;;  %v13501_v54 = vpop.f32.mrb[240].mxu1 }
 0xfc6   : > { %v6307_v43 = vpop.f32.mrb[244].mxu0  ;;  %9862 = vmatprep.mubr.msk.bf16.mxu0 %vm11032_vm4, %v11031_v46  ;;  %v9758_v58 = vpop.f32.mrb[241].mxu1 }
 0xfc7   : > { %v9748_v9 = vpop.f32.mrb[245].mxu0  ;;  %v13505_v31 = vpop.f32.mrb[242].mxu1  ;;  %9885 = vmatpush3.bf16.msra.mxu0 %v10404_v16 }
 0xfc8   : > { %v6310_v8 = vpop.f32.mrb[246].mxu0  ;;  %v9759_v4 = vpop.f32.mrb[243].mxu1  ;;  %9886 = vmatprep.subr.bf16.mxu0 %v10405_v56 }
 0xfc9   : > { %9873 = vmatmul.mubr.msk.bf16.gmra.mrb[36].mxu1 %vm1351_vm5, %v13267_v44  ;;  %v10245_v33 = vpack.i.bf16 %v6310_v8, %v6307_v43  ;;  %v9749_v23 = vpop.f32.mrb[247].mxu0 }
 0xfca   : > { %9876 = vmatprep.mubr.msk.bf16.mxu1 %vm11032_vm4, %v11031_v46 }
 0xfcb   : > { %10246 = vrot.lane.b32.xlu1 %v10245_v33, %s11034_s2  ;;  %9887 = vmatpush3.bf16.msra.mxu0 %v10405_v56 }
 0xfcc   : > { %9888 = vmatprep.subr.bf16.mxu0 %v10406_v60 }
 0xfcd   : > { %9863 = vmatmul.mubr.msk.bf16.gmra.mrb[40].mxu0 %vm1351_vm5, %v13287_v35  ;;  %v6364_v38 = vpop.f32.mrb[244].mxu1 }
 0xfce   : > { %v6315_v19 = vpop.f32.mrb[248].mxu0  ;;  %v9762_v17 = vpop.f32.mrb[245].mxu1 }
 0xfcf   : > { %v9752_v44 = vpop.f32.mrb[249].mxu0  ;;  %v6367_v21 = vpop.f32.mrb[246].mxu1  ;;  %9889 = vmatpush3.bf16.msra.mxu0 %v10406_v60 }
 0xfd0   : > { %v6318_v29 = vpop.f32.mrb[250].mxu0  ;;  %v10260_v11 = vpack.i.bf16 %v6367_v21, %v6364_v38  ;;  %v9763_v45 = vpop.f32.mrb[247].mxu1  ;;  %9890 = vmatprep.subr.bf16.mxu0 %v10407_v34 }
 0xfd1   : > { %9877 = vmatmul.mubr.msk.bf16.gmra.mrb[40].mxu1 %vm1351_vm5, %v13287_v35  ;;  %v10255_v3 = vpack.i.bf16 %v6318_v29, %v6315_v19  ;;  %v9753_v52 = vpop.f32.mrb[251].mxu0 }
 0xfd2   : > { %10261 = vrot.lane.b32.xlu0 %v10260_v11, %s11034_s2 }
 0xfd3   : > { %10256 = vrot.lane.b32.xlu1 %v10255_v3, %s11035_s1  ;;  %9891 = vmatpush3.bf16.msra.mxu0 %v10407_v34 }
 0xfd5   : > { %v6372_v5 = vpop.f32.mrb[248].mxu1 }
 0xfd6   : > { %v9766_v36 = vpop.f32.mrb[249].mxu1 }
 0xfd7   : > { %v6375_v14 = vpop.f32.mrb[250].mxu1 }
 0xfd8   : > { %v10270_v53 = vpack.i.bf16 %v6375_v14, %v6372_v5  ;;  %v9767_v61 = vpop.f32.mrb[251].mxu1 }
 0xfda   : > { %10271 = vrot.lane.b32.xlu0 %v10270_v53, %s11035_s1 }
0x1014   : > { %v13525_v13 = vpop.f32.mrb[252].mxu0  ;;  %v10232_v35 = vpop.permute.xlu1 %10231 }
0x1015   : > { %v9772_v20 = vpop.f32.mrb[253].mxu0  ;;  %v10234_v57 = vunpack.i.h.bf16 %v10232_v35  ;;  %v10233_v7 = vunpack.i.l.bf16 %v10232_v35 }
0x1016   : > { %v13527_v51 = vpop.f32.mrb[254].mxu0 }
0x1017   : > { %v9773_v18 = vpop.f32.mrb[255].mxu0  ;;  %v7028_v63 = vsel %vm2237_vm6, %v13461_v59, %v10234_v57  ;;  %v7027_v32 = vsel %vm2237_vm6, %v13459_v25, %v10233_v7 }
0x1018   : > { %v13529_v50 = vpop.f32.mrb[252].mxu1 }
0x1019   : > { %v9786_v55 = vpop.f32.mrb[253].mxu1 }
0x101a   : > { %v13531_v48 = vpop.f32.mrb[254].mxu1 }
0x101b   : > { %v9787_v30 = vpop.f32.mrb[255].mxu1 }
0x101c   : > { %v10237_v12 = vpop.permute.xlu1 %10236  ;;  %v6421_v0 = vpop.f32.mrb[0].mxu0 }
0x101d   : > { %v10239_v1 = vunpack.i.h.bf16 %v10237_v12  ;;  %v10238_v40 = vunpack.i.l.bf16 %v10237_v12  ;;  %v9776_v49 = vpop.f32.mrb[1].mxu0 }
0x101e   : > { %v6424_v10 = vpop.f32.mrb[2].mxu0 }
0x101f   : > { %v7052_v41 = vsel %vm2262_vm7, %v7028_v63, %v10239_v1  ;;  %v7051_v2 = vsel %vm2262_vm7, %v7027_v32, %v10238_v40  ;;  %v10265_v22 = vpack.i.bf16 %v6424_v10, %v6421_v0  ;;  %v9777_v15 = vpop.f32.mrb[3].mxu0 }
0x1020   : > { %v7075_v26 = vpack.c.bf16 %v7052_v41, %v7051_v2  ;;  %v6478_v42 = vpop.f32.mrb[0].mxu1 }
0x1021   : > { %10266 = vrot.lane.b32.xlu1 %v10265_v22, %s11034_s2  ;;  %v9790_v37 = vpop.f32.mrb[1].mxu1 }
0x1022   : > { %v6481_v47 = vpop.f32.mrb[2].mxu1  ;;  %9892 = vmatprep.mubr.msk.bf16.mxu0 %vm2354_vm8, %v7075_v26 }
0x1023   : > { %v10280_v24 = vpack.i.bf16 %v6481_v47, %v6478_v42  ;;  %v9791_v59 = vpop.f32.mrb[3].mxu1 }
0x1024   : > { %v6429_v16 = vpop.f32.mrb[4].mxu0 }
0x1025   : > { %v9780_v56 = vpop.f32.mrb[5].mxu0  ;;  %10281 = vrot.lane.b32.xlu0 %v10280_v24, %s11034_s2 }
0x1026   : > { %v6432_v25 = vpop.f32.mrb[6].mxu0 }
0x1027   : > { %v10275_v43 = vpack.i.bf16 %v6432_v25, %v6429_v16  ;;  %v9781_v58 = vpop.f32.mrb[7].mxu0 }
0x1028   : > { %v6486_v9 = vpop.f32.mrb[4].mxu1 }
0x1029   : > { %10276 = vrot.lane.b32.xlu1 %v10275_v43, %s11035_s1  ;;  %v9794_v8 = vpop.f32.mrb[5].mxu1 }
0x102a   : > { %v6489_v4 = vpop.f32.mrb[6].mxu1 }
0x102b   : > { %v10290_v60 = vpack.i.bf16 %v6489_v4, %v6486_v9  ;;  %v9795_v33 = vpop.f32.mrb[7].mxu1 }
0x102c   : > { %v13543_v23 = vpop.f32.mrb[8].mxu0  ;;  %v10242_v19 = vpop.permute.xlu0 %10241 }
0x102d   : > { %10291 = vrot.lane.b32.xlu0 %v10290_v60, %s11035_s1  ;;  %v9800_v34 = vpop.f32.mrb[9].mxu0  ;;  %v10244_v29 = vunpack.i.h.bf16 %v10242_v19  ;;  %v10243_v11 = vunpack.i.l.bf16 %v10242_v19 }
0x102e   : > { %v13546_v38 = vpop.f32.mrb[10].mxu0 }
0x102f   : > { %v9801_v17 = vpop.f32.mrb[11].mxu0  ;;  %v7030_v61 = vsel %vm2237_vm6, %v13467_v27, %v10244_v29  ;;  %v7029_v20 = vsel %vm2237_vm6, %v13465_v6, %v10243_v11 }
0x1030   : > { %v13548_v44 = vpop.f32.mrb[8].mxu1 }
0x1031   : > { %v9814_v21 = vpop.f32.mrb[9].mxu1 }
0x1032   : > { %v13550_v45 = vpop.f32.mrb[10].mxu1 }
0x1033   : > { %v9815_v3 = vpop.f32.mrb[11].mxu1 }
0x1034   : > { %v6535_v52 = vpop.f32.mrb[12].mxu0  ;;  %v10252_v5 = vpop.permute.xlu0 %10251 }
0x1035   : > { %v10254_v36 = vunpack.i.h.bf16 %v10252_v5  ;;  %v10253_v14 = vunpack.i.l.bf16 %v10252_v5  ;;  %v9804_v53 = vpop.f32.mrb[13].mxu0 }
0x1036   : > { %v6538_v35 = vpop.f32.mrb[14].mxu0 }
0x1037   : > { %v7053_v18 = vsel %vm2262_vm7, %v7029_v20, %v10253_v14  ;;  %v7054_v55 = vsel %vm2262_vm7, %v7030_v61, %v10254_v36  ;;  %v10285_v57 = vpack.i.bf16 %v6538_v35, %v6535_v52  ;;  %v9805_v7 = vpop.f32.mrb[15].mxu0 }
0x1038   : > { %v7076_v30 = vpack.c.bf16 %v7054_v55, %v7053_v18  ;;  %v6592_v12 = vpop.f32.mrb[12].mxu1 }
0x1039   : > { %10286 = vrot.lane.b32.xlu1 %v10285_v57, %s11034_s2  ;;  %v9818_v0 = vpop.f32.mrb[13].mxu1 }
0x103a   : > { %v6595_v1 = vpop.f32.mrb[14].mxu1  ;;  %9893 = vmatmul.mubr.msk.bf16.vlgmr.msra.gmra.mrb[44].mxu0 %vm2354_vm8, %v7076_v30 }
0x103b   : > { %v10300_v40 = vpack.i.bf16 %v6595_v1, %v6592_v12  ;;  %v9819_v27 = vpop.f32.mrb[15].mxu1 }
0x103c   : > { %v6543_v49 = vpop.f32.mrb[16].mxu0 }
0x103d   : > { %v9808_v63 = vpop.f32.mrb[17].mxu0  ;;  %10301 = vrot.lane.b32.xlu0 %v10300_v40, %s11034_s2  ;;  %v10247_v2 = vpop.permute.xlu1 %10246 }
0x103e   : > { %v6546_v6 = vpop.f32.mrb[18].mxu0  ;;  %v10249_v42 = vunpack.i.h.bf16 %v10247_v2  ;;  %v10248_v37 = vunpack.i.l.bf16 %v10247_v2 }
0x103f   : > { %v10295_v32 = vpack.i.bf16 %v6546_v6, %v6543_v49  ;;  %v9809_v10 = vpop.f32.mrb[19].mxu0 }
0x1040   : > { %v6600_v41 = vpop.f32.mrb[16].mxu1  ;;  %v7032_v58 = vsel %vm2237_vm6, %v13486_v28, %v10249_v42  ;;  %v7031_v9 = vsel %vm2237_vm6, %v13482_v62, %v10248_v37 }
0x1041   : > { %10296 = vrot.lane.b32.xlu1 %v10295_v32, %s11035_s1  ;;  %v9822_v22 = vpop.f32.mrb[17].mxu1 }
0x1042   : > { %v6603_v15 = vpop.f32.mrb[18].mxu1 }
0x1043   : > { %v10310_v26 = vpack.i.bf16 %v6603_v15, %v6600_v41  ;;  %v9823_v47 = vpop.f32.mrb[19].mxu1 }
0x1044   : > { %v13562_v24 = vpop.f32.mrb[20].mxu0  ;;  %v10262_v8 = vpop.permute.xlu0 %10261 }
0x1045   : > { %10311 = vrot.lane.b32.xlu0 %v10310_v26, %s11035_s1  ;;  %v10257_v59 = vpop.permute.xlu1 %10256  ;;  %v9828_v16 = vpop.f32.mrb[21].mxu0  ;;  %v10264_v21 = vunpack.i.h.bf16 %v10262_v8  ;;  %v10263_v29 = vunpack.i.l.bf16 %v10262_v8 }
0x1046   : > { %v10259_v56 = vunpack.i.h.bf16 %v10257_v59  ;;  %v10258_v25 = vunpack.i.l.bf16 %v10257_v59  ;;  %v13565_v43 = vpop.f32.mrb[22].mxu0 }
0x1047   : > { %v9829_v4 = vpop.f32.mrb[23].mxu0  ;;  %v7034_v14 = vsel %vm2237_vm6, %v13505_v31, %v10264_v21  ;;  %v7033_v53 = vsel %vm2237_vm6, %v13501_v54, %v10263_v29 }
0x1048   : > { %v7056_v60 = vsel %vm2262_vm7, %v7032_v58, %v10259_v56  ;;  %v7055_v33 = vsel %vm2262_vm7, %v7031_v9, %v10258_v25  ;;  %v13573_v34 = vpop.f32.mrb[20].mxu1 }
0x1049   : > { %v7077_v19 = vpack.c.bf16 %v7056_v60, %v7055_v33  ;;  %v9842_v17 = vpop.f32.mrb[21].mxu1 }
0x104a   : > { %v13575_v11 = vpop.f32.mrb[22].mxu1 }
0x104b   : > { %9896 = vmatprep.mubr.msk.bf16.mxu0 %vm2354_vm8, %v7077_v19  ;;  %v9843_v28 = vpop.f32.mrb[23].mxu1 }
0x104c   : > { %v6649_v3 = vpop.f32.mrb[24].mxu0  ;;  %v10272_v52 = vpop.permute.xlu0 %10271 }
0x104d   : > { %v10274_v62 = vunpack.i.h.bf16 %v10272_v52  ;;  %v10273_v5 = vunpack.i.l.bf16 %v10272_v52  ;;  %v9832_v36 = vpop.f32.mrb[25].mxu0 }
0x104e   : > { %v6652_v61 = vpop.f32.mrb[26].mxu0 }
0x104f   : > { %v7057_v20 = vsel %vm2262_vm7, %v7033_v53, %v10273_v5  ;;  %v7058_v35 = vsel %vm2262_vm7, %v7034_v14, %v10274_v62  ;;  %v10305_v18 = vpack.i.bf16 %v6652_v61, %v6649_v3  ;;  %v9833_v55 = vpop.f32.mrb[27].mxu0 }
0x1050   : > { %v7078_v57 = vpack.c.bf16 %v7058_v35, %v7057_v20  ;;  %v6706_v7 = vpop.f32.mrb[24].mxu1 }
0x1051   : > { %10306 = vrot.lane.b32.xlu1 %v10305_v18, %s11034_s2  ;;  %v9846_v30 = vpop.f32.mrb[25].mxu1 }
0x1052   : > { %v6709_v12 = vpop.f32.mrb[26].mxu1  ;;  %9897 = vmatmul.mubr.msk.bf16.gmra.mrb[48].mxu0 %vm2354_vm8, %v7078_v57 }
0x1053   : > { %v10320_v0 = vpack.i.bf16 %v6709_v12, %v6706_v7  ;;  %v9847_v31 = vpop.f32.mrb[27].mxu1 }
0x1054   : > { %v6657_v1 = vpop.f32.mrb[28].mxu0 }
0x1055   : > { %v9836_v40 = vpop.f32.mrb[29].mxu0  ;;  %10321 = vrot.lane.b32.xlu0 %v10320_v0, %s11034_s2 }
0x1056   : > { %v6660_v54 = vpop.f32.mrb[30].mxu0 }
0x1057   : > { %v10315_v27 = vpack.i.bf16 %v6660_v54, %v6657_v1  ;;  %v9837_v49 = vpop.f32.mrb[31].mxu0 }
0x1058   : > { %v6714_v63 = vpop.f32.mrb[28].mxu1 }
0x1059   : > { %10316 = vrot.lane.b32.xlu1 %v10315_v27, %s11035_s1  ;;  %v9850_v6 = vpop.f32.mrb[29].mxu1 }
0x105a   : > { %v6717_v32 = vpop.f32.mrb[30].mxu1 }
0x105b   : > { %v10330_v10 = vpack.i.bf16 %v6717_v32, %v6714_v63  ;;  %v9851_v41 = vpop.f32.mrb[31].mxu1 }
0x105d   : > { %10331 = vrot.lane.b32.xlu0 %v10330_v10, %s11035_s1 }
0x1090   : > { %v13589_v2 = vpop.f32.mrb[32].mxu0 }
0x1091   : > { %v9856_v22 = vpop.f32.mrb[33].mxu0 }
0x1092   : > { %v13591_v15 = vpop.f32.mrb[34].mxu0 }
0x1093   : > { %v9857_v26 = vpop.f32.mrb[35].mxu0  ;;  %v10267_v47 = vpop.permute.xlu1 %10266 }
0x1094   : > { %v13593_v42 = vpop.f32.mrb[32].mxu1  ;;  %v10269_v25 = vunpack.i.h.bf16 %v10267_v47  ;;  %v10268_v58 = vunpack.i.l.bf16 %v10267_v47 }
0x1095   : > { %v9870_v37 = vpop.f32.mrb[33].mxu1 }
0x1096   : > { %v13595_v59 = vpop.f32.mrb[34].mxu1  ;;  %v7036_v28 = vsel %vm2237_vm6, %v13527_v51, %v10269_v25  ;;  %v7035_v3 = vsel %vm2237_vm6, %v13525_v13, %v10268_v58 }
0x1097   : > { %v9871_v16 = vpop.f32.mrb[35].mxu1  ;;  %v10282_v8 = vpop.permute.xlu0 %10281 }
0x1098   : > { %v6763_v56 = vpop.f32.mrb[36].mxu0  ;;  %v10284_v52 = vunpack.i.h.bf16 %v10282_v8  ;;  %v10283_v62 = vunpack.i.l.bf16 %v10282_v8 }
0x1099   : > { %v9860_v9 = vpop.f32.mrb[37].mxu0 }
0x109a   : > { %v6766_v4 = vpop.f32.mrb[38].mxu0  ;;  %v7038_v13 = vsel %vm2237_vm6, %v13531_v48, %v10284_v52  ;;  %v7037_v7 = vsel %vm2237_vm6, %v13529_v50, %v10283_v62 }
0x109b   : > { %v10325_v60 = vpack.i.bf16 %v6766_v4, %v6763_v56  ;;  %v10277_v33 = vpop.permute.xlu1 %10276  ;;  %v9861_v19 = vpop.f32.mrb[39].mxu0 }
0x109c   : > { %v10279_v17 = vunpack.i.h.bf16 %v10277_v33  ;;  %v10278_v21 = vunpack.i.l.bf16 %v10277_v33  ;;  %v6820_v29 = vpop.f32.mrb[36].mxu1 }
0x109d   : > { %10326 = vrot.lane.b32.xlu1 %v10325_v60, %s11034_s2  ;;  %v9874_v5 = vpop.f32.mrb[37].mxu1 }
0x109e   : > { %v7060_v36 = vsel %vm2262_vm7, %v7036_v28, %v10279_v17  ;;  %v7059_v14 = vsel %vm2262_vm7, %v7035_v3, %v10278_v21  ;;  %v6823_v53 = vpop.f32.mrb[38].mxu1 }
0x109f   : > { %v7079_v61 = vpack.c.bf16 %v7060_v36, %v7059_v14  ;;  %v10340_v20 = vpack.i.bf16 %v6823_v53, %v6820_v29  ;;  %v10292_v35 = vpop.permute.xlu0 %10291  ;;  %v9875_v18 = vpop.f32.mrb[39].mxu1 }
0x10a0   : > { %v10294_v55 = vunpack.i.h.bf16 %v10292_v35  ;;  %v10293_v57 = vunpack.i.l.bf16 %v10292_v35  ;;  %v6771_v51 = vpop.f32.mrb[40].mxu0 }
0x10a1   : > { %v9864_v30 = vpop.f32.mrb[41].mxu0  ;;  %10341 = vrot.lane.b32.xlu0 %v10340_v20, %s11034_s2  ;;  %9900 = vmatprep.mubr.msk.bf16.mxu0 %vm2354_vm8, %v7079_v61 }
0x10a2   : > { %v7061_v12 = vsel %vm2262_vm7, %v7037_v7, %v10293_v57  ;;  %v7062_v0 = vsel %vm2262_vm7, %v7038_v13, %v10294_v55  ;;  %v6774_v31 = vpop.f32.mrb[42].mxu0  ;;  %v10408_v30 = vld [vmem:[%s14094_s18] sm:$0xff]  }
0x10a3   : > { %v7080_v1 = vpack.c.bf16 %v7062_v0, %v7061_v12  ;;  %v10335_v40 = vpack.i.bf16 %v6774_v31, %v6771_v51  ;;  %v9865_v54 = vpop.f32.mrb[43].mxu0  ;;  %9916 = vmatprep.subr.bf16.mxu1 %v10408_v30  ;;  %v10409_v31 = vld [vmem:[%s14094_s18 + $0x8] sm:$0xff]  }
0x10a4   : > { %v6828_v27 = vpop.f32.mrb[40].mxu1  ;;  %9917 = vmatpush3.bf16.msra.mxu1 %v10408_v30 }
0x10a5   : > { %10336 = vrot.lane.b32.xlu1 %v10335_v40, %s11035_s1  ;;  %v9878_v48 = vpop.f32.mrb[41].mxu1  ;;  %9901 = vmatmul.mubr.msk.bf16.gmra.mrb[52].mxu0 %vm2354_vm8, %v7080_v1 }
0x10a6   : > { %v6831_v50 = vpop.f32.mrb[42].mxu1  ;;  %9918 = vmatprep.subr.bf16.mxu1 %v10409_v31 }
0x10a7   : > { %v10345_v49 = vpack.i.bf16 %v6831_v50, %v6828_v27  ;;  %v9879_v63 = vpop.f32.mrb[43].mxu1 }
0x10a8   : > { %9919 = vmatpush3.bf16.msra.mxu1 %v10409_v31 }
0x10a9   : > { %10346 = vrot.lane.b32.xlu0 %v10345_v49, %s11035_s1 }
0x10ab   : > { %v10287_v6 = vpop.permute.xlu1 %10286 }
0x10ac   : > { %v10289_v32 = vunpack.i.h.bf16 %v10287_v6  ;;  %v10288_v10 = vunpack.i.l.bf16 %v10287_v6  ;;  %v10410_v6 = vld [vmem:[%s14094_s18 + $0x10] sm:$0xff]  }
0x10ad   : > { %9920 = vmatprep.subr.bf16.mxu1 %v10410_v6 }
0x10ae   : > { %v7040_v47 = vsel %vm2237_vm6, %v13546_v38, %v10289_v32  ;;  %v7039_v16 = vsel %vm2237_vm6, %v13543_v23, %v10288_v10  ;;  %9921 = vmatpush3.bf16.msra.mxu1 %v10410_v6 }
0x10af   : > { %v10302_v41 = vpop.permute.xlu0 %10301 }
0x10b0   : > { %v10304_v56 = vunpack.i.h.bf16 %v10302_v41  ;;  %v10303_v25 = vunpack.i.l.bf16 %v10302_v41 }
0x10b2   : > { %v7042_v19 = vsel %vm2237_vm6, %v13550_v45, %v10304_v56  ;;  %v7041_v17 = vsel %vm2237_vm6, %v13548_v44, %v10303_v25 }
0x10b3   : > { %v10297_v22 = vpop.permute.xlu1 %10296 }
0x10b4   : > { %v10299_v26 = vunpack.i.h.bf16 %v10297_v22  ;;  %v10298_v37 = vunpack.i.l.bf16 %v10297_v22 }
0x10b6   : > { %v7064_v58 = vsel %vm2262_vm7, %v7040_v47, %v10299_v26  ;;  %v7063_v9 = vsel %vm2262_vm7, %v7039_v16, %v10298_v37  ;;  %v10411_v16 = vld [vmem:[%s14094_s18 + $0x18] sm:$0xff]  }
0x10b7   : > { %v7081_v8 = vpack.c.bf16 %v7064_v58, %v7063_v9  ;;  %v10312_v4 = vpop.permute.xlu0 %10311  ;;  %9922 = vmatprep.subr.bf16.mxu1 %v10411_v16 }
0x10b8   : > { %v10314_v60 = vunpack.i.h.bf16 %v10312_v4  ;;  %v10313_v33 = vunpack.i.l.bf16 %v10312_v4  ;;  %9923 = vmatpush3.bf16.msra.mxu1 %v10411_v16 }
0x10b9   : > { %9904 = vmatprep.mubr.msk.bf16.mxu0 %vm2354_vm8, %v7081_v8 }
0x10ba   : > { %v7065_v23 = vsel %vm2262_vm7, %v7041_v17, %v10313_v33  ;;  %v7066_v38 = vsel %vm2262_vm7, %v7042_v19, %v10314_v60  ;;  %v10412_v17 = vld [vmem:[%s14094_s18 + $0x20] sm:$0xff]  }
0x10bb   : > { %v7082_v21 = vpack.c.bf16 %v7066_v38, %v7065_v23  ;;  %9924 = vmatprep.subr.bf16.mxu1 %v10412_v17 }
0x10bc   : > { %9925 = vmatpush3.bf16.msra.mxu1 %v10412_v17 }
0x10bd   : > { %9905 = vmatmul.mubr.msk.bf16.gmra.mrb[56].mxu0 %vm2354_vm8, %v7082_v21 }
0x10c3   : > { %v10307_v29 = vpop.permute.xlu1 %10306 }
0x10c4   : > { %v10309_v28 = vunpack.i.h.bf16 %v10307_v29  ;;  %v10308_v3 = vunpack.i.l.bf16 %v10307_v29 }
0x10c6   : > { %v7044_v45 = vsel %vm2237_vm6, %v13565_v43, %v10309_v28  ;;  %v7043_v44 = vsel %vm2237_vm6, %v13562_v24, %v10308_v3 }
0x10c7   : > { %v10322_v52 = vpop.permute.xlu0 %10321 }
0x10c8   : > { %v10324_v14 = vunpack.i.h.bf16 %v10322_v52  ;;  %v10323_v53 = vunpack.i.l.bf16 %v10322_v52  ;;  %v10413_v52 = vld [vmem:[%s14094_s18 + $0x28] sm:$0xff]  }
0x10c9   : > { %9926 = vmatprep.subr.bf16.mxu1 %v10413_v52 }
0x10ca   : > { %v7046_v51 = vsel %vm2237_vm6, %v13575_v11, %v10324_v14  ;;  %v7045_v13 = vsel %vm2237_vm6, %v13573_v34, %v10323_v53  ;;  %v13649_v11 = vld [vmem:[%s14093_s17] ss:$0 sm:$0xff]  ;;  %9927 = vmatpush3.bf16.msra.mxu1 %v10413_v52 }
0x10cb   : > { %v10317_v62 = vpop.permute.xlu1 %10316  ;;  %9952 = vmatprep.subr.bf16.mxu1 %v11031_v46 }
0x10cc   : > { %v10319_v5 = vunpack.i.h.bf16 %v10317_v62  ;;  %v10318_v36 = vunpack.i.l.bf16 %v10317_v62 }
0x10ce   : > { %v7068_v61 = vsel %vm2262_vm7, %v7044_v45, %v10319_v5  ;;  %v7067_v20 = vsel %vm2262_vm7, %v7043_v44, %v10318_v36 }
0x10cf   : > { %v7083_v35 = vpack.c.bf16 %v7068_v61, %v7067_v20  ;;  %v10332_v18 = vpop.permute.xlu0 %10331 }
0x10d0   : > { %v10334_v55 = vunpack.i.h.bf16 %v10332_v18  ;;  %v10333_v57 = vunpack.i.l.bf16 %v10332_v18 }
0x10d1   : > { %9908 = vmatprep.mubr.msk.bf16.mxu0 %vm2354_vm8, %v7083_v35 }
0x10d2   : > { %v7069_v24 = vsel %vm2262_vm7, %v7045_v13, %v10333_v57  ;;  %v7070_v43 = vsel %vm2262_vm7, %v7046_v51, %v10334_v55 }
0x10d3   : > { %v7084_v7 = vpack.c.bf16 %v7070_v43, %v7069_v24 }
0x10d5   : > { %9909 = vmatmul.mubr.msk.bf16.gmra.mrb[60].mxu0 %vm2354_vm8, %v7084_v7 }
0x110d   : > { %v9894_v34 = vpop.f32.mrb[44].mxu0 }
0x110e   : > { %v7221_v12 = vadd.f32 %v9894_v34, %v13649_v11  ;;  %v7212_v0 = vpop.f32.mrb[45].mxu0 }
0x110f   : > { %v7213_v1 = vadd.f32 %v13649_v11, %v7212_v0  ;;  %v9895_v40 = vpop.f32.mrb[46].mxu0  ;;  %v10327_v49 = vpop.permute.xlu1 %10326 }
0x1110   : > { %v7224_v54 = vadd.f32 %v9895_v40, %v13649_v11  ;;  %v7215_v27 = vpop.f32.mrb[47].mxu0  ;;  %v7309_v50 = vmax.f32 %v7221_v12, 0.0  ;;  %v10329_v22 = vunpack.i.h.bf16 %v10327_v49  ;;  %v10328_v26 = vunpack.i.l.bf16 %v10327_v49 }
0x1111   : > { %v7216_v48 = vadd.f32 %v13649_v11, %v7215_v27  ;;  %v7307_v32 = vmax.f32 %v7213_v1, 0.0 }
0x1112   : > { %v7310_v63 = vmax.f32 %v7224_v54, 0.0  ;;  %v7048_v9 = vsel %vm2237_vm6, %v13591_v15, %v10329_v22  ;;  %v7047_v8 = vsel %vm2237_vm6, %v13589_v2, %v10328_v26 }
0x1113   : > { %v7308_v10 = vmax.f32 %v7216_v48, 0.0  ;;  %v10342_v47 = vpop.permute.xlu0 %10341 }
0x1114   : > { %v13661_v41 = vpack.c.bf16 %v7310_v63, %v7309_v50  ;;  %v10344_v4 = vunpack.i.h.bf16 %v10342_v47  ;;  %v10343_v60 = vunpack.i.l.bf16 %v10342_v47 }
0x1115   : > { %v13663_v37 = vpack.c.bf16 %v7308_v10, %v7307_v32 }
0x1116   : > { %7357 = vrot.lane.b32.xlu0 %v13661_v41, %s11034_s2  ;;  %v7050_v2 = vsel %vm2237_vm6, %v13595_v59, %v10344_v4  ;;  %v7049_v29 = vsel %vm2237_vm6, %v13593_v42, %v10343_v60 }
0x1117   : > { %v10337_v56 = vpop.permute.xlu1 %10336  ;;  %7355 = vrot.lane.b32.xlu1 %v13663_v37, %s11034_s2 }
0x1118   : > { %v10339_v25 = vunpack.i.h.bf16 %v10337_v56  ;;  %v10338_v58 = vunpack.i.l.bf16 %v10337_v56 }
0x111a   : > { %v7072_v33 = vsel %vm2262_vm7, %v7048_v9, %v10339_v25  ;;  %v7071_v19 = vsel %vm2262_vm7, %v7047_v8, %v10338_v58 }
0x111b   : > { %v7085_v23 = vpack.c.bf16 %v7072_v33, %v7071_v19  ;;  %v10347_v38 = vpop.permute.xlu0 %10346  ;;  %7379 = vrot.lane.b32.xlu1 %v13661_v41, %s11035_s1 }
0x111c   : > { %v10349_v15 = vunpack.i.h.bf16 %v10347_v38  ;;  %v10348_v21 = vunpack.i.l.bf16 %v10347_v38 }
0x111d   : > { %9912 = vmatprep.mubr.msk.bf16.mxu0 %vm2354_vm8, %v7085_v23 }
0x111e   : > { %v7073_v28 = vsel %vm2262_vm7, %v7049_v29, %v10348_v21  ;;  %v7074_v3 = vsel %vm2262_vm7, %v7050_v2, %v10349_v15 }
0x111f   : > { %v7086_v62 = vpack.c.bf16 %v7074_v3, %v7073_v28 }
0x1121   : > { %9913 = vmatmul.mubr.msk.bf16.gmra.mrb[64].mxu0 %vm2354_vm8, %v7086_v62 }
0x1125   : > { %v9898_v59 = vpop.f32.mrb[48].mxu0 }
0x1126   : > { %v7237_v42 = vadd.f32 %v9898_v59, %v13649_v11  ;;  %v7228_v5 = vpop.f32.mrb[49].mxu0 }
0x1127   : > { %v7229_v36 = vadd.f32 %v13649_v11, %v7228_v5  ;;  %v9899_v45 = vpop.f32.mrb[50].mxu0 }
0x1128   : > { %v7240_v44 = vadd.f32 %v9899_v45, %v13649_v11  ;;  %v7231_v14 = vpop.f32.mrb[51].mxu0  ;;  %v7313_v61 = vmax.f32 %v7237_v42, 0.0 }
0x1129   : > { %v7232_v53 = vadd.f32 %v13649_v11, %v7231_v14  ;;  %v7311_v35 = vmax.f32 %v7229_v36, 0.0 }
0x112a   : > { %v7314_v20 = vmax.f32 %v7240_v44, 0.0 }
0x112b   : > { %v7312_v18 = vmax.f32 %v7232_v53, 0.0 }
0x112c   : > { %v13699_v55 = vpack.c.bf16 %v7314_v20, %v7313_v61 }
0x112d   : > { %v13701_v57 = vpack.c.bf16 %v7312_v18, %v7311_v35 }
0x112f   : > { %7381 = vrot.lane.b32.xlu0 %v13701_v57, %s11035_s1  ;;  %7359 = vrot.lane.b32.xlu1 %v13701_v57, %s11034_s2 }
0x1133   : > { %7361 = vrot.lane.b32.xlu0 %v13699_v55, %s11034_s2  ;;  %7383 = vrot.lane.b32.xlu1 %v13699_v55, %s11035_s1 }
0x1178   : > { %v9902_v51 = vpop.f32.mrb[52].mxu0 }
0x1179   : > { %v7253_v13 = vadd.f32 %v9902_v51, %v13649_v11  ;;  %v7244_v24 = vpop.f32.mrb[53].mxu0 }
0x117a   : > { %v7245_v43 = vadd.f32 %v13649_v11, %v7244_v24  ;;  %v9903_v7 = vpop.f32.mrb[54].mxu0 }
0x117b   : > { %v7256_v30 = vadd.f32 %v9903_v7, %v13649_v11  ;;  %v7247_v34 = vpop.f32.mrb[55].mxu0  ;;  %v7317_v0 = vmax.f32 %v7253_v13, 0.0 }
0x117c   : > { %v7248_v12 = vadd.f32 %v13649_v11, %v7247_v34  ;;  %v7315_v1 = vmax.f32 %v7245_v43, 0.0 }
0x117d   : > { %v7318_v31 = vmax.f32 %v7256_v30, 0.0 }
0x117e   : > { %v7316_v40 = vmax.f32 %v7248_v12, 0.0 }
0x117f   : > { %v13715_v54 = vpack.c.bf16 %v7318_v31, %v7317_v0 }
0x1180   : > { %v13717_v27 = vpack.c.bf16 %v7316_v40, %v7315_v1 }
0x1182   : > { %7385 = vrot.lane.b32.xlu0 %v13717_v27, %s11035_s1  ;;  %7363 = vrot.lane.b32.xlu1 %v13717_v27, %s11034_s2 }
0x1186   : > { %7365 = vrot.lane.b32.xlu0 %v13715_v54, %s11034_s2  ;;  %7387 = vrot.lane.b32.xlu1 %v13715_v54, %s11035_s1 }
0x1188   : > { %v7358_v33 = vpop.permute.xlu0 %7357 }
0x1189   : > { %v7356_v48 = vpop.permute.xlu1 %7355  ;;  %v7405_v19 = vsel %vm2237_vm6, %v13663_v37, %v7358_v33 }
0x118a   : > { %v7402_v50 = vsel %vm2237_vm6, 0, %v7356_v48 }
0x118d   : > { %v7380_v49 = vpop.permute.xlu1 %7379 }
0x118e   : > { %v7437_v63 = vsel %vm2262_vm7, %v7402_v50, %v7380_v49 }
0x118f   : > { %9928 = vmatprep.mubr.msk.bf16.mxu1 %vm2354_vm8, %v7437_v63 }
0x1190   : > { %v9906_v6 = vpop.f32.mrb[56].mxu0 }
0x1191   : > { %v7269_v32 = vadd.f32 %v9906_v6, %v13649_v11  ;;  %v7260_v10 = vpop.f32.mrb[57].mxu0 }
0x1192   : > { %v7261_v22 = vadd.f32 %v13649_v11, %v7260_v10  ;;  %v9907_v26 = vpop.f32.mrb[58].mxu0 }
0x1193   : > { %v7272_v47 = vadd.f32 %v9907_v26, %v13649_v11  ;;  %v7263_v16 = vpop.f32.mrb[59].mxu0  ;;  %v7321_v25 = vmax.f32 %v7269_v32, 0.0 }
0x1194   : > { %v7264_v56 = vadd.f32 %v13649_v11, %v7263_v16  ;;  %v7319_v9 = vmax.f32 %v7261_v22, 0.0 }
0x1195   : > { %v7322_v58 = vmax.f32 %v7272_v47, 0.0 }
0x1196   : > { %v7320_v8 = vmax.f32 %v7264_v56, 0.0 }
0x1197   : > { %v13734_v4 = vpack.c.bf16 %v7322_v58, %v7321_v25 }
0x1198   : > { %v13736_v60 = vpack.c.bf16 %v7320_v8, %v7319_v9 }
0x119a   : > { %7389 = vrot.lane.b32.xlu0 %v13736_v60, %s11035_s1  ;;  %7367 = vrot.lane.b32.xlu1 %v13736_v60, %s11034_s2 }
0x119e   : > { %7369 = vrot.lane.b32.xlu0 %v13734_v4, %s11034_s2  ;;  %7391 = vrot.lane.b32.xlu1 %v13734_v4, %s11035_s1 }
0x11a1   : > { %v7382_v17 = vpop.permute.xlu0 %7381  ;;  %v7360_v23 = vpop.permute.xlu1 %7359 }
0x11a2   : > { %v7439_v38 = vsel %vm2262_vm7, %v7405_v19, %v7382_v17  ;;  %v7408_v15 = vsel %vm2237_vm6, %v13661_v41, %v7360_v23 }
0x11a3   : > { %9929 = vmatmul.mubr.msk.bf16.vlgmr.msra.gmra.mrb[44].mxu1 %vm2354_vm8, %v7439_v38 }
0x11a5   : > { %v7384_v21 = vpop.permute.xlu1 %7383  ;;  %v7362_v53 = vpop.permute.xlu0 %7361 }
0x11a6   : > { %v7441_v2 = vsel %vm2262_vm7, %v7408_v15, %v7384_v21  ;;  %v7411_v61 = vsel %vm2237_vm6, %v13701_v57, %v7362_v53 }
0x11a7   : > { %9932 = vmatprep.mubr.msk.bf16.mxu1 %vm2354_vm8, %v7441_v2 }
0x11a8   : > { %v9910_v29 = vpop.f32.mrb[60].mxu0 }
0x11a9   : > { %v7285_v28 = vadd.f32 %v9910_v29, %v13649_v11  ;;  %v7276_v3 = vpop.f32.mrb[61].mxu0 }
0x11aa   : > { %v7277_v37 = vadd.f32 %v13649_v11, %v7276_v3  ;;  %v9911_v52 = vpop.f32.mrb[62].mxu0 }
0x11ab   : > { %v7288_v62 = vadd.f32 %v9911_v52, %v13649_v11  ;;  %v7279_v59 = vpop.f32.mrb[63].mxu0  ;;  %v7325_v5 = vmax.f32 %v7285_v28, 0.0 }
0x11ac   : > { %v7280_v42 = vadd.f32 %v13649_v11, %v7279_v59  ;;  %v7323_v41 = vmax.f32 %v7277_v37, 0.0 }
0x11ad   : > { %v7326_v36 = vmax.f32 %v7288_v62, 0.0 }
0x11ae   : > { %v7324_v45 = vmax.f32 %v7280_v42, 0.0 }
0x11af   : > { %v7340_v44 = vpack.c.bf16 %v7326_v36, %v7325_v5 }
0x11b0   : > { %v7339_v14 = vpack.c.bf16 %v7324_v45, %v7323_v41 }
0x11b2   : > { %7393 = vrot.lane.b32.xlu0 %v7339_v14, %s11035_s1  ;;  %7371 = vrot.lane.b32.xlu1 %v7339_v14, %s11034_s2 }
0x11b6   : > { %7373 = vrot.lane.b32.xlu0 %v7340_v44, %s11034_s2  ;;  %7395 = vrot.lane.b32.xlu1 %v7340_v44, %s11035_s1 }
0x11f4   : > { %v9914_v20 = vpop.f32.mrb[64].mxu0  ;;  %v7386_v35 = vpop.permute.xlu0 %7385 }
0x11f5   : > { %v7301_v18 = vadd.f32 %v9914_v20, %v13649_v11  ;;  %v7443_v51 = vsel %vm2262_vm7, %v7411_v61, %v7386_v35  ;;  %v7364_v13 = vpop.permute.xlu1 %7363  ;;  %v7292_v24 = vpop.f32.mrb[65].mxu0 }
0x11f6   : > { %v7293_v43 = vadd.f32 %v13649_v11, %v7292_v24  ;;  %v9915_v7 = vpop.f32.mrb[66].mxu0  ;;  %9933 = vmatmul.mubr.msk.bf16.gmra.mrb[48].mxu1 %vm2354_vm8, %v7443_v51  ;;  %v7414_v57 = vsel %vm2237_vm6, %v13699_v55, %v7364_v13 }
0x11f7   : > { %v7304_v30 = vadd.f32 %v9915_v7, %v13649_v11  ;;  %v7295_v34 = vpop.f32.mrb[67].mxu0  ;;  %v7329_v0 = vmax.f32 %v7301_v18, 0.0 }
0x11f8   : > { %v7296_v12 = vadd.f32 %v13649_v11, %v7295_v34  ;;  %v7327_v40 = vmax.f32 %v7293_v43, 0.0  ;;  %v7366_v11 = vpop.permute.xlu0 %7365 }
0x11f9   : > { %v7330_v31 = vmax.f32 %v7304_v30, 0.0  ;;  %v7388_v1 = vpop.permute.xlu1 %7387  ;;  %v7417_v55 = vsel %vm2237_vm6, %v13717_v27, %v7366_v11 }
0x11fa   : > { %v7328_v48 = vmax.f32 %v7296_v12, 0.0  ;;  %v7445_v50 = vsel %vm2262_vm7, %v7414_v57, %v7388_v1 }
0x11fb   : > { %v7342_v49 = vpack.c.bf16 %v7330_v31, %v7329_v0  ;;  %9936 = vmatprep.mubr.msk.bf16.mxu1 %vm2354_vm8, %v7445_v50 }
0x11fc   : > { %v7341_v63 = vpack.c.bf16 %v7328_v48, %v7327_v40 }
0x11fe   : > { %7397 = vrot.lane.b32.xlu0 %v7341_v63, %s11035_s1  ;;  %7375 = vrot.lane.b32.xlu1 %v7341_v63, %s11034_s2 }
0x1202   : > { %7377 = vrot.lane.b32.xlu0 %v7342_v49, %s11034_s2  ;;  %7399 = vrot.lane.b32.xlu1 %v7342_v49, %s11035_s1 }
0x120c   : > { %v7390_v6 = vpop.permute.xlu0 %7389  ;;  %v7368_v32 = vpop.permute.xlu1 %7367 }
0x120d   : > { %v7447_v10 = vsel %vm2262_vm7, %v7417_v55, %v7390_v6  ;;  %v7420_v22 = vsel %vm2237_vm6, %v13715_v54, %v7368_v32 }
0x120e   : > { %9937 = vmatmul.mubr.msk.bf16.gmra.mrb[52].mxu1 %vm2354_vm8, %v7447_v10 }
0x1210   : > { %v7392_v26 = vpop.permute.xlu1 %7391  ;;  %v7370_v16 = vpop.permute.xlu0 %7369 }
0x1211   : > { %v7449_v47 = vsel %vm2262_vm7, %v7420_v22, %v7392_v26  ;;  %v7423_v56 = vsel %vm2237_vm6, %v13736_v60, %v7370_v16 }
0x1212   : > { %9940 = vmatprep.mubr.msk.bf16.mxu1 %vm2354_vm8, %v7449_v47 }
0x1224   : > { %v7394_v25 = vpop.permute.xlu0 %7393  ;;  %v7372_v27 = vpop.permute.xlu1 %7371 }
0x1225   : > { %v7451_v58 = vsel %vm2262_vm7, %v7423_v56, %v7394_v25  ;;  %v7426_v9 = vsel %vm2237_vm6, %v13734_v4, %v7372_v27  ;;  %v13801_v4 = vld [vmem:[%s14095_s19] ss:$0 sm:$0xff] }
0x1226   : > { %9941 = vmatmul.mubr.msk.bf16.gmra.mrb[56].mxu1 %vm2354_vm8, %v7451_v58 }
0x1228   : > { %v7396_v8 = vpop.permute.xlu1 %7395  ;;  %v7374_v33 = vpop.permute.xlu0 %7373 }
0x1229   : > { %v7453_v54 = vsel %vm2262_vm7, %v7426_v9, %v7396_v8  ;;  %v7429_v19 = vsel %vm2237_vm6, %v7339_v14, %v7374_v33 }
0x122a   : > { %9944 = vmatprep.mubr.msk.bf16.mxu1 %vm2354_vm8, %v7453_v54 }
0x1270   : > { %v7398_v17 = vpop.permute.xlu0 %7397  ;;  %v7376_v23 = vpop.permute.xlu1 %7375 }
0x1271   : > { %v7455_v60 = vsel %vm2262_vm7, %v7429_v19, %v7398_v17  ;;  %v7432_v38 = vsel %vm2237_vm6, %v7340_v44, %v7376_v23 }
0x1272   : > { %9945 = vmatmul.mubr.msk.bf16.gmra.mrb[60].mxu1 %vm2354_vm8, %v7455_v60 }
0x1274   : > { %v7378_v15 = vpop.permute.xlu0 %7377  ;;  %v7400_v21 = vpop.permute.xlu1 %7399 }
0x1275   : > { %v7457_v2 = vsel %vm2262_vm7, %v7432_v38, %v7400_v21  ;;  %v7435_v29 = vsel %vm2237_vm6, %v7341_v63, %v7378_v15 }
0x1276   : > { %v9930_v28 = vpop.f32.mrb[44].mxu1  ;;  %9948 = vmatprep.mubr.msk.bf16.mxu1 %vm2354_vm8, %v7457_v2  ;;  %v7458_v62 = vsel %vm2262_vm7, %v7435_v29, %v11919_v39 }
0x1277   : > { %v13807_v3 = vadd.f32 %v9930_v28, %v13801_v4  ;;  %v13809_v37 = vpop.f32.mrb[45].mxu1 }
0x1278   : > { %v9931_v52 = vpop.f32.mrb[46].mxu1 }
0x1279   : > { %v8752_v59 = vmul.f32 -1.442695, %v13807_v3  ;;  %v13815_v42 = vadd.f32 %v9931_v52, %v13801_v4  ;;  %v13817_v5 = vpop.f32.mrb[47].mxu1 }
0x127a   : > { %9949 = vmatmul.mubr.msk.bf16.gmra.mrb[64].mxu1 %vm2354_vm8, %v7458_v62 }
0x127b   : > { %10918 = vpow2.f32 %v8752_v59  ;;  %v8753_v36 = vmul.f32 -1.442695, %v13815_v42  ;;  %9968 = vmatprep.mubr.msk.bf16.mxu1 %vm11032_vm4, %v11031_v46 }
0x127d   : > { %10920 = vpow2.f32 %v8753_v36 }
0x1285   : > { %v10919_v41 = vpop.eup %10918 }
0x1286   : > { %v7741_v45 = vadd.f32 1.0, %v10919_v41 }
0x1287   : > { %v10921_v44 = vpop.eup %10920 }
0x1288   : > { %10922 = vrcp.f32 %v7741_v45  ;;  %v7742_v39 = vadd.f32 1.0, %v10921_v44 }
0x128a   : > { %10924 = vrcp.f32 %v7742_v39 }
0x1292   : > { %v10923_v14 = vpop.eup %10922 }
0x1293   : > { %7839 = vrot.lane.b32.xlu0 %v10923_v14, %s11033_s29 }
0x1294   : > { %v10925_v53 = vpop.eup %10924 }
0x1295   : > { %7841 = vrot.lane.b32.xlu1 %v10925_v53, %s11033_s29 }
0x12c9   : > { %v9934_v61 = vpop.f32.mrb[48].mxu1 }
0x12ca   : > { %v13826_v20 = vadd.f32 %v9934_v61, %v13801_v4  ;;  %v7588_v35 = vpop.f32.mrb[49].mxu1 }
0x12cb   : > { %v13829_v18 = vadd.f32 %v13801_v4, %v7588_v35  ;;  %v9935_v51 = vpop.f32.mrb[50].mxu1 }
0x12cc   : > { %v8756_v13 = vmul.f32 -1.442695, %v13826_v20  ;;  %v13833_v24 = vadd.f32 %v9935_v51, %v13801_v4  ;;  %v7591_v43 = vpop.f32.mrb[51].mxu1 }
0x12cd   : > { %v8754_v7 = vmul.f32 -1.442695, %v13829_v18  ;;  %v13837_v30 = vadd.f32 %v13801_v4, %v7591_v43 }
0x12ce   : > { %10926 = vpow2.f32 %v8756_v13  ;;  %v8757_v34 = vmul.f32 -1.442695, %v13833_v24 }
0x12cf   : > { %10928 = vpow2.f32 %v8754_v7  ;;  %v8755_v12 = vmul.f32 -1.442695, %v13837_v30 }
0x12d0   : > { %10930 = vpow2.f32 %v8757_v34 }
0x12d1   : > { %10932 = vpow2.f32 %v8755_v12 }
0x12d8   : > { %v10927_v0 = vpop.eup %10926 }
0x12d9   : > { %v10929_v57 = vpop.eup %10928  ;;  %v7745_v31 = vadd.f32 1.0, %v10927_v0 }
0x12da   : > { %v10931_v1 = vpop.eup %10930  ;;  %v7743_v48 = vadd.f32 1.0, %v10929_v57 }
0x12db   : > { %v10933_v40 = vpop.eup %10932  ;;  %10934 = vrcp.f32 %v7745_v31  ;;  %v7746_v50 = vadd.f32 1.0, %v10931_v1 }
0x12dc   : > { %v7744_v49 = vadd.f32 1.0, %v10933_v40 }
0x12dd   : > { %10936 = vrcp.f32 %v7746_v50 }
0x12de   : > { %10938 = vrcp.f32 %v7743_v48 }
0x12df   : > { %10940 = vrcp.f32 %v7744_v49 }
0x12e1   : > { %v9938_v63 = vpop.f32.mrb[52].mxu1 }
0x12e2   : > { %v13842_v11 = vadd.f32 %v9938_v63, %v13801_v4  ;;  %v13844_v55 = vpop.f32.mrb[53].mxu1 }
0x12e3   : > { %v9939_v6 = vpop.f32.mrb[54].mxu1  ;;  %v13889_v48 = vadd.f32 %v13801_v4, %v13844_v55 }
0x12e4   : > { %v8760_v32 = vmul.f32 -1.442695, %v13842_v11  ;;  %v13848_v10 = vadd.f32 %v9939_v6, %v13801_v4  ;;  %v13850_v22 = vpop.f32.mrb[55].mxu1 }
0x12e5   : > { %v10935_v26 = vpop.eup %10934 }
0x12e6   : > { %10942 = vpow2.f32 %v8760_v32  ;;  %v8761_v47 = vmul.f32 -1.442695, %v13848_v10  ;;  %7847 = vrot.lane.b32.xlu0 %v10935_v26, %s11033_s29  ;;  %v13899_v32 = vadd.f32 %v13801_v4, %v13850_v22  ;;  %v13913_v22 = vadd.f32 %v13801_v4, %v13809_v37 }
0x12e7   : > { %v10937_v16 = vpop.eup %10936 }
0x12e8   : > { %10944 = vpow2.f32 %v8761_v47  ;;  %7849 = vrot.lane.b32.xlu1 %v10937_v16, %s11033_s29  ;;  %v10939_v56 = vpop.eup %10938 }
0x12e9   : > { %v10941_v25 = vpop.eup %10940 }
0x12ea   : > { %7843 = vrot.lane.b32.xlu0 %v10939_v56, %s11033_s29 }
0x12ec   : > { %7845 = vrot.lane.b32.xlu1 %v10941_v25, %s11033_s29  ;;  %v8758_v25 = vmul.f32 -1.442695, %v13889_v48 }
0x12f0   : > { %v10943_v27 = vpop.eup %10942 }
0x12f1   : > { %v7749_v58 = vadd.f32 1.0, %v10943_v27 }
0x12f2   : > { %v10945_v9 = vpop.eup %10944 }
0x12f3   : > { %10946 = vrcp.f32 %v7749_v58  ;;  %v7750_v8 = vadd.f32 1.0, %v10945_v9 }
0x12f5   : > { %10948 = vrcp.f32 %v7750_v8  ;;  %v8759_v8 = vmul.f32 -1.442695, %v13899_v32 }
0x12f9   : > { %v9942_v54 = vpop.f32.mrb[56].mxu1 }
0x12fa   : > { %v13858_v33 = vadd.f32 %v9942_v54, %v13801_v4  ;;  %v7620_v19 = vpop.f32.mrb[57].mxu1  ;;  %v13919_v54 = vadd.f32 %v13801_v4, %v13817_v5 }
0x12fb   : > { %v13861_v17 = vadd.f32 %v13801_v4, %v7620_v19  ;;  %v9943_v23 = vpop.f32.mrb[58].mxu1 }
0x12fc   : > { %v8764_v60 = vmul.f32 -1.442695, %v13858_v33  ;;  %v13865_v38 = vadd.f32 %v9943_v23, %v13801_v4  ;;  %v7623_v15 = vpop.f32.mrb[59].mxu1 }
0x12fd   : > { %v10947_v21 = vpop.eup %10946  ;;  %v8762_v2 = vmul.f32 -1.442695, %v13861_v17  ;;  %v13869_v29 = vadd.f32 %v13801_v4, %v7623_v15 }
0x12fe   : > { %10950 = vpow2.f32 %v8764_v60  ;;  %v8765_v28 = vmul.f32 -1.442695, %v13865_v38  ;;  %7855 = vrot.lane.b32.xlu0 %v10947_v21, %s11033_s29  ;;  %v8750_v60 = vmul.f32 -1.442695, %v13913_v22  ;;  %v8751_v21 = vmul.f32 -1.442695, %v13919_v54 }
0x12ff   : > { %v10949_v52 = vpop.eup %10948  ;;  %10952 = vpow2.f32 %v8762_v2  ;;  %v8763_v62 = vmul.f32 -1.442695, %v13869_v29 }
0x1300   : > { %10954 = vpow2.f32 %v8765_v28  ;;  %7857 = vrot.lane.b32.xlu1 %v10949_v52, %s11033_s29 }
0x1301   : > { %10956 = vpow2.f32 %v8763_v62 }
0x1308   : > { %v10951_v59 = vpop.eup %10950 }
0x1309   : > { %v10953_v36 = vpop.eup %10952  ;;  %v7753_v41 = vadd.f32 1.0, %v10951_v59 }
0x130a   : > { %v10955_v45 = vpop.eup %10954  ;;  %v7751_v39 = vadd.f32 1.0, %v10953_v36 }
0x130b   : > { %v10957_v44 = vpop.eup %10956  ;;  %10958 = vrcp.f32 %v7753_v41  ;;  %v7754_v14 = vadd.f32 1.0, %v10955_v45 }
0x130c   : > { %v7752_v53 = vadd.f32 1.0, %v10957_v44 }
0x130d   : > { %10960 = vrcp.f32 %v7754_v14 }
0x130e   : > { %10962 = vrcp.f32 %v7751_v39 }
0x130f   : > { %10964 = vrcp.f32 %v7752_v53 }
0x1315   : > { %v10959_v61 = vpop.eup %10958 }
0x1316   : > { %7863 = vrot.lane.b32.xlu0 %v10959_v61, %s11033_s29 }
0x1317   : > { %v10961_v35 = vpop.eup %10960 }
0x1318   : > { %7865 = vrot.lane.b32.xlu1 %v10961_v35, %s11033_s29  ;;  %v10963_v51 = vpop.eup %10962 }
0x1319   : > { %v10965_v13 = vpop.eup %10964 }
0x131a   : > { %7859 = vrot.lane.b32.xlu0 %v10963_v51, %s11033_s29 }
0x131c   : > { %7861 = vrot.lane.b32.xlu1 %v10965_v13, %s11033_s29 }
0x1345   : > { %v9946_v43 = vpop.f32.mrb[60].mxu1 }
0x1346   : > { %v13880_v7 = vadd.f32 %v9946_v43, %v13801_v4  ;;  %v7636_v34 = vpop.f32.mrb[61].mxu1 }
0x1347   : > { %v9947_v12 = vpop.f32.mrb[62].mxu1  ;;  %v13927_v2 = vadd.f32 %v13801_v4, %v7636_v34 }
0x1348   : > { %v8768_v0 = vmul.f32 -1.442695, %v13880_v7  ;;  %v13884_v57 = vadd.f32 %v9947_v12, %v13801_v4  ;;  %v7639_v31 = vpop.f32.mrb[63].mxu1  ;;  %v7842_v12 = vpop.permute.xlu1 %7841 }
0x1349   : > { %v13923_v15 = vadd.f32 %v13801_v4, %v7639_v31  ;;  %v8766_v62 = vmul.f32 -1.442695, %v13927_v2 }
0x134a   : > { %10966 = vpow2.f32 %v8768_v0  ;;  %v8769_v1 = vmul.f32 -1.442695, %v13884_v57  ;;  %v10414_v0 = vld [vmem:[%s14096_s20 + $0x40] sm:$0xff]  }
0x134b   : > { %v8767_v5 = vmul.f32 -1.442695, %v13923_v15  ;;  %9103 = vmatprep.subr.bf16.mxu0 %v10414_v0 }
0x134c   : > { %10968 = vpow2.f32 %v8769_v1  ;;  %v10415_v1 = vld [vmem:[%s14096_s20] sm:$0xff]  }
0x134d   : > { %v9950_v40 = vpop.f32.mrb[64].mxu1  ;;  %9104 = vmatpush3.bf16.msra.mxu0 %v10415_v1 }
0x134e   : > { %v13892_v50 = vadd.f32 %v9950_v40, %v13801_v4  ;;  %v7652_v49 = vpop.f32.mrb[65].mxu1 }
0x134f   : > { %v13895_v63 = vadd.f32 %v13801_v4, %v7652_v49  ;;  %v9951_v6 = vpop.f32.mrb[66].mxu1 }
0x1350   : > { %v8772_v26 = vmul.f32 -1.442695, %v13892_v50  ;;  %v13903_v47 = vadd.f32 %v9951_v6, %v13801_v4  ;;  %v7655_v16 = vpop.f32.mrb[67].mxu1  ;;  %v7840_v6 = vpop.permute.xlu0 %7839 }
0x1351   : > { %v8770_v55 = vmul.f32 -1.442695, %v13895_v63  ;;  %v13907_v56 = vadd.f32 %v13801_v4, %v7655_v16 }
0x1352   : > { %10970 = vpow2.f32 %v8772_v26  ;;  %v8773_v27 = vmul.f32 -1.442695, %v13903_v47 }
0x1353   : > { %10972 = vpow2.f32 %v8770_v55  ;;  %v8771_v58 = vmul.f32 -1.442695, %v13907_v56 }
0x1354   : > { %v10967_v9 = vpop.eup %10966  ;;  %10974 = vpow2.f32 %v8773_v27  ;;  %v10416_v27 = vld [vmem:[%s14096_s20 + $0x48] sm:$0xff]  }
0x1355   : > { %v7757_v19 = vadd.f32 1.0, %v10967_v9  ;;  %10976 = vpow2.f32 %v8771_v58  ;;  %v10417_v58 = vld [vmem:[%s14096_s20 + $0x8] sm:$0xff]   ;;  %9105 = vmatprep.subr.bf16.mxu0 %v10416_v27 }
0x1356   : > { %v10969_v23 = vpop.eup %10968  ;;  %10978 = vpow2.f32 %v8758_v25  ;;  %9106 = vmatpush3.bf16.msra.mxu0 %v10417_v58 }
0x1357   : > { %10980 = vrcp.f32 %v7757_v19  ;;  %v7758_v37 = vadd.f32 1.0, %v10969_v23 }
0x1358   : > { %10982 = vpow2.f32 %v8759_v8  ;;  %v7848_v19 = vpop.permute.xlu0 %7847 }
0x1359   : > { %10984 = vrcp.f32 %v7758_v37  ;;  %v10419_v37 = vld [vmem:[%s14096_s20 + $0x10] sm:$0xff]  }
0x135a   : > { %10986 = vpow2.f32 %v8750_v60  ;;  %v7850_v25 = vpop.permute.xlu1 %7849  ;;  %v10418_v60 = vld [vmem:[%s14096_s20 + $0x50] sm:$0xff]  }
0x135b   : > { %10988 = vpow2.f32 %v8751_v21  ;;  %9107 = vmatprep.subr.bf16.mxu0 %v10418_v60  ;;  %v7914_v1 = vmul.f32 %v7850_v25, %v13833_v24  ;;  %v10430_v24 = vld [vmem:[%s14096_s20 + $0x80] sm:$0xff]  }
0x135c   : > { %v10971_v28 = vpop.eup %10970  ;;  %10990 = vpow2.f32 %v8767_v5  ;;  %9108 = vmatpush3.bf16.msra.mxu0 %v10419_v37  ;;  %9953 = vmatpush3.bf16.msra.mxu1 %v10430_v24 }
0x135d   : > { %v10973_v52 = vpop.eup %10972  ;;  %v7761_v44 = vadd.f32 1.0, %v10971_v28  ;;  %9954 = vmatprep.subr.bf16.mxu1 %v11031_v46 }
0x135e   : > { %v10975_v59 = vpop.eup %10974  ;;  %v7759_v36 = vadd.f32 1.0, %v10973_v52  ;;  %v7846_v5 = vpop.permute.xlu1 %7845 }
0x135f   : > { %v10977_v41 = vpop.eup %10976  ;;  %v7762_v53 = vadd.f32 1.0, %v10975_v59  ;;  %v7844_v52 = vpop.permute.xlu0 %7843  ;;  %v10421_v59 = vld [vmem:[%s14096_s20 + $0x18] sm:$0xff]  }
0x1360   : > { %v10979_v45 = vpop.eup %10978  ;;  %10992 = vrcp.f32 %v7759_v36  ;;  %v7760_v39 = vadd.f32 1.0, %v10977_v41  ;;  %v7911_v0 = vmul.f32 %v7844_v52, %v13829_v18  ;;  %v10429_v18 = vld [vmem:[%s14096_s20 + $0x38] sm:$0xff]  }
0x1361   : > { %v10981_v14 = vpop.eup %10980  ;;  %10994 = vpow2.f32 %v8766_v62  ;;  %v7747_v35 = vadd.f32 1.0, %v10979_v45  ;;  %v10420_v62 = vld [vmem:[%s14096_s20 + $0x58] sm:$0xff]  }
0x1362   : > { %v10983_v4 = vpop.eup %10982  ;;  %10996 = vrcp.f32 %v7760_v39  ;;  %7871 = vrot.lane.b32.xlu0 %v10981_v14, %s11033_s29  ;;  %9109 = vmatprep.subr.bf16.mxu0 %v10420_v62  ;;  %v10422_v39 = vld [vmem:[%s14096_s20 + $0x60] sm:$0xff]  }
0x1363   : > { %v10985_v61 = vpop.eup %10984  ;;  %10998 = vrcp.f32 %v7761_v44  ;;  %v7748_v13 = vadd.f32 1.0, %v10983_v4  ;;  %9110 = vmatpush3.bf16.msra.mxu0 %v10421_v59  ;;  %v10423_v14 = vld [vmem:[%s14096_s20 + $0x20] sm:$0xff]  }
0x1364   : > { %7873 = vrot.lane.b32.xlu1 %v10985_v61, %s11033_s29  ;;  %v10987_v51 = vpop.eup %10986  ;;  %11000 = vrcp.f32 %v7762_v53  ;;  %9111 = vmatprep.subr.bf16.mxu0 %v10422_v39  ;;  %v7910_v61 = vmul.f32 %v7842_v12, %v13815_v42  ;;  %v7909_v42 = vmul.f32 %v7840_v6, %v13807_v3  ;;  %v7912_v12 = vmul.f32 %v7846_v5, %v13837_v30  ;;  %v10428_v3 = vld [vmem:[%s14096_s20 + $0x78] sm:$0xff]  }
0x1365   : > { %v10989_v43 = vpop.eup %10988  ;;  %v7739_v34 = vadd.f32 1.0, %v10987_v51  ;;  %11002 = vrcp.f32 %v7747_v35  ;;  %v7913_v30 = vmul.f32 %v7848_v19, %v13826_v20  ;;  %v10433_v19 = vld [vmem:[%s14096_s20 + $0x98] sm:$0xff]  }
0x1366   : > { %v10991_v31 = vpop.eup %10990  ;;  %v7740_v49 = vadd.f32 1.0, %v10989_v43  ;;  %11004 = vrcp.f32 %v7748_v13  ;;  %v10424_v13 = vld [vmem:[%s14096_s20 + $0x68] sm:$0xff]   ;;  %v10426_v43 = vld [vmem:[%s14096_s20 + $0x70] sm:$0xff]  }
0x1367   : > { %11006 = vrcp.f32 %v7739_v34  ;;  %v7756_v55 = vadd.f32 1.0, %v10991_v31  ;;  %9112 = vmatpush3.bf16.msra.mxu0 %v10423_v14  ;;  %v10427_v31 = vld [vmem:[%s14096_s20 + $0x30] sm:$0xff]  }
0x1368   : > { %11008 = vrcp.f32 %v7740_v49  ;;  %9113 = vmatprep.subr.bf16.mxu0 %v10424_v13  ;;  %v7934_v49 = vpack.c.bf16 %v7914_v1, %v7913_v30 }
0x1369   : > { %11010 = vrcp.f32 %v7756_v55  ;;  %v10431_v55 = vld [vmem:[%s14096_s20 + $0x88] sm:$0xff]  }
0x136a   : > { %v10993_v40 = vpop.eup %10992  ;;  %9955 = vmatpush3.bf16.msra.mxu1 %v10431_v55 }
0x136b   : > { %v10995_v26 = vpop.eup %10994  ;;  %7875 = vrot.lane.b32.xlu0 %v10993_v40, %s11033_s29  ;;  %v7933_v40 = vpack.c.bf16 %v7912_v12, %v7911_v0  ;;  %9956 = vmatprep.subr.bf16.mxu1 %v11031_v46 }
0x136c   : > { %v10997_v16 = vpop.eup %10996  ;;  %v7755_v8 = vadd.f32 1.0, %v10995_v26 }
0x136d   : > { %7877 = vrot.lane.b32.xlu1 %v10997_v16, %s11033_s29  ;;  %v10999_v9 = vpop.eup %10998 }
0x136e   : > { %v11001_v23 = vpop.eup %11000  ;;  %11012 = vrcp.f32 %v7755_v8 }
0x136f   : > { %7879 = vrot.lane.b32.xlu0 %v10999_v9, %s11033_s29  ;;  %v11003_v21 = vpop.eup %11002 }
0x1370   : > { %v11005_v28 = vpop.eup %11004  ;;  %v7856_v44 = vpop.permute.xlu0 %7855 }
0x1371   : > { %7881 = vrot.lane.b32.xlu1 %v11001_v23, %s11033_s29  ;;  %v11007_v36 = vpop.eup %11006  ;;  %v7917_v35 = vmul.f32 %v7856_v44, %v13842_v11  ;;  %v7932_v11 = vpack.c.bf16 %v7910_v61, %v7909_v42  ;;  %v10436_v23 = vld [vmem:[%s14096_s20 + $0xb0] sm:$0xff]  }
0x1372   : > { %v7858_v41 = vpop.permute.xlu1 %7857  ;;  %v11009_v45 = vpop.eup %11008 }
0x1373   : > { %7851 = vrot.lane.b32.xlu0 %v11003_v21, %s11033_s29  ;;  %v7918_v4 = vmul.f32 %v7858_v41, %v13848_v10  ;;  %v11011_v53 = vpop.eup %11010  ;;  %v10425_v10 = vld [vmem:[%s14096_s20 + $0x28] sm:$0xff]  }
0x1374   : > { %9114 = vmatpush3.bf16.msra.mxu0 %v10425_v10 }
0x1375   : > { %7853 = vrot.lane.b32.xlu1 %v11005_v28, %s11033_s29  ;;  %v7936_v34 = vpack.c.bf16 %v7918_v4, %v7917_v35  ;;  %9115 = vmatprep.subr.bf16.mxu0 %v10426_v43  ;;  %v10437_v28 = vld [vmem:[%s14096_s20 + $0xb8] sm:$0xff]  }
0x1377   : > { %7835 = vrot.lane.b32.xlu0 %v11007_v36, %s11033_s29 }
0x1378   : > { %v11013_v51 = vpop.eup %11012  ;;  %9116 = vmatpush3.bf16.msra.mxu0 %v10427_v31 }
0x1379   : > { %7837 = vrot.lane.b32.xlu1 %v11009_v45, %s11033_s29  ;;  %9117 = vmatprep.subr.bf16.mxu0 %v10428_v3 }
0x137b   : > { %7869 = vrot.lane.b32.xlu0 %v11011_v53, %s11033_s29 }
0x137c   : > { %9118 = vmatpush3.bf16.msra.mxu0 %v10429_v18 }
0x137d   : > { %7867 = vrot.lane.b32.xlu1 %v11013_v51, %s11033_s29 }
0x137f   : > { %7953 = vrot.lane.b32.xlu0 %v7936_v34, %s11034_s2 }
0x1381   : > { %7944 = vrot.lane.b32.xlu1 %v7932_v11, %s11034_s2 }
0x1385   : > { %7947 = vrot.lane.b32.xlu1 %v7933_v40, %s11035_s1 }
0x1388   : > { %v7864_v6 = vpop.permute.xlu0 %7863 }
0x1389   : > { %7950 = vrot.lane.b32.xlu1 %v7934_v49, %s11033_s29  ;;  %v7921_v16 = vmul.f32 %v7864_v6, %v13858_v33  ;;  %v10432_v33 = vld [vmem:[%s14096_s20 + $0x90] sm:$0xff]  }
0x138a   : > { %v7866_v26 = vpop.permute.xlu1 %7865  ;;  %9957 = vmatpush3.bf16.msra.mxu1 %v10432_v33 }
0x138b   : > { %v7922_v20 = vmul.f32 %v7866_v26, %v13865_v38  ;;  %9958 = vmatprep.subr.bf16.mxu1 %v11031_v46 }
0x138c   : > { %v7860_v25 = vpop.permute.xlu0 %7859 }
0x138d   : > { %v7938_v27 = vpack.c.bf16 %v7922_v20, %v7921_v16  ;;  %v7919_v9 = vmul.f32 %v7860_v25, %v13861_v17  ;;  %v10434_v17 = vld [vmem:[%s14096_s20 + $0xa0] sm:$0xff]  }
0x138e   : > { %v7862_v58 = vpop.permute.xlu1 %7861  ;;  %9959 = vmatpush3.bf16.msra.mxu1 %v10433_v19 }
0x138f   : > { %v7920_v8 = vmul.f32 %v7862_v58, %v13869_v29  ;;  %7959 = vrot.lane.b32.xlu0 %v7938_v27, %s11033_s29  ;;  %9960 = vmatprep.subr.bf16.mxu1 %v11031_v46  ;;  %v10435_v29 = vld [vmem:[%s14096_s20 + $0xa8] sm:$0xff]   ;;  %v8774_v58 = vld [vmem:[%s14097_s21] ss:$0 sm:$0xff] }
0x1391   : > { %v7937_v38 = vpack.c.bf16 %v7920_v8, %v7919_v9 }
0x1392   : > { %9961 = vmatpush3.bf16.msra.mxu1 %v10434_v17 }
0x1393   : > { %7956 = vrot.lane.b32.xlu0 %v7937_v38, %s11035_s1  ;;  %9962 = vmatprep.subr.bf16.mxu1 %v11031_v46 }
0x1396   : > { %9963 = vmatpush3.bf16.msra.mxu1 %v10435_v29 }
0x1397   : > { %9964 = vmatprep.subr.bf16.mxu1 %v11031_v46 }
0x139a   : > { %9965 = vmatpush3.bf16.msra.mxu1 %v10436_v23 }
0x139b   : > { %9966 = vmatprep.subr.bf16.mxu1 %v11031_v46 }
0x139e   : > { %9967 = vmatpush3.bf16.msra.mxu1 %v10437_v28 }
0x13d4   : > { %v7872_v60 = vpop.permute.xlu0 %7871 }
0x13d5   : > { %v7925_v21 = vmul.f32 %v7872_v60, %v13880_v7 }
0x13d6   : > { %v7874_v37 = vpop.permute.xlu1 %7873 }
0x13d7   : > { %v7926_v5 = vmul.f32 %v7874_v37, %v13884_v57 }
0x13d9   : > { %v7940_v52 = vpack.c.bf16 %v7926_v5, %v7925_v21 }
0x13db   : > { %7962 = vrot.lane.b32.xlu0 %v7940_v52, %s11034_s2 }
0x13dd   : > { %v7876_v62 = vpop.permute.xlu0 %7875 }
0x13de   : > { %v7927_v36 = vmul.f32 %v7876_v62, %v13895_v63 }
0x13df   : > { %v7878_v59 = vpop.permute.xlu1 %7877 }
0x13e0   : > { %v7928_v41 = vmul.f32 %v7878_v59, %v13907_v56 }
0x13e1   : > { %v7880_v46 = vpop.permute.xlu0 %7879 }
0x13e2   : > { %v7941_v45 = vpack.c.bf16 %v7928_v41, %v7927_v36  ;;  %v7929_v7 = vmul.f32 %v7880_v46, %v13892_v50 }
0x13e3   : > { %v7882_v44 = vpop.permute.xlu1 %7881 }
0x13e4   : > { %v7930_v57 = vmul.f32 %v7882_v44, %v13903_v47  ;;  %7965 = vrot.lane.b32.xlu1 %v7941_v45, %s11035_s1  ;;  %s8801_s1 = sshll.u32 %s14117_s28, 4 }
0x13e5   : > { %v7852_v39 = vpop.permute.xlu0 %7851  ;;  %s683_s24 = scalar_lea.vmem %s14098_s22, %s8801_s1 }
0x13e6   : > { %v7942_v14 = vpack.c.bf16 %v7930_v57, %v7929_v7  ;;  %v7915_v34 = vmul.f32 %v7852_v39, %v13889_v48 }
0x13e7   : > { %v7854_v4 = vpop.permute.xlu1 %7853 }
0x13e8   : > { %7968 = vrot.lane.b32.xlu0 %v7942_v14, %s11033_s29  ;;  %v7916_v47 = vmul.f32 %v7854_v4, %v13899_v32 }
0x13e9   : > { %v7836_v53 = vpop.permute.xlu0 %7835 }
0x13ea   : > { %v7907_v12 = vmul.f32 %v7836_v53, %v13913_v22  ;;  %v7935_v0 = vpack.c.bf16 %v7916_v47, %v7915_v34 }
0x13eb   : > { %v7838_v61 = vpop.permute.xlu1 %7837 }
0x13ec   : > { %v7908_v42 = vmul.f32 %v7838_v61, %v13919_v54 }
0x13ed   : > { %v7870_v35 = vpop.permute.xlu0 %7869 }
0x13ee   : > { %v7924_v56 = vmul.f32 %v7870_v35, %v13923_v15  ;;  %v7931_v31 = vpack.c.bf16 %v7908_v42, %v7907_v12 }
0x13ef   : > { %v7868_v63 = vpop.permute.xlu1 %7867 }
0x13f0   : > { %v7923_v51 = vmul.f32 %v7868_v63, %v13927_v2 }
0x13f1   : > { %v7954_v50 = vpop.permute.xlu0 %7953 }
0x13f2   : > { %v7939_v13 = vpack.c.bf16 %v7924_v56, %v7923_v51  ;;  %v7980_v3 = vsel %vm2237_vm6, %v7935_v0, %v7954_v50 }
0x13f3   : > { %v7945_v10 = vpop.permute.xlu1 %7944 }
0x13f4   : > { %v7972_v2 = vsel %vm2237_vm6, %v7931_v31, %v7945_v10 }
0x13f7   : > { %v7948_v43 = vpop.permute.xlu1 %7947 }
0x13f8   : > { %v7974_v32 = vsel %vm2262_vm7, %v7972_v2, %v7948_v43 }
0x13fb   : > { %v7951_v15 = vpop.permute.xlu1 %7950 }
0x13fc   : > { %v7976_v54 = vsel %vm2354_vm8, %v7974_v32, %v7951_v15 }
0x1401   : > { %v7960_v11 = vpop.permute.xlu0 %7959 }
0x1405   : > { %v7957_v1 = vpop.permute.xlu0 %7956 }
0x1406   : > { %v7982_v40 = vsel %vm2262_vm7, %v7980_v3, %v7957_v1 }
0x1407   : > { %v7984_v30 = vsel %vm2354_vm8, %v7982_v40, %v7960_v11 }
0x1408   : > { %8225 = vmatprep.mubr.bf16.mxu0 %v7984_v30 }
0x1409   : > { %8226 = vmatmul.mubr.bf16.vlgmr.msra.gmra.mrb[68].mxu0 %v7976_v54 }
0x144d   : > { %v7963_v48 = vpop.permute.xlu0 %7962 }
0x144e   : > { %v7988_v18 = vsel %vm2237_vm6, %v7939_v13, %v7963_v48 }
0x1456   : > { %v7966_v22 = vpop.permute.xlu1 %7965 }
0x1457   : > { %v7990_v49 = vsel %vm2262_vm7, %v7988_v18, %v7966_v22 }
0x145a   : > { %v7969_v6 = vpop.permute.xlu0 %7968 }
0x145b   : > { %v7992_v24 = vsel %vm2354_vm8, %v7990_v49, %v7969_v6 }
0x145c   : > { %9969 = vmatmul.mubr.bf16.vlgmr.msra.gmra.mrb[68].mxu1 %v7992_v24 }
0x14dc   : > { %v9119_v26 = vpop.f32.mrb[68].mxu0 }
0x14dd   : > { %v9120_v16 = vpop.f32.mrb[69].mxu0 }
0x14de   : > { %v9121_v20 = vadd.f32 %v9120_v16, %v9119_v26  ;;  %v9122_v55 = vpop.f32.mrb[70].mxu0 }
0x14df   : > { %v9123_v25 = vpop.f32.mrb[71].mxu0 }
0x14e0   : > { %v9124_v27 = vadd.f32 %v9123_v25, %v9122_v55  ;;  %v8228_v9 = vadd.f32 %v9121_v20, %v8774_v58 }
0x14e2   : > { %v8231_v19 = vadd.f32 %v9124_v27, %v8774_v58 }
0x152f   : > { %v8268_v8 = vpop.f32.mrb[68].mxu1 }
0x1530   : > { %v8269_v33 = vadd.f32 %v8268_v8, %v8228_v9  ;;  %v9970_v38 = vpop.f32.mrb[69].mxu1 }
0x1531   : > { %v8271_v17 = vpop.f32.mrb[70].mxu1 }
0x1532   : > { %8275 = vst.msk [vmem:[%s683_s24] sm:$0xff] %vm902_vm3, %v8269_v33  ;;  %v8272_v29 = vadd.f32 %v8271_v17, %v8231_v19  ;;  %v9971_v23 = vpop.f32.mrb[71].mxu1 }
0x1534   : > { %8276 = vst.msk [vmem:[%s683_s24 + $0x8] sm:$0xff] %vm902_vm3, %v8272_v29 }
0x1535 PF: > { %s32_s3 = sadd.s32 1, %s11026_s3  }
0x1536   : > { %p29_p4 = scmp.ge.s32.totalorder %s32_s3, 4  }
0x1538   :  { %31 = sbr.rel (!%p29_p4) target bundleno = 8 (0x8), region = 138 }

</bundles_post_ra>
